<compile_context>
chip_gen: v5e
topology: v5e:2x2
jax: 0.10.0
libtpu: 0.0.40
codegen_flags: <defaults>
</compile_context>

<pallas_src>
import numpy as np

import jax
import jax.numpy as jnp
from jax import lax
from jax.experimental import pallas as pl
from jax.experimental.pallas import tpu as pltpu

# ----------------------------- static geometry ------------------------------
H = W = 32              # input spatial size
CIN = 3                 # input channels
KS = 5                  # conv kernel size
C1 = 6                  # conv1 output channels
WO1 = W - KS + 1        # 28 : conv1 output width/height
C2 = 16                 # conv2 output channels
WO2 = 10                # conv2 output width/height (on the 14x14 pooled grid)
NP2 = 5                 # pool2 output width/height
LIN = 128               # input lanes: W*CIN = 96 padded to 128
L1 = WO1 * C1           # 168 : conv1 output lanes (w_out, c1)
L2 = WO2 * C2           # 160 : conv2 output lanes (w_out, c2)
NH1, NH2, NH3 = 120, 84, 10
LOUT = 128              # output lanes: 10 logits padded to 128 (lane-dense vst)


# ------------------------------ in-kernel helpers ---------------------------
def _rshift(a, s):
    """Circular row shift: out[r, :] = a[(r + s) % m, :].

    INVARIANT (do not break when changing H, the pooling structure, or the
    fc1 feature rows): rows that wrap around the batch tile, or that read
    across an image boundary inside the tile, only ever land in
    dilated-invalid output rows (h >= 28 after conv1, odd h after pool1,
    h odd or > 18 after conv2, h not in {0,4,8,12,16} after pool2).  Those
    rows are never consumed by the pools / fc layers, which is what makes a
    circular shift (roll semantics) safe here.
    """
    if s == 0:
        return a
    return jnp.concatenate([a[s:, :], a[:s, :]], axis=0)


def _lshift(a, s):
    """Circular lane shift: out[:, l] = a[:, (l + s) % n].

    Wrapped lanes only land in dilated-invalid (odd w_out) columns, which are
    never consumed downstream (pool outputs are only read at even w_out and
    the fc1 weight rows for odd w_out are zero)."""
    if s == 0:
        return a
    return jnp.concatenate([a[:, s:], a[:, :s]], axis=1)


# --------------------------------- the kernel -------------------------------
def _lenet_kernel(x_ref, bw1_ref, b1_ref, bw2_ref, b2_ref,
                  a1_ref, c1_ref, a2_ref, c2_ref, a3_ref, c3_ref, o_ref):
    # x: (BT*32, 128) bf16; rows = (image, h), lanes = (w, cin) + 32 zero lanes
    x = x_ref[...]
    m = x.shape[0]

    # ---- conv1 + bias + ReLU: ONE K-stacked MXU matmul (K = 5*128) ----
    x_stk = jnp.concatenate([_rshift(x, kh) for kh in range(KS)], axis=1)
    y1 = jnp.dot(x_stk, bw1_ref[...], preferred_element_type=jnp.float32)
    y1 = jnp.maximum(y1 + b1_ref[...], 0.0)            # (m, 168) f32

    # ---- pool1 (2x2 / 2), kept on the dilated grid (valid at even h / w) ----
    # 2-element max uses shifted neighbours; only valid positions are read
    # later, so wrapped/garbage neighbours never matter.
    t1 = jnp.maximum(y1, _rshift(y1, 1))
    u1 = jnp.maximum(t1, _lshift(t1, C1))              # (m, 168) f32

    # ---- conv2 + bias + ReLU: ONE K-stacked matmul, taps step by 2 rows ----
    u1_stk = jnp.concatenate(
        [_rshift(u1, 2 * kh) for kh in range(KS)], axis=1).astype(jnp.bfloat16)
    y2 = jnp.dot(u1_stk, bw2_ref[...], preferred_element_type=jnp.float32)
    y2 = jnp.maximum(y2 + b2_ref[...], 0.0)            # (m, 160) f32

    # ---- pool2 (2x2 / 2) on the doubly dilated grid ----
    t2 = jnp.maximum(y2, _rshift(y2, 2))
    u2 = jnp.maximum(t2, _lshift(t2, C2))              # (m, 160) f32

    # ---- fc1 as a sum of 5 matmuls, one per valid pool2 row (dilated 4*p) ----
    # a1 rows for invalid (odd w_out) lane groups are zero, so the (finite)
    # garbage lanes of the dilated pool2 output drop out on the MXU.
    bt = m // H
    m3 = u2.reshape(bt, H, L2)                         # (BT, 32, 160)
    acc = jnp.zeros((bt, NH1), jnp.float32)
    for p in range(NP2):
        rowp = m3[:, 4 * p, :].astype(jnp.bfloat16)    # (BT, 160)
        acc = acc + jnp.dot(rowp, a1_ref[p],
                            preferred_element_type=jnp.float32)
    h1 = jnp.maximum(acc + c1_ref[...], 0.0)

    # ---- fc2 -> ReLU -> fc3 (fc3 padded to 128 lanes: lane-dense store) ----
    h2 = jnp.maximum(
        jnp.dot(h1.astype(jnp.bfloat16), a2_ref[...],
                preferred_element_type=jnp.float32) + c2_ref[...], 0.0)
    out = jnp.dot(h2.astype(jnp.bfloat16), a3_ref[...],
                  preferred_element_type=jnp.float32) + c3_ref[...]
    o_ref[...] = out.astype(o_ref.dtype)               # (BT, 128) unmasked vst


# ------------------------------- forward wrapper ----------------------------
def _pick_bt(batch):
    """Batch tile: as large as 32 while keeping >=2 grid steps when possible
    (per-step overhead amortization; >=2 'parallel' steps for v7x megacore)."""
    if batch >= 64:
        return 32
    if batch >= 32:
        return 16
    return 8


def net_forward(params, x):
    """x: (B, 3, 32, 32) f32 NCHW -> (B, 10) f32 logits."""
    b = x.shape[0]
    bt = _pick_bt(b)
    bpad = ((b + bt - 1) // bt) * bt

    # Single fused relayout under jit (transpose+pad+reshape+lane-pad+cast).
    # Production callers can feed NHWC/bf16 directly and skip this entirely.
    xt = jnp.transpose(x, (0, 2, 3, 1))                # NCHW -> NHWC
    if bpad != b:
        xt = jnp.pad(xt, ((0, bpad - b), (0, 0), (0, 0), (0, 0)))
    x2d = xt.reshape(bpad * H, W * CIN)
    x2d = jnp.pad(x2d, ((0, 0), (0, LIN - W * CIN))).astype(jnp.bfloat16)

    grid = (bpad // bt,)
    m = bt * H
    flops = 2 * grid[0] * (m * (KS * LIN) * L1 + m * (KS * L1) * L2
                           + bt * (NP2 * L2 * NH1 + NH1 * NH2 + NH2 * LOUT))
    bytes_accessed = int(
        x2d.size * 2 + bpad * LOUT * 4
        + sum(int(np.prod(params[k].shape)) * params[k].dtype.itemsize
              for k in params))

    out = pl.pallas_call(
        _lenet_kernel,
        out_shape=jax.ShapeDtypeStruct((bpad, LOUT), jnp.float32),
        grid_spec=pltpu.PrefetchScalarGridSpec(
            num_scalar_prefetch=0,
            grid=grid,
            in_specs=[
                pl.BlockSpec((m, LIN), lambda i: (i, 0)),
                pl.BlockSpec((KS * LIN, L1), lambda i: (0, 0)),
                pl.BlockSpec((1, L1), lambda i: (0, 0)),
                pl.BlockSpec((KS * L1, L2), lambda i: (0, 0)),
                pl.BlockSpec((1, L2), lambda i: (0, 0)),
                pl.BlockSpec((NP2, L2, NH1), lambda i: (0, 0, 0)),
                pl.BlockSpec((1, NH1), lambda i: (0, 0)),
                pl.BlockSpec((NH1, NH2), lambda i: (0, 0)),
                pl.BlockSpec((1, NH2), lambda i: (0, 0)),
                pl.BlockSpec((NH2, LOUT), lambda i: (0, 0)),
                pl.BlockSpec((1, LOUT), lambda i: (0, 0)),
            ],
            out_specs=pl.BlockSpec((bt, LOUT), lambda i: (i, 0)),
        ),
        compiler_params=pltpu.CompilerParams(
            dimension_semantics=("parallel",),
            # <~10 MiB live per step even at bt=32; safe on v7x's 64 MiB VMEM.
            vmem_limit_bytes=32 * 1024 * 1024),
        cost_estimate=pl.CostEstimate(flops=flops, transcendentals=0,
                                      bytes_accessed=bytes_accessed),
    )(x2d, params["bw1"], params["b1"], params["bw2"], params["b2"],
      params["a1"], params["c1"], params["a2"], params["c2"],
      params["a3"], params["c3"])
    return out[:b, :NH3]


# ------------------------------ parameter handling --------------------------
def init_raw_params(key):
    """Parameters in the original PyTorch layout."""
    ks = jax.random.split(key, 10)

    def nrm(k, shape, scale=0.1):
        return scale * jax.random.normal(k, shape, dtype=jnp.float32)

    return {
        "conv1_w": nrm(ks[0], (C1, CIN, KS, KS)),
        "conv1_b": nrm(ks[1], (C1,)),
        "conv2_w": nrm(ks[2], (C2, C1, KS, KS)),
        "conv2_b": nrm(ks[3], (C2,)),
        "fc1_w":   nrm(ks[4], (NH1, C2 * NP2 * NP2)),   # torch Linear: (out, in)
        "fc1_b":   nrm(ks[5], (NH1,)),
        "fc2_w":   nrm(ks[6], (NH2, NH1)),
        "fc2_b":   nrm(ks[7], (NH2,)),
        "fc3_w":   nrm(ks[8], (NH3, NH2)),
        "fc3_b":   nrm(ks[9], (NH3,)),
    }


def prepare_params(raw):
    """One-time host-side repack of the PyTorch-layout weights into the
    K-stacked banded / pre-transposed layouts the fused kernel consumes."""
    w1 = np.asarray(raw["conv1_w"], np.float32)        # (6, 3, 5, 5)  OIHW
    w2 = np.asarray(raw["conv2_w"], np.float32)        # (16, 6, 5, 5)
    fc1 = np.asarray(raw["fc1_w"], np.float32)         # (120, 400)

    # conv1: single K-stacked banded weight.  Row = kh*128 + (w_in*CIN + cin)
    # (rows 96..127 of each kh block are the zero lane padding); col = w_out*C1 + c1.
    bw1 = np.zeros((KS * LIN, L1), np.float32)
    for kh in range(KS):
        for kw in range(KS):
            blk = w1[:, :, kh, kw].T                   # (cin, c1)
            for wo in range(WO1):
                r0 = kh * LIN + (wo + kw) * CIN
                bw1[r0:r0 + CIN, wo * C1:(wo + 1) * C1] = blk

    # conv2: K-stacked banded weight on the dilated pool1 grid (valid input
    # lane groups sit at even w).  Row = kh*168 + (w_in*C1 + c1); col = w_out*C2 + c2.
    bw2 = np.zeros((KS * L1, L2), np.float32)
    for kh in range(KS):
        for kw in range(KS):
            blk = w2[:, :, kh, kw].T                   # (c1, c2)
            for wo in range(WO2):
                r0 = kh * L1 + 2 * (wo + kw) * C1
                bw2[r0:r0 + C1, wo * C2:(wo + 1) * C2] = blk

    # fc1: split into NP2 row blocks, one per valid pool2 row (dilated row 4p):
    # a1[p, (2q)*C2 + co, :] = fc1_w[:, co*25 + p*5 + q]; odd-w rows stay zero.
    a1 = np.zeros((NP2, L2, NH1), np.float32)
    for p in range(NP2):
        for q in range(NP2):
            for co in range(C2):
                a1[p, (2 * q) * C2 + co, :] = \
                    fc1[:, co * NP2 * NP2 + p * NP2 + q]

    # fc3: pad to 128 output lanes so the final kernel store is lane-dense.
    a3 = np.zeros((NH2, LOUT), np.float32)
    a3[:, :NH3] = np.asarray(raw["fc3_w"], np.float32).T
    c3 = np.zeros((1, LOUT), np.float32)
    c3[0, :NH3] = np.asarray(raw["fc3_b"], np.float32)

    def bf(a):
        return jnp.asarray(np.asarray(a, np.float32), dtype=jnp.bfloat16)

    def f32row(a):
        return jnp.asarray(np.asarray(a, np.float32).reshape(1, -1))

    return {
        "bw1": bf(bw1),
        "b1":  f32row(np.tile(np.asarray(raw["conv1_b"], np.float32), WO1)),
        "bw2": bf(bw2),
        "b2":  f32row(np.tile(np.asarray(raw["conv2_b"], np.float32), WO2)),
        "a1":  bf(a1),
        "c1":  f32row(raw["fc1_b"]),
        "a2":  bf(np.asarray(raw["fc2_w"], np.float32).T),
        "c2":  f32row(raw["fc2_b"]),
        "a3":  bf(a3),
        "c3":  jnp.asarray(c3),
    }


# ------------------------------ pure-XLA reference --------------------------
def reference_forward(raw, x):
    """f32 reference matching the PyTorch module (used only for a self-check)."""
    def conv(z, w, b):
        z = lax.conv_general_dilated(
            z, w, (1, 1), "VALID",
            dimension_numbers=("NCHW", "OIHW", "NCHW"))
        return jax.nn.relu(z + b[None, :, None, None])

    def pool(z):
        return lax.reduce_window(z, -jnp.inf, lax.max,
                                 (1, 1, 2, 2), (1, 1, 2, 2), "VALID")

    z = pool(conv(x, raw["conv1_w"], raw["conv1_b"]))
    z = pool(conv(z, raw["conv2_w"], raw["conv2_b"]))
    z = z.reshape(z.shape[0], -1)
    z = jax.nn.relu(z @ raw["fc1_w"].T + raw["fc1_b"])
    z = jax.nn.relu(z @ raw["fc2_w"].T + raw["fc2_b"])
    return z @ raw["fc3_w"].T + raw["fc3_b"]


# ------------------------------------ main -----------------------------------
if __name__ == "__main__":
    key = jax.random.PRNGKey(0)
    pkey, xkey = jax.random.split(key)
    raw = init_raw_params(pkey)
    params = prepare_params(raw)
    x = jax.random.normal(xkey, (2, CIN, H, W), dtype=jnp.float32)

    out = jax.block_until_ready(jax.jit(net_forward)(params, x))
    assert out.shape == (2, 10), out.shape

    # Self-check vs. the f32 XLA reference.  bf16 matmuls at this weight scale
    # land around 1e-2 absolute error on the logits; 0.1 catches layout bugs.
    ref = jax.block_until_ready(jax.jit(reference_forward)(raw, x))
    err = float(jnp.max(jnp.abs(out - ref)))
    assert err < 0.1, f"kernel/reference mismatch: max abs err = {err}"
    print("KERNEL_OK")
</pallas_src>

<mosaic_0001>
module attributes {stable_mosaic.version = 11 : i64} {
  func.func @_lenet_kernel(%arg0: i32, %arg1: memref<256x128xbf16, #tpu.memory_space<vmem>>, %arg2: memref<640x168xbf16, #tpu.memory_space<vmem>>, %arg3: memref<1x168xf32, #tpu.memory_space<vmem>>, %arg4: memref<840x160xbf16, #tpu.memory_space<vmem>>, %arg5: memref<1x160xf32, #tpu.memory_space<vmem>>, %arg6: memref<5x160x120xbf16, #tpu.memory_space<vmem>>, %arg7: memref<1x120xf32, #tpu.memory_space<vmem>>, %arg8: memref<120x84xbf16, #tpu.memory_space<vmem>>, %arg9: memref<1x84xf32, #tpu.memory_space<vmem>>, %arg10: memref<84x128xbf16, #tpu.memory_space<vmem>>, %arg11: memref<1x128xf32, #tpu.memory_space<vmem>>, %arg12: memref<8x128xf32, #tpu.memory_space<vmem>>) attributes {dimension_semantics = [#tpu.dimension_semantics<parallel>], iteration_bounds = array<i64: 1>, scalar_prefetch = 0 : i64, scratch_operands = 0 : i64, tpu.core_type = #tpu.core_type<tc>, window_params = [{transform_indices = @transform_0, window_bounds = array<i64: 256, 128>}, {pipeline_mode = #tpu.pipeline_mode<synchronous>, transform_indices = @transform_1, window_bounds = array<i64: 640, 168>}, {pipeline_mode = #tpu.pipeline_mode<synchronous>, transform_indices = @transform_2, window_bounds = array<i64: 1, 168>}, {pipeline_mode = #tpu.pipeline_mode<synchronous>, transform_indices = @transform_3, window_bounds = array<i64: 840, 160>}, {pipeline_mode = #tpu.pipeline_mode<synchronous>, transform_indices = @transform_4, window_bounds = array<i64: 1, 160>}, {pipeline_mode = #tpu.pipeline_mode<synchronous>, transform_indices = @transform_5, window_bounds = array<i64: 5, 160, 120>}, {pipeline_mode = #tpu.pipeline_mode<synchronous>, transform_indices = @transform_6, window_bounds = array<i64: 1, 120>}, {pipeline_mode = #tpu.pipeline_mode<synchronous>, transform_indices = @transform_7, window_bounds = array<i64: 120, 84>}, {pipeline_mode = #tpu.pipeline_mode<synchronous>, transform_indices = @transform_8, window_bounds = array<i64: 1, 84>}, {pipeline_mode = #tpu.pipeline_mode<synchronous>, transform_indices = @transform_9, window_bounds = array<i64: 84, 128>}, {pipeline_mode = #tpu.pipeline_mode<synchronous>, transform_indices = @transform_10, window_bounds = array<i64: 1, 128>}, {transform_indices = @transform_11, window_bounds = array<i64: 8, 128>}]} {
    %c0 = arith.constant 0 : index
    %c0_0 = arith.constant 0 : index
    %0 = vector.load %arg1[%c0, %c0_0] : memref<256x128xbf16, #tpu.memory_space<vmem>>, vector<256x128xbf16>
    %1 = vector.extract_strided_slice %0 {offsets = [1, 0], sizes = [255, 128], strides = [1, 1]} : vector<256x128xbf16> to vector<255x128xbf16>
    %2 = vector.extract_strided_slice %0 {offsets = [0, 0], sizes = [1, 128], strides = [1, 1]} : vector<256x128xbf16> to vector<1x128xbf16>
    %3 = tpu.concatenate %1, %2 in 0 : vector<255x128xbf16>, vector<1x128xbf16> -> vector<256x128xbf16>
    %4 = vector.extract_strided_slice %0 {offsets = [2, 0], sizes = [254, 128], strides = [1, 1]} : vector<256x128xbf16> to vector<254x128xbf16>
    %5 = vector.extract_strided_slice %0 {offsets = [0, 0], sizes = [2, 128], strides = [1, 1]} : vector<256x128xbf16> to vector<2x128xbf16>
    %6 = tpu.concatenate %4, %5 in 0 : vector<254x128xbf16>, vector<2x128xbf16> -> vector<256x128xbf16>
    %7 = vector.extract_strided_slice %0 {offsets = [3, 0], sizes = [253, 128], strides = [1, 1]} : vector<256x128xbf16> to vector<253x128xbf16>
    %8 = vector.extract_strided_slice %0 {offsets = [0, 0], sizes = [3, 128], strides = [1, 1]} : vector<256x128xbf16> to vector<3x128xbf16>
    %9 = tpu.concatenate %7, %8 in 0 : vector<253x128xbf16>, vector<3x128xbf16> -> vector<256x128xbf16>
    %10 = vector.extract_strided_slice %0 {offsets = [4, 0], sizes = [252, 128], strides = [1, 1]} : vector<256x128xbf16> to vector<252x128xbf16>
    %11 = vector.extract_strided_slice %0 {offsets = [0, 0], sizes = [4, 128], strides = [1, 1]} : vector<256x128xbf16> to vector<4x128xbf16>
    %12 = tpu.concatenate %10, %11 in 0 : vector<252x128xbf16>, vector<4x128xbf16> -> vector<256x128xbf16>
    %13 = tpu.concatenate %0, %3, %6, %9, %12 in 1 : vector<256x128xbf16>, vector<256x128xbf16>, vector<256x128xbf16>, vector<256x128xbf16>, vector<256x128xbf16> -> vector<256x640xbf16>
    %c0_1 = arith.constant 0 : index
    %c0_2 = arith.constant 0 : index
    %14 = vector.load %arg2[%c0_1, %c0_2] : memref<640x168xbf16, #tpu.memory_space<vmem>>, vector<640x168xbf16>
    %cst = arith.constant dense<0.000000e+00> : vector<256x168xf32>
    %15 = tpu.matmul %13, %14, %cst {dimension_numbers = #tpu.dot_dimension_numbers<[1], [0], [0], [1], [0, 0, 1, 1], [], []>} : vector<256x640xbf16>, vector<640x168xbf16>, vector<256x168xf32> -> vector<256x168xf32>
    %c0_3 = arith.constant 0 : index
    %c0_4 = arith.constant 0 : index
    %16 = vector.load %arg3[%c0_3, %c0_4] : memref<1x168xf32, #tpu.memory_space<vmem>>, vector<1x168xf32>
    %17 = vector.broadcast %16 : vector<1x168xf32> to vector<256x168xf32>
    %18 = arith.addf %15, %17 : vector<256x168xf32>
    %cst_5 = arith.constant 0.000000e+00 : f32
    %19 = vector.broadcast %cst_5 : f32 to vector<256x168xf32>
    %20 = arith.maximumf %18, %19 : vector<256x168xf32>
    %21 = vector.extract_strided_slice %20 {offsets = [1, 0], sizes = [255, 168], strides = [1, 1]} : vector<256x168xf32> to vector<255x168xf32>
    %22 = vector.extract_strided_slice %20 {offsets = [0, 0], sizes = [1, 168], strides = [1, 1]} : vector<256x168xf32> to vector<1x168xf32>
    %23 = tpu.concatenate %21, %22 in 0 : vector<255x168xf32>, vector<1x168xf32> -> vector<256x168xf32>
    %24 = arith.maximumf %20, %23 : vector<256x168xf32>
    %25 = vector.extract_strided_slice %24 {offsets = [0, 6], sizes = [256, 162], strides = [1, 1]} : vector<256x168xf32> to vector<256x162xf32>
    %26 = vector.extract_strided_slice %24 {offsets = [0, 0], sizes = [256, 6], strides = [1, 1]} : vector<256x168xf32> to vector<256x6xf32>
    %27 = tpu.concatenate %25, %26 in 1 : vector<256x162xf32>, vector<256x6xf32> -> vector<256x168xf32>
    %28 = arith.maximumf %24, %27 : vector<256x168xf32>
    %29 = vector.extract_strided_slice %28 {offsets = [2, 0], sizes = [254, 168], strides = [1, 1]} : vector<256x168xf32> to vector<254x168xf32>
    %30 = vector.extract_strided_slice %28 {offsets = [0, 0], sizes = [2, 168], strides = [1, 1]} : vector<256x168xf32> to vector<2x168xf32>
    %31 = tpu.concatenate %29, %30 in 0 : vector<254x168xf32>, vector<2x168xf32> -> vector<256x168xf32>
    %32 = vector.extract_strided_slice %28 {offsets = [4, 0], sizes = [252, 168], strides = [1, 1]} : vector<256x168xf32> to vector<252x168xf32>
    %33 = vector.extract_strided_slice %28 {offsets = [0, 0], sizes = [4, 168], strides = [1, 1]} : vector<256x168xf32> to vector<4x168xf32>
    %34 = tpu.concatenate %32, %33 in 0 : vector<252x168xf32>, vector<4x168xf32> -> vector<256x168xf32>
    %35 = vector.extract_strided_slice %28 {offsets = [6, 0], sizes = [250, 168], strides = [1, 1]} : vector<256x168xf32> to vector<250x168xf32>
    %36 = vector.extract_strided_slice %28 {offsets = [0, 0], sizes = [6, 168], strides = [1, 1]} : vector<256x168xf32> to vector<6x168xf32>
    %37 = tpu.concatenate %35, %36 in 0 : vector<250x168xf32>, vector<6x168xf32> -> vector<256x168xf32>
    %38 = vector.extract_strided_slice %28 {offsets = [8, 0], sizes = [248, 168], strides = [1, 1]} : vector<256x168xf32> to vector<248x168xf32>
    %39 = vector.extract_strided_slice %28 {offsets = [0, 0], sizes = [8, 168], strides = [1, 1]} : vector<256x168xf32> to vector<8x168xf32>
    %40 = tpu.concatenate %38, %39 in 0 : vector<248x168xf32>, vector<8x168xf32> -> vector<256x168xf32>
    %41 = tpu.concatenate %28, %31, %34, %37, %40 in 1 : vector<256x168xf32>, vector<256x168xf32>, vector<256x168xf32>, vector<256x168xf32>, vector<256x168xf32> -> vector<256x840xf32>
    %42 = arith.truncf %41 : vector<256x840xf32> to vector<256x840xbf16>
    %c0_6 = arith.constant 0 : index
    %c0_7 = arith.constant 0 : index
    %43 = vector.load %arg4[%c0_6, %c0_7] : memref<840x160xbf16, #tpu.memory_space<vmem>>, vector<840x160xbf16>
    %cst_8 = arith.constant dense<0.000000e+00> : vector<256x160xf32>
    %44 = tpu.matmul %42, %43, %cst_8 {dimension_numbers = #tpu.dot_dimension_numbers<[1], [0], [0], [1], [0, 0, 1, 1], [], []>} : vector<256x840xbf16>, vector<840x160xbf16>, vector<256x160xf32> -> vector<256x160xf32>
    %c0_9 = arith.constant 0 : index
    %c0_10 = arith.constant 0 : index
    %45 = vector.load %arg5[%c0_9, %c0_10] : memref<1x160xf32, #tpu.memory_space<vmem>>, vector<1x160xf32>
    %46 = vector.broadcast %45 : vector<1x160xf32> to vector<256x160xf32>
    %47 = arith.addf %44, %46 : vector<256x160xf32>
    %cst_11 = arith.constant 0.000000e+00 : f32
    %48 = vector.broadcast %cst_11 : f32 to vector<256x160xf32>
    %49 = arith.maximumf %47, %48 : vector<256x160xf32>
    %50 = vector.extract_strided_slice %49 {offsets = [2, 0], sizes = [254, 160], strides = [1, 1]} : vector<256x160xf32> to vector<254x160xf32>
    %51 = vector.extract_strided_slice %49 {offsets = [0, 0], sizes = [2, 160], strides = [1, 1]} : vector<256x160xf32> to vector<2x160xf32>
    %52 = tpu.concatenate %50, %51 in 0 : vector<254x160xf32>, vector<2x160xf32> -> vector<256x160xf32>
    %53 = arith.maximumf %49, %52 : vector<256x160xf32>
    %54 = vector.extract_strided_slice %53 {offsets = [0, 16], sizes = [256, 144], strides = [1, 1]} : vector<256x160xf32> to vector<256x144xf32>
    %55 = vector.extract_strided_slice %53 {offsets = [0, 0], sizes = [256, 16], strides = [1, 1]} : vector<256x160xf32> to vector<256x16xf32>
    %56 = tpu.concatenate %54, %55 in 1 : vector<256x144xf32>, vector<256x16xf32> -> vector<256x160xf32>
    %57 = arith.maximumf %53, %56 : vector<256x160xf32>
    %58 = vector.shape_cast %57 : vector<256x160xf32> to vector<8x32x160xf32>
    %cst_12 = arith.constant 0.000000e+00 : f32
    %59 = vector.broadcast %cst_12 : f32 to vector<8x120xf32>
    %60 = vector.extract_strided_slice %58 {offsets = [0, 0, 0], sizes = [8, 1, 160], strides = [1, 1, 1]} : vector<8x32x160xf32> to vector<8x1x160xf32>
    %61 = vector.shape_cast %60 : vector<8x1x160xf32> to vector<8x160xf32>
    %62 = arith.truncf %61 : vector<8x160xf32> to vector<8x160xbf16>
    %c0_13 = arith.constant 0 : index
    %c0_14 = arith.constant 0 : index
    %c0_15 = arith.constant 0 : index
    %63 = vector.load %arg6[%c0_13, %c0_14, %c0_15] : memref<5x160x120xbf16, #tpu.memory_space<vmem>>, vector<1x160x120xbf16>
    %64 = vector.shape_cast %63 : vector<1x160x120xbf16> to vector<160x120xbf16>
    %cst_16 = arith.constant dense<0.000000e+00> : vector<8x120xf32>
    %65 = tpu.matmul %62, %64, %cst_16 {dimension_numbers = #tpu.dot_dimension_numbers<[1], [0], [0], [1], [0, 0, 1, 1], [], []>} : vector<8x160xbf16>, vector<160x120xbf16>, vector<8x120xf32> -> vector<8x120xf32>
    %66 = arith.addf %59, %65 : vector<8x120xf32>
    %67 = vector.extract_strided_slice %58 {offsets = [0, 4, 0], sizes = [8, 1, 160], strides = [1, 1, 1]} : vector<8x32x160xf32> to vector<8x1x160xf32>
    %68 = vector.shape_cast %67 : vector<8x1x160xf32> to vector<8x160xf32>
    %69 = arith.truncf %68 : vector<8x160xf32> to vector<8x160xbf16>
    %c1 = arith.constant 1 : index
    %c0_17 = arith.constant 0 : index
    %c0_18 = arith.constant 0 : index
    %70 = vector.load %arg6[%c1, %c0_17, %c0_18] : memref<5x160x120xbf16, #tpu.memory_space<vmem>>, vector<1x160x120xbf16>
    %71 = vector.shape_cast %70 : vector<1x160x120xbf16> to vector<160x120xbf16>
    %cst_19 = arith.constant dense<0.000000e+00> : vector<8x120xf32>
    %72 = tpu.matmul %69, %71, %cst_19 {dimension_numbers = #tpu.dot_dimension_numbers<[1], [0], [0], [1], [0, 0, 1, 1], [], []>} : vector<8x160xbf16>, vector<160x120xbf16>, vector<8x120xf32> -> vector<8x120xf32>
    %73 = arith.addf %66, %72 : vector<8x120xf32>
    %74 = vector.extract_strided_slice %58 {offsets = [0, 8, 0], sizes = [8, 1, 160], strides = [1, 1, 1]} : vector<8x32x160xf32> to vector<8x1x160xf32>
    %75 = vector.shape_cast %74 : vector<8x1x160xf32> to vector<8x160xf32>
    %76 = arith.truncf %75 : vector<8x160xf32> to vector<8x160xbf16>
    %c2 = arith.constant 2 : index
    %c0_20 = arith.constant 0 : index
    %c0_21 = arith.constant 0 : index
    %77 = vector.load %arg6[%c2, %c0_20, %c0_21] : memref<5x160x120xbf16, #tpu.memory_space<vmem>>, vector<1x160x120xbf16>
    %78 = vector.shape_cast %77 : vector<1x160x120xbf16> to vector<160x120xbf16>
    %cst_22 = arith.constant dense<0.000000e+00> : vector<8x120xf32>
    %79 = tpu.matmul %76, %78, %cst_22 {dimension_numbers = #tpu.dot_dimension_numbers<[1], [0], [0], [1], [0, 0, 1, 1], [], []>} : vector<8x160xbf16>, vector<160x120xbf16>, vector<8x120xf32> -> vector<8x120xf32>
    %80 = arith.addf %73, %79 : vector<8x120xf32>
    %81 = vector.extract_strided_slice %58 {offsets = [0, 12, 0], sizes = [8, 1, 160], strides = [1, 1, 1]} : vector<8x32x160xf32> to vector<8x1x160xf32>
    %82 = vector.shape_cast %81 : vector<8x1x160xf32> to vector<8x160xf32>
    %83 = arith.truncf %82 : vector<8x160xf32> to vector<8x160xbf16>
    %c3 = arith.constant 3 : index
    %c0_23 = arith.constant 0 : index
    %c0_24 = arith.constant 0 : index
    %84 = vector.load %arg6[%c3, %c0_23, %c0_24] : memref<5x160x120xbf16, #tpu.memory_space<vmem>>, vector<1x160x120xbf16>
    %85 = vector.shape_cast %84 : vector<1x160x120xbf16> to vector<160x120xbf16>
    %cst_25 = arith.constant dense<0.000000e+00> : vector<8x120xf32>
    %86 = tpu.matmul %83, %85, %cst_25 {dimension_numbers = #tpu.dot_dimension_numbers<[1], [0], [0], [1], [0, 0, 1, 1], [], []>} : vector<8x160xbf16>, vector<160x120xbf16>, vector<8x120xf32> -> vector<8x120xf32>
    %87 = arith.addf %80, %86 : vector<8x120xf32>
    %88 = vector.extract_strided_slice %58 {offsets = [0, 16, 0], sizes = [8, 1, 160], strides = [1, 1, 1]} : vector<8x32x160xf32> to vector<8x1x160xf32>
    %89 = vector.shape_cast %88 : vector<8x1x160xf32> to vector<8x160xf32>
    %90 = arith.truncf %89 : vector<8x160xf32> to vector<8x160xbf16>
    %c4 = arith.constant 4 : index
    %c0_26 = arith.constant 0 : index
    %c0_27 = arith.constant 0 : index
    %91 = vector.load %arg6[%c4, %c0_26, %c0_27] : memref<5x160x120xbf16, #tpu.memory_space<vmem>>, vector<1x160x120xbf16>
    %92 = vector.shape_cast %91 : vector<1x160x120xbf16> to vector<160x120xbf16>
    %cst_28 = arith.constant dense<0.000000e+00> : vector<8x120xf32>
    %93 = tpu.matmul %90, %92, %cst_28 {dimension_numbers = #tpu.dot_dimension_numbers<[1], [0], [0], [1], [0, 0, 1, 1], [], []>} : vector<8x160xbf16>, vector<160x120xbf16>, vector<8x120xf32> -> vector<8x120xf32>
    %94 = arith.addf %87, %93 : vector<8x120xf32>
    %c0_29 = arith.constant 0 : index
    %c0_30 = arith.constant 0 : index
    %95 = vector.load %arg7[%c0_29, %c0_30] : memref<1x120xf32, #tpu.memory_space<vmem>>, vector<1x120xf32>
    %96 = vector.broadcast %95 : vector<1x120xf32> to vector<8x120xf32>
    %97 = arith.addf %94, %96 : vector<8x120xf32>
    %cst_31 = arith.constant 0.000000e+00 : f32
    %98 = vector.broadcast %cst_31 : f32 to vector<8x120xf32>
    %99 = arith.maximumf %97, %98 : vector<8x120xf32>
    %100 = arith.truncf %99 : vector<8x120xf32> to vector<8x120xbf16>
    %c0_32 = arith.constant 0 : index
    %c0_33 = arith.constant 0 : index
    %101 = vector.load %arg8[%c0_32, %c0_33] : memref<120x84xbf16, #tpu.memory_space<vmem>>, vector<120x84xbf16>
    %cst_34 = arith.constant dense<0.000000e+00> : vector<8x84xf32>
    %102 = tpu.matmul %100, %101, %cst_34 {dimension_numbers = #tpu.dot_dimension_numbers<[1], [0], [0], [1], [0, 0, 1, 1], [], []>} : vector<8x120xbf16>, vector<120x84xbf16>, vector<8x84xf32> -> vector<8x84xf32>
    %c0_35 = arith.constant 0 : index
    %c0_36 = arith.constant 0 : index
    %103 = vector.load %arg9[%c0_35, %c0_36] : memref<1x84xf32, #tpu.memory_space<vmem>>, vector<1x84xf32>
    %104 = vector.broadcast %103 : vector<1x84xf32> to vector<8x84xf32>
    %105 = arith.addf %102, %104 : vector<8x84xf32>
    %cst_37 = arith.constant 0.000000e+00 : f32
    %106 = vector.broadcast %cst_37 : f32 to vector<8x84xf32>
    %107 = arith.maximumf %105, %106 : vector<8x84xf32>
    %108 = arith.truncf %107 : vector<8x84xf32> to vector<8x84xbf16>
    %c0_38 = arith.constant 0 : index
    %c0_39 = arith.constant 0 : index
    %109 = vector.load %arg10[%c0_38, %c0_39] : memref<84x128xbf16, #tpu.memory_space<vmem>>, vector<84x128xbf16>
    %cst_40 = arith.constant dense<0.000000e+00> : vector<8x128xf32>
    %110 = tpu.matmul %108, %109, %cst_40 {dimension_numbers = #tpu.dot_dimension_numbers<[1], [0], [0], [1], [0, 0, 1, 1], [], []>} : vector<8x84xbf16>, vector<84x128xbf16>, vector<8x128xf32> -> vector<8x128xf32>
    %c0_41 = arith.constant 0 : index
    %c0_42 = arith.constant 0 : index
    %111 = vector.load %arg11[%c0_41, %c0_42] : memref<1x128xf32, #tpu.memory_space<vmem>>, vector<1x128xf32>
    %112 = vector.broadcast %111 : vector<1x128xf32> to vector<8x128xf32>
    %113 = arith.addf %110, %112 : vector<8x128xf32>
    %c0_43 = arith.constant 0 : index
    %c0_44 = arith.constant 0 : index
    %114 = vector.load %arg12[%c0_43, %c0_44] : memref<8x128xf32, #tpu.memory_space<vmem>>, vector<8x128xf32>
    tpu.vector_store %arg12[%c0_43, %c0_44], %113 {strides = array<i32>} : memref<8x128xf32, #tpu.memory_space<vmem>>, vector<8x128xf32>,
    return
  }
  func.func @transform_0(%arg0: i32) -> (i32, i32) {
    %c0_i32 = arith.constant 0 : i32
    %c0_i32_0 = arith.constant 0 : i32
    return %arg0, %c0_i32 : i32, i32
  }
  func.func @transform_1(%arg0: i32) -> (i32, i32) {
    %c0_i32 = arith.constant 0 : i32
    %c0_i32_0 = arith.constant 0 : i32
    %c0_i32_1 = arith.constant 0 : i32
    return %c0_i32, %c0_i32_0 : i32, i32
  }
  func.func @transform_2(%arg0: i32) -> (i32, i32) {
    %c0_i32 = arith.constant 0 : i32
    %c0_i32_0 = arith.constant 0 : i32
    %c0_i32_1 = arith.constant 0 : i32
    return %c0_i32, %c0_i32_0 : i32, i32
  }
  func.func @transform_3(%arg0: i32) -> (i32, i32) {
    %c0_i32 = arith.constant 0 : i32
    %c0_i32_0 = arith.constant 0 : i32
    %c0_i32_1 = arith.constant 0 : i32
    return %c0_i32, %c0_i32_0 : i32, i32
  }
  func.func @transform_4(%arg0: i32) -> (i32, i32) {
    %c0_i32 = arith.constant 0 : i32
    %c0_i32_0 = arith.constant 0 : i32
    %c0_i32_1 = arith.constant 0 : i32
    return %c0_i32, %c0_i32_0 : i32, i32
  }
  func.func @transform_5(%arg0: i32) -> (i32, i32, i32) {
    %c0_i32 = arith.constant 0 : i32
    %c0_i32_0 = arith.constant 0 : i32
    %c0_i32_1 = arith.constant 0 : i32
    %c0_i32_2 = arith.constant 0 : i32
    return %c0_i32, %c0_i32_0, %c0_i32_1 : i32, i32, i32
  }
  func.func @transform_6(%arg0: i32) -> (i32, i32) {
    %c0_i32 = arith.constant 0 : i32
    %c0_i32_0 = arith.constant 0 : i32
    %c0_i32_1 = arith.constant 0 : i32
    return %c0_i32, %c0_i32_0 : i32, i32
  }
  func.func @transform_7(%arg0: i32) -> (i32, i32) {
    %c0_i32 = arith.constant 0 : i32
    %c0_i32_0 = arith.constant 0 : i32
    %c0_i32_1 = arith.constant 0 : i32
    return %c0_i32, %c0_i32_0 : i32, i32
  }
  func.func @transform_8(%arg0: i32) -> (i32, i32) {
    %c0_i32 = arith.constant 0 : i32
    %c0_i32_0 = arith.constant 0 : i32
    %c0_i32_1 = arith.constant 0 : i32
    return %c0_i32, %c0_i32_0 : i32, i32
  }
  func.func @transform_9(%arg0: i32) -> (i32, i32) {
    %c0_i32 = arith.constant 0 : i32
    %c0_i32_0 = arith.constant 0 : i32
    %c0_i32_1 = arith.constant 0 : i32
    return %c0_i32, %c0_i32_0 : i32, i32
  }
  func.func @transform_10(%arg0: i32) -> (i32, i32) {
    %c0_i32 = arith.constant 0 : i32
    %c0_i32_0 = arith.constant 0 : i32
    %c0_i32_1 = arith.constant 0 : i32
    return %c0_i32, %c0_i32_0 : i32, i32
  }
  func.func @transform_11(%arg0: i32) -> (i32, i32) {
    %c0_i32 = arith.constant 0 : i32
    %c0_i32_0 = arith.constant 0 : i32
    return %arg0, %c0_i32 : i32, i32
  }
}

</mosaic_0001>

<bundles_post_ra>
// kernel: net_forward.1
= control target key start
LH: loop header
LB: loop body
LE: loop exit
PB: predicated region body
PF: predicated region fallthrough
CT: control target
= control target key end

     0   :  { %vm151_vm0 = vsmask.f32 7424  ;;  %vm304_vm1 = vcmask 1046528   ;;  %vm357_vm2 = vsmask.f32 6400  ;;  %vm301_vm3 = vcmask 1047552   ;;  %s17962_s1 = inlined_call_operand.vmem [shape: bf16[640,168], index: 1, kind: input, shape index: {}]   ;;  %s17963_s0 = inlined_call_operand.vmem [shape: bf16[256,128], index: 0, kind: input, shape index: {}]   ;;  %s17964_s2 = inlined_call_operand.vmem [shape: f32[1,168], index: 2, kind: input, shape index: {}]   ;;  %s17965_s3 = inlined_call_operand.vmem [shape: bf16[840,160], index: 3, kind: input, shape index: {}]   ;;  %s17966_s4 = inlined_call_operand.vmem [shape: f32[1,160], index: 4, kind: input, shape index: {}]   ;;  %s17967_s5 = inlined_call_operand.vmem [shape: bf16[5,160,120], index: 5, kind: input, shape index: {}]   ;;  %s17968_s6 = inlined_call_operand.vmem [shape: f32[1,120], index: 6, kind: input, shape index: {}]   ;;  %s17969_s8 = inlined_call_operand.vmem [shape: f32[1,84], index: 8, kind: input, shape index: {}]   ;;  %s17970_s7 = inlined_call_operand.vmem [shape: bf16[120,84], index: 7, kind: input, shape index: {}]   ;;  %s17971_s9 = inlined_call_operand.vmem [shape: bf16[84,128], index: 9, kind: input, shape index: {}]   ;;  %s17972_s10 = inlined_call_operand.vmem [shape: f32[1,128], index: 10, kind: input, shape index: {}]   ;;  %s17973_s11 = inlined_call_operand.vmem [shape: f32[8,128], index: 11, kind: output, shape index: {}]  }
   0x1   :  { %v8174_v0 = vld [vmem:[%s17962_s1 + $0x70] sm:$0xf]  ;;  %v9249_v1 = vld [vmem:[%s17962_s1 + $0x74] sm:$0xf0]  ;;  %v8166_v11 = vld [vmem:[%s17962_s1 + $0x60] sm:$0xf] }
   0x2   :  { %v8238_v2 = vld [vmem:[%s17962_s1 + $0xf0] sm:$0xf]  ;;  %v8175_v3 = vor.u32 %v9249_v1, %v8174_v0  ;;  %v9265_v4 = vld [vmem:[%s17962_s1 + $0xf4] sm:$0xf0]  ;;  %v9247_v13 = vld [vmem:[%s17962_s1 + $0x64] sm:$0xf0] }
   0x3   :  { %v8302_v5 = vld [vmem:[%s17962_s1 + $0x170] sm:$0xf]  ;;  %v9281_v6 = vld [vmem:[%s17962_s1 + $0x174] sm:$0xf0]  ;;  %v8239_v7 = vor.u32 %v9265_v4, %v8238_v2  ;;  %v8230_v14 = vld [vmem:[%s17962_s1 + $0xe0] sm:$0xf]  ;;  %v8167_v16 = vor.u32 %v9247_v13, %v8166_v11 }
   0x4   :  { %v8303_v8 = vor.u32 %v9281_v6, %v8302_v5  ;;  %v8366_v9 = vld [vmem:[%s17962_s1 + $0x1f0] sm:$0xf]  ;;  %v9297_v10 = vld [vmem:[%s17962_s1 + $0x1f4] sm:$0xf0]  ;;  %1000 = vmatpush.bf16.msra.mxu0 %v8175_v3  ;;  %v9263_v15 = vld [vmem:[%s17962_s1 + $0xe4] sm:$0xf0] }
   0x5   :  { %v8367_v12 = vor.u32 %v9297_v10, %v8366_v9  ;;  %1089 = vmatpush.bf16.msra.mxu1 %v8239_v7  ;;  %v8231_v17 = vor.u32 %v9263_v15, %v8230_v14  ;;  %v8294_v18 = vld [vmem:[%s17962_s1 + $0x160] sm:$0xf]  ;;  %v9279_v19 = vld [vmem:[%s17962_s1 + $0x164] sm:$0xf0]  ;;  %v8158_v23 = vld [vmem:[%s17962_s1 + $0x50] sm:$0xf] }
   0x6   :  { %1178 = vmatpush.bf16.msra.mxu2 %v8303_v8  ;;  %v8358_v20 = vld [vmem:[%s17962_s1 + $0x1e0] sm:$0xf]  ;;  %v8295_v21 = vor.u32 %v9279_v19, %v8294_v18  ;;  %v9295_v22 = vld [vmem:[%s17962_s1 + $0x1e4] sm:$0xf0]  ;;  %v9245_v24 = vld [vmem:[%s17962_s1 + $0x54] sm:$0xf0] }
   0x7   :  { %1267 = vmatpush.bf16.msra.mxu3 %v8367_v12  ;;  %v8359_v25 = vor.u32 %v9295_v22, %v8358_v20  ;;  %v8222_v26 = vld [vmem:[%s17962_s1 + $0xd0] sm:$0xf]  ;;  %v9261_v27 = vld [vmem:[%s17962_s1 + $0xd4] sm:$0xf0]  ;;  %v8159_v29 = vor.u32 %v9245_v24, %v8158_v23  ;;  %v8150_v35 = vld [vmem:[%s17962_s1 + $0x40] sm:$0xf] }
   0x8   :  { %v8286_v28 = vld [vmem:[%s17962_s1 + $0x150] sm:$0xf]  ;;  %1001 = vmatpush.bf16.msra.mxu0 %v8167_v16  ;;  %v9277_v30 = vld [vmem:[%s17962_s1 + $0x154] sm:$0xf0]  ;;  %v8223_v33 = vor.u32 %v9261_v27, %v8222_v26  ;;  %v9243_v36 = vld [vmem:[%s17962_s1 + $0x44] sm:$0xf0] }
   0x9   :  { %v8350_v31 = vld [vmem:[%s17962_s1 + $0x1d0] sm:$0xf]  ;;  %v9293_v32 = vld [vmem:[%s17962_s1 + $0x1d4] sm:$0xf0]  ;;  %1090 = vmatpush.bf16.msra.mxu1 %v8231_v17  ;;  %v8287_v34 = vor.u32 %v9277_v30, %v8286_v28  ;;  %v8214_v37 = vld [vmem:[%s17962_s1 + $0xc0] sm:$0xf]  ;;  %v8151_v44 = vor.u32 %v9243_v36, %v8150_v35 }
   0xa   :  { %1179 = vmatpush.bf16.msra.mxu2 %v8295_v21  ;;  %v8351_v38 = vor.u32 %v9293_v32, %v8350_v31  ;;  %v9259_v39 = vld [vmem:[%s17962_s1 + $0xc4] sm:$0xf0]  ;;  %v8278_v40 = vld [vmem:[%s17962_s1 + $0x140] sm:$0xf]  ;;  %v8142_v47 = vld [vmem:[%s17962_s1 + $0x30] sm:$0xf] }
   0xb   :  { %1268 = vmatpush.bf16.msra.mxu3 %v8359_v25  ;;  %v9275_v41 = vld [vmem:[%s17962_s1 + $0x144] sm:$0xf0]  ;;  %v8342_v42 = vld [vmem:[%s17962_s1 + $0x1c0] sm:$0xf]  ;;  %v8215_v45 = vor.u32 %v9259_v39, %v8214_v37  ;;  %v9241_v48 = vld [vmem:[%s17962_s1 + $0x34] sm:$0xf0] }
   0xc   :  { %v9291_v43 = vld [vmem:[%s17962_s1 + $0x1c4] sm:$0xf0]  ;;  %1002 = vmatpush.bf16.msra.mxu0 %v8159_v29  ;;  %v8279_v46 = vor.u32 %v9275_v41, %v8278_v40  ;;  %v8206_v49 = vld [vmem:[%s17962_s1 + $0xb0] sm:$0xf]  ;;  %v9257_v51 = vld [vmem:[%s17962_s1 + $0xb4] sm:$0xf0]  ;;  %v8143_v56 = vor.u32 %v9241_v48, %v8142_v47 }
   0xd   :  { %1091 = vmatpush.bf16.msra.mxu1 %v8223_v33  ;;  %v8343_v50 = vor.u32 %v9291_v43, %v8342_v42  ;;  %v8270_v52 = vld [vmem:[%s17962_s1 + $0x130] sm:$0xf]  ;;  %v9273_v53 = vld [vmem:[%s17962_s1 + $0x134] sm:$0xf0]  ;;  %v8134_v57 = vld [vmem:[%s17962_s1 + $0x20] sm:$0xf]  ;;  %v8207_v58 = vor.u32 %v9257_v51, %v8206_v49 }
   0xe   :  { %1180 = vmatpush.bf16.msra.mxu2 %v8287_v34  ;;  %v8334_v54 = vld [vmem:[%s17962_s1 + $0x1b0] sm:$0xf]  ;;  %v9289_v55 = vld [vmem:[%s17962_s1 + $0x1b4] sm:$0xf0]  ;;  %v8271_v59 = vor.u32 %v9273_v53, %v8270_v52  ;;  %v9239_v60 = vld [vmem:[%s17962_s1 + $0x24] sm:$0xf0] }
   0xf   :  { %1269 = vmatpush.bf16.msra.mxu3 %v8351_v38  ;;  %v8198_v61 = vld [vmem:[%s17962_s1 + $0xa0] sm:$0xf]  ;;  %v9255_v62 = vld [vmem:[%s17962_s1 + $0xa4] sm:$0xf0]  ;;  %v8335_v63 = vor.u32 %v9289_v55, %v8334_v54  ;;  %v8126_v4 = vld [vmem:[%s17962_s1 + $0x10] sm:$0xf]  ;;  %v8135_v6 = vor.u32 %v9239_v60, %v8134_v57 }
  0x10   :  { %1003 = vmatpush.bf16.msra.mxu0 %v8151_v44  ;;  %v8262_v0 = vld [vmem:[%s17962_s1 + $0x120] sm:$0xf]  ;;  %v9271_v1 = vld [vmem:[%s17962_s1 + $0x124] sm:$0xf0]  ;;  %v9237_v5 = vld [vmem:[%s17962_s1 + $0x14] sm:$0xf0]  ;;  %v8199_v10 = vor.u32 %v9255_v62, %v8198_v61 }
  0x11   :  { %1092 = vmatpush.bf16.msra.mxu1 %v8215_v45  ;;  %v8326_v2 = vld [vmem:[%s17962_s1 + $0x1a0] sm:$0xf]  ;;  %v9287_v3 = vld [vmem:[%s17962_s1 + $0x1a4] sm:$0xf0]  ;;  %v8190_v7 = vld [vmem:[%s17962_s1 + $0x90] sm:$0xf]  ;;  %v8263_v11 = vor.u32 %v9271_v1, %v8262_v0  ;;  %v8127_v24 = vor.u32 %v9237_v5, %v8126_v4 }
  0x12   :  { %1181 = vmatpush.bf16.msra.mxu2 %v8279_v46  ;;  %v9253_v8 = vld [vmem:[%s17962_s1 + $0x94] sm:$0xf0]  ;;  %v8254_v9 = vld [vmem:[%s17962_s1 + $0x110] sm:$0xf]  ;;  %v8327_v15 = vor.u32 %v9287_v3, %v8326_v2  ;;  %v8118_v16 = vld [vmem:[%s17962_s1] sm:$0xf] }
  0x13   :  { %1270 = vmatpush.bf16.msra.mxu3 %v8343_v50  ;;  %v9269_v12 = vld [vmem:[%s17962_s1 + $0x114] sm:$0xf0]  ;;  %v8318_v13 = vld [vmem:[%s17962_s1 + $0x190] sm:$0xf]  ;;  %v9235_v17 = vld [vmem:[%s17962_s1 + $0x4] sm:$0xf0]  ;;  %v8191_v29 = vor.u32 %v9253_v8, %v8190_v7 }
  0x14   :  { %1004 = vmatpush.bf16.msra.mxu0 %v8143_v56  ;;  %v9285_v14 = vld [vmem:[%s17962_s1 + $0x194] sm:$0xf0]  ;;  %v10819_v18 = vld [vmem:[%s17963_s0] sm:$0xff]   ;;  %v10824_v19 = vld [vmem:[%s17963_s0 + $0x8] sm:$0xff]  ;;  %v8255_v30 = vor.u32 %v9269_v12, %v8254_v9  ;;  %v8119_v38 = vor.u32 %v9235_v17, %v8118_v16  ;;  %vm445_vm6 = vcmask 1045504   ;;  %s10575_s22 = smov 34  }
  0x15   :  { %1093 = vmatpush.bf16.msra.mxu1 %v8207_v58  ;;  %v8182_v20 = vld [vmem:[%s17962_s1 + $0x80] sm:$0xf]  ;;  %v9251_v21 = vld [vmem:[%s17962_s1 + $0x84] sm:$0xf0]  ;;  %v153_v22 = vshrl.u32 %v10819_v18, 16  ;;  %v155_v23 = vshll.u32 %v10819_v18, 16  ;;  %v8319_v34 = vor.u32 %v9285_v14, %v8318_v13  ;;  %vm302_vm4 = vmand %vm301_vm3, %vm151_vm0 }
  0x16   :  { %1182 = vmatpush.bf16.msra.mxu2 %v8271_v59  ;;  %v8246_v25 = vld [vmem:[%s17962_s1 + $0x100] sm:$0xf]  ;;  %v9267_v26 = vld [vmem:[%s17962_s1 + $0x104] sm:$0xf0]  ;;  %v160_v27 = vshll.u32 %v10824_v19, 16  ;;  %v164_v28 = vshrl.u32 %v10824_v19, 16  ;;  %v8183_v42 = vor.u32 %v9251_v21, %v8182_v20  ;;  %vm443_vm5 = vmand %vm304_vm1, %vm357_vm2 }
  0x17   :  { %1271 = vmatpush.bf16.msra.mxu3 %v8335_v63  ;;  %v8310_v31 = vld [vmem:[%s17962_s1 + $0x180] sm:$0xf]  ;;  %v9283_v32 = vld [vmem:[%s17962_s1 + $0x184] sm:$0xf0]  ;;  %v157_v33 = vrot.slane %v155_v23, 1  ;;  %v358_v35 = vrot.slane %v153_v22, 1  ;;  %v8247_v43 = vor.u32 %v9267_v26, %v8246_v25 }
  0x18   :  { %1005 = vmatpush.bf16.msra.mxu0 %v8135_v6  ;;  %v359_v36 = vrot.slane %v155_v23, 2  ;;  %v361_v37 = vrot.slane %v164_v28, 1  ;;  %v8430_v39 = vld [vmem:[%s17962_s1 + $0x270] sm:$0xf]  ;;  %v9313_v40 = vld [vmem:[%s17962_s1 + $0x274] sm:$0xf0]  ;;  %v8311_v44 = vor.u32 %v9283_v32, %v8310_v31 }
  0x19   :  { %1094 = vmatpush.bf16.msra.mxu1 %v8199_v10  ;;  %v362_v41 = vrot.slane %v160_v27, 2  ;;  %v9248_v45 = vld [vmem:[%s17962_s1 + $0x74] sm:$0xf]  ;;  %v8176_v46 = vld [vmem:[%s17962_s1 + $0x78] sm:$0xf0]  ;;  %v158_v47 = vor.u32 %v157_v33, %v153_v22  ;;  %v162_v48 = vrot.slane %v160_v27, 1  ;;  %v8431_v51 = vor.u32 %v9313_v40, %v8430_v39 }
  0x1a   :  { %1183 = vmatpush.bf16.msra.mxu2 %v8263_v11  ;;  %v305_v49 = vrot.slane %v10819_v18, 1  ;;  %v306_v50 = vrot.slane %v10824_v19, 1  ;;  %v360_v52 = vor.u32 %v359_v36, %v358_v35  ;;  %v8179_v54 = vor.u32 %v9248_v45, %v8176_v46  ;;  %v9220_v58 = vld [vmem:[%s17963_s0 + $0x10] sm:$0xff]  ;;  %v8422_v59 = vld [vmem:[%s17962_s1 + $0x260] sm:$0xf]  ;;  %v9221_v12 = vld [vmem:[%s17963_s0 + $0x18] sm:$0xff] }
  0x1b   :  { %1272 = vmatpush.bf16.msra.mxu3 %v8327_v15  ;;  %v363_v53 = vor.u32 %v362_v41, %v361_v37  ;;  %v10865_v55 = vsel %vm151_vm0, %v158_v47, %v162_v48  ;;  %v9311_v60 = vld [vmem:[%s17962_s1 + $0x264] sm:$0xf0]  ;;  %v9246_v62 = vld [vmem:[%s17962_s1 + $0x64] sm:$0xf]  ;;  %v8168_v63 = vld [vmem:[%s17962_s1 + $0x68] sm:$0xf0]  ;;  %v166_v5 = vor.u32 %v164_v28, %v162_v48 }
  0x1c   :  { %1006 = vmatpush.bf16.msra.mxu0 %v8127_v24  ;;  %v10868_v56 = vsel %vm304_vm1, %v305_v49, %v306_v50  ;;  %v8423_v61 = vor.u32 %v9311_v60, %v8422_v59  ;;  %v168_v0 = vshll.u32 %v9220_v58, 16  ;;  %v172_v1 = vshrl.u32 %v9220_v58, 16  ;;  %v9222_v25 = vld [vmem:[%s17963_s0 + $0x20] sm:$0xff]  ;;  %v8414_v26 = vld [vmem:[%s17962_s1 + $0x250] sm:$0xf]  ;;  %s10576_s15 = smov 40  }
  0x1d   :  { %1095 = vmatpush.bf16.msra.mxu1 %v8191_v29  ;;  %v10871_v57 = vsel %vm357_vm2, %v360_v52, %v363_v53  ;;  %v8171_v2 = vor.u32 %v9246_v62, %v8168_v63  ;;  %v308_v7 = vrot.slane %v9220_v58, 1  ;;  %v176_v13 = vshll.u32 %v9221_v12, 16  ;;  %v9309_v27 = vld [vmem:[%s17962_s1 + $0x254] sm:$0xf0]  ;;  %v9244_v29 = vld [vmem:[%s17962_s1 + $0x54] sm:$0xf] }
  0x1e   :  { %1184 = vmatpush.bf16.msra.mxu2 %v8255_v30  ;;  %18572 = vst [vmem:[#allocation2_spill] sm:$0xff] %v10871_v57  ;;  %v365_v3 = vrot.slane %v172_v1, 1  ;;  %v366_v4 = vrot.slane %v168_v0, 2  ;;  %v170_v6 = vrot.slane %v168_v0, 1  ;;  %v180_v14 = vshrl.u32 %v9221_v12, 16  ;;  %s10578_s28 = smov 32  }
  0x1f   :  { %1273 = vmatpush.bf16.msra.mxu3 %v8319_v34  ;;  %v10898_v10 = vsel %vm304_vm1, %v306_v50, %v308_v7  ;;  %v370_v16 = vrot.slane %v176_v13, 2  ;;  %v178_v20 = vrot.slane %v176_v13, 1  ;;  %v310_v21 = vrot.slane %v9221_v12, 1  ;;  %v8160_v30 = vld [vmem:[%s17962_s1 + $0x58] sm:$0xf0]  ;;  %s10579_s13 = smov 80  }
  0x20   :  { %1007 = vmatpush.bf16.msra.mxu0 %v8119_v38  ;;  %v367_v8 = vor.u32 %v366_v4, %v365_v3  ;;  %v10895_v9 = vsel %vm151_vm0, %v166_v5, %v170_v6  ;;  %v369_v15 = vrot.slane %v180_v14, 1  ;;  %v174_v17 = vor.u32 %v172_v1, %v170_v6  ;;  %v8406_v59 = vld [vmem:[%s17962_s1 + $0x240] sm:$0xf]  ;;  %v9307_v60 = vld [vmem:[%s17962_s1 + $0x244] sm:$0xf0]  ;;  %s10580_s12 = smov 16  }
  0x21   :  { %1096 = vmatpush.bf16.msra.mxu1 %v8183_v42  ;;  %v10914_v24 = vsel %vm304_vm1, %v308_v7, %v310_v21  ;;  %v8415_v28 = vor.u32 %v9309_v27, %v8414_v26  ;;  %v184_v31 = vshll.u32 %v9222_v25, 16  ;;  %v188_v32 = vshrl.u32 %v9222_v25, 16  ;;  %v9242_v62 = vld [vmem:[%s17962_s1 + $0x44] sm:$0xf]  ;;  %v8152_v63 = vld [vmem:[%s17962_s1 + $0x48] sm:$0xf0] }
  0x22   :  { %1185 = vmatpush.bf16.msra.mxu2 %v8247_v43  ;;  %v10901_v11 = vsel %vm357_vm2, %v363_v53, %v367_v8  ;;  %v371_v22 = vor.u32 %v370_v16, %v369_v15  ;;  %v10911_v23 = vsel %vm151_vm0, %v174_v17, %v178_v20  ;;  %v8163_v33 = vor.u32 %v9244_v29, %v8160_v30  ;;  %v9223_v43 = vld [vmem:[%s17963_s0 + $0x28] sm:$0xff]  ;;  %v9225_v15 = vld [vmem:[%s17963_s0 + $0x38] sm:$0xff] }
  0x23   :  { %1274 = vmatpush.bf16.msra.mxu3 %v8311_v44  ;;  %1008 = vmatmul.bf16.vlgmr.msra.gmra.mxu0 %v10819_v18  ;;  %18573 = vst [vmem:[#allocation3_spill] sm:$0xff] %v10901_v11  ;;  %v373_v34 = vrot.slane %v188_v32, 1  ;;  %v374_v35 = vrot.slane %v184_v31, 2  ;;  %v182_v36 = vor.u32 %v180_v14, %v178_v20  ;;  %v186_v37 = vrot.slane %v184_v31, 1  ;;  %v9226_v31 = vld [vmem:[%s17963_s0 + $0x40] sm:$0xff] }
  0x24   :  { %1356 = vmatpush.bf16.msrb.mxu0 %v8431_v51  ;;  %1097 = vmatmul.bf16.vlgmr.msra.gmra.mxu1 %v10865_v55  ;;  %v312_v38 = vrot.slane %v9222_v25, 1  ;;  %v192_v44 = vshll.u32 %v9223_v43, 16  ;;  %v196_v45 = vshrl.u32 %v9223_v43, 16  ;;  %v314_v50 = vrot.slane %v9223_v43, 1 }
  0x25   :  { %1445 = vmatpush.bf16.msrb.mxu1 %v8179_v54  ;;  %1186 = vmatmul.bf16.vlgmr.msra.gmra.mxu2 %v10868_v56  ;;  %v375_v39 = vor.u32 %v374_v35, %v373_v34  ;;  %v10938_v40 = vsel %vm151_vm0, %v182_v36, %v186_v37  ;;  %v190_v48 = vor.u32 %v188_v32, %v186_v37  ;;  %v208_v16 = vshll.u32 %v9225_v15, 16  ;;  %v8398_v32 = vld [vmem:[%s17962_s1 + $0x230] sm:$0xf]  ;;  %v9240_v35 = vld [vmem:[%s17962_s1 + $0x34] sm:$0xf] }
  0x26   :  { %1275 = vmatmul.bf16.vlgmr.msra.gmra.mxu3 %v10871_v57  ;;  %v10941_v41 = vsel %vm304_vm1, %v310_v21, %v312_v38  ;;  %v377_v46 = vrot.slane %v196_v45, 1  ;;  %v378_v47 = vrot.slane %v192_v44, 2  ;;  %v194_v49 = vrot.slane %v192_v44, 1  ;;  %v8144_v36 = vld [vmem:[%s17962_s1 + $0x38] sm:$0xf0] }
  0x27   :  { %v10944_v42 = vsel %vm357_vm2, %v371_v22, %v375_v39  ;;  %v10956_v53 = vsel %vm304_vm1, %v312_v38, %v314_v50  ;;  %v212_v17 = vshrl.u32 %v9225_v15, 16  ;;  %v386_v21 = vrot.slane %v208_v16, 2 }
  0x28   :  { %1357 = vmatpush.bf16.msrb.mxu0 %v8423_v61  ;;  %18575 = vst [vmem:[#allocation5_spill] sm:$0xff] %v10944_v42  ;;  %v379_v51 = vor.u32 %v378_v47, %v377_v46  ;;  %v10953_v52 = vsel %vm151_vm0, %v190_v48, %v194_v49  ;;  %v8407_v61 = vor.u32 %v9307_v60, %v8406_v59  ;;  %v318_v26 = vrot.slane %v9225_v15, 1 }
  0x29   :  { %1446 = vmatpush.bf16.msrb.mxu1 %v8171_v2  ;;  %v8155_v2 = vor.u32 %v9242_v62, %v8152_v63  ;;  %v198_v5 = vor.u32 %v196_v45, %v194_v49  ;;  %v385_v20 = vrot.slane %v212_v17, 1  ;;  %v216_v37 = vshll.u32 %v9226_v31, 16 }
  0x2a   :  { %v10959_v54 = vsel %vm357_vm2, %v375_v39, %v379_v51  ;;  %v220_v38 = vshrl.u32 %v9226_v31, 16  ;;  %v8147_v39 = vor.u32 %v9240_v35, %v8144_v36  ;;  %v320_v47 = vrot.slane %v9226_v31, 1 }
  0x2b   :  { %18576 = vst [vmem:[#allocation6_spill] sm:$0xff] %v10959_v54  ;;  %v387_v27 = vor.u32 %v386_v21, %v385_v20  ;;  %v390_v44 = vrot.slane %v216_v37, 2  ;;  %v218_v46 = vrot.slane %v216_v37, 1  ;;  %v8390_v21 = vld [vmem:[%s17962_s1 + $0x220] sm:$0xf]  ;;  %vm2468_vm7 = vcmask 998400  }
  0x2c   :  { %1358 = vmatpush.bf16.msrb.mxu0 %v8415_v28  ;;  %vm3087_vm8 = vcmask 1041408   ;;  %vm2954_vm9 = vcmask 1043456   ;;  %vm2661_vm10 = vcmask 277504   ;;  %vm3350_vm11 = vcmask 326656  }
  0x2d   :  { %1447 = vmatpush.bf16.msrb.mxu1 %v8163_v33  ;;  %v9305_v33 = vld [vmem:[%s17962_s1 + $0x234] sm:$0xf0]  ;;  %vm3804_vm12 = vcmask 982016   ;;  %vm3577_vm13 = vcmask 654336   ;;  %vm4061_vm14 = vcmask 261120   ;;  %vm5034_vm15 = vcmask 588800  }
  0x2e   :  { %v8399_v34 = vor.u32 %v9305_v33, %v8398_v32  ;;  %vm7127_vm3 = vcmask 1042434  }
  0x30   :  { %1359 = vmatpush.bf16.msrb.mxu0 %v8407_v61  ;;  %v594_v61 = vld [vmem:[%s17964_s2] sm:$0x3] }
  0x31   :  { %1448 = vmatpush.bf16.msrb.mxu1 %v8155_v2 }
  0x33   :  { %1013 = vmatmul.bf16.gmra.mxu0 %v10824_v19  ;;  %v10917_v19 = vsel %vm357_vm2, %v367_v8, %v371_v22 }
  0x34   :  { %1102 = vmatmul.bf16.gmra.mxu1 %v10895_v9  ;;  %18574 = vst [vmem:[#allocation4_spill] sm:$0xff] %v10917_v19  ;;  %1360 = vmatpush.bf16.msrb.mxu0 %v8399_v34 }
  0x35   :  { %1191 = vmatmul.bf16.gmra.mxu2 %v10898_v10  ;;  %1449 = vmatpush.bf16.msrb.mxu1 %v8147_v39 }
  0x36   :  { %1280 = vmatmul.bf16.gmra.mxu3 %v10901_v11 }
  0x43   :  { %1018 = vmatmul.bf16.gmra.mxu0 %v9220_v58  ;;  %v9224_v58 = vld [vmem:[%s17963_s0 + $0x30] sm:$0xff] }
  0x44   :  { %1107 = vmatmul.bf16.gmra.mxu1 %v10911_v23  ;;  %v200_v0 = vshll.u32 %v9224_v58, 16  ;;  %v204_v1 = vshrl.u32 %v9224_v58, 16  ;;  %v316_v7 = vrot.slane %v9224_v58, 1 }
  0x45   :  { %1196 = vmatmul.bf16.gmra.mxu2 %v10914_v24 }
  0x46   :  { %1285 = vmatmul.bf16.gmra.mxu3 %v10917_v19  ;;  %v381_v3 = vrot.slane %v204_v1, 1  ;;  %v382_v4 = vrot.slane %v200_v0, 2  ;;  %v202_v6 = vrot.slane %v200_v0, 1  ;;  %v10983_v13 = vsel %vm304_vm1, %v314_v50, %v316_v7 }
  0x47   :  { %v10998_v29 = vsel %vm304_vm1, %v316_v7, %v318_v26  ;;  %v11025_v50 = vsel %vm304_vm1, %v318_v26, %v320_v47  ;;  %v11043_v0 = vperm.slane %v594_v61, 0  ;;  %v9238_v26 = vld [vmem:[%s17962_s1 + $0x24] sm:$0xf] }
  0x48   :  { %v383_v8 = vor.u32 %v382_v4, %v381_v3  ;;  %v206_v22 = vor.u32 %v204_v1, %v202_v6  ;;  %v222_v1 = vor.u32 %v220_v38, %v218_v46 }
  0x4a   :  { %v10986_v14 = vsel %vm357_vm2, %v379_v51, %v383_v8  ;;  %v11001_v30 = vsel %vm357_vm2, %v383_v8, %v387_v27 }
  0x4b   :  { %18577 = vst [vmem:[#allocation7_spill] sm:$0xff] %v10986_v14 }
  0x4c   :  { %18578 = vst [vmem:[#allocation8_spill] sm:$0xff] %v11001_v30 }
  0x53   :  { %1023 = vmatmul.bf16.gmra.mxu0 %v9221_v12  ;;  %v10980_v12 = vsel %vm151_vm0, %v198_v5, %v202_v6 }
  0x54   :  { %1112 = vmatmul.bf16.gmra.mxu1 %v10938_v40 }
  0x55   :  { %1201 = vmatmul.bf16.gmra.mxu2 %v10941_v41 }
  0x56   :  { %1290 = vmatmul.bf16.gmra.mxu3 %v10944_v42  ;;  %v8192_v42 = vld [vmem:[%s17962_s1 + $0x98] sm:$0xf0] }
  0x63   :  { %1028 = vmatmul.bf16.gmra.mxu0 %v9222_v25  ;;  %v210_v25 = vrot.slane %v208_v16, 1 }
  0x64   :  { %1117 = vmatmul.bf16.gmra.mxu1 %v10953_v52 }
  0x65   :  { %1206 = vmatmul.bf16.gmra.mxu2 %v10956_v53  ;;  %v10995_v28 = vsel %vm151_vm0, %v206_v22, %v210_v25  ;;  %v214_v45 = vor.u32 %v212_v17, %v210_v25  ;;  %v11059_v17 = vld [vmem:[%s17963_s0 + $0x50] sm:$0xff]  ;;  %v9303_v22 = vld [vmem:[%s17962_s1 + $0x224] sm:$0xf0] }
  0x66   :  { %1295 = vmatmul.bf16.gmra.mxu3 %v10959_v54  ;;  %v8391_v25 = vor.u32 %v9303_v22, %v8390_v21  ;;  %v236_v32 = vshrl.u32 %v11059_v17, 16 }
  0x67   :  { %v11022_v49 = vsel %vm151_vm0, %v214_v45, %v218_v46 }
  0x68   :  { %1361 = vmatpush.bf16.msrb.mxu0 %v8391_v25 }
  0x73   :  { %1033 = vmatmul.bf16.gmra.mxu0 %v9223_v43  ;;  %v389_v43 = vrot.slane %v220_v38, 1 }
  0x74   :  { %1122 = vmatmul.bf16.gmra.mxu1 %v10980_v12 }
  0x75   :  { %1211 = vmatmul.bf16.gmra.mxu2 %v10983_v13  ;;  %v391_v48 = vor.u32 %v390_v44, %v389_v43  ;;  %v397_v44 = vrot.slane %v236_v32, 1 }
  0x76   :  { %1300 = vmatmul.bf16.gmra.mxu3 %v10986_v14 }
  0x77   :  { %v11028_v51 = vsel %vm357_vm2, %v387_v27, %v391_v48  ;;  %v8136_v27 = vld [vmem:[%s17962_s1 + $0x28] sm:$0xf0] }
  0x78   :  { %18579 = vst [vmem:[#allocation9_spill] sm:$0xff] %v11028_v51  ;;  %v8139_v33 = vor.u32 %v9238_v26, %v8136_v27 }
  0x7a   :  { %1450 = vmatpush.bf16.msrb.mxu1 %v8139_v33 }
  0x83   :  { %1038 = vmatmul.bf16.gmra.mxu0 %v9224_v58  ;;  %v11033_v58 = vld [vmem:[%s17963_s0 + $0x48] sm:$0xff] }
  0x84   :  { %1127 = vmatmul.bf16.gmra.mxu1 %v10995_v28  ;;  %v224_v59 = vshll.u32 %v11033_v58, 16  ;;  %v228_v60 = vshrl.u32 %v11033_v58, 16  ;;  %v322_v3 = vrot.slane %v11033_v58, 1 }
  0x85   :  { %1216 = vmatmul.bf16.gmra.mxu2 %v10998_v29 }
  0x86   :  { %1305 = vmatmul.bf16.gmra.mxu3 %v11001_v30  ;;  %v393_v62 = vrot.slane %v228_v60, 1  ;;  %v394_v63 = vrot.slane %v224_v59, 2  ;;  %v226_v2 = vrot.slane %v224_v59, 1  ;;  %v324_v59 = vrot.slane %v11059_v17, 1 }
  0x88   :  { %v395_v4 = vor.u32 %v394_v63, %v393_v62  ;;  %v11048_v8 = vsel %vm151_vm0, %v222_v1, %v226_v2  ;;  %v11087_v21 = vsel %vm304_vm1, %v322_v3, %v324_v59 }
  0x8a   :  { %v11054_v16 = vsel %vm357_vm2, %v391_v48, %v395_v4 }
  0x8b   :  { %18580 = vst [vmem:[#allocation10_spill] sm:$0xff] %v11054_v16 }
  0x93   :  { %1043 = vmatmul.bf16.gmra.mxu0 %v9225_v15  ;;  %v11051_v15 = vsel %vm304_vm1, %v320_v47, %v322_v3  ;;  %v230_v47 = vor.u32 %v228_v60, %v226_v2  ;;  %v11097_v2 = vld [vmem:[%s17963_s0 + $0x58] sm:$0xff] }
  0x94   :  { %1132 = vmatmul.bf16.gmra.mxu1 %v11022_v49  ;;  %v240_v3 = vshll.u32 %v11097_v2, 16  ;;  %v244_v26 = vshrl.u32 %v11097_v2, 16 }
  0x95   :  { %1221 = vmatmul.bf16.gmra.mxu2 %v11025_v50 }
  0x96   :  { %1310 = vmatmul.bf16.gmra.mxu3 %v11028_v51 }
  0xa0   :  { %v1009_v5 = vpop.f32.mrf.mxu0 }
  0xa1   :  { %v1010_v6 = vadd.f32 %v1009_v5, %v11043_v0  ;;  %v1098_v7 = vpop.f32.mrf.mxu1 }
  0xa3   :  { %v1099_v20 = vadd.f32 %v1098_v7, %v1010_v6  ;;  %1048 = vmatmul.bf16.gmra.mxu0 %v9226_v31  ;;  %v232_v31 = vshll.u32 %v11059_v17, 16 }
  0xa4   :  { %1137 = vmatmul.bf16.gmra.mxu1 %v11048_v8 }
  0xa5   :  { %1226 = vmatmul.bf16.gmra.mxu2 %v11051_v15  ;;  %v398_v45 = vrot.slane %v232_v31, 2  ;;  %v234_v48 = vrot.slane %v232_v31, 1 }
  0xa6   :  { %1315 = vmatmul.bf16.gmra.mxu3 %v11054_v16 }
  0xa7   :  { %v399_v61 = vor.u32 %v398_v45, %v397_v44  ;;  %v242_v44 = vrot.slane %v240_v3, 1  ;;  %v326_v45 = vrot.slane %v11097_v2, 1 }
  0xa8   :  { %v1187_v34 = vpop.f32.mrf.mxu2  ;;  %v1011_v36 = vpop.f32.mrf.mxu0 }
  0xa9   :  { %v1188_v35 = vadd.f32 %v1187_v34, %v1099_v20  ;;  %v1276_v37 = vpop.f32.mrf.mxu3  ;;  %v1012_v38 = vadd.f32 %v1011_v36, %v11043_v0  ;;  %v1100_v39 = vpop.f32.mrf.mxu1  ;;  %v11084_v20 = vsel %vm151_vm0, %v230_v47, %v234_v48  ;;  %v11092_v60 = vsel %vm357_vm2, %v395_v4, %v399_v61 }
  0xaa   :  { %18581 = vst [vmem:[#allocation11_spill] sm:$0xff] %v11092_v60 }
  0xab   :  { %v11079_v43 = vadd.f32 %v1276_v37, %v1188_v35  ;;  %v1101_v46 = vadd.f32 %v1100_v39, %v1012_v38  ;;  %v402_v37 = vrot.slane %v240_v3, 2  ;;  %v238_v39 = vor.u32 %v236_v32, %v234_v48  ;;  %v11124_v48 = vld [vmem:[%s17963_s0 + $0x60] sm:$0xff] }
  0xb0   :  { %v1189_v62 = vpop.f32.mrf.mxu2  ;;  %v1014_v1 = vpop.f32.mrf.mxu0 }
  0xb1   :  { %v1190_v63 = vadd.f32 %v1189_v62, %v1101_v46  ;;  %v1278_v5 = vpop.f32.mrf.mxu3  ;;  %v1015_v6 = vadd.f32 %v1014_v1, %v11043_v0  ;;  %v1103_v7 = vpop.f32.mrf.mxu1 }
  0xb3   :  { %v11089_v22 = vadd.f32 %v1278_v5, %v1190_v63  ;;  %v1104_v25 = vadd.f32 %v1103_v7, %v1015_v6  ;;  %1053 = vmatmul.bf16.gmra.mxu0 %v11033_v58  ;;  %v401_v58 = vrot.slane %v244_v26, 1  ;;  %v11111_v7 = vsel %vm151_vm0, %v238_v39, %v242_v44 }
  0xb4   :  { %1142 = vmatmul.bf16.gmra.mxu1 %v11084_v20 }
  0xb5   :  { %1231 = vmatmul.bf16.gmra.mxu2 %v11087_v21  ;;  %v403_v46 = vor.u32 %v402_v37, %v401_v58 }
  0xb6   :  { %1320 = vmatmul.bf16.gmra.mxu3 %v11092_v60 }
  0xb7   :  { %v11119_v32 = vsel %vm357_vm2, %v399_v61, %v403_v46  ;;  %v9301_v61 = vld [vmem:[%s17962_s1 + $0x214] sm:$0xf0] }
  0xb8   :  { %v1192_v4 = vpop.f32.mrf.mxu2  ;;  %v1016_v31 = vpop.f32.mrf.mxu0  ;;  %18582 = vst [vmem:[#allocation12_spill] sm:$0xff] %v11119_v32 }
  0xb9   :  { %v1193_v27 = vadd.f32 %v1192_v4, %v1104_v25  ;;  %v1281_v33 = vpop.f32.mrf.mxu3  ;;  %v1017_v34 = vadd.f32 %v1016_v31, %v11043_v0  ;;  %v1105_v35 = vpop.f32.mrf.mxu1  ;;  %v11114_v25 = vsel %vm304_vm1, %v324_v59, %v326_v45  ;;  %v8382_v59 = vld [vmem:[%s17962_s1 + $0x210] sm:$0xf]  ;;  %v9236_v31 = vld [vmem:[%s17962_s1 + $0x14] sm:$0xf] }
  0xbb   :  { %v11106_v36 = vadd.f32 %v1281_v33, %v1193_v27  ;;  %v1106_v38 = vadd.f32 %v1105_v35, %v1017_v34  ;;  %v8383_v27 = vor.u32 %v9301_v61, %v8382_v59  ;;  %v248_v33 = vshll.u32 %v11124_v48, 16 }
  0xbc   :  { %v252_v34 = vshrl.u32 %v11124_v48, 16  ;;  %v246_v59 = vor.u32 %v244_v26, %v242_v44  ;;  %v11163_v44 = vld [vmem:[%s17963_s0 + $0x68] sm:$0xff] }
  0xbd   :  { %1362 = vmatpush.bf16.msrb.mxu0 %v8383_v27  ;;  %v250_v61 = vrot.slane %v248_v33, 1 }
  0xc0   :  { %v1194_v47 = vpop.f32.mrf.mxu2  ;;  %v1019_v63 = vpop.f32.mrf.mxu0 }
  0xc1   :  { %v1195_v62 = vadd.f32 %v1194_v47, %v1106_v38  ;;  %v1283_v1 = vpop.f32.mrf.mxu3  ;;  %v1020_v5 = vadd.f32 %v1019_v63, %v11043_v0  ;;  %v1108_v6 = vpop.f32.mrf.mxu1 }
  0xc3   :  { %v11116_v4 = vadd.f32 %v1283_v1, %v1195_v62  ;;  %v1109_v3 = vadd.f32 %v1108_v6, %v1020_v5  ;;  %1058 = vmatmul.bf16.gmra.mxu0 %v11059_v17  ;;  %v8128_v17 = vld [vmem:[%s17962_s1 + $0x18] sm:$0xf0]  ;;  %v405_v1 = vrot.slane %v252_v34, 1  ;;  %v406_v5 = vrot.slane %v248_v33, 2 }
  0xc4   :  { %1147 = vmatmul.bf16.gmra.mxu1 %v11111_v7  ;;  %v8131_v35 = vor.u32 %v9236_v31, %v8128_v17 }
  0xc5   :  { %1236 = vmatmul.bf16.gmra.mxu2 %v11114_v25  ;;  %v407_v60 = vor.u32 %v406_v5, %v405_v1 }
  0xc6   :  { %1325 = vmatmul.bf16.gmra.mxu3 %v11119_v32  ;;  %1451 = vmatpush.bf16.msrb.mxu1 %v8131_v35  ;;  %v328_v32 = vrot.slane %v11124_v48, 1 }
  0xc7   :  { %v11158_v26 = vsel %vm357_vm2, %v403_v46, %v407_v60 }
  0xc8   :  { %v1197_v58 = vpop.f32.mrf.mxu2  ;;  %v1021_v38 = vpop.f32.mrf.mxu0  ;;  %18583 = vst [vmem:[#allocation13_spill] sm:$0xff] %v11158_v26 }
  0xc9   :  { %v1198_v37 = vadd.f32 %v1197_v58, %v1109_v3  ;;  %v1286_v39 = vpop.f32.mrf.mxu3  ;;  %v1022_v47 = vadd.f32 %v1021_v38, %v11043_v0  ;;  %v1110_v62 = vpop.f32.mrf.mxu1  ;;  %v11150_v38 = vsel %vm151_vm0, %v246_v59, %v250_v61 }
  0xcb   :  { %v11145_v63 = vadd.f32 %v1286_v39, %v1198_v37  ;;  %v1111_v6 = vadd.f32 %v1110_v62, %v1022_v47  ;;  %v11153_v37 = vsel %vm304_vm1, %v326_v45, %v328_v32  ;;  %v256_v45 = vshll.u32 %v11163_v44, 16 }
  0xcc   :  { %v17981_v47 = vshrl.u32 %v11163_v44, 16 }
  0xd0   :  { %v1199_v31 = vpop.f32.mrf.mxu2  ;;  %v1024_v27 = vpop.f32.mrf.mxu0 }
  0xd1   :  { %v1200_v17 = vadd.f32 %v1199_v31, %v1111_v6  ;;  %v1288_v3 = vpop.f32.mrf.mxu3  ;;  %v1025_v58 = vadd.f32 %v1024_v27, %v11043_v0  ;;  %v1113_v35 = vpop.f32.mrf.mxu1 }
  0xd3   :  { %v11155_v39 = vadd.f32 %v1288_v3, %v1200_v17  ;;  %v1114_v33 = vadd.f32 %v1113_v35, %v1025_v58  ;;  %1063 = vmatmul.bf16.gmra.mxu0 %v11097_v2  ;;  %v409_v2 = vrot.slane %v17981_v47, 1  ;;  %v410_v17 = vrot.slane %v256_v45, 2 }
  0xd4   :  { %1152 = vmatmul.bf16.gmra.mxu1 %v11150_v38  ;;  %v254_v3 = vor.u32 %v252_v34, %v250_v61  ;;  %v258_v58 = vrot.slane %v256_v45, 1  ;;  %v17980_v35 = vrot.slane %v11163_v44, 1  ;;  %v9264_v45 = vld [vmem:[%s17962_s1 + $0xf4] sm:$0xf] }
  0xd5   :  { %1241 = vmatmul.bf16.gmra.mxu2 %v11153_v37 }
  0xd6   :  { %1330 = vmatmul.bf16.gmra.mxu3 %v11158_v26  ;;  %v11177_v26 = vor.u32 %v410_v17, %v409_v2  ;;  %v9280_v2 = vld [vmem:[%s17962_s1 + $0x174] sm:$0xf]  ;;  %v8120_v17 = vld [vmem:[%s17962_s1 + $0x8] sm:$0xf0] }
  0xd8   :  { %v1202_v46 = vpop.f32.mrf.mxu2  ;;  %v1026_v1 = vpop.f32.mrf.mxu0  ;;  %v11192_v61 = vsel %vm357_vm2, %v407_v60, %v11177_v26  ;;  %v8374_v60 = vld [vmem:[%s17962_s1 + $0x200] sm:$0xf] }
  0xd9   :  { %v1203_v62 = vadd.f32 %v1202_v46, %v1114_v33  ;;  %v1291_v5 = vpop.f32.mrf.mxu3  ;;  %v1027_v6 = vadd.f32 %v1026_v1, %v11043_v0  ;;  %v1115_v59 = vpop.f32.mrf.mxu1  ;;  %18584 = vst [vmem:[#allocation14_spill] sm:$0xff] %v11192_v61 }
  0xdb   :  { %v11172_v31 = vadd.f32 %v1291_v5, %v1203_v62  ;;  %v1116_v27 = vadd.f32 %v1115_v59, %v1027_v6  ;;  %v11181_v62 = vsel %vm151_vm0, %v254_v3, %v258_v58  ;;  %v11186_v5 = vsel %vm304_vm1, %v328_v32, %v17980_v35  ;;  %v8240_v32 = vld [vmem:[%s17962_s1 + $0xf8] sm:$0xf0]  ;;  %v9299_v59 = vld [vmem:[%s17962_s1 + $0x204] sm:$0xf0] }
  0xe0   :  { %v1204_v16 = vpop.f32.mrf.mxu2  ;;  %v1029_v46 = vpop.f32.mrf.mxu0 }
  0xe1   :  { %v1205_v33 = vadd.f32 %v1204_v16, %v1116_v27  ;;  %v1293_v51 = vpop.f32.mrf.mxu3  ;;  %v1030_v1 = vadd.f32 %v1029_v46, %v11043_v0  ;;  %v1118_v30 = vpop.f32.mrf.mxu1  ;;  %v11197_v16 = vld [vmem:[%s17963_s0 + $0x70] sm:$0xff]  ;;  %v8304_v27 = vld [vmem:[%s17962_s1 + $0x178] sm:$0xf0] }
  0xe2   :  { %v264_v3 = vshll.u32 %v11197_v16, 16 }
  0xe3   :  { %v11188_v34 = vadd.f32 %v1293_v51, %v1205_v33  ;;  %v1119_v6 = vadd.f32 %v1118_v30, %v1030_v1  ;;  %1068 = vmatmul.bf16.gmra.mxu0 %v11124_v48  ;;  %v8243_v51 = vor.u32 %v9264_v45, %v8240_v32  ;;  %v8375_v30 = vor.u32 %v9299_v59, %v8374_v60  ;;  %v9234_v48 = vld [vmem:[%s17962_s1 + $0x4] sm:$0xf]  ;;  %v8232_v32 = vld [vmem:[%s17962_s1 + $0xe8] sm:$0xf0] }
  0xe4   :  { %1157 = vmatmul.bf16.gmra.mxu1 %v11181_v62  ;;  %v8123_v46 = vor.u32 %v9234_v48, %v8120_v17  ;;  %v8307_v1 = vor.u32 %v9280_v2, %v8304_v27  ;;  %v9262_v45 = vld [vmem:[%s17962_s1 + $0xe4] sm:$0xf]  ;;  %v8296_v48 = vld [vmem:[%s17962_s1 + $0x168] sm:$0xf0] }
  0xe5   :  { %1246 = vmatmul.bf16.gmra.mxu2 %v11186_v5  ;;  %1363 = vmatpush.bf16.msrb.mxu0 %v8375_v30  ;;  %v8235_v60 = vor.u32 %v9262_v45, %v8232_v32  ;;  %v9278_v2 = vld [vmem:[%s17962_s1 + $0x164] sm:$0xf]  ;;  %v8224_v32 = vld [vmem:[%s17962_s1 + $0xd8] sm:$0xf0] }
  0xe6   :  { %1335 = vmatmul.bf16.gmra.mxu3 %v11192_v61  ;;  %1534 = vmatpush.bf16.msrb.mxu2 %v8243_v51  ;;  %v8299_v33 = vor.u32 %v9278_v2, %v8296_v48  ;;  %v266_v2 = vrot.slane %v264_v3, 1  ;;  %v17985_v48 = vrot.slane %v11197_v16, 1 }
  0xe7   :  { %1452 = vmatpush.bf16.msrb.mxu1 %v8123_v46  ;;  %1623 = vmatpush.bf16.msrb.mxu3 %v8307_v1  ;;  %v414_v46 = vrot.slane %v264_v3, 2  ;;  %v9260_v1 = vld [vmem:[%s17962_s1 + $0xd4] sm:$0xf]  ;;  %v8280_v3 = vld [vmem:[%s17962_s1 + $0x148] sm:$0xf0] }
  0xe8   :  { %v1207_v51 = vpop.f32.mrf.mxu2  ;;  %v1031_v35 = vpop.f32.mrf.mxu0  ;;  %v8227_v61 = vor.u32 %v9260_v1, %v8224_v32 }
  0xe9   :  { %v1208_v59 = vadd.f32 %v1207_v51, %v1119_v6  ;;  %v1296_v47 = vpop.f32.mrf.mxu3  ;;  %v1032_v17 = vadd.f32 %v1031_v35, %v11043_v0  ;;  %v1120_v27 = vpop.f32.mrf.mxu1  ;;  %v18585_v6 = vshrl.u32 %v11197_v16, 16  ;;  %v8288_v35 = vld [vmem:[%s17962_s1 + $0x158] sm:$0xf0] }
  0xea   :  { %1535 = vmatpush.bf16.msrb.mxu2 %v8235_v60  ;;  %v18586_v60 = vshrl.u32 %v11163_v44, 16 }
  0xeb   :  { %v11242_v30 = vadd.f32 %v1296_v47, %v1208_v59  ;;  %v413_v45 = vrot.slane %v18585_v6, 1  ;;  %v1121_v51 = vadd.f32 %v1120_v27, %v1032_v17  ;;  %1624 = vmatpush.bf16.msrb.mxu3 %v8299_v33  ;;  %v9276_v47 = vld [vmem:[%s17962_s1 + $0x154] sm:$0xf]  ;;  %v9258_v33 = vld [vmem:[%s17962_s1 + $0xc4] sm:$0xf] }
  0xec   :  { %v262_v59 = vor.u32 %v18586_v60, %v258_v58  ;;  %v8291_v6 = vor.u32 %v9276_v47, %v8288_v35  ;;  %v8216_v17 = vld [vmem:[%s17962_s1 + $0xc8] sm:$0xf0] }
  0xed   :  { %v11261_v14 = vor.u32 %v414_v46, %v413_v45  ;;  %v8219_v1 = vor.u32 %v9258_v33, %v8216_v17  ;;  %v9256_v33 = vld [vmem:[%s17962_s1 + $0xb4] sm:$0xf]  ;;  %v8208_v17 = vld [vmem:[%s17962_s1 + $0xb8] sm:$0xf0] }
  0xee   :  { %1536 = vmatpush.bf16.msrb.mxu2 %v8227_v61  ;;  %v9274_v61 = vld [vmem:[%s17962_s1 + $0x144] sm:$0xf]  ;;  %v11277_v47 = vsel %vm151_vm0, %v262_v59, %v266_v2 }
  0xef   :  { %1625 = vmatpush.bf16.msrb.mxu3 %v8291_v6  ;;  %v11291_v6 = vsel %vm357_vm2, %v11177_v26, %v11261_v14  ;;  %v8283_v59 = vor.u32 %v9274_v61, %v8280_v3  ;;  %v9272_v26 = vld [vmem:[%s17962_s1 + $0x134] sm:$0xf]  ;;  %v9254_v3 = vld [vmem:[%s17962_s1 + $0xa4] sm:$0xf] }
  0xf0   :  { %v1209_v27 = vpop.f32.mrf.mxu2  ;;  %v1034_v54 = vpop.f32.mrf.mxu0  ;;  %18588 = vst [vmem:[#allocation15_spill] sm:$0xff] %v11291_v6 }
  0xf1   :  { %v1210_v32 = vadd.f32 %v1209_v27, %v1121_v51  ;;  %v1298_v58 = vpop.f32.mrf.mxu3  ;;  %v1035_v45 = vadd.f32 %v1034_v54, %v11043_v0  ;;  %v1123_v46 = vpop.f32.mrf.mxu1  ;;  %v18587_v51 = vrot.slane %v11163_v44, 1  ;;  %v11296_v54 = vld [vmem:[%s17963_s0 + $0x78] sm:$0xff] }
  0xf2   :  { %1537 = vmatpush.bf16.msrb.mxu2 %v8219_v1  ;;  %v8211_v1 = vor.u32 %v9256_v33, %v8208_v17 }
  0xf3   :  { %v11284_v35 = vsel %vm304_vm1, %v18587_v51, %v17985_v48  ;;  %v11286_v60 = vadd.f32 %v1298_v58, %v1210_v32  ;;  %v1124_v27 = vadd.f32 %v1123_v46, %v1035_v45  ;;  %1073 = vmatmul.bf16.gmra.mxu0 %v11163_v44  ;;  %v8272_v32 = vld [vmem:[%s17962_s1 + $0x138] sm:$0xf0]  ;;  %v272_v58 = vshll.u32 %v11296_v54, 16  ;;  %1626 = vmatpush.bf16.msrb.mxu3 %v8283_v59  ;;  %v8200_v45 = vld [vmem:[%s17962_s1 + $0xa8] sm:$0xf0] }
  0xf4   :  { %1162 = vmatmul.bf16.gmra.mxu1 %v11277_v47  ;;  %v8275_v61 = vor.u32 %v9272_v26, %v8272_v32  ;;  %v8203_v51 = vor.u32 %v9254_v3, %v8200_v45  ;;  %v8264_v59 = vld [vmem:[%s17962_s1 + $0x128] sm:$0xf0] }
  0xf5   :  { %1251 = vmatmul.bf16.gmra.mxu2 %v11284_v35 }
  0xf6   :  { %1340 = vmatmul.bf16.gmra.mxu3 %v11291_v6  ;;  %1538 = vmatpush.bf16.msrb.mxu2 %v8211_v1  ;;  %v9270_v1 = vld [vmem:[%s17962_s1 + $0x124] sm:$0xf]  ;;  %v18589_v6 = vshrl.u32 %v11296_v54, 16 }
  0xf7   :  { %1627 = vmatpush.bf16.msrb.mxu3 %v8275_v61  ;;  %v8267_v45 = vor.u32 %v9270_v1, %v8264_v59  ;;  %v18590_v61 = vshrl.u32 %v11197_v16, 16 }
  0xf8   :  { %v1212_v46 = vpop.f32.mrf.mxu2  ;;  %v1036_v17 = vpop.f32.mrf.mxu0  ;;  %v417_v3 = vrot.slane %v18589_v6, 1  ;;  %v8256_v6 = vld [vmem:[%s17962_s1 + $0x118] sm:$0xf0] }
  0xf9   :  { %v1213_v33 = vadd.f32 %v1212_v46, %v1124_v27  ;;  %v1301_v48 = vpop.f32.mrf.mxu3  ;;  %v1037_v26 = vadd.f32 %v1036_v17, %v11043_v0  ;;  %v1125_v32 = vpop.f32.mrf.mxu1  ;;  %v418_v27 = vrot.slane %v272_v58, 2  ;;  %v9252_v46 = vld [vmem:[%s17962_s1 + $0x94] sm:$0xf] }
  0xfa   :  { %1539 = vmatpush.bf16.msrb.mxu2 %v8203_v51  ;;  %v8195_v17 = vor.u32 %v9252_v46, %v8192_v42  ;;  %v270_v51 = vor.u32 %v18590_v61, %v266_v2  ;;  %v8184_v46 = vld [vmem:[%s17962_s1 + $0x88] sm:$0xf0] }
  0xfb   :  { %v11329_v44 = vadd.f32 %v1301_v48, %v1213_v33  ;;  %v1126_v19 = vadd.f32 %v1125_v32, %v1037_v26  ;;  %v9268_v48 = vld [vmem:[%s17962_s1 + $0x114] sm:$0xf]  ;;  %v274_v33 = vrot.slane %v272_v58, 1  ;;  %v11348_v59 = vor.u32 %v418_v27, %v417_v3  ;;  %1628 = vmatpush.bf16.msrb.mxu3 %v8267_v45  ;;  %v9250_v32 = vld [vmem:[%s17962_s1 + $0x84] sm:$0xf] }
  0xfc   :  { %v9482_v26 = vunpack.c.l.b16 %v10819_v18  ;;  %v8259_v42 = vor.u32 %v9268_v48, %v8256_v6  ;;  %v8187_v2 = vor.u32 %v9250_v32, %v8184_v46  ;;  %v9266_v3 = vld [vmem:[%s17962_s1 + $0x104] sm:$0xf]  ;;  %v8248_v18 = vld [vmem:[%s17962_s1 + $0x108] sm:$0xf0]  ;;  %v18592_v48 = vrot.slane %v11296_v54, 1 }
  0xfd   :  { %v11379_v32 = vsel %vm357_vm2, %v11261_v14, %v11348_v59  ;;  %v8368_v14 = vld [vmem:[%s17962_s1 + $0x1f8] sm:$0xf0]  ;;  %vm7124_vm2 = vcmask 1041409  }
  0xfe   :  { %1540 = vmatpush.bf16.msrb.mxu2 %v8195_v17  ;;  %v11365_v17 = vsel %vm151_vm0, %v270_v51, %v274_v33  ;;  %18596 = vst [vmem:[#allocation19_spill] sm:$0xff] %v11379_v32  ;;  %v11381_v46 = vpack.c.b16 %v9482_v26, %v9482_v26  ;;  %v8251_v51 = vor.u32 %v9266_v3, %v8248_v18  ;;  %vm6815_vm0 = vcmask 916480  }
  0xff   :  { %18591 = vst [vmem:[#allocation16_spill] sm:$0xff] %v11365_v17  ;;  %1629 = vmatpush.bf16.msrb.mxu3 %v8259_v42  ;;  %v9312_v42 = vld [vmem:[%s17962_s1 + $0x274] sm:$0xf] }
 0x100   :  { %v1214_v11 = vpop.f32.mrf.mxu2  ;;  %v1039_v61 = vpop.f32.mrf.mxu0 }
 0x101   :  { %v1215_v58 = vadd.f32 %v1214_v11, %v1126_v19  ;;  %v1303_v1 = vpop.f32.mrf.mxu3  ;;  %v1040_v27 = vadd.f32 %v1039_v61, %v11043_v0  ;;  %v1128_v45 = vpop.f32.mrf.mxu1  ;;  %v18593_v11 = vrot.slane %v11197_v16, 1 }
 0x102   :  { %1541 = vmatpush.bf16.msrb.mxu2 %v8187_v2  ;;  %v297_v2 = vshll.u32 %v11381_v46, 16 }
 0x103   :  { %v11372_v19 = vsel %vm304_vm1, %v18593_v11, %v18592_v48  ;;  %v11374_v6 = vadd.f32 %v1303_v1, %v1215_v58  ;;  %v1129_v61 = vadd.f32 %v1128_v45, %v1040_v27  ;;  %1078 = vmatmul.bf16.gmra.mxu0 %v11197_v16  ;;  %v9296_v1 = vld [vmem:[%s17962_s1 + $0x1f4] sm:$0xf]  ;;  %v8432_v16 = vld [vmem:[%s17962_s1 + $0x278] sm:$0xf0]  ;;  %v437_v58 = vshrl.u32 %v11381_v46, 16  ;;  %1630 = vmatpush.bf16.msrb.mxu3 %v8251_v51 }
 0x104   :  { %18594 = vst [vmem:[#allocation17_spill] sm:$0xff] %v11372_v19  ;;  %1167 = vmatmul.bf16.gmra.mxu1 %v11365_v17  ;;  %v8371_v26 = vor.u32 %v9296_v1, %v8368_v14  ;;  %v8435_v3 = vor.u32 %v9312_v42, %v8432_v16  ;;  %v440_v57 = vrot.slane %v297_v2, 2  ;;  %v18597_v17 = vshrl.u32 %v11296_v54, 16 }
 0x105   :  { %18595 = vst [vmem:[#allocation18_spill] sm:$0xff] %v11374_v6  ;;  %1256 = vmatmul.bf16.gmra.mxu2 %v11372_v19  ;;  %v299_v51 = vrot.slane %v297_v2, 1  ;;  %v351_v42 = vrot.slane %v11381_v46, 1 }
 0x106   :  { %1345 = vmatmul.bf16.gmra.mxu3 %v11379_v32  ;;  %1712 = vmatpush.bf16.msra.mxu0 %v8371_v26  ;;  %v439_v32 = vrot.slane %v437_v58, 1  ;;  %v278_v6 = vor.u32 %v18597_v17, %v274_v33  ;;  %v18598_v33 = vrot.slane %v11296_v54, 1 }
 0x107   :  { %1801 = vmatpush.bf16.msra.mxu1 %v8435_v3 }
 0x108   :  { %v1217_v18 = vpop.f32.mrf.mxu2  ;;  %v1041_v45 = vpop.f32.mrf.mxu0  ;;  %v11416_v17 = vsel %vm304_vm1, %v18598_v33, %v351_v42 }
 0x109   :  { %v1218_v27 = vadd.f32 %v1217_v18, %v1129_v61  ;;  %v1306_v48 = vpop.f32.mrf.mxu3  ;;  %v1042_v11 = vadd.f32 %v1041_v45, %v11043_v0  ;;  %v1130_v1 = vpop.f32.mrf.mxu1  ;;  %v441_v61 = vor.u32 %v440_v57, %v439_v32  ;;  %v11411_v45 = vsel %vm302_vm4, %v278_v6, %v299_v51 }
 0x10a   :  { %vm7130_vm4 = vcmask 1043459  }
 0x10b   :  { %v11402_v14 = vadd.f32 %v1306_v48, %v1218_v27  ;;  %v1131_v19 = vadd.f32 %v1130_v1, %v1042_v11  ;;  %v11421_v57 = vsel %vm443_vm5, %v11348_v59, %v441_v61  ;;  %vm7132_vm5 = vcmask 1044484  }
 0x10c   :  { %18599 = vst [vmem:[#allocation20_spill] sm:$0xff] %v11421_v57 }
 0x110   :  { %v1219_v26 = vpop.f32.mrf.mxu2  ;;  %v1044_v3 = vpop.f32.mrf.mxu0 }
 0x111   :  { %v1220_v16 = vadd.f32 %v1219_v26, %v1131_v19  ;;  %v1308_v18 = vpop.f32.mrf.mxu3  ;;  %v1045_v58 = vadd.f32 %v1044_v3, %v11043_v0  ;;  %v1133_v27 = vpop.f32.mrf.mxu1  ;;  %v10556_v26 = vld [vmem:[%s17963_s0 + $0x8] sm:$0xff] }
 0x113   :  { %v11418_v2 = vadd.f32 %v1308_v18, %v1220_v16  ;;  %v1134_v32 = vadd.f32 %v1133_v27, %v1045_v58  ;;  %1083 = vmatmul.bf16.gmra.mxu0 %v11296_v54  ;;  %v10555_v54 = vld [vmem:[%s17963_s0] sm:$0xff]   ;;  %v447_v16 = vrot.slane %v10556_v26, 2 }
 0x114   :  { %1172 = vmatmul.bf16.gmra.mxu1 %v11411_v45  ;;  %v446_v61 = vrot.slane %v10555_v54, 2 }
 0x115   :  { %1261 = vmatmul.bf16.gmra.mxu2 %v11416_v17 }
 0x116   :  { %1350 = vmatmul.bf16.gmra.mxu3 %v11421_v57  ;;  %v11437_v33 = vsel %vm445_vm6, %v446_v61, %v447_v16 }
 0x117   :  { %18600 = vst [vmem:[#allocation21_spill] sm:$0xff] %v11437_v33 }
 0x118   :  { %v1222_v19 = vpop.f32.mrf.mxu2  ;;  %v1046_v48 = vpop.f32.mrf.mxu0 }
 0x119   :  { %v1223_v6 = vadd.f32 %v1222_v19, %v1134_v32  ;;  %v1311_v11 = vpop.f32.mrf.mxu3  ;;  %v1047_v1 = vadd.f32 %v1046_v48, %v11043_v0  ;;  %v1135_v51 = vpop.f32.mrf.mxu1 }
 0x11b   :  { %v11428_v42 = vadd.f32 %v1311_v11, %v1223_v6  ;;  %v1136_v59 = vadd.f32 %v1135_v51, %v1047_v1  ;;  %v9294_v11 = vld [vmem:[%s17962_s1 + $0x1e4] sm:$0xf]  ;;  %v8360_v1 = vld [vmem:[%s17962_s1 + $0x1e8] sm:$0xf0] }
 0x11c   :  { %v8363_v51 = vor.u32 %v9294_v11, %v8360_v1  ;;  %v10557_v11 = vld [vmem:[%s17963_s0 + $0x10] sm:$0xff] }
 0x11d   :  { %v449_v1 = vrot.slane %v10557_v11, 2 }
 0x11e   :  { %1713 = vmatpush.bf16.msra.mxu0 %v8363_v51 }
 0x120   :  { %v1224_v3 = vpop.f32.mrf.mxu2  ;;  %v1049_v58 = vpop.f32.mrf.mxu0 }
 0x121   :  { %v1225_v18 = vadd.f32 %v1224_v3, %v1136_v59  ;;  %v1313_v27 = vpop.f32.mrf.mxu3  ;;  %v1050_v32 = vadd.f32 %v1049_v58, %v11043_v0  ;;  %v1138_v19 = vpop.f32.mrf.mxu1  ;;  %v9310_v59 = vld [vmem:[%s17962_s1 + $0x264] sm:$0xf] }
 0x123   :  { %v11440_v6 = vadd.f32 %v1313_v27, %v1225_v18  ;;  %v1139_v48 = vadd.f32 %v1138_v19, %v1050_v32  ;;  %1364 = vmatmul.bf16.vlgmr.msrb.gmra.mxu0 %v11437_v33 }
 0x124   :  { %1453 = vmatmul.bf16.vlgmr.msrb.gmra.mxu1 %v10555_v54  ;;  %v8424_v54 = vld [vmem:[%s17962_s1 + $0x268] sm:$0xf0] }
 0x125   :  { %1542 = vmatmul.bf16.vlgmr.msrb.gmra.mxu2 %v10865_v55  ;;  %v8427_v55 = vor.u32 %v9310_v59, %v8424_v54 }
 0x126   :  { %1631 = vmatmul.bf16.vlgmr.msrb.gmra.mxu3 %v10868_v56 }
 0x127   :  { %1802 = vmatpush.bf16.msra.mxu1 %v8427_v55 }
 0x128   :  { %v1227_v61 = vpop.f32.mrf.mxu2  ;;  %v1051_v18 = vpop.f32.mrf.mxu0 }
 0x129   :  { %v1228_v3 = vadd.f32 %v1227_v61, %v1139_v48  ;;  %v1316_v58 = vpop.f32.mrf.mxu3  ;;  %v1052_v27 = vadd.f32 %v1051_v18, %v11043_v0  ;;  %v1140_v32 = vpop.f32.mrf.mxu1  ;;  %v11464_v48 = vsel %vm445_vm6, %v447_v16, %v449_v1 }
 0x12b   :  { %v11458_v56 = vadd.f32 %v1316_v58, %v1228_v3  ;;  %v1141_v19 = vadd.f32 %v1140_v32, %v1052_v27 }
 0x130   :  { %v1229_v57 = vpop.f32.mrf.mxu2  ;;  %v1054_v59 = vpop.f32.mrf.mxu0 }
 0x131   :  { %v1230_v33 = vadd.f32 %v1229_v57, %v1141_v19  ;;  %v1318_v54 = vpop.f32.mrf.mxu3  ;;  %v1055_v51 = vadd.f32 %v1054_v59, %v11043_v0  ;;  %v1143_v55 = vpop.f32.mrf.mxu1 }
 0x133   :  { %v11467_v61 = vadd.f32 %v1318_v54, %v1230_v33  ;;  %v1144_v3 = vadd.f32 %v1143_v55, %v1055_v51  ;;  %1369 = vmatmul.bf16.gmra.mxu0 %v11464_v48  ;;  %v10558_v33 = vld [vmem:[%s17963_s0 + $0x18] sm:$0xff] }
 0x134   :  { %1458 = vmatmul.bf16.gmra.mxu1 %v10556_v26  ;;  %v451_v54 = vrot.slane %v10558_v33, 2 }
 0x135   :  { %1547 = vmatmul.bf16.gmra.mxu2 %v10895_v9 }
 0x136   :  { %1636 = vmatmul.bf16.gmra.mxu3 %v10898_v10  ;;  %v11479_v10 = vsel %vm445_vm6, %v449_v1, %v451_v54  ;;  %v8352_v1 = vld [vmem:[%s17962_s1 + $0x1d8] sm:$0xf0] }
 0x137   :  { %18601 = vst [vmem:[#allocation22_spill] sm:$0xff] %v11479_v10 }
 0x138   :  { %v1232_v18 = vpop.f32.mrf.mxu2  ;;  %v1056_v58 = vpop.f32.mrf.mxu0 }
 0x139   :  { %v1233_v57 = vadd.f32 %v1232_v18, %v1144_v3  ;;  %v1321_v27 = vpop.f32.mrf.mxu3  ;;  %v1057_v16 = vadd.f32 %v1056_v58, %v11043_v0  ;;  %v1145_v32 = vpop.f32.mrf.mxu1 }
 0x13b   :  { %v11473_v19 = vadd.f32 %v1321_v27, %v1233_v57  ;;  %v1146_v59 = vadd.f32 %v1145_v32, %v1057_v16  ;;  %v9292_v27 = vld [vmem:[%s17962_s1 + $0x1d4] sm:$0xf] }
 0x13c   :  { %v8355_v16 = vor.u32 %v9292_v27, %v8352_v1  ;;  %v9308_v32 = vld [vmem:[%s17962_s1 + $0x254] sm:$0xf]  ;;  %v10559_v27 = vld [vmem:[%s17963_s0 + $0x20] sm:$0xff] }
 0x13d   :  { %v453_v1 = vrot.slane %v10559_v27, 2 }
 0x13e   :  { %1714 = vmatpush.bf16.msra.mxu0 %v8355_v16 }
 0x140   :  { %v1234_v26 = vpop.f32.mrf.mxu2  ;;  %v1059_v9 = vpop.f32.mrf.mxu0 }
 0x141   :  { %v1235_v51 = vadd.f32 %v1234_v26, %v1146_v59  ;;  %v1323_v55 = vpop.f32.mrf.mxu3  ;;  %v1060_v3 = vadd.f32 %v1059_v9, %v11043_v0  ;;  %v1148_v18 = vpop.f32.mrf.mxu1 }
 0x143   :  { %v11482_v58 = vadd.f32 %v1323_v55, %v1235_v51  ;;  %v1149_v57 = vadd.f32 %v1148_v18, %v1060_v3  ;;  %1374 = vmatmul.bf16.gmra.mxu0 %v11479_v10 }
 0x144   :  { %1463 = vmatmul.bf16.gmra.mxu1 %v10557_v11  ;;  %v8416_v11 = vld [vmem:[%s17962_s1 + $0x258] sm:$0xf0] }
 0x145   :  { %18602 = vst [vmem:[#allocation23_spill] sm:$0xff] %v11482_v58  ;;  %1552 = vmatmul.bf16.gmra.mxu2 %v10911_v23  ;;  %v8419_v23 = vor.u32 %v9308_v32, %v8416_v11 }
 0x146   :  { %1641 = vmatmul.bf16.gmra.mxu3 %v10914_v24 }
 0x147   :  { %1803 = vmatpush.bf16.msra.mxu1 %v8419_v23 }
 0x148   :  { %v1237_v59 = vpop.f32.mrf.mxu2  ;;  %v1061_v51 = vpop.f32.mrf.mxu0 }
 0x149   :  { %v1238_v26 = vadd.f32 %v1237_v59, %v1149_v57  ;;  %v1326_v9 = vpop.f32.mrf.mxu3  ;;  %v1062_v55 = vadd.f32 %v1061_v51, %v11043_v0  ;;  %v1150_v3 = vpop.f32.mrf.mxu1  ;;  %v11506_v57 = vsel %vm445_vm6, %v451_v54, %v453_v1 }
 0x14b   :  { %v11500_v24 = vadd.f32 %v1326_v9, %v1238_v26  ;;  %v1151_v18 = vadd.f32 %v1150_v3, %v1062_v55 }
 0x150   :  { %v1239_v10 = vpop.f32.mrf.mxu2  ;;  %v1064_v32 = vpop.f32.mrf.mxu0 }
 0x151   :  { %v1240_v58 = vadd.f32 %v1239_v10, %v1151_v18  ;;  %v1328_v11 = vpop.f32.mrf.mxu3  ;;  %v1065_v16 = vadd.f32 %v1064_v32, %v11043_v0  ;;  %v1153_v23 = vpop.f32.mrf.mxu1 }
 0x153   :  { %v11509_v59 = vadd.f32 %v1328_v11, %v1240_v58  ;;  %v1154_v26 = vadd.f32 %v1153_v23, %v1065_v16  ;;  %1379 = vmatmul.bf16.gmra.mxu0 %v11506_v57  ;;  %v10560_v58 = vld [vmem:[%s17963_s0 + $0x28] sm:$0xff] }
 0x154   :  { %1468 = vmatmul.bf16.gmra.mxu1 %v10558_v33  ;;  %v455_v11 = vrot.slane %v10560_v58, 2 }
 0x155   :  { %1557 = vmatmul.bf16.gmra.mxu2 %v10938_v40 }
 0x156   :  { %1646 = vmatmul.bf16.gmra.mxu3 %v10941_v41  ;;  %v11521_v41 = vsel %vm445_vm6, %v453_v1, %v455_v11  ;;  %v8344_v1 = vld [vmem:[%s17962_s1 + $0x1c8] sm:$0xf0] }
 0x157   :  { %18603 = vst [vmem:[#allocation24_spill] sm:$0xff] %v11521_v41 }
 0x158   :  { %v1242_v51 = vpop.f32.mrf.mxu2  ;;  %v1066_v9 = vpop.f32.mrf.mxu0 }
 0x159   :  { %v1243_v10 = vadd.f32 %v1242_v51, %v1154_v26  ;;  %v1331_v55 = vpop.f32.mrf.mxu3  ;;  %v1067_v54 = vadd.f32 %v1066_v9, %v11043_v0  ;;  %v1155_v3 = vpop.f32.mrf.mxu1 }
 0x15b   :  { %v11515_v18 = vadd.f32 %v1331_v55, %v1243_v10  ;;  %v1156_v32 = vadd.f32 %v1155_v3, %v1067_v54  ;;  %v9290_v55 = vld [vmem:[%s17962_s1 + $0x1c4] sm:$0xf] }
 0x15c   :  { %v8347_v54 = vor.u32 %v9290_v55, %v8344_v1  ;;  %v9306_v3 = vld [vmem:[%s17962_s1 + $0x244] sm:$0xf]  ;;  %v10561_v55 = vld [vmem:[%s17963_s0 + $0x30] sm:$0xff] }
 0x15d   :  { %v457_v1 = vrot.slane %v10561_v55, 2 }
 0x15e   :  { %1715 = vmatpush.bf16.msra.mxu0 %v8347_v54 }
 0x160   :  { %v1244_v33 = vpop.f32.mrf.mxu2  ;;  %v1069_v40 = vpop.f32.mrf.mxu0 }
 0x161   :  { %v1245_v16 = vadd.f32 %v1244_v33, %v1156_v32  ;;  %v1333_v23 = vpop.f32.mrf.mxu3  ;;  %v1070_v26 = vadd.f32 %v1069_v40, %v11043_v0  ;;  %v1158_v51 = vpop.f32.mrf.mxu1 }
 0x163   :  { %v11524_v9 = vadd.f32 %v1333_v23, %v1245_v16  ;;  %v1159_v10 = vadd.f32 %v1158_v51, %v1070_v26  ;;  %1384 = vmatmul.bf16.gmra.mxu0 %v11521_v41 }
 0x164   :  { %1473 = vmatmul.bf16.gmra.mxu1 %v10559_v27  ;;  %v8408_v27 = vld [vmem:[%s17962_s1 + $0x248] sm:$0xf0] }
 0x165   :  { %18604 = vst [vmem:[#allocation25_spill] sm:$0xff] %v11524_v9  ;;  %1562 = vmatmul.bf16.gmra.mxu2 %v10953_v52  ;;  %v8411_v52 = vor.u32 %v9306_v3, %v8408_v27 }
 0x166   :  { %1651 = vmatmul.bf16.gmra.mxu3 %v10956_v53 }
 0x167   :  { %1804 = vmatpush.bf16.msra.mxu1 %v8411_v52 }
 0x168   :  { %v1247_v32 = vpop.f32.mrf.mxu2  ;;  %v1071_v16 = vpop.f32.mrf.mxu0 }
 0x169   :  { %v1248_v33 = vadd.f32 %v1247_v32, %v1159_v10  ;;  %v1336_v40 = vpop.f32.mrf.mxu3  ;;  %v1072_v23 = vadd.f32 %v1071_v16, %v11043_v0  ;;  %v1160_v26 = vpop.f32.mrf.mxu1  ;;  %v11548_v10 = vsel %vm445_vm6, %v455_v11, %v457_v1 }
 0x16a   :  { %18605 = vst [vmem:[#allocation26_spill] sm:$0xff] %v11548_v10 }
 0x16b   :  { %v11542_v53 = vadd.f32 %v1336_v40, %v1248_v33  ;;  %v1161_v51 = vadd.f32 %v1160_v26, %v1072_v23 }
 0x170   :  { %v1249_v41 = vpop.f32.mrf.mxu2  ;;  %v1074_v3 = vpop.f32.mrf.mxu0 }
 0x171   :  { %v1250_v9 = vadd.f32 %v1249_v41, %v1161_v51  ;;  %v1338_v27 = vpop.f32.mrf.mxu3  ;;  %v1075_v54 = vadd.f32 %v1074_v3, %v11043_v0  ;;  %v1163_v52 = vpop.f32.mrf.mxu1 }
 0x173   :  { %v11551_v32 = vadd.f32 %v1338_v27, %v1250_v9  ;;  %v1164_v33 = vadd.f32 %v1163_v52, %v1075_v54  ;;  %1389 = vmatmul.bf16.gmra.mxu0 %v11548_v10  ;;  %v10562_v9 = vld [vmem:[%s17963_s0 + $0x38] sm:$0xff] }
 0x174   :  { %1478 = vmatmul.bf16.gmra.mxu1 %v10560_v58  ;;  %v459_v27 = vrot.slane %v10562_v9, 2 }
 0x175   :  { %1567 = vmatmul.bf16.gmra.mxu2 %v10980_v12 }
 0x176   :  { %1656 = vmatmul.bf16.gmra.mxu3 %v10983_v13  ;;  %v11563_v13 = vsel %vm445_vm6, %v457_v1, %v459_v27  ;;  %v8336_v1 = vld [vmem:[%s17962_s1 + $0x1b8] sm:$0xf0] }
 0x177   :  { %18606 = vst [vmem:[#allocation27_spill] sm:$0xff] %v11563_v13 }
 0x178   :  { %v1252_v16 = vpop.f32.mrf.mxu2  ;;  %v1076_v40 = vpop.f32.mrf.mxu0 }
 0x179   :  { %v1253_v41 = vadd.f32 %v1252_v16, %v1164_v33  ;;  %v1341_v23 = vpop.f32.mrf.mxu3  ;;  %v1077_v11 = vadd.f32 %v1076_v40, %v11043_v0  ;;  %v1165_v26 = vpop.f32.mrf.mxu1 }
 0x17b   :  { %v11557_v51 = vadd.f32 %v1341_v23, %v1253_v41  ;;  %v1166_v3 = vadd.f32 %v1165_v26, %v1077_v11  ;;  %v9288_v23 = vld [vmem:[%s17962_s1 + $0x1b4] sm:$0xf] }
 0x17c   :  { %v9304_v11 = vld [vmem:[%s17962_s1 + $0x234] sm:$0xf]  ;;  %v8339_v26 = vor.u32 %v9288_v23, %v8336_v1  ;;  %v10563_v23 = vld [vmem:[%s17963_s0 + $0x40] sm:$0xff] }
 0x17d   :  { %v461_v1 = vrot.slane %v10563_v23, 2 }
 0x17e   :  { %1716 = vmatpush.bf16.msra.mxu0 %v8339_v26 }
 0x180   :  { %v1254_v58 = vpop.f32.mrf.mxu2  ;;  %v1079_v12 = vpop.f32.mrf.mxu0 }
 0x181   :  { %v1255_v54 = vadd.f32 %v1254_v58, %v1166_v3  ;;  %v1343_v52 = vpop.f32.mrf.mxu3  ;;  %v1080_v33 = vadd.f32 %v1079_v12, %v11043_v0  ;;  %v1168_v16 = vpop.f32.mrf.mxu1 }
 0x183   :  { %v11566_v40 = vadd.f32 %v1343_v52, %v1255_v54  ;;  %v1169_v41 = vadd.f32 %v1168_v16, %v1080_v33  ;;  %1394 = vmatmul.bf16.gmra.mxu0 %v11563_v13 }
 0x184   :  { %1483 = vmatmul.bf16.gmra.mxu1 %v10561_v55  ;;  %v8400_v55 = vld [vmem:[%s17962_s1 + $0x238] sm:$0xf0] }
 0x185   :  { %18607 = vst [vmem:[#allocation28_spill] sm:$0xff] %v11566_v40  ;;  %1572 = vmatmul.bf16.gmra.mxu2 %v10995_v28  ;;  %v8403_v3 = vor.u32 %v9304_v11, %v8400_v55 }
 0x186   :  { %1661 = vmatmul.bf16.gmra.mxu3 %v10998_v29 }
 0x187   :  { %1805 = vmatpush.bf16.msra.mxu1 %v8403_v3 }
 0x188   :  { %v1257_v28 = vpop.f32.mrf.mxu2  ;;  %v1081_v58 = vpop.f32.mrf.mxu0 }
 0x189   :  { %v1258_v29 = vadd.f32 %v1257_v28, %v1169_v41  ;;  %v1346_v54 = vpop.f32.mrf.mxu3  ;;  %v1082_v12 = vadd.f32 %v1081_v58, %v11043_v0  ;;  %v1170_v52 = vpop.f32.mrf.mxu1  ;;  %v11590_v41 = vsel %vm445_vm6, %v459_v27, %v461_v1 }
 0x18b   :  { %v11584_v33 = vadd.f32 %v1346_v54, %v1258_v29  ;;  %v1171_v16 = vadd.f32 %v1170_v52, %v1082_v12 }
 0x190   :  { %v1259_v13 = vpop.f32.mrf.mxu2  ;;  %v1084_v10 = vpop.f32.mrf.mxu0 }
 0x191   :  { %v1260_v40 = vadd.f32 %v1259_v13, %v1171_v16  ;;  %v1348_v11 = vpop.f32.mrf.mxu3  ;;  %v1085_v26 = vadd.f32 %v1084_v10, %v11043_v0  ;;  %v1173_v55 = vpop.f32.mrf.mxu1 }
 0x193   :  { %v11593_v28 = vadd.f32 %v1348_v11, %v1260_v40  ;;  %v1174_v3 = vadd.f32 %v1173_v55, %v1085_v26  ;;  %1399 = vmatmul.bf16.gmra.mxu0 %v11590_v41  ;;  %v10564_v40 = vld [vmem:[%s17963_s0 + $0x48] sm:$0xff] }
 0x194   :  { %1488 = vmatmul.bf16.gmra.mxu1 %v10562_v9  ;;  %v463_v16 = vrot.slane %v10564_v40, 2 }
 0x195   :  { %1577 = vmatmul.bf16.gmra.mxu2 %v11022_v49 }
 0x196   :  { %1666 = vmatmul.bf16.gmra.mxu3 %v11025_v50  ;;  %v11605_v50 = vsel %vm445_vm6, %v461_v1, %v463_v16 }
 0x197   :  { %18608 = vst [vmem:[#allocation29_spill] sm:$0xff] %v11605_v50 }
 0x198   :  { %v1262_v29 = vpop.f32.mrf.mxu2  ;;  %v1086_v58 = vpop.f32.mrf.mxu0 }
 0x199   :  { %v1263_v13 = vadd.f32 %v1262_v29, %v1174_v3  ;;  %v1351_v54 = vpop.f32.mrf.mxu3  ;;  %v1087_v27 = vadd.f32 %v1086_v58, %v11043_v0  ;;  %v1175_v12 = vpop.f32.mrf.mxu1  ;;  %v10565_v29 = vld [vmem:[%s17964_s2] sm:$0x3] }
 0x19b   :  { %v11599_v52 = vadd.f32 %v1351_v54, %v1263_v13  ;;  %v1176_v10 = vadd.f32 %v1175_v12, %v1087_v27  ;;  %v11613_v13 = vperm.slane %v10565_v29, 1  ;;  %v8328_v54 = vld [vmem:[%s17962_s1 + $0x1a8] sm:$0xf0]  ;;  %v9302_v27 = vld [vmem:[%s17962_s1 + $0x224] sm:$0xf] }
 0x1a0   :  { %v1264_v9 = vpop.f32.mrf.mxu2  ;;  %v1365_v26 = vpop.f32.mrf.mxu0 }
 0x1a1   :  { %v1265_v11 = vadd.f32 %v1264_v9, %v1176_v10  ;;  %v1353_v49 = vpop.f32.mrf.mxu3  ;;  %v1366_v55 = vadd.f32 %v1365_v26, %v11079_v43  ;;  %v1454_v3 = vpop.f32.mrf.mxu1  ;;  %v9286_v43 = vld [vmem:[%s17962_s1 + $0x1a4] sm:$0xf] }
 0x1a2   :  { %v1455_v1 = vadd.f32 %v1454_v3, %v11613_v13  ;;  %v8331_v10 = vor.u32 %v9286_v43, %v8328_v54 }
 0x1a3   :  { %v11608_v0 = vadd.f32 %v1353_v49, %v1265_v11  ;;  %1404 = vmatmul.bf16.gmra.mxu0 %v11605_v50  ;;  %v1890_v9 = vmax.f32 %v1366_v55, 0.0 }
 0x1a4   :  { %1493 = vmatmul.bf16.gmra.mxu1 %v10563_v23  ;;  %1717 = vmatpush.bf16.msra.mxu0 %v8331_v10 }
 0x1a5   :  { %1582 = vmatmul.bf16.gmra.mxu2 %v11048_v8  ;;  %v11637_v43 = vrot.slane %v1890_v9, 1 }
 0x1a6   :  { %1671 = vmatmul.bf16.gmra.mxu3 %v11051_v15  ;;  %v8392_v15 = vld [vmem:[%s17962_s1 + $0x228] sm:$0xf0] }
 0x1a7   :  { %v8395_v26 = vor.u32 %v9302_v27, %v8392_v15  ;;  %18610 = vst [vmem:[#allocation31_spill] sm:$0xff] %v11637_v43 }
 0x1a8   :  { %v1543_v58 = vpop.f32.mrf.mxu2  ;;  %v1367_v12 = vpop.f32.mrf.mxu0 }
 0x1a9   :  { %v1544_v23 = vadd.f32 %v1543_v58, %v1455_v1  ;;  %v1632_v8 = vpop.f32.mrf.mxu3  ;;  %v1368_v11 = vadd.f32 %v1367_v12, %v11089_v22  ;;  %v1456_v49 = vpop.f32.mrf.mxu1  ;;  %1806 = vmatpush.bf16.msra.mxu1 %v8395_v26  ;;  %v10566_v1 = vld [vmem:[%s17963_s0 + $0x50] sm:$0xff] }
 0x1aa   :  { %v465_v58 = vrot.slane %v10566_v1, 2  ;;  %v1457_v50 = vadd.f32 %v1456_v49, %v11613_v13 }
 0x1ab   :  { %v11632_v3 = vadd.f32 %v1632_v8, %v1544_v23  ;;  %v1892_v29 = vmax.f32 %v1368_v11, 0.0 }
 0x1ac   :  { %v11643_v8 = vsel %vm445_vm6, %v463_v16, %v465_v58 }
 0x1ad   :  { %18609 = vst [vmem:[#allocation30_spill] sm:$0xff] %v11632_v3  ;;  %v2019_v54 = vrot.slane %v1892_v29, 1 }
 0x1af   :  { %v2020_v22 = vsel %vm304_vm1, %v11637_v43, %v2019_v54 }
 0x1b0   :  { %v1545_v55 = vpop.f32.mrf.mxu2  ;;  %v1370_v23 = vpop.f32.mrf.mxu0  ;;  %v11645_v10 = vmax.f32 %v1890_v9, %v2020_v22 }
 0x1b1   :  { %v1546_v27 = vadd.f32 %v1545_v55, %v1457_v50  ;;  %v1634_v12 = vpop.f32.mrf.mxu3  ;;  %v1371_v15 = vadd.f32 %v1370_v23, %v11106_v36  ;;  %v1459_v11 = vpop.f32.mrf.mxu1 }
 0x1b2   :  { %v1460_v50 = vadd.f32 %v1459_v11, %v11613_v13 }
 0x1b3   :  { %v11648_v26 = vadd.f32 %v1634_v12, %v1546_v27  ;;  %v1894_v3 = vmax.f32 %v1371_v15, 0.0  ;;  %1409 = vmatmul.bf16.gmra.mxu0 %v11643_v8 }
 0x1b4   :  { %1498 = vmatmul.bf16.gmra.mxu1 %v10564_v40 }
 0x1b5   :  { %1587 = vmatmul.bf16.gmra.mxu2 %v11084_v20  ;;  %v2024_v49 = vrot.slane %v1894_v3, 1  ;;  %v10567_v20 = vld [vmem:[%s17963_s0 + $0x58] sm:$0xff] }
 0x1b6   :  { %1676 = vmatmul.bf16.gmra.mxu3 %v11087_v21  ;;  %v467_v21 = vrot.slane %v10567_v20, 2 }
 0x1b7   :  { %v2025_v16 = vsel %vm304_vm1, %v2019_v54, %v2024_v49 }
 0x1b8   :  { %v1548_v9 = vpop.f32.mrf.mxu2  ;;  %v1372_v22 = vpop.f32.mrf.mxu0  ;;  %v11655_v23 = vmax.f32 %v1892_v29, %v2025_v16 }
 0x1b9   :  { %v1549_v55 = vadd.f32 %v1548_v9, %v1460_v50  ;;  %v1637_v36 = vpop.f32.mrf.mxu3  ;;  %v1373_v27 = vadd.f32 %v1372_v22, %v11116_v4  ;;  %v1461_v12 = vpop.f32.mrf.mxu1  ;;  %v11666_v4 = vsel %vm445_vm6, %v465_v58, %v467_v21 }
 0x1ba   :  { %18611 = vst [vmem:[#allocation32_spill] sm:$0xff] %v11655_v23  ;;  %v1462_v54 = vadd.f32 %v1461_v12, %v11613_v13  ;;  %v8320_v12 = vld [vmem:[%s17962_s1 + $0x198] sm:$0xf0] }
 0x1bb   :  { %v11658_v15 = vadd.f32 %v1637_v36, %v1549_v55  ;;  %v1896_v40 = vmax.f32 %v1373_v27, 0.0  ;;  %18612 = vst [vmem:[#allocation33_spill] sm:$0xff] %v11666_v4 }
 0x1bd   :  { %v2028_v11 = vrot.slane %v1896_v40, 1 }
 0x1bf   :  { %v2029_v50 = vsel %vm304_vm1, %v2024_v49, %v2028_v11 }
 0x1c0   :  { %v1550_v43 = vpop.f32.mrf.mxu2  ;;  %v1375_v29 = vpop.f32.mrf.mxu0  ;;  %v11668_v55 = vmax.f32 %v1894_v3, %v2029_v50 }
 0x1c1   :  { %v1551_v9 = vadd.f32 %v1550_v43, %v1462_v54  ;;  %v1639_v16 = vpop.f32.mrf.mxu3  ;;  %v1376_v22 = vadd.f32 %v1375_v29, %v11145_v63  ;;  %v1464_v36 = vpop.f32.mrf.mxu1  ;;  %v9284_v63 = vld [vmem:[%s17962_s1 + $0x194] sm:$0xf] }
 0x1c2   :  { %18613 = vst [vmem:[#allocation34_spill] sm:$0xff] %v11668_v55  ;;  %v1465_v43 = vadd.f32 %v1464_v36, %v11613_v13  ;;  %v8323_v50 = vor.u32 %v9284_v63, %v8320_v12 }
 0x1c3   :  { %v11671_v27 = vadd.f32 %v1639_v16, %v1551_v9  ;;  %v1898_v23 = vmax.f32 %v1376_v22, 0.0  ;;  %1414 = vmatmul.bf16.gmra.mxu0 %v11666_v4 }
 0x1c4   :  { %1503 = vmatmul.bf16.gmra.mxu1 %v10566_v1  ;;  %1718 = vmatpush.bf16.msra.mxu0 %v8323_v50 }
 0x1c5   :  { %1592 = vmatmul.bf16.gmra.mxu2 %v11111_v7  ;;  %v2032_v49 = vrot.slane %v1898_v23, 1  ;;  %v9300_v7 = vld [vmem:[%s17962_s1 + $0x214] sm:$0xf] }
 0x1c6   :  { %1681 = vmatmul.bf16.gmra.mxu3 %v11114_v25 }
 0x1c7   :  { %v2033_v58 = vsel %vm304_vm1, %v2028_v11, %v2032_v49  ;;  %v8384_v11 = vld [vmem:[%s17962_s1 + $0x218] sm:$0xf0] }
 0x1c8   :  { %v1553_v3 = vpop.f32.mrf.mxu2  ;;  %v1377_v54 = vpop.f32.mrf.mxu0  ;;  %v11690_v9 = vmax.f32 %v1896_v40, %v2033_v58  ;;  %v8387_v22 = vor.u32 %v9300_v7, %v8384_v11 }
 0x1c9   :  { %v1554_v1 = vadd.f32 %v1553_v3, %v1465_v43  ;;  %v1642_v25 = vpop.f32.mrf.mxu3  ;;  %v1378_v29 = vadd.f32 %v1377_v54, %v11155_v39  ;;  %v1466_v16 = vpop.f32.mrf.mxu1  ;;  %v10568_v43 = vld [vmem:[%s17963_s0 + $0x60] sm:$0xff] }
 0x1ca   :  { %1807 = vmatpush.bf16.msra.mxu1 %v8387_v22  ;;  %v469_v3 = vrot.slane %v10568_v43, 2  ;;  %v1467_v12 = vadd.f32 %v1466_v16, %v11613_v13 }
 0x1cb   :  { %v11693_v36 = vadd.f32 %v1642_v25, %v1554_v1  ;;  %v1900_v55 = vmax.f32 %v1378_v29, 0.0 }
 0x1cc   :  { %v11701_v7 = vsel %vm445_vm6, %v467_v21, %v469_v3 }
 0x1cd   :  { %v2036_v63 = vrot.slane %v1900_v55, 1 }
 0x1cf   :  { %v2037_v40 = vsel %vm304_vm1, %v2032_v49, %v2036_v63 }
 0x1d0   :  { %v1555_v4 = vpop.f32.mrf.mxu2  ;;  %v1380_v39 = vpop.f32.mrf.mxu0  ;;  %v11703_v1 = vmax.f32 %v1898_v23, %v2037_v40 }
 0x1d1   :  { %v1556_v58 = vadd.f32 %v1555_v4, %v1467_v12  ;;  %v1644_v54 = vpop.f32.mrf.mxu3  ;;  %v1381_v25 = vadd.f32 %v1380_v39, %v11172_v31  ;;  %v1469_v50 = vpop.f32.mrf.mxu1 }
 0x1d2   :  { %v1470_v4 = vadd.f32 %v1469_v50, %v11613_v13 }
 0x1d3   :  { %v11706_v11 = vadd.f32 %v1644_v54, %v1556_v58  ;;  %v1902_v29 = vmax.f32 %v1381_v25, 0.0  ;;  %1419 = vmatmul.bf16.gmra.mxu0 %v11701_v7 }
 0x1d4   :  { %1508 = vmatmul.bf16.gmra.mxu1 %v10567_v20 }
 0x1d5   :  { %1597 = vmatmul.bf16.gmra.mxu2 %v11150_v38  ;;  %v2040_v49 = vrot.slane %v1902_v29, 1  ;;  %v10569_v38 = vld [vmem:[%s17963_s0 + $0x68] sm:$0xff] }
 0x1d6   :  { %1686 = vmatmul.bf16.gmra.mxu3 %v11153_v37  ;;  %v471_v37 = vrot.slane %v10569_v38, 2 }
 0x1d7   :  { %v2041_v21 = vsel %vm304_vm1, %v2036_v63, %v2040_v49 }
 0x1d8   :  { %v1558_v23 = vpop.f32.mrf.mxu2  ;;  %v1382_v22 = vpop.f32.mrf.mxu0  ;;  %v11713_v12 = vmax.f32 %v1900_v55, %v2041_v21 }
 0x1d9   :  { %v1559_v16 = vadd.f32 %v1558_v23, %v1470_v4  ;;  %v1647_v31 = vpop.f32.mrf.mxu3  ;;  %v1383_v40 = vadd.f32 %v1382_v22, %v11188_v34  ;;  %v1471_v58 = vpop.f32.mrf.mxu1  ;;  %v11724_v34 = vsel %vm445_vm6, %v469_v3, %v471_v37 }
 0x1da   :  { %v1472_v63 = vadd.f32 %v1471_v58, %v11613_v13  ;;  %v9298_v58 = vld [vmem:[%s17962_s1 + $0x204] sm:$0xf] }
 0x1db   :  { %v11716_v39 = vadd.f32 %v1647_v31, %v1559_v16  ;;  %v1904_v20 = vmax.f32 %v1383_v40, 0.0 }
 0x1dd   :  { %v2044_v54 = vrot.slane %v1904_v20, 1 }
 0x1df   :  { %v2045_v25 = vsel %vm304_vm1, %v2040_v49, %v2044_v54 }
 0x1e0   :  { %v1560_v50 = vpop.f32.mrf.mxu2  ;;  %v1385_v55 = vpop.f32.mrf.mxu0  ;;  %v11726_v23 = vmax.f32 %v1902_v29, %v2045_v25  ;;  %v9282_v29 = vld [vmem:[%s17962_s1 + $0x184] sm:$0xf] }
 0x1e1   :  { %v1561_v4 = vadd.f32 %v1560_v50, %v1472_v63  ;;  %v1649_v21 = vpop.f32.mrf.mxu3  ;;  %v1386_v16 = vadd.f32 %v1385_v55, %v11242_v30  ;;  %v11729_v22 = vpop.f32.mrf.mxu1  ;;  %v8312_v30 = vld [vmem:[%s17962_s1 + $0x188] sm:$0xf0]  ;;  %v10570_v55 = vld [vmem:[%s17963_s0 + $0x70] sm:$0xff] }
 0x1e2   :  { %v8315_v63 = vor.u32 %v9282_v29, %v8312_v30 }
 0x1e3   :  { %v11731_v31 = vadd.f32 %v1649_v21, %v1561_v4  ;;  %v1906_v40 = vmax.f32 %v1386_v16, 0.0  ;;  %1424 = vmatmul.bf16.gmra.mxu0 %v11724_v34  ;;  %v473_v21 = vrot.slane %v10570_v55, 2 }
 0x1e4   :  { %1513 = vmatmul.bf16.gmra.mxu1 %v10568_v43  ;;  %1719 = vmatpush.bf16.msra.mxu0 %v8315_v63 }
 0x1e5   :  { %1602 = vmatmul.bf16.gmra.mxu2 %v11181_v62  ;;  %v2048_v49 = vrot.slane %v1906_v40, 1  ;;  %v8376_v62 = vld [vmem:[%s17962_s1 + $0x208] sm:$0xf0] }
 0x1e6   :  { %1691 = vmatmul.bf16.gmra.mxu3 %v11186_v5  ;;  %v8379_v50 = vor.u32 %v9298_v58, %v8376_v62 }
 0x1e7   :  { %v2049_v3 = vsel %vm304_vm1, %v2044_v54, %v2048_v49 }
 0x1e8   :  { %v1387_v43 = vpop.f32.mrf.mxu0  ;;  %v11749_v5 = vmax.f32 %v1904_v20, %v2049_v3  ;;  %1808 = vmatpush.bf16.msra.mxu1 %v8379_v50  ;;  %v11759_v20 = vsel %vm445_vm6, %v471_v37, %v473_v21 }
 0x1e9   :  { %v1388_v54 = vadd.f32 %v1387_v43, %v11286_v60  ;;  %v11752_v25 = vpop.f32.mrf.mxu1 }
 0x1eb   :  { %v1908_v4 = vmax.f32 %v1388_v54, 0.0 }
 0x1ed   :  { %v2052_v16 = vrot.slane %v1908_v4, 1 }
 0x1ef   :  { %v2053_v29 = vsel %vm304_vm1, %v2048_v49, %v2052_v16 }
 0x1f0   :  { %v1390_v30 = vpop.f32.mrf.mxu0  ;;  %v11761_v3 = vmax.f32 %v1906_v40, %v2053_v29  ;;  %v18616_v40 = vld [vmem:[#allocation18_spill] sm:$0xff]  ;;  %v10571_v29 = vld [vmem:[%s17963_s0 + $0x78] sm:$0xff]  ;;  %s10574_s0 = smov 122  }
 0x1f1   :  { %v1391_v60 = vadd.f32 %v1390_v30, %v11329_v44  ;;  %v11764_v58 = vpop.f32.mrf.mxu1 }
 0x1f2   :  { %18614 = vst [vmem:[#allocation35_spill] sm:$0xff] %v11761_v3 }
 0x1f3   :  { %v1910_v43 = vmax.f32 %v1391_v60, 0.0  ;;  %1429 = vmatmul.bf16.gmra.mxu0 %v11759_v20 }
 0x1f4   :  { %1518 = vmatmul.bf16.gmra.mxu1 %v10569_v38  ;;  %v475_v38 = vrot.slane %v10571_v29, 2 }
 0x1f5   :  { %1607 = vmatmul.bf16.gmra.mxu2 %v11277_v47  ;;  %v2056_v63 = vrot.slane %v1910_v43, 1 }
 0x1f6   :  { %1696 = vmatmul.bf16.gmra.mxu3 %v11284_v35  ;;  %v11780_v35 = vsel %vm445_vm6, %v473_v21, %v475_v38 }
 0x1f7   :  { %v2057_v49 = vsel %vm304_vm1, %v2052_v16, %v2056_v63 }
 0x1f8   :  { %v1392_v62 = vpop.f32.mrf.mxu0  ;;  %v11770_v37 = vmax.f32 %v1908_v4, %v2057_v49 }
 0x1f9   :  { %v1393_v54 = vadd.f32 %v1392_v62, %v18616_v40  ;;  %v11773_v50 = vpop.f32.mrf.mxu1  ;;  %v18618_v40 = vld [vmem:[#allocation16_spill] sm:$0xff] }
 0x1fa   :  { %18615 = vst [vmem:[#allocation36_spill] sm:$0xff] %v11770_v37  ;;  %v18619_v37 = vld [vmem:[#allocation17_spill] sm:$0xff] }
 0x1fb   :  { %v1912_v44 = vmax.f32 %v1393_v54, 0.0 }
 0x1fd   :  { %v2060_v30 = vrot.slane %v1912_v44, 1 }
 0x1ff   :  { %v2061_v47 = vsel %vm304_vm1, %v2056_v63, %v2060_v30 }
 0x200   :  { %v1395_v60 = vpop.f32.mrf.mxu0  ;;  %v11782_v16 = vmax.f32 %v1910_v43, %v2061_v47 }
 0x201   :  { %v1396_v4 = vadd.f32 %v1395_v60, %v11402_v14  ;;  %v11785_v49 = vpop.f32.mrf.mxu1  ;;  %v492_v60 = vrot.slane %v11381_v46, 2 }
 0x202   :  { %18617 = vst [vmem:[#allocation18_spill] sm:$0xff] %v11782_v16 }
 0x203   :  { %v1914_v62 = vmax.f32 %v1396_v4, 0.0  ;;  %1434 = vmatmul.bf16.gmra.mxu0 %v11780_v35 }
 0x204   :  { %1523 = vmatmul.bf16.gmra.mxu1 %v10570_v55 }
 0x205   :  { %1612 = vmatmul.bf16.gmra.mxu2 %v18618_v40  ;;  %v2064_v54 = vrot.slane %v1914_v62, 1  ;;  %v11799_v40 = vsel %vm445_vm6, %v475_v38, %v492_v60 }
 0x206   :  { %1701 = vmatmul.bf16.gmra.mxu3 %v18619_v37 }
 0x207   :  { %v2065_v63 = vsel %vm304_vm1, %v2060_v30, %v2064_v54 }
 0x208   :  { %v1397_v3 = vpop.f32.mrf.mxu0  ;;  %v11791_v21 = vmax.f32 %v1912_v44, %v2065_v63 }
 0x209   :  { %v1398_v43 = vadd.f32 %v1397_v3, %v11418_v2  ;;  %v11794_v47 = vpop.f32.mrf.mxu1 }
 0x20b   :  { %v1916_v14 = vmax.f32 %v1398_v43, 0.0 }
 0x20d   :  { %v2068_v4 = vrot.slane %v1916_v14, 1 }
 0x20f   :  { %v2069_v55 = vsel %vm304_vm1, %v2064_v54, %v2068_v4 }
 0x210   :  { %v1400_v16 = vpop.f32.mrf.mxu0  ;;  %v11801_v37 = vmax.f32 %v1914_v62, %v2069_v55 }
 0x211   :  { %v1401_v30 = vadd.f32 %v1400_v16, %v11428_v42  ;;  %v11804_v44 = vpop.f32.mrf.mxu1 }
 0x213   :  { %v1918_v63 = vmax.f32 %v1401_v30, 0.0  ;;  %1439 = vmatmul.bf16.gmra.mxu0 %v11799_v40 }
 0x214   :  { %1528 = vmatmul.bf16.gmra.mxu1 %v10571_v29 }
 0x215   :  { %1617 = vmatmul.bf16.gmra.mxu2 %v11411_v45  ;;  %v2072_v46 = vrot.slane %v1918_v63, 1 }
 0x216   :  { %1706 = vmatmul.bf16.gmra.mxu3 %v11416_v17 }
 0x217   :  { %v2073_v2 = vsel %vm304_vm1, %v2068_v4, %v2072_v46  ;;  %v18622_v4 = vld [vmem:[#allocation2_spill] sm:$0xff] }
 0x218   :  { %v1402_v3 = vpop.f32.mrf.mxu0  ;;  %v11810_v38 = vmax.f32 %v1916_v14, %v2073_v2  ;;  %v18623_v14 = vld [vmem:[#allocation21_spill] sm:$0xff] }
 0x219   :  { %v1403_v62 = vadd.f32 %v1402_v3, %v11440_v6  ;;  %v11813_v54 = vpop.f32.mrf.mxu1 }
 0x21a   :  { %18620 = vst [vmem:[#allocation16_spill] sm:$0xff] %v11810_v38 }
 0x21b   :  { %v1920_v42 = vmax.f32 %v1403_v62, 0.0 }
 0x21d   :  { %v2076_v16 = vrot.slane %v1920_v42, 1 }
 0x21f   :  { %v2077_v43 = vsel %vm304_vm1, %v2072_v46, %v2076_v16 }
 0x220   :  { %v1405_v60 = vpop.f32.mrf.mxu0  ;;  %v11816_v29 = vmax.f32 %v1918_v63, %v2077_v43 }
 0x221   :  { %v1406_v45 = vadd.f32 %v1405_v60, %v11458_v56  ;;  %v11819_v55 = vpop.f32.mrf.mxu1 }
 0x222   :  { %18621 = vst [vmem:[#allocation17_spill] sm:$0xff] %v11816_v29 }
 0x223   :  { %v1922_v17 = vmax.f32 %v1406_v45, 0.0  ;;  %1720 = vmatmul.bf16.vlgmr.msra.gmra.mxu0 %v18622_v4 }
 0x224   :  { %1809 = vmatmul.bf16.vlgmr.msra.gmra.mxu1 %v18623_v14 }
 0x225   :  { %v2080_v30 = vrot.slane %v1922_v17, 1 }
 0x227   :  { %v2081_v6 = vsel %vm304_vm1, %v2076_v16, %v2080_v30  ;;  %v18626_v16 = vld [vmem:[#allocation3_spill] sm:$0xff] }
 0x228   :  { %v1407_v2 = vpop.f32.mrf.mxu0  ;;  %v11824_v3 = vmax.f32 %v1920_v42, %v2081_v6 }
 0x229   :  { %v1408_v46 = vadd.f32 %v1407_v2, %v11467_v61  ;;  %v11827_v62 = vpop.f32.mrf.mxu1 }
 0x22a   :  { %18624 = vst [vmem:[#allocation2_spill] sm:$0xff] %v11824_v3 }
 0x22b   :  { %v1924_v63 = vmax.f32 %v1408_v46, 0.0  ;;  %v18628_v46 = vld [vmem:[#allocation23_spill] sm:$0xff] }
 0x22d   :  { %v2084_v43 = vrot.slane %v1924_v63, 1 }
 0x22f   :  { %v2085_v56 = vsel %vm304_vm1, %v2080_v30, %v2084_v43 }
 0x230   :  { %v1410_v60 = vpop.f32.mrf.mxu0  ;;  %v11830_v45 = vmax.f32 %v1922_v17, %v2085_v56 }
 0x231   :  { %v1411_v4 = vadd.f32 %v1410_v60, %v11473_v19  ;;  %v11833_v14 = vpop.f32.mrf.mxu1 }
 0x232   :  { %18625 = vst [vmem:[#allocation21_spill] sm:$0xff] %v11830_v45 }
 0x233   :  { %v1926_v29 = vmax.f32 %v1411_v4, 0.0  ;;  %1725 = vmatmul.bf16.gmra.mxu0 %v18626_v16 }
 0x234   :  { %1814 = vmatmul.bf16.gmra.mxu1 %v11464_v48 }
 0x235   :  { %v2088_v42 = vrot.slane %v1926_v29, 1 }
 0x237   :  { %v2089_v61 = vsel %vm304_vm1, %v2084_v43, %v2088_v42  ;;  %v18630_v43 = vld [vmem:[#allocation4_spill] sm:$0xff] }
 0x238   :  { %v1412_v6 = vpop.f32.mrf.mxu0  ;;  %v11838_v2 = vmax.f32 %v1924_v63, %v2089_v61  ;;  %v18631_v63 = vld [vmem:[#allocation22_spill] sm:$0xff] }
 0x239   :  { %v1413_v30 = vadd.f32 %v1412_v6, %v18628_v46  ;;  %v11841_v3 = vpop.f32.mrf.mxu1 }
 0x23a   :  { %18627 = vst [vmem:[#allocation3_spill] sm:$0xff] %v11838_v2 }
 0x23b   :  { %v1928_v17 = vmax.f32 %v1413_v30, 0.0 }
 0x23d   :  { %v2092_v56 = vrot.slane %v1928_v17, 1 }
 0x23f   :  { %v2093_v19 = vsel %vm304_vm1, %v2088_v42, %v2092_v56 }
 0x240   :  { %v1415_v60 = vpop.f32.mrf.mxu0  ;;  %v11844_v4 = vmax.f32 %v1926_v29, %v2093_v19 }
 0x241   :  { %v1416_v16 = vadd.f32 %v1415_v60, %v11500_v24  ;;  %v11847_v48 = vpop.f32.mrf.mxu1 }
 0x242   :  { %18629 = vst [vmem:[#allocation23_spill] sm:$0xff] %v11844_v4 }
 0x243   :  { %v1930_v45 = vmax.f32 %v1416_v16, 0.0  ;;  %1730 = vmatmul.bf16.gmra.mxu0 %v18630_v43 }
 0x244   :  { %1819 = vmatmul.bf16.gmra.mxu1 %v18631_v63 }
 0x245   :  { %v2096_v61 = vrot.slane %v1930_v45, 1 }
 0x247   :  { %v2097_v6 = vsel %vm304_vm1, %v2092_v56, %v2096_v61  ;;  %v18634_v56 = vld [vmem:[#allocation5_spill] sm:$0xff] }
 0x248   :  { %v1417_v46 = vpop.f32.mrf.mxu0  ;;  %v11852_v30 = vmax.f32 %v1928_v17, %v2097_v6 }
 0x249   :  { %v1418_v42 = vadd.f32 %v1417_v46, %v11509_v59  ;;  %v11855_v2 = vpop.f32.mrf.mxu1 }
 0x24a   :  { %18632 = vst [vmem:[#allocation4_spill] sm:$0xff] %v11852_v30 }
 0x24b   :  { %v1932_v29 = vmax.f32 %v1418_v42, 0.0  ;;  %v18636_v42 = vld [vmem:[#allocation25_spill] sm:$0xff] }
 0x24d   :  { %v2100_v19 = vrot.slane %v1932_v29, 1 }
 0x24f   :  { %v2101_v24 = vsel %vm304_vm1, %v2096_v61, %v2100_v19 }
 0x250   :  { %v1420_v60 = vpop.f32.mrf.mxu0  ;;  %v11858_v16 = vmax.f32 %v1930_v45, %v2101_v24 }
 0x251   :  { %v1421_v43 = vadd.f32 %v1420_v60, %v11515_v18  ;;  %v11861_v63 = vpop.f32.mrf.mxu1 }
 0x252   :  { %18633 = vst [vmem:[#allocation22_spill] sm:$0xff] %v11858_v16 }
 0x253   :  { %v1934_v4 = vmax.f32 %v1421_v43, 0.0  ;;  %1735 = vmatmul.bf16.gmra.mxu0 %v18634_v56 }
 0x254   :  { %1824 = vmatmul.bf16.gmra.mxu1 %v11506_v57 }
 0x255   :  { %v2104_v17 = vrot.slane %v1934_v4, 1 }
 0x257   :  { %v2105_v59 = vsel %vm304_vm1, %v2100_v19, %v2104_v17  ;;  %v18638_v19 = vld [vmem:[#allocation6_spill] sm:$0xff] }
 0x258   :  { %v1422_v6 = vpop.f32.mrf.mxu0  ;;  %v11866_v46 = vmax.f32 %v1932_v29, %v2105_v59  ;;  %v18639_v29 = vld [vmem:[#allocation24_spill] sm:$0xff] }
 0x259   :  { %v1423_v61 = vadd.f32 %v1422_v6, %v18636_v42  ;;  %v11869_v30 = vpop.f32.mrf.mxu1 }
 0x25a   :  { %18635 = vst [vmem:[#allocation5_spill] sm:$0xff] %v11866_v46 }
 0x25b   :  { %v1936_v45 = vmax.f32 %v1423_v61, 0.0 }
 0x25d   :  { %v2108_v24 = vrot.slane %v1936_v45, 1 }
 0x25f   :  { %v2109_v18 = vsel %vm304_vm1, %v2104_v17, %v2108_v24 }
 0x260   :  { %v1425_v60 = vpop.f32.mrf.mxu0  ;;  %v11872_v43 = vmax.f32 %v1934_v4, %v2109_v18 }
 0x261   :  { %v1426_v56 = vadd.f32 %v1425_v60, %v11542_v53  ;;  %v11875_v57 = vpop.f32.mrf.mxu1 }
 0x262   :  { %18637 = vst [vmem:[#allocation25_spill] sm:$0xff] %v11872_v43 }
 0x263   :  { %v1938_v16 = vmax.f32 %v1426_v56, 0.0  ;;  %1740 = vmatmul.bf16.gmra.mxu0 %v18638_v19 }
 0x264   :  { %1829 = vmatmul.bf16.gmra.mxu1 %v18639_v29 }
 0x265   :  { %v2112_v59 = vrot.slane %v1938_v16, 1 }
 0x267   :  { %v2113_v6 = vsel %vm304_vm1, %v2108_v24, %v2112_v59  ;;  %v18642_v24 = vld [vmem:[#allocation7_spill] sm:$0xff] }
 0x268   :  { %v1427_v42 = vpop.f32.mrf.mxu0  ;;  %v11880_v61 = vmax.f32 %v1936_v45, %v2113_v6  ;;  %v18643_v45 = vld [vmem:[#allocation26_spill] sm:$0xff] }
 0x269   :  { %v1428_v17 = vadd.f32 %v1427_v42, %v11551_v32  ;;  %v11883_v46 = vpop.f32.mrf.mxu1 }
 0x26a   :  { %18640 = vst [vmem:[#allocation6_spill] sm:$0xff] %v11880_v61  ;;  %v18645_v61 = vld [vmem:[#allocation28_spill] sm:$0xff] }
 0x26b   :  { %v1940_v4 = vmax.f32 %v1428_v17, 0.0 }
 0x26d   :  { %v2116_v18 = vrot.slane %v1940_v4, 1 }
 0x26f   :  { %v2117_v53 = vsel %vm304_vm1, %v2112_v59, %v2116_v18 }
 0x270   :  { %v1430_v60 = vpop.f32.mrf.mxu0  ;;  %v11886_v56 = vmax.f32 %v1938_v16, %v2117_v53 }
 0x271   :  { %v1431_v19 = vadd.f32 %v1430_v60, %v11557_v51  ;;  %v11889_v29 = vpop.f32.mrf.mxu1 }
 0x272   :  { %18641 = vst [vmem:[#allocation24_spill] sm:$0xff] %v11886_v56 }
 0x273   :  { %v1942_v43 = vmax.f32 %v1431_v19, 0.0  ;;  %1745 = vmatmul.bf16.gmra.mxu0 %v18642_v24 }
 0x274   :  { %1834 = vmatmul.bf16.gmra.mxu1 %v18643_v45 }
 0x275   :  { %v2120_v6 = vrot.slane %v1942_v43, 1 }
 0x277   :  { %v2121_v32 = vsel %vm304_vm1, %v2116_v18, %v2120_v6  ;;  %v18648_v18 = vld [vmem:[#allocation8_spill] sm:$0xff] }
 0x278   :  { %v1432_v42 = vpop.f32.mrf.mxu0  ;;  %v11894_v17 = vmax.f32 %v1940_v4, %v2121_v32  ;;  %v18649_v4 = vld [vmem:[#allocation27_spill] sm:$0xff] }
 0x279   :  { %v1433_v59 = vadd.f32 %v1432_v42, %v18645_v61  ;;  %v11897_v38 = vpop.f32.mrf.mxu1 }
 0x27a   :  { %18644 = vst [vmem:[#allocation7_spill] sm:$0xff] %v11894_v17 }
 0x27b   :  { %v1944_v16 = vmax.f32 %v1433_v59, 0.0 }
 0x27d   :  { %v2124_v53 = vrot.slane %v1944_v16, 1 }
 0x27f   :  { %v2125_v51 = vsel %vm304_vm1, %v2120_v6, %v2124_v53 }
 0x280   :  { %v1435_v60 = vpop.f32.mrf.mxu0  ;;  %v11900_v19 = vmax.f32 %v1942_v43, %v2125_v51 }
 0x281   :  { %v1436_v24 = vadd.f32 %v1435_v60, %v11584_v33  ;;  %v11903_v45 = vpop.f32.mrf.mxu1 }
 0x282   :  { %18646 = vst [vmem:[#allocation26_spill] sm:$0xff] %v11900_v19 }
 0x283   :  { %18647 = vst [vmem:[#allocation28_spill] sm:$0xff] %v11903_v45  ;;  %v1946_v56 = vmax.f32 %v1436_v24, 0.0  ;;  %1750 = vmatmul.bf16.gmra.mxu0 %v18648_v18 }
 0x284   :  { %1839 = vmatmul.bf16.gmra.mxu1 %v18649_v4 }
 0x285   :  { %v2128_v32 = vrot.slane %v1946_v56, 1 }
 0x287   :  { %v2129_v61 = vsel %vm304_vm1, %v2124_v53, %v2128_v32  ;;  %v18654_v53 = vld [vmem:[#allocation9_spill] sm:$0xff] }
 0x288   :  { %v1437_v42 = vpop.f32.mrf.mxu0  ;;  %v11908_v59 = vmax.f32 %v1944_v16, %v2129_v61 }
 0x289   :  { %v1438_v6 = vadd.f32 %v1437_v42, %v11593_v28  ;;  %v11911_v17 = vpop.f32.mrf.mxu1 }
 0x28a   :  { %18650 = vst [vmem:[#allocation8_spill] sm:$0xff] %v11908_v59 }
 0x28b   :  { %18651 = vst [vmem:[#allocation27_spill] sm:$0xff] %v11911_v17  ;;  %v1948_v43 = vmax.f32 %v1438_v6, 0.0 }
 0x28d   :  { %v2132_v51 = vrot.slane %v1948_v43, 1 }
 0x28f   :  { %v2133_v33 = vsel %vm304_vm1, %v2128_v32, %v2132_v51 }
 0x290   :  { %v1440_v60 = vpop.f32.mrf.mxu0  ;;  %v11914_v24 = vmax.f32 %v1946_v56, %v2133_v33 }
 0x291   :  { %v1441_v18 = vadd.f32 %v1440_v60, %v11599_v52  ;;  %v11917_v4 = vpop.f32.mrf.mxu1 }
 0x292   :  { %18652 = vst [vmem:[#allocation37_spill] sm:$0xff] %v11914_v24  ;;  %v11944_v24 = vpop.f32.mrf.mxu3 }
 0x293   :  { %18653 = vst [vmem:[#allocation38_spill] sm:$0xff] %v11917_v4  ;;  %v1950_v19 = vmax.f32 %v1441_v18, 0.0  ;;  %1755 = vmatmul.bf16.gmra.mxu0 %v18654_v53  ;;  %v18661_v53 = vld [vmem:[#allocation10_spill] sm:$0xff] }
 0x294   :  { %1844 = vmatmul.bf16.gmra.mxu1 %v11590_v41 }
 0x295   :  { %v2136_v16 = vrot.slane %v1950_v19, 1 }
 0x297   :  { %v2137_v28 = vsel %vm304_vm1, %v2132_v51, %v2136_v16 }
 0x298   :  { %v1442_v61 = vpop.f32.mrf.mxu0  ;;  %v11922_v42 = vmax.f32 %v1948_v43, %v2137_v28  ;;  %v18660_v43 = vld [vmem:[#allocation30_spill] sm:$0xff] }
 0x299   :  { %v11925_v32 = vadd.f32 %v1442_v61, %v11608_v0  ;;  %v11927_v56 = vpop.f32.mrf.mxu1  ;;  %v18662_v0 = vld [vmem:[#allocation29_spill] sm:$0xff] }
 0x29a   :  { %18655 = vst [vmem:[#allocation9_spill] sm:$0xff] %v11922_v42  ;;  %v11941_v42 = vpop.f32.mrf.mxu2 }
 0x29b   :  { %18656 = vst [vmem:[#allocation39_spill] sm:$0xff] %v11925_v32  ;;  %v18023_v52 = vmax.f32 %v11925_v32, 0.0 }
 0x29c   :  { %18657 = vst [vmem:[#allocation40_spill] sm:$0xff] %v11927_v56 }
 0x29d   :  { %v11932_v6 = vrot.slane %v18023_v52, 1 }
 0x29f   :  { %18658 = vst [vmem:[#allocation41_spill] sm:$0xff] %v11932_v6  ;;  %v2141_v41 = vsel %vm304_vm1, %v2136_v16, %v11932_v6 }
 0x2a0   :  { %v1721_v33 = vpop.f32.mrf.mxu0  ;;  %v11936_v60 = vmax.f32 %v1950_v19, %v2141_v41 }
 0x2a1   :  { %v1810_v51 = vpop.f32.mrf.mxu1  ;;  %v1722_v18 = vadd.f32 %v1721_v33, %v18660_v43 }
 0x2a2   :  { %18659 = vst [vmem:[#allocation42_spill] sm:$0xff] %v11936_v60 }
 0x2a3   :  { %1760 = vmatmul.bf16.gmra.mxu0 %v18661_v53  ;;  %v1811_v28 = vadd.f32 %v1810_v51, %v1722_v18 }
 0x2a4   :  { %1849 = vmatmul.bf16.gmra.mxu1 %v18662_v0  ;;  %v11953_v0 = vpop.f32.mrf.mxu2 }
 0x2a5   :  { %v1891_v16 = vmax.f32 %v1811_v28, 0.0 }
 0x2a7   :  { %v11946_v41 = vrot.slane %v1891_v16, 1 }
 0x2a8   :  { %v1723_v61 = vpop.f32.mrf.mxu0 }
 0x2a9   :  { %v1724_v52 = vadd.f32 %v1723_v61, %v11648_v26  ;;  %v1812_v32 = vpop.f32.mrf.mxu1  ;;  %18663 = vst [vmem:[#allocation30_spill] sm:$0xff] %v11946_v41  ;;  %v18665_v61 = vld [vmem:[#allocation11_spill] sm:$0xff] }
 0x2ab   :  { %v1813_v6 = vadd.f32 %v1812_v32, %v1724_v52  ;;  %v11959_v52 = vpop.f32.mrf.mxu3 }
 0x2ad   :  { %v1893_v19 = vmax.f32 %v1813_v6, 0.0 }
 0x2af   :  { %v2022_v60 = vrot.slane %v1893_v19, 1 }
 0x2b0   :  { %v1726_v33 = vpop.f32.mrf.mxu0 }
 0x2b1   :  { %v1727_v43 = vadd.f32 %v1726_v33, %v11658_v15  ;;  %v1815_v53 = vpop.f32.mrf.mxu1  ;;  %v2023_v51 = vsel %vm304_vm1, %v11946_v41, %v2022_v60  ;;  %v11968_v41 = vpop.f32.mrf.mxu2 }
 0x2b2   :  { %v11951_v18 = vmax.f32 %v1891_v16, %v2023_v51 }
 0x2b3   :  { %v1816_v26 = vadd.f32 %v1815_v53, %v1727_v43  ;;  %1765 = vmatmul.bf16.gmra.mxu0 %v18665_v61 }
 0x2b4   :  { %18664 = vst [vmem:[#allocation10_spill] sm:$0xff] %v11951_v18  ;;  %1854 = vmatmul.bf16.gmra.mxu1 %v11643_v8  ;;  %v9492_v32 = vpack.i.bf16 %v11951_v18, %v11645_v10  ;;  %v18667_v8 = vld [vmem:[#allocation32_spill] sm:$0xff] }
 0x2b5   :  { %v1895_v6 = vmax.f32 %v1816_v26, 0.0  ;;  %v11971_v26 = vpop.f32.mrf.mxu3 }
 0x2b6   :  { %9493 = vrot.lane.b32.xlu0 %v9492_v32, %s10574_s0 }
 0x2b7   :  { %v2026_v15 = vrot.slane %v1895_v6, 1 }
 0x2b8   :  { %v1728_v28 = vpop.f32.mrf.mxu0 }
 0x2b9   :  { %v1729_v16 = vadd.f32 %v1728_v28, %v11671_v27  ;;  %v1817_v33 = vpop.f32.mrf.mxu1  ;;  %v2027_v43 = vsel %vm304_vm1, %v2022_v60, %v2026_v15  ;;  %v11982_v56 = vpop.f32.mrf.mxu2 }
 0x2ba   :  { %v11964_v53 = vmax.f32 %v1893_v19, %v2027_v43  ;;  %v18670_v43 = vld [vmem:[#allocation33_spill] sm:$0xff] }
 0x2bb   :  { %v1818_v51 = vadd.f32 %v1817_v33, %v1729_v16  ;;  %v18669_v33 = vld [vmem:[#allocation12_spill] sm:$0xff] }
 0x2bc   :  { %18666 = vst [vmem:[#allocation29_spill] sm:$0xff] %v11964_v53  ;;  %v9497_v61 = vpack.i.bf16 %v11964_v53, %v18667_v8  ;;  %v18671_v53 = vld [vmem:[#allocation34_spill] sm:$0xff] }
 0x2bd   :  { %v1897_v59 = vmax.f32 %v1818_v51, 0.0 }
 0x2be   :  { %9498 = vrot.lane.b32.xlu0 %v9497_v61, %s10574_s0 }
 0x2bf   :  { %v2030_v32 = vrot.slane %v1897_v59, 1 }
 0x2c0   :  { %v1731_v18 = vpop.f32.mrf.mxu0 }
 0x2c1   :  { %v1732_v27 = vadd.f32 %v1731_v18, %v11693_v36  ;;  %v1820_v28 = vpop.f32.mrf.mxu1  ;;  %v2031_v60 = vsel %vm304_vm1, %v2026_v15, %v2030_v32  ;;  %v11984_v18 = vpop.f32.mrf.mxu3 }
 0x2c2   :  { %v11975_v19 = vmax.f32 %v1895_v6, %v2031_v60 }
 0x2c3   :  { %v1821_v16 = vadd.f32 %v1820_v28, %v1732_v27  ;;  %1770 = vmatmul.bf16.gmra.mxu0 %v18669_v33 }
 0x2c4   :  { %18668 = vst [vmem:[#allocation11_spill] sm:$0xff] %v11975_v19  ;;  %1859 = vmatmul.bf16.gmra.mxu1 %v18670_v43  ;;  %v9502_v51 = vpack.i.bf16 %v11975_v19, %v18671_v53  ;;  %v11993_v19 = vpop.f32.mrf.mxu2 }
 0x2c5   :  { %v1899_v61 = vmax.f32 %v1821_v16, 0.0 }
 0x2c6   :  { %9503 = vrot.lane.b32.xlu1 %v9502_v51, %s10574_s0 }
 0x2c7   :  { %v2034_v4 = vrot.slane %v1899_v61, 1 }
 0x2c8   :  { %v1733_v36 = vpop.f32.mrf.mxu0 }
 0x2c9   :  { %v1734_v6 = vadd.f32 %v1733_v36, %v11706_v11  ;;  %v1822_v15 = vpop.f32.mrf.mxu1  ;;  %v2035_v27 = vsel %vm304_vm1, %v2030_v32, %v2034_v4 }
 0x2ca   :  { %v11988_v28 = vmax.f32 %v1897_v59, %v2035_v27  ;;  %v11999_v59 = vpop.f32.mrf.mxu3  ;;  %v9527_v27 = vpack.i.bf16 %v18667_v8, %v11645_v10 }
 0x2cb   :  { %v1823_v60 = vadd.f32 %v1822_v15, %v1734_v6  ;;  %v18674_v6 = vld [vmem:[#allocation13_spill] sm:$0xff] }
 0x2cc   :  { %18672 = vst [vmem:[#allocation32_spill] sm:$0xff] %v11988_v28  ;;  %v9507_v33 = vpack.i.bf16 %v11988_v28, %v11690_v9 }
 0x2cd   :  { %v1901_v16 = vmax.f32 %v1823_v60, 0.0 }
 0x2ce   :  { %9508 = vrot.lane.b32.xlu1 %v9507_v33, %s10574_s0 }
 0x2cf   :  { %v2038_v43 = vrot.slane %v1901_v16, 1 }
 0x2d0   :  { %v1736_v51 = vpop.f32.mrf.mxu0 }
 0x2d1   :  { %v1737_v17 = vadd.f32 %v1736_v51, %v11716_v39  ;;  %v1825_v45 = vpop.f32.mrf.mxu1  ;;  %v2039_v11 = vsel %vm304_vm1, %v2034_v4, %v2038_v43 }
 0x2d2   :  { %v11997_v36 = vmax.f32 %v1899_v61, %v2039_v11  ;;  %v12016_v11 = vpop.f32.mrf.mxu2 }
 0x2d3   :  { %v1826_v32 = vadd.f32 %v1825_v45, %v1737_v17  ;;  %1775 = vmatmul.bf16.gmra.mxu0 %v18674_v6  ;;  %v1475_v17 = vadd.f32 %v11729_v22, %v11613_v13 }
 0x2d4   :  { %18673 = vst [vmem:[#allocation12_spill] sm:$0xff] %v11997_v36  ;;  %1864 = vmatmul.bf16.gmra.mxu1 %v11701_v7  ;;  %v9512_v15 = vpack.i.bf16 %v11997_v36, %v11703_v1  ;;  %v18677_v36 = vld [vmem:[#allocation14_spill] sm:$0xff] }
 0x2d5   :  { %v1903_v60 = vmax.f32 %v1826_v32, 0.0  ;;  %v1564_v51 = vadd.f32 %v11941_v42, %v1475_v17 }
 0x2d6   :  { %9513 = vrot.lane.b32.xlu2 %v9512_v15, %s10574_s0  ;;  %9528 = vrot.lane.b32.xlu1 %v9527_v27, %s10575_s22  ;;  %v12020_v15 = vpop.f32.mrf.mxu3 }
 0x2d7   :  { %v2042_v39 = vrot.slane %v1903_v60, 1  ;;  %v1653_v22 = vadd.f32 %v11944_v24, %v1564_v51 }
 0x2d8   :  { %v1738_v4 = vpop.f32.mrf.mxu0 }
 0x2d9   :  { %v1739_v45 = vadd.f32 %v1738_v4, %v11731_v31  ;;  %v1827_v7 = vpop.f32.mrf.mxu1  ;;  %v2043_v61 = vsel %vm304_vm1, %v2038_v43, %v2042_v39 }
 0x2da   :  { %v12013_v33 = vmax.f32 %v1901_v16, %v2043_v61  ;;  %v1477_v16 = vadd.f32 %v11752_v25, %v11613_v13  ;;  %v12034_v51 = vpop.f32.mrf.mxu2 }
 0x2db   :  { %v1828_v32 = vadd.f32 %v1827_v7, %v1739_v45 }
 0x2dc   :  { %18675 = vst [vmem:[#allocation33_spill] sm:$0xff] %v12013_v33  ;;  %v9517_v6 = vpack.i.bf16 %v12013_v33, %v11713_v12  ;;  %v1566_v7 = vadd.f32 %v11953_v0, %v1477_v16  ;;  %v1480_v0 = vadd.f32 %v11764_v58, %v11613_v13 }
 0x2dd   :  { %v1905_v27 = vmax.f32 %v1828_v32, 0.0 }
 0x2de   :  { %9518 = vrot.lane.b32.xlu2 %v9517_v6, %s10574_s0  ;;  %v1655_v25 = vadd.f32 %v11959_v52, %v1566_v7  ;;  %v1569_v16 = vadd.f32 %v11968_v41, %v1480_v0 }
 0x2df   :  { %v2046_v31 = vrot.slane %v1905_v27, 1 }
 0x2e0   :  { %v1741_v4 = vpop.f32.mrf.mxu0 }
 0x2e1   :  { %v1742_v43 = vadd.f32 %v1741_v4, %v1653_v22  ;;  %v1830_v42 = vpop.f32.mrf.mxu1  ;;  %v2047_v17 = vsel %vm304_vm1, %v2042_v39, %v2046_v31  ;;  %v12038_v39 = vpop.f32.mrf.mxu3 }
 0x2e2   :  { %v12027_v45 = vmax.f32 %v1903_v60, %v2047_v17  ;;  %v1658_v17 = vadd.f32 %v11971_v26, %v1569_v16  ;;  %v12050_v7 = vpop.f32.mrf.mxu2  ;;  %v18681_v26 = vld [vmem:[#allocation35_spill] sm:$0xff] }
 0x2e3   :  { %v1831_v61 = vadd.f32 %v1830_v42, %v1742_v43  ;;  %1780 = vmatmul.bf16.gmra.mxu0 %v18677_v36 }
 0x2e4   :  { %18676 = vst [vmem:[#allocation34_spill] sm:$0xff] %v12027_v45  ;;  %1869 = vmatmul.bf16.gmra.mxu1 %v11724_v34  ;;  %v9522_v24 = vpack.i.bf16 %v12027_v45, %v11726_v23 }
 0x2e5   :  { %v1907_v32 = vmax.f32 %v1831_v61, 0.0 }
 0x2e6   :  { %9523 = vrot.lane.b32.xlu0 %v9522_v24, %s10574_s0 }
 0x2e7   :  { %v2050_v60 = vrot.slane %v1907_v32, 1 }
 0x2e8   :  { %v1743_v6 = vpop.f32.mrf.mxu0 }
 0x2e9   :  { %v1744_v36 = vadd.f32 %v1743_v6, %v1655_v25  ;;  %v1832_v22 = vpop.f32.mrf.mxu1  ;;  %v2051_v34 = vsel %vm304_vm1, %v2046_v31, %v2050_v60  ;;  %v1482_v31 = vadd.f32 %v11773_v50, %v11613_v13 }
 0x2ea   :  { %v12043_v4 = vmax.f32 %v1905_v27, %v2051_v34  ;;  %v12054_v27 = vpop.f32.mrf.mxu3 }
 0x2eb   :  { %v1833_v43 = vadd.f32 %v1832_v22, %v1744_v36  ;;  %v1571_v0 = vadd.f32 %v11982_v56, %v1482_v31  ;;  %v18680_v22 = vld [vmem:[#allocation15_spill] sm:$0xff]  ;;  %v9329_v56 = vld [vmem:[%s17965_s3 + $0x74] sm:$0xf0] }
 0x2ec   :  { %18678 = vst [vmem:[#allocation13_spill] sm:$0xff] %v12043_v4  ;;  %v9537_v42 = vpack.i.bf16 %v12043_v4, %v11749_v5 }
 0x2ed   :  { %v1909_v52 = vmax.f32 %v1833_v43, 0.0  ;;  %v1660_v50 = vadd.f32 %v11984_v18, %v1571_v0 }
 0x2ee   :  { %9538 = vrot.lane.b32.xlu0 %v9537_v42, %s10574_s0 }
 0x2ef   :  { %v2054_v58 = vrot.slane %v1909_v52, 1 }
 0x2f0   :  { %v1746_v61 = vpop.f32.mrf.mxu0 }
 0x2f1   :  { %v1747_v24 = vadd.f32 %v1746_v61, %v1658_v17  ;;  %v1835_v41 = vpop.f32.mrf.mxu1  ;;  %v2055_v25 = vsel %vm304_vm1, %v2050_v60, %v2054_v58  ;;  %v12074_v17 = vpop.f32.mrf.mxu2 }
 0x2f2   :  { %v12057_v6 = vmax.f32 %v1907_v32, %v2055_v25  ;;  %v8494_v32 = vld [vmem:[%s17965_s3 + $0x70] sm:$0xf]  ;;  %v12080_v25 = vpop.f32.mrf.mxu3 }
 0x2f3   :  { %v1836_v36 = vadd.f32 %v1835_v41, %v1747_v24  ;;  %1785 = vmatmul.bf16.gmra.mxu0 %v18680_v22  ;;  %v8495_v42 = vor.u32 %v9329_v56, %v8494_v32  ;;  %v18683_v22 = vld [vmem:[#allocation36_spill] sm:$0xff]  ;;  %v9325_v56 = vld [vmem:[%s17965_s3 + $0x54] sm:$0xf0] }
 0x2f4   :  { %18679 = vst [vmem:[#allocation14_spill] sm:$0xff] %v12057_v6  ;;  %1874 = vmatmul.bf16.gmra.mxu1 %v11759_v20  ;;  %v9542_v34 = vpack.i.bf16 %v12057_v6, %v18681_v26  ;;  %v1485_v20 = vadd.f32 %v11785_v49, %v11613_v13  ;;  %v9327_v49 = vld [vmem:[%s17965_s3 + $0x64] sm:$0xf0]  ;;  %v8478_v32 = vld [vmem:[%s17965_s3 + $0x50] sm:$0xf] }
 0x2f5   :  { %v1911_v16 = vmax.f32 %v1836_v36, 0.0  ;;  %5089 = vmatpush.bf16.msra.mxu2 %v8495_v42  ;;  %v8486_v36 = vld [vmem:[%s17965_s3 + $0x60] sm:$0xf]  ;;  %v8479_v42 = vor.u32 %v9325_v56, %v8478_v32  ;;  %v8462_v32 = vld [vmem:[%s17965_s3 + $0x30] sm:$0xf] }
 0x2f6   :  { %9543 = vrot.lane.b32.xlu1 %v9542_v34, %s10574_s0  ;;  %v1574_v41 = vadd.f32 %v11993_v19, %v1485_v20  ;;  %v1487_v20 = vadd.f32 %v11794_v47, %v11613_v13  ;;  %v9323_v47 = vld [vmem:[%s17965_s3 + $0x44] sm:$0xf0]  ;;  %v9321_v56 = vld [vmem:[%s17965_s3 + $0x34] sm:$0xf0] }
 0x2f7   :  { %v2058_v43 = vrot.slane %v1911_v16, 1 }
 0x2f8   :  { %v1748_v60 = vpop.f32.mrf.mxu0  ;;  %v1663_v19 = vadd.f32 %v11999_v59, %v1574_v41  ;;  %v1576_v41 = vadd.f32 %v12016_v11, %v1487_v20 }
 0x2f9   :  { %v1749_v61 = vadd.f32 %v1748_v60, %v1660_v50  ;;  %v1837_v31 = vpop.f32.mrf.mxu1  ;;  %v2059_v18 = vsel %vm304_vm1, %v2054_v58, %v2058_v43  ;;  %v8487_v58 = vor.u32 %v9327_v49, %v8486_v36  ;;  %v18684_v49 = vld [vmem:[#allocation19_spill] sm:$0xff] }
 0x2fa   :  { %v12077_v24 = vmax.f32 %v1909_v52, %v2059_v18  ;;  %v1665_v11 = vadd.f32 %v12020_v15, %v1576_v41 }
 0x2fb   :  { %v1838_v0 = vadd.f32 %v1837_v31, %v1749_v61  ;;  %5090 = vmatpush.bf16.msra.mxu2 %v8487_v58 }
 0x2fc   :  { %18682 = vst [vmem:[#allocation15_spill] sm:$0xff] %v12077_v24  ;;  %v9557_v34 = vpack.i.bf16 %v12077_v24, %v18683_v22 }
 0x2fd   :  { %v1913_v52 = vmax.f32 %v1838_v0, 0.0  ;;  %v12104_v0 = vpop.f32.mrf.mxu2 }
 0x2fe   :  { %9558 = vrot.lane.b32.xlu1 %v9557_v34, %s10574_s0  ;;  %v8470_v34 = vld [vmem:[%s17965_s3 + $0x40] sm:$0xf] }
 0x2ff   :  { %v2062_v50 = vrot.slane %v1913_v52, 1  ;;  %5091 = vmatpush.bf16.msra.mxu2 %v8479_v42  ;;  %v8463_v42 = vor.u32 %v9321_v56, %v8462_v32 }
 0x300   :  { %v1751_v60 = vpop.f32.mrf.mxu0 }
 0x301   :  { %v1752_v61 = vadd.f32 %v1751_v60, %v1663_v19  ;;  %v1840_v31 = vpop.f32.mrf.mxu1  ;;  %v2063_v18 = vsel %vm304_vm1, %v2058_v43, %v2062_v50  ;;  %v8471_v43 = vor.u32 %v9323_v47, %v8470_v34 }
 0x302   :  { %v12101_v59 = vmax.f32 %v1911_v16, %v2063_v18  ;;  %v12114_v16 = vpop.f32.mrf.mxu3 }
 0x303   :  { %v1841_v36 = vadd.f32 %v1840_v31, %v1752_v61  ;;  %1790 = vmatmul.bf16.gmra.mxu0 %v18684_v49  ;;  %5092 = vmatpush.bf16.msra.mxu2 %v8471_v43  ;;  %v9319_v49 = vld [vmem:[%s17965_s3 + $0x24] sm:$0xf0] }
 0x304   :  { %1879 = vmatmul.bf16.gmra.mxu1 %v11780_v35  ;;  %v1490_v35 = vadd.f32 %v11804_v44, %v11613_v13 }
 0x305   :  { %v1915_v58 = vmax.f32 %v1841_v36, 0.0  ;;  %v8454_v36 = vld [vmem:[%s17965_s3 + $0x20] sm:$0xf]  ;;  %v1588_v44 = vpop.f32.mrf.mxu2 }
 0x306   :  { %v1579_v18 = vadd.f32 %v12034_v51, %v1490_v35  ;;  %v8455_v34 = vor.u32 %v9319_v49, %v8454_v36  ;;  %v8446_v51 = vld [vmem:[%s17965_s3 + $0x10] sm:$0xf] }
 0x307   :  { %v2066_v19 = vrot.slane %v1915_v58, 1  ;;  %5093 = vmatpush.bf16.msra.mxu2 %v8463_v42 }
 0x308   :  { %v1753_v60 = vpop.f32.mrf.mxu0 }
 0x309   :  { %v1754_v20 = vadd.f32 %v1753_v60, %v1665_v11  ;;  %v1842_v61 = vpop.f32.mrf.mxu1  ;;  %v2067_v31 = vsel %vm304_vm1, %v2062_v50, %v2066_v19  ;;  %v1668_v50 = vadd.f32 %v12038_v39, %v1579_v18  ;;  %v9317_v11 = vld [vmem:[%s17965_s3 + $0x14] sm:$0xf0]  ;;  %v1492_v60 = vadd.f32 %v11813_v54, %v11613_v13  ;;  %v18686_v18 = vld [vmem:[#allocation20_spill] sm:$0xff]  ;;  %v9315_v54 = vld [vmem:[%s17965_s3 + $0x4] sm:$0xf0] }
 0x30a   :  { %v12126_v15 = vmax.f32 %v1913_v52, %v2067_v31  ;;  %v12136_v43 = vpop.f32.mrf.mxu3  ;;  %v8447_v56 = vor.u32 %v9317_v11, %v8446_v51 }
 0x30b   :  { %v1843_v41 = vadd.f32 %v1842_v61, %v1754_v20  ;;  %5094 = vmatpush.bf16.msra.mxu2 %v8455_v34  ;;  %v1581_v61 = vadd.f32 %v12050_v7, %v1492_v60 }
 0x30d   :  { %v1917_v47 = vmax.f32 %v1843_v41, 0.0  ;;  %v8438_v41 = vld [vmem:[%s17965_s3] sm:$0xf]  ;;  %v1590_v49 = vpop.f32.mrf.mxu2 }
 0x30e   :  { %v8439_v36 = vor.u32 %v9315_v54, %v8438_v41 }
 0x30f   :  { %v2070_v52 = vrot.slane %v1917_v47, 1  ;;  %5095 = vmatpush.bf16.msra.mxu2 %v8447_v56 }
 0x310   :  { %v1756_v32 = vpop.f32.mrf.mxu0 }
 0x311   :  { %v1757_v42 = vadd.f32 %v1756_v32, %v1668_v50  ;;  %v1845_v35 = vpop.f32.mrf.mxu1  ;;  %v2071_v39 = vsel %vm304_vm1, %v2066_v19, %v2070_v52  ;;  %v1495_v50 = vadd.f32 %v11819_v55, %v11613_v13 }
 0x312   :  { %v12147_v20 = vmax.f32 %v1915_v58, %v2071_v39  ;;  %v1670_v58 = vadd.f32 %v12054_v27, %v1581_v61  ;;  %v12161_v51 = vpop.f32.mrf.mxu3 }
 0x313   :  { %v1846_v31 = vadd.f32 %v1845_v35, %v1757_v42  ;;  %1795 = vmatmul.bf16.gmra.mxu0 %v18686_v18  ;;  %5096 = vmatpush.bf16.msra.mxu2 %v8439_v36 }
 0x314   :  { %18685 = vst [vmem:[#allocation35_spill] sm:$0xff] %v12147_v20  ;;  %1884 = vmatmul.bf16.gmra.mxu1 %v11799_v40  ;;  %v1584_v40 = vadd.f32 %v12074_v17, %v1495_v50 }
 0x315   :  { %v1919_v19 = vmax.f32 %v1846_v31, 0.0  ;;  %v1497_v31 = vadd.f32 %v11827_v62, %v11613_v13  ;;  %v1593_v55 = vpop.f32.mrf.mxu2  ;;  %v1500_v62 = vadd.f32 %v11833_v14, %v11613_v13 }
 0x316   :  { %v1673_v27 = vadd.f32 %v12080_v25, %v1584_v40 }
 0x317   :  { %v2074_v7 = vrot.slane %v1919_v19, 1 }
 0x318   :  { %v1758_v34 = vpop.f32.mrf.mxu0 }
 0x319   :  { %v1759_v11 = vadd.f32 %v1758_v34, %v1670_v58  ;;  %v1847_v32 = vpop.f32.mrf.mxu1  ;;  %v2075_v56 = vsel %vm304_vm1, %v2070_v52, %v2074_v7 }
 0x31a   :  { %v12164_v60 = vmax.f32 %v1917_v47, %v2075_v56  ;;  %v1586_v47 = vadd.f32 %v12104_v0, %v1497_v31  ;;  %v1682_v52 = vpop.f32.mrf.mxu3 }
 0x31b   :  { %v1848_v42 = vadd.f32 %v1847_v32, %v1759_v11 }
 0x31c   :  { %18687 = vst [vmem:[#allocation36_spill] sm:$0xff] %v12164_v60  ;;  %v1675_v34 = vadd.f32 %v12114_v16, %v1586_v47 }
 0x31d   :  { %v1921_v35 = vmax.f32 %v1848_v42, 0.0  ;;  %v1595_v40 = vpop.f32.mrf.mxu2 }
 0x31f   :  { %v2078_v39 = vrot.slane %v1921_v35, 1 }
 0x320   :  { %v1761_v61 = vpop.f32.mrf.mxu0 }
 0x321   :  { %v1762_v18 = vadd.f32 %v1761_v61, %v1673_v27  ;;  %v1850_v41 = vpop.f32.mrf.mxu1  ;;  %v2079_v54 = vsel %vm304_vm1, %v2074_v7, %v2078_v39 }
 0x322   :  { %v12171_v36 = vmax.f32 %v1919_v19, %v2079_v54  ;;  %v1589_v19 = vadd.f32 %v1588_v44, %v1500_v62  ;;  %v12182_v27 = vpop.f32.mrf.mxu3  ;;  %v1505_v44 = vadd.f32 %v11847_v48, %v11613_v13 }
 0x323   :  { %v1851_v17 = vadd.f32 %v1850_v41, %v1762_v18  ;;  %v1502_v41 = vadd.f32 %v11841_v3, %v11613_v13 }
 0x324   :  { %18688 = vst [vmem:[#allocation19_spill] sm:$0xff] %v12171_v36  ;;  %v1678_v18 = vadd.f32 %v12136_v43, %v1589_v19  ;;  %v1594_v19 = vadd.f32 %v1593_v55, %v1505_v44 }
 0x325   :  { %v1923_v58 = vmax.f32 %v1851_v17, 0.0 }
 0x327   :  { %v2082_v25 = vrot.slane %v1923_v58, 1 }
 0x328   :  { %v1763_v50 = vpop.f32.mrf.mxu0  ;;  %v12175_v11 = vpop.permute.xlu0 %9493 }
 0x329   :  { %v1764_v32 = vadd.f32 %v1763_v50, %v1675_v34  ;;  %v1852_v56 = vpop.f32.mrf.mxu1  ;;  %v2083_v7 = vsel %vm304_vm1, %v2078_v39, %v2082_v25  ;;  %v18038_v16 = vunpack.i.h.bf16 %v12175_v11  ;;  %v9495_v61 = vunpack.i.l.bf16 %v12175_v11 }
 0x32a   :  { %v12180_v0 = vmax.f32 %v1921_v35, %v2083_v7 }
 0x32b   :  { %v1853_v42 = vadd.f32 %v1852_v56, %v1764_v32  ;;  %v2469_v54 = vsel %vm2468_vm7, %v9495_v61, %v18038_v16  ;;  %v1591_v56 = vadd.f32 %v1590_v49, %v1502_v41  ;;  %v12210_v61 = vpop.f32.mrf.mxu2  ;;  %v1507_v49 = vadd.f32 %v11855_v2, %v11613_v13  ;;  %v12225_v41 = vpop.f32.mrf.mxu3 }
 0x32d   :  { %v1925_v31 = vmax.f32 %v1853_v42, 0.0 }
 0x32f   :  { %v2086_v14 = vrot.slane %v1925_v31, 1 }
 0x330   :  { %v1766_v39 = vpop.f32.mrf.mxu0  ;;  %v12191_v35 = vpop.permute.xlu2 %9513 }
 0x331   :  { %18689 = vst [vmem:[#allocation20_spill] sm:$0xff] %v12191_v35  ;;  %v1767_v47 = vadd.f32 %v1766_v39, %v1678_v18  ;;  %v18034_v17 = vunpack.i.h.bf16 %v12191_v35  ;;  %v12197_v34 = vpop.permute.xlu0 %9498  ;;  %v1855_v43 = vpop.f32.mrf.mxu1  ;;  %v2087_v50 = vsel %vm304_vm1, %v2082_v25, %v2086_v14  ;;  %v9515_v3 = vunpack.i.l.bf16 %v12191_v35 }
 0x332   :  { %v18035_v62 = vunpack.i.h.bf16 %v12197_v34  ;;  %v9500_v48 = vunpack.i.l.bf16 %v12197_v34  ;;  %v12203_v32 = vmax.f32 %v1923_v58, %v2087_v50  ;;  %v12213_v25 = vmax.f32 %v11645_v10, %v2469_v54 }
 0x333   :  { %v12205_v7 = vadd.f32 %v1855_v43, %v1767_v47  ;;  %v2473_v55 = vsel %vm2468_vm7, %v9515_v3, %v18034_v17  ;;  %v1680_v58 = vadd.f32 %v12161_v51, %v1591_v56  ;;  %v1596_v54 = vadd.f32 %v1595_v40, %v1507_v49 }
 0x334   :  { %v2470_v42 = vsel %vm2468_vm7, %v9500_v48, %v18035_v62  ;;  %18690 = vst [vmem:[#allocation43_spill] sm:$0xff] %v12213_v25  ;;  %v12234_v2 = vmax.f32 %v11703_v1, %v2473_v55  ;;  %v18044_v49 = vrot.slane %v12213_v25, 2 }
 0x335   :  { %v12216_v18 = vmax.f32 %v18667_v8, %v2470_v42  ;;  %v1927_v39 = vmax.f32 %v12205_v7, 0.0  ;;  %v1683_v8 = vadd.f32 %v1682_v52, %v1594_v19 }
 0x336   :  { %18694 = vst [vmem:[#allocation47_spill] sm:$0xff] %v12234_v2  ;;  %v18700_v24 = vrot.slane %v12234_v2, 4 }
 0x337   :  { %18691 = vst [vmem:[#allocation44_spill] sm:$0xff] %v12216_v18  ;;  %v2090_v44 = vrot.slane %v1927_v39, 1  ;;  %v12229_v10 = vpack.c.bf16 %v12216_v18, %v12213_v25  ;;  %v18702_v35 = vrot.slane %v12216_v18, 6 }
 0x338   :  { %v1768_v47 = vpop.f32.mrf.mxu0  ;;  %v12231_v43 = vpop.permute.xlu2 %9518 }
 0x339   :  { %18692 = vst [vmem:[#allocation45_spill] sm:$0xff] %v12229_v10  ;;  %v1769_v50 = vadd.f32 %v1768_v47, %v1680_v58  ;;  %v18036_v3 = vunpack.i.h.bf16 %v12231_v43  ;;  %v9520_v51 = vunpack.i.l.bf16 %v12231_v43  ;;  %v12238_v48 = vpop.permute.xlu1 %9503  ;;  %5097 = vmatmul.bf16.vlgmr.msra.gmra.mxu2 %v12229_v10  ;;  %v1857_v56 = vpop.f32.mrf.mxu1  ;;  %v2091_v7 = vsel %vm304_vm1, %v2086_v14, %v2090_v44 }
 0x33a   :  { %18693 = vst [vmem:[#allocation46_spill] sm:$0xff] %v12231_v43  ;;  %v18037_v52 = vunpack.i.h.bf16 %v12238_v48  ;;  %v9505_v40 = vunpack.i.l.bf16 %v12238_v48  ;;  %v12250_v55 = vmax.f32 %v1925_v31, %v2091_v7  ;;  %v2823_v14 = vrot.slane %v12216_v18, 2 }
 0x33b   :  { %v2474_v19 = vsel %vm2468_vm7, %v9520_v51, %v18036_v3  ;;  %v12247_v42 = vadd.f32 %v1857_v56, %v1769_v50  ;;  %v3102_v51 = vrot.slane %v12234_v2, 6  ;;  %v12270_v3 = vpop.f32.mrf.mxu2 }
 0x33c   :  { %18695 = vst [vmem:[#allocation48_spill] sm:$0xff] %v12250_v55  ;;  %v12253_v58 = vmax.f32 %v11713_v12, %v2474_v19  ;;  %v2471_v47 = vsel %vm2468_vm7, %v9505_v40, %v18037_v52  ;;  %v2956_v19 = vrot.slane %v12216_v18, 4  ;;  %v2824_v56 = vsel %vm445_vm6, %v18044_v49, %v2823_v14 }
 0x33d   :  { %v12261_v62 = vmax.f32 %v18671_v53, %v2471_v47  ;;  %v1929_v50 = vmax.f32 %v12247_v42, 0.0 }
 0x33e   :  { %18696 = vst [vmem:[#allocation49_spill] sm:$0xff] %v12253_v58  ;;  %v18047_v7 = vrot.slane %v12253_v58, 6  ;;  %v18699_v10 = vrot.slane %v12253_v58, 4 }
 0x33f   :  { %18697 = vst [vmem:[#allocation50_spill] sm:$0xff] %v12261_v62  ;;  %v2094_v52 = vrot.slane %v1929_v50, 1  ;;  %v2828_v47 = vrot.slane %v12261_v62, 2  ;;  %v3094_v16 = vrot.slane %v12261_v62, 6  ;;  %v2961_v31 = vrot.slane %v12261_v62, 4 }
 0x340   :  { %v1771_v17 = vpop.f32.mrf.mxu0  ;;  %v12283_v40 = vsel %vm3087_vm8, %v3102_v51, %v18047_v7  ;;  %v12290_v45 = vsel %vm2954_vm9, %v18700_v24, %v18699_v10 }
 0x341   :  { %18698 = vst [vmem:[#allocation51_spill] sm:$0xff] %v12283_v40  ;;  %v1772_v42 = vadd.f32 %v1771_v17, %v1683_v8  ;;  %v12292_v4 = vpop.permute.xlu1 %9508  ;;  %v1860_v6 = vpop.f32.mrf.mxu1  ;;  %v2829_v49 = vsel %vm445_vm6, %v2823_v14, %v2828_v47  ;;  %v2095_v33 = vsel %vm304_vm1, %v2090_v44, %v2094_v52  ;;  %v12299_v7 = vsel %vm3087_vm8, %v18702_v35, %v3094_v16 }
 0x342   :  { %18701 = vst [vmem:[#allocation52_spill] sm:$0xff] %v12290_v45  ;;  %v18051_v40 = vunpack.i.h.bf16 %v12292_v4  ;;  %v9510_v43 = vunpack.i.l.bf16 %v12292_v4  ;;  %v9532_v28 = vpack.i.bf16 %v2829_v49, %v2824_v56  ;;  %v12303_v24 = vmax.f32 %v1927_v39, %v2095_v33  ;;  %v1689_v17 = vpop.f32.mrf.mxu3 }
 0x343   :  { %18703 = vst [vmem:[#allocation53_spill] sm:$0xff] %v12299_v7  ;;  %v1861_v10 = vadd.f32 %v1860_v6, %v1772_v42  ;;  %v18705_v8 = vrot.slane %v12213_v25, 4  ;;  %v12311_v44 = vsel %vm2954_vm9, %v2956_v19, %v2961_v31  ;;  %v1685_v49 = vadd.f32 %v12182_v27, %v1596_v54  ;;  %v1603_v54 = vpop.f32.mrf.mxu2 }
 0x344   :  { %18704 = vst [vmem:[#allocation54_spill] sm:$0xff] %v12303_v24  ;;  %v2472_v35 = vsel %vm2468_vm7, %v9510_v43, %v18051_v40  ;;  %9533 = vrot.lane.b32.xlu2 %v9532_v28, %s10576_s15 }
 0x345   :  { %v12308_v14 = vsel %vm2954_vm9, %v18705_v8, %v2956_v19  ;;  %18707 = vst [vmem:[#allocation56_spill] sm:$0xff] %v12311_v44  ;;  %v12320_v6 = vmax.f32 %v11690_v9, %v2472_v35  ;;  %v1931_v39 = vmax.f32 %v1861_v10, 0.0  ;;  %v1510_v8 = vadd.f32 %v11861_v63, %v11613_v13 }
 0x346   :  { %18706 = vst [vmem:[#allocation55_spill] sm:$0xff] %v12308_v14  ;;  %v18710_v14 = vrot.slane %v12234_v2, 2  ;;  %v9547_v10 = vpack.i.bf16 %v11690_v9, %v18671_v53  ;;  %v18715_v9 = vrot.slane %v12234_v2, 4 }
 0x347   :  { %18708 = vst [vmem:[#allocation57_spill] sm:$0xff] %v12320_v6  ;;  %v2098_v19 = vrot.slane %v1931_v39, 1  ;;  %v12326_v42 = vpack.c.bf16 %v12320_v6, %v12261_v62  ;;  %v2832_v43 = vrot.slane %v12320_v6, 2  ;;  %v3098_v28 = vrot.slane %v12320_v6, 6 }
 0x348   :  { %v1773_v33 = vpop.f32.mrf.mxu0  ;;  %v2965_v27 = vrot.slane %v12320_v6, 4  ;;  %v1599_v63 = vadd.f32 %v12210_v61, %v1510_v8 }
 0x349   :  { %18709 = vst [vmem:[#allocation58_spill] sm:$0xff] %v12326_v42  ;;  %v1774_v35 = vadd.f32 %v1773_v33, %v1685_v49  ;;  %5102 = vmatmul.bf16.gmra.mxu2 %v12326_v42  ;;  %v1862_v40 = vpop.f32.mrf.mxu1  ;;  %v2833_v56 = vsel %vm445_vm6, %v2828_v47, %v2832_v43  ;;  %v2837_v44 = vsel %vm445_vm6, %v2832_v43, %v18710_v14 }
 0x34a   :  { %v2099_v25 = vsel %vm304_vm1, %v2094_v52, %v2098_v19  ;;  %v9552_v18 = vpack.i.bf16 %v2837_v44, %v2833_v56  ;;  %v12347_v49 = vsel %vm3087_vm8, %v3098_v28, %v3102_v51  ;;  %v12350_v47 = vsel %vm3087_vm8, %v3094_v16, %v3098_v28  ;;  %v1692_v61 = vpop.f32.mrf.mxu3  ;;  %v18717_v56 = vld [vmem:[#allocation18_spill] sm:$0xff] }
 0x34b   :  { %v12344_v6 = vmax.f32 %v1929_v50, %v2099_v25  ;;  %v1863_v33 = vadd.f32 %v1862_v40, %v1774_v35  ;;  %18712 = vst [vmem:[#allocation60_spill] sm:$0xff] %v12347_v49  ;;  %v12353_v42 = vsel %vm2954_vm9, %v2961_v31, %v2965_v27  ;;  %v12360_v53 = vsel %vm2954_vm9, %v2965_v27, %v18715_v9 }
 0x34c   :  { %18713 = vst [vmem:[#allocation61_spill] sm:$0xff] %v12350_v47  ;;  %9553 = vrot.lane.b32.xlu0 %v9552_v18, %s10576_s15  ;;  %9548 = vrot.lane.b32.xlu2 %v9547_v10, %s10575_s22  ;;  %v1688_v16 = vadd.f32 %v12225_v41, %v1599_v63  ;;  %v1512_v31 = vadd.f32 %v11869_v30, %v11613_v13  ;;  %v1605_v41 = vpop.f32.mrf.mxu2 }
 0x34d   :  { %18711 = vst [vmem:[#allocation59_spill] sm:$0xff] %v12344_v6  ;;  %v1933_v52 = vmax.f32 %v1863_v33, 0.0  ;;  %v9567_v44 = vpack.i.bf16 %v11713_v12, %v11703_v1  ;;  %v9562_v43 = vpack.i.bf16 %v12101_v59, %v18717_v56  ;;  %v12381_v1 = vpack.c.bf16 %v12253_v58, %v12234_v2 }
 0x34e   :  { %18714 = vst [vmem:[#allocation62_spill] sm:$0xff] %v12353_v42  ;;  %v1601_v8 = vadd.f32 %v12270_v3, %v1512_v31  ;;  %v1515_v12 = vadd.f32 %v11875_v57, %v11613_v13  ;;  %v9577_v31 = vpack.i.bf16 %v12126_v15, %v11791_v21 }
 0x34f   :  { %18716 = vst [vmem:[#allocation63_spill] sm:$0xff] %v12360_v53  ;;  %v2102_v50 = vrot.slane %v1933_v52, 1 }
 0x350   :  { %v1776_v51 = vpop.f32.mrf.mxu0  ;;  %v1690_v27 = vadd.f32 %v1689_v17, %v1601_v8  ;;  %18719 = vst [vmem:[#allocation64_spill] sm:$0xff] %v12381_v1 }
 0x351   :  { %v1777_v18 = vadd.f32 %v1776_v51, %v1688_v16  ;;  %v1865_v40 = vpop.f32.mrf.mxu1  ;;  %v2103_v14 = vsel %vm304_vm1, %v2098_v19, %v2102_v50  ;;  %v9582_v51 = vpack.i.bf16 %v12147_v20, %v11801_v37 }
 0x352   :  { %v12372_v28 = vmax.f32 %v1931_v39, %v2103_v14  ;;  %v12377_v35 = vpop.f32.mrf.mxu3 }
 0x353   :  { %v1866_v10 = vadd.f32 %v1865_v40, %v1777_v18  ;;  %v1604_v18 = vadd.f32 %v1603_v54, %v1515_v12  ;;  %v1517_v12 = vadd.f32 %v11883_v46, %v11613_v13  ;;  %v18724_v46 = vrot.slane %v12253_v58, 4 }
 0x354   :  { %18718 = vst [vmem:[#allocation18_spill] sm:$0xff] %v12372_v28  ;;  %9568 = vrot.lane.b32.xlu0 %v9567_v44, %s10575_s22  ;;  %9563 = vrot.lane.b32.xlu2 %v9562_v43, %s10574_s0  ;;  %v12408_v43 = vpop.f32.mrf.mxu2 }
 0x355   :  { %v1935_v30 = vmax.f32 %v1866_v10, 0.0  ;;  %v1606_v42 = vadd.f32 %v1605_v41, %v1517_v12 }
 0x357   :  { %v2106_v19 = vrot.slane %v1935_v30, 1 }
 0x358   :  { %v1778_v39 = vpop.f32.mrf.mxu0  ;;  %v12385_v3 = vpop.permute.xlu0 %9523 }
 0x359   :  { %v1779_v63 = vadd.f32 %v1778_v39, %v1690_v27  ;;  %v18060_v33 = vunpack.i.h.bf16 %v12385_v3  ;;  %v9525_v9 = vunpack.i.l.bf16 %v12385_v3  ;;  %5107 = vmatmul.bf16.gmra.mxu2 %v12381_v1  ;;  %v1867_v17 = vpop.f32.mrf.mxu1  ;;  %v2107_v16 = vsel %vm304_vm1, %v2102_v50, %v2106_v19 }
 0x35a   :  { %v12395_v57 = vmax.f32 %v1933_v52, %v2107_v16  ;;  %v2840_v50 = vrot.slane %v12253_v58, 2  ;;  %v1693_v39 = vadd.f32 %v1692_v61, %v1604_v18  ;;  %v1697_v53 = vpop.f32.mrf.mxu3 }
 0x35b   :  { %v2475_v40 = vsel %vm2468_vm7, %v9525_v9, %v18060_v33  ;;  %v12400_v14 = vadd.f32 %v1867_v17, %v1779_v63  ;;  %v12418_v63 = vpop.permute.xlu1 %9528 }
 0x35c   :  { %v12403_v44 = vmax.f32 %v11726_v23, %v2475_v40  ;;  %9583 = vrot.lane.b32.xlu0 %v9582_v51, %s10574_s0  ;;  %9578 = vrot.lane.b32.xlu2 %v9577_v31, %s10574_s0  ;;  %v18721_v51 = vrot.slane %v12234_v2, 2 }
 0x35d   :  { %v1937_v52 = vmax.f32 %v12400_v14, 0.0  ;;  %v18722_v14 = vrot.slane %v12253_v58, 6 }
 0x35e   :  { %18720 = vst [vmem:[#allocation65_spill] sm:$0xff] %v12403_v44  ;;  %v18064_v54 = vrot.slane %v12403_v44, 2  ;;  %v3110_v8 = vrot.slane %v12403_v44, 6  ;;  %v2977_v27 = vrot.slane %v12403_v44, 4  ;;  %v2841_v31 = vsel %vm445_vm6, %v18721_v51, %v2840_v50 }
 0x35f   :  { %v2110_v9 = vrot.slane %v1937_v52, 1 }
 0x360   :  { %v1781_v17 = vpop.f32.mrf.mxu0  ;;  %v12420_v16 = vpop.permute.xlu0 %9538  ;;  %v2845_v40 = vsel %vm445_vm6, %v2840_v50, %v18064_v54  ;;  %v12431_v25 = vsel %vm3087_vm8, %v18722_v14, %v3110_v8  ;;  %v12436_v61 = vsel %vm2954_vm9, %v18724_v46, %v2977_v27  ;;  %v18726_v50 = vld [vmem:[#allocation16_spill] sm:$0xff]  ;;  %v9345_v46 = vld [vmem:[%s17965_s3 + $0xf4] sm:$0xf0] }
 0x361   :  { %18723 = vst [vmem:[#allocation66_spill] sm:$0xff] %v12431_v25  ;;  %v1782_v18 = vadd.f32 %v1781_v17, %v1693_v39  ;;  %v18066_v10 = vunpack.i.h.bf16 %v12420_v16  ;;  %v9540_v33 = vunpack.i.l.bf16 %v12420_v16  ;;  %v1870_v51 = vpop.f32.mrf.mxu1  ;;  %v9572_v1 = vpack.i.bf16 %v2845_v40, %v2841_v31  ;;  %v8558_v14 = vld [vmem:[%s17965_s3 + $0xf0] sm:$0xf] }
 0x362   :  { %18725 = vst [vmem:[#allocation67_spill] sm:$0xff] %v12436_v61  ;;  %v9597_v54 = vpack.i.bf16 %v12164_v60, %v18726_v50  ;;  %v2111_v39 = vsel %vm304_vm1, %v2106_v19, %v2110_v9  ;;  %v8559_v31 = vor.u32 %v9345_v46, %v8558_v14 }
 0x363   :  { %v2476_v41 = vsel %vm2468_vm7, %v9540_v33, %v18066_v10  ;;  %v12454_v12 = vadd.f32 %v1870_v51, %v1782_v18  ;;  %9573 = vrot.lane.b32.xlu1 %v9572_v1, %s10576_s15  ;;  %v12457_v40 = vmax.f32 %v1935_v30, %v2111_v39  ;;  %v8550_v33 = vld [vmem:[%s17965_s3 + $0xe0] sm:$0xf]  ;;  %v9343_v30 = vld [vmem:[%s17965_s3 + $0xe4] sm:$0xf0]  ;;  %v1695_v18 = vadd.f32 %v12377_v35, %v1606_v42 }
 0x364   :  { %v12460_v58 = vmax.f32 %v11749_v5, %v2476_v41  ;;  %9598 = vrot.lane.b32.xlu0 %v9597_v54, %s10574_s0  ;;  %5178 = vmatpush.bf16.msra.mxu3 %v8559_v31  ;;  %v1610_v54 = vpop.f32.mrf.mxu2  ;;  %v8551_v14 = vor.u32 %v9343_v30, %v8550_v33  ;;  %v1520_v39 = vadd.f32 %v11889_v29, %v11613_v13  ;;  %v8542_v30 = vld [vmem:[%s17965_s3 + $0xd0] sm:$0xf] }
 0x365   :  { %v18068_v19 = vmax.f32 %v12454_v12, 0.0  ;;  %v9587_v10 = vpack.i.bf16 %v11749_v5, %v11726_v23  ;;  %v9341_v23 = vld [vmem:[%s17965_s3 + $0xd4] sm:$0xf0] }
 0x366   :  { %18727 = vst [vmem:[#allocation16_spill] sm:$0xff] %v12460_v58  ;;  %v12466_v17 = vpack.c.bf16 %v12460_v58, %v12403_v44  ;;  %v3114_v1 = vrot.slane %v12460_v58, 6  ;;  %v2981_v46 = vrot.slane %v12460_v58, 4 }
 0x367   :  { %v2114_v51 = vrot.slane %v18068_v19, 1 }
 0x368   :  { %18728 = vst [vmem:[#allocation68_spill] sm:$0xff] %v12466_v17  ;;  %v1783_v41 = vpop.f32.mrf.mxu0  ;;  %v12481_v31 = vpop.permute.xlu1 %9543  ;;  %v12486_v45 = vsel %vm3087_vm8, %v3110_v8, %v3114_v1  ;;  %5179 = vmatpush.bf16.msra.mxu3 %v8551_v14  ;;  %v12501_v8 = vsel %vm2954_vm9, %v2977_v27, %v2981_v46 }
 0x369   :  { %18729 = vst [vmem:[#allocation69_spill] sm:$0xff] %v12486_v45  ;;  %v1784_v42 = vadd.f32 %v1783_v41, %v1695_v18  ;;  %v18071_v35 = vunpack.i.h.bf16 %v12481_v31  ;;  %v9545_v19 = vunpack.i.l.bf16 %v12481_v31  ;;  %5112 = vmatmul.bf16.gmra.mxu2 %v12466_v17  ;;  %v1872_v33 = vpop.f32.mrf.mxu1  ;;  %v2115_v29 = vsel %vm304_vm1, %v2110_v9, %v2114_v51  ;;  %v1699_v17 = vpop.f32.mrf.mxu3  ;;  %v18912_v45 = vld [vmem:[#allocation8_spill] sm:$0xff] }
 0x36a   :  { %v12498_v5 = vmax.f32 %v1937_v52, %v2115_v29  ;;  %18730 = vst [vmem:[#allocation70_spill] sm:$0xff] %v12501_v8  ;;  %v1609_v18 = vadd.f32 %v12408_v43, %v1520_v39  ;;  %v8543_v41 = vor.u32 %v9341_v23, %v8542_v30  ;;  %v2848_v52 = vrot.slane %v12460_v58, 2 }
 0x36b   :  { %v2477_v14 = vsel %vm2468_vm7, %v9545_v19, %v18071_v35  ;;  %v12507_v9 = vadd.f32 %v1872_v33, %v1784_v42  ;;  %9588 = vrot.lane.b32.xlu1 %v9587_v10, %s10575_s22  ;;  %v1522_v43 = vadd.f32 %v11897_v38, %v11613_v13  ;;  %v8534_v19 = vld [vmem:[%s17965_s3 + $0xc0] sm:$0xf]  ;;  %v9339_v10 = vld [vmem:[%s17965_s3 + $0xc4] sm:$0xf0]  ;;  %v18733_v39 = vrot.slane %v12403_v44, 2 }
 0x36c   :  { %v12511_v61 = vmax.f32 %v18681_v26, %v2477_v14  ;;  %5180 = vmatpush.bf16.msra.mxu3 %v8543_v41  ;;  %v1698_v29 = vadd.f32 %v1697_v53, %v1609_v18  ;;  %v8535_v23 = vor.u32 %v9339_v10, %v8534_v19  ;;  %v18732_v41 = vld [vmem:[#allocation17_spill] sm:$0xff]  ;;  %v18747_v44 = vld [vmem:[#allocation3_spill] sm:$0xff] }
 0x36d   :  { %v1941_v27 = vmax.f32 %v12507_v9, 0.0  ;;  %v9602_v35 = vpack.i.bf16 %v12171_v36, %v18732_v41  ;;  %v2849_v2 = vsel %vm445_vm6, %v18733_v39, %v2848_v52  ;;  %v1611_v60 = vadd.f32 %v1610_v54, %v1522_v43  ;;  %v1613_v36 = vpop.f32.mrf.mxu2  ;;  %v8526_v39 = vld [vmem:[%s17965_s3 + $0xb0] sm:$0xf] }
 0x36e   :  { %18731 = vst [vmem:[#allocation71_spill] sm:$0xff] %v12511_v61  ;;  %v3118_v42 = vrot.slane %v12511_v61, 6  ;;  %v2985_v38 = vrot.slane %v12511_v61, 4  ;;  %v18734_v62 = vrot.slane %v12511_v61, 2 }
 0x36f   :  { %v2118_v30 = vrot.slane %v1941_v27, 1 }
 0x370   :  { %v1786_v14 = vpop.f32.mrf.mxu0  ;;  %v12528_v9 = vpop.permute.xlu1 %9558  ;;  %v2853_v20 = vsel %vm445_vm6, %v2848_v52, %v18734_v62  ;;  %v12539_v53 = vsel %vm3087_vm8, %v3114_v1, %v3118_v42  ;;  %5181 = vmatpush.bf16.msra.mxu3 %v8535_v23  ;;  %v9337_v62 = vld [vmem:[%s17965_s3 + $0xb4] sm:$0xf0]  ;;  %v12551_v52 = vsel %vm2954_vm9, %v2981_v46, %v2985_v38 }
 0x371   :  { %18735 = vst [vmem:[#allocation17_spill] sm:$0xff] %v12539_v53  ;;  %v1787_v18 = vadd.f32 %v1786_v14, %v1698_v29  ;;  %v18078_v19 = vunpack.i.h.bf16 %v12528_v9  ;;  %v9560_v10 = vunpack.i.l.bf16 %v12528_v9  ;;  %v1875_v33 = vpop.f32.mrf.mxu1  ;;  %v9592_v58 = vpack.i.bf16 %v2853_v20, %v2849_v2  ;;  %v1702_v14 = vpop.f32.mrf.mxu3 }
 0x372   :  { %v2119_v1 = vsel %vm304_vm1, %v2114_v51, %v2118_v30  ;;  %18736 = vst [vmem:[#allocation72_spill] sm:$0xff] %v12551_v52  ;;  %v8527_v54 = vor.u32 %v9337_v62, %v8526_v39  ;;  %v18738_v29 = vmax.f32 %v12454_v12, 0.0  ;;  %v9335_v12 = vld [vmem:[%s17965_s3 + $0xa4] sm:$0xf0]  ;;  %v9607_v51 = vpack.i.bf16 %v18683_v22, %v18681_v26  ;;  %v8510_v26 = vld [vmem:[%s17965_s3 + $0x90] sm:$0xf] }
 0x373   :  { %v2478_v20 = vsel %vm2468_vm7, %v9560_v10, %v18078_v19  ;;  %v1876_v2 = vadd.f32 %v1875_v33, %v1787_v18  ;;  %9603 = vrot.lane.b32.xlu1 %v9602_v35, %s10574_s0  ;;  %9593 = vrot.lane.b32.xlu2 %v9592_v58, %s10576_s15  ;;  %v8518_v58 = vld [vmem:[%s17965_s3 + $0xa0] sm:$0xf]  ;;  %v1700_v18 = vadd.f32 %v1699_v17, %v1611_v60 }
 0x374   :  { %v12559_v43 = vmax.f32 %v18683_v22, %v2478_v20  ;;  %v12563_v23 = vmax.f32 %v18738_v29, %v2119_v1  ;;  %5182 = vmatpush.bf16.msra.mxu3 %v8527_v54  ;;  %v8519_v39 = vor.u32 %v9335_v12, %v8518_v58  ;;  %v18740_v1 = vld [vmem:[#allocation28_spill] sm:$0xff]  ;;  %v18741_v54 = vld [vmem:[#allocation2_spill] sm:$0xff]  ;;  %v9333_v22 = vld [vmem:[%s17965_s3 + $0x94] sm:$0xf0] }
 0x375   :  { %v1943_v46 = vmax.f32 %v1876_v2, 0.0  ;;  %v1525_v20 = vadd.f32 %v18740_v1, %v11613_v13  ;;  %v9617_v29 = vpack.i.bf16 %v12180_v0, %v18741_v54 }
 0x376   :  { %18737 = vst [vmem:[#allocation73_spill] sm:$0xff] %v12559_v43  ;;  %v12569_v33 = vpack.c.bf16 %v12559_v43, %v12511_v61  ;;  %v18080_v35 = vrot.slane %v12559_v43, 6  ;;  %v18079_v62 = vrot.slane %v12559_v43, 4 }
 0x377   :  { %v2122_v10 = vrot.slane %v1943_v46, 1 }
 0x378   :  { %18739 = vst [vmem:[#allocation74_spill] sm:$0xff] %v12569_v33  ;;  %v1788_v2 = vpop.f32.mrf.mxu0  ;;  %v12588_v19 = vsel %vm3087_vm8, %v3118_v42, %v18080_v35  ;;  %5183 = vmatpush.bf16.msra.mxu3 %v8519_v39  ;;  %v12595_v12 = vsel %vm2954_vm9, %v2985_v38, %v18079_v62  ;;  %v1615_v39 = vpop.f32.mrf.mxu2  ;;  %v9331_v62 = vld [vmem:[%s17965_s3 + $0x84] sm:$0xf0] }
 0x379   :  { %18742 = vst [vmem:[#allocation28_spill] sm:$0xff] %v12588_v19  ;;  %v1789_v60 = vadd.f32 %v1788_v2, %v1700_v18  ;;  %5117 = vmatmul.bf16.gmra.mxu2 %v12569_v33  ;;  %v1877_v17 = vpop.f32.mrf.mxu1  ;;  %v2123_v58 = vsel %vm304_vm1, %v2118_v30, %v2122_v10  ;;  %v1614_v18 = vadd.f32 %v1613_v36, %v1525_v20  ;;  %v8502_v2 = vld [vmem:[%s17965_s3 + $0x80] sm:$0xf]  ;;  %v1704_v20 = vpop.f32.mrf.mxu3 }
 0x37a   :  { %18743 = vst [vmem:[#allocation2_spill] sm:$0xff] %v12595_v12  ;;  %v12603_v42 = vmax.f32 %v1941_v27, %v2123_v58  ;;  %v8511_v30 = vor.u32 %v9333_v22, %v8510_v26  ;;  %v8503_v36 = vor.u32 %v9331_v62, %v8502_v2  ;;  %v18745_v22 = vld [vmem:[#allocation21_spill] sm:$0xff] }
 0x37b   :  { %v1878_v1 = vadd.f32 %v1877_v17, %v1789_v60  ;;  %9618 = vrot.lane.b32.xlu1 %v9617_v29, %s10574_s0  ;;  %9608 = vrot.lane.b32.xlu2 %v9607_v51, %s10575_s22  ;;  %v1703_v27 = vadd.f32 %v1702_v14, %v1614_v18  ;;  %v18744_v29 = vld [vmem:[#allocation27_spill] sm:$0xff] }
 0x37c   :  { %5184 = vmatpush.bf16.msra.mxu3 %v8511_v30  ;;  %v1527_v51 = vadd.f32 %v18744_v29, %v11613_v13 }
 0x37d   :  { %v1945_v38 = vmax.f32 %v1878_v1, 0.0  ;;  %v9622_v1 = vpack.i.bf16 %v12203_v32, %v18745_v22 }
 0x37e   :  { %v1616_v33 = vadd.f32 %v1615_v39, %v1527_v51 }
 0x37f   :  { %v2126_v58 = vrot.slane %v1945_v38, 1 }
 0x380   :  { %v1791_v60 = vpop.f32.mrf.mxu0  ;;  %5185 = vmatpush.bf16.msra.mxu3 %v8503_v36  ;;  %v1618_v62 = vpop.f32.mrf.mxu2  ;;  %v1705_v18 = vadd.f32 %v1704_v20, %v1616_v33  ;;  %v9637_v36 = vpack.i.bf16 %v12250_v55, %v18747_v44 }
 0x381   :  { %v1792_v17 = vadd.f32 %v1791_v60, %v1703_v27  ;;  %v1880_v26 = vpop.f32.mrf.mxu1  ;;  %v2127_v30 = vsel %vm304_vm1, %v2122_v10, %v2126_v58  ;;  %v18746_v27 = vld [vmem:[#allocation38_spill] sm:$0xff]  ;;  %v1707_v10 = vpop.f32.mrf.mxu3 }
 0x382   :  { %v12618_v35 = vmax.f32 %v1943_v46, %v2127_v30  ;;  %v1530_v60 = vadd.f32 %v18746_v27, %v11613_v13 }
 0x383   :  { %v1881_v19 = vadd.f32 %v1880_v26, %v1792_v17  ;;  %9623 = vrot.lane.b32.xlu2 %v9622_v1, %s10574_s0 }
 0x384   :  { %v1619_v51 = vadd.f32 %v1618_v62, %v1530_v60 }
 0x385   :  { %v1947_v14 = vmax.f32 %v1881_v19, 0.0 }
 0x386   :  { %v1708_v33 = vadd.f32 %v1707_v10, %v1619_v51  ;;  %v9531_v10 = vunpack.i.h.bf16 %v12418_v63 }
 0x387   :  { %v2130_v2 = vrot.slane %v1947_v14, 1 }
 0x388   :  { %v1793_v8 = vpop.f32.mrf.mxu0  ;;  %v1620_v26 = vpop.f32.mrf.mxu2 }
 0x389   :  { %v1794_v29 = vadd.f32 %v1793_v8, %v1705_v18  ;;  %v1882_v52 = vpop.f32.mrf.mxu1  ;;  %v2131_v46 = vsel %vm304_vm1, %v2126_v58, %v2130_v2  ;;  %v18748_v8 = vld [vmem:[#allocation40_spill] sm:$0xff]  ;;  %v1709_v62 = vpop.f32.mrf.mxu3 }
 0x38a   :  { %v12626_v39 = vmax.f32 %v1945_v38, %v2131_v46  ;;  %v1532_v30 = vadd.f32 %v18748_v8, %v11613_v13 }
 0x38b   :  { %v1883_v17 = vadd.f32 %v1882_v52, %v1794_v29  ;;  %9638 = vrot.lane.b32.xlu2 %v9637_v36, %s10574_s0  ;;  %v9530_v29 = vunpack.i.l.bf16 %v12418_v63  ;;  %v18753_v63 = vld [vmem:[#allocation10_spill] sm:$0xff] }
 0x38c   :  { %v1621_v38 = vadd.f32 %v1620_v26, %v1532_v30  ;;  %v18752_v26 = vunpack.i.h.bf16 %v12197_v34 }
 0x38d   :  { %v1949_v19 = vmax.f32 %v1883_v17, 0.0 }
 0x38e   :  { %v1710_v60 = vadd.f32 %v1709_v62, %v1621_v38  ;;  %v2663_v8 = vsel %vm2661_vm10, %v18752_v26, %v9531_v10 }
 0x38f   :  { %v2134_v20 = vrot.slane %v1949_v19, 1 }
 0x390   :  { %v1796_v1 = vpop.f32.mrf.mxu0 }
 0x391   :  { %v1797_v18 = vadd.f32 %v1796_v1, %v1708_v33  ;;  %v1885_v27 = vpop.f32.mrf.mxu1  ;;  %v2135_v55 = vsel %vm304_vm1, %v2130_v2, %v2134_v20 }
 0x392   :  { %v12632_v58 = vmax.f32 %v1947_v14, %v2135_v55  ;;  %v18750_v55 = vunpack.i.h.bf16 %v12175_v11 }
 0x393   :  { %v1886_v46 = vadd.f32 %v1885_v27, %v1797_v18 }
 0x394   :  { %v2662_v14 = vsel %vm2661_vm10, %v18750_v55, %v9530_v29 }
 0x395   :  { %v1951_v52 = vmax.f32 %v1886_v46, 0.0  ;;  %v12649_v18 = vmax.f32 %v18753_v63, %v2662_v14  ;;  %v18762_v14 = vunpack.i.h.bf16 %v12238_v48 }
 0x397   :  { %v2138_v36 = vrot.slane %v1951_v52, 1  ;;  %18754 = vst [vmem:[#allocation38_spill] sm:$0xff] %v12649_v18 }
 0x398   :  { %v1798_v51 = vpop.f32.mrf.mxu0 }
 0x399   :  { %v1799_v17 = vadd.f32 %v1798_v51, %v1710_v60  ;;  %v1887_v13 = vpop.f32.mrf.mxu1  ;;  %v2139_v33 = vsel %vm304_vm1, %v2134_v20, %v2138_v36 }
 0x39a   :  { %v12637_v1 = vmax.f32 %v1949_v19, %v2139_v33  ;;  %v18756_v19 = vld [vmem:[#allocation29_spill] sm:$0xff]  ;;  %v18761_v33 = vunpack.i.h.bf16 %v12292_v4 }
 0x39b   :  { %v12642_v2 = vadd.f32 %v1887_v13, %v1799_v17  ;;  %v12654_v20 = vmax.f32 %v18756_v19, %v2663_v8  ;;  %v18763_v8 = vld [vmem:[#allocation32_spill] sm:$0xff] }
 0x39c   :  { %18749 = vst [vmem:[#allocation27_spill] sm:$0xff] %v12637_v1 }
 0x39d   :  { %18751 = vst [vmem:[#allocation21_spill] sm:$0xff] %v12642_v2  ;;  %v18090_v30 = vmax.f32 %v12642_v2, 0.0 }
 0x39e   :  { %v12651_v27 = vpop.permute.xlu2 %9533  ;;  %18757 = vst [vmem:[#allocation40_spill] sm:$0xff] %v12654_v20 }
 0x39f   :  { %18755 = vst [vmem:[#allocation3_spill] sm:$0xff] %v12651_v27  ;;  %v12658_v11 = vrot.slane %v18090_v30, 1  ;;  %v18087_v38 = vunpack.i.h.bf16 %v12651_v27  ;;  %v18086_v34 = vunpack.i.l.bf16 %v12651_v27 }
 0x3a1   :  { %18758 = vst [vmem:[#allocation10_spill] sm:$0xff] %v12658_v11  ;;  %v4159_v46 = vsel %vm3350_vm11, %v12654_v20, %v18087_v38  ;;  %v4158_v62 = vsel %vm3350_vm11, %v12649_v18, %v18086_v34  ;;  %v2143_v60 = vsel %vm304_vm1, %v2138_v36, %v12658_v11  ;;  %v18765_v36 = vld [vmem:[#allocation11_spill] sm:$0xff] }
 0x3a2   :  { %v12672_v29 = vpack.c.bf16 %v4159_v46, %v4158_v62  ;;  %v12674_v10 = vmax.f32 %v1951_v52, %v2143_v60  ;;  %v18088_v52 = vrot.slane %v12654_v20, 6 }
 0x3a4   :  { %18759 = vst [vmem:[#allocation29_spill] sm:$0xff] %v12672_v29  ;;  %5186 = vmatmul.bf16.vlgmr.msra.gmra.mxu3 %v12672_v29 }
 0x3a5   :  { %18760 = vst [vmem:[#allocation75_spill] sm:$0xff] %v12674_v10 }
 0x3a6   :  { %v9549_v51 = vpop.permute.xlu2 %9548 }
 0x3a7   :  { %v9551_v17 = vunpack.i.h.bf16 %v9549_v51  ;;  %v9550_v13 = vunpack.i.l.bf16 %v9549_v51 }
 0x3a9   :  { %v2665_v55 = vsel %vm2661_vm10, %v18761_v33, %v9551_v17  ;;  %v2664_v26 = vsel %vm2661_vm10, %v18762_v14, %v9550_v13 }
 0x3aa   :  { %v12684_v63 = vmax.f32 %v18763_v8, %v2665_v55  ;;  %v12687_v19 = vmax.f32 %v18765_v36, %v2664_v26  ;;  %v2856_v8 = vrot.slane %v12559_v43, 2 }
 0x3ac   :  { %18764 = vst [vmem:[#allocation32_spill] sm:$0xff] %v12684_v63  ;;  %v3096_v46 = vrot.slane %v12687_v19, 6  ;;  %v18095_v62 = vrot.slane %v12684_v63, 6  ;;  %v18089_v4 = vrot.slane %v12687_v19, 2  ;;  %v18091_v60 = vrot.slane %v12687_v19, 4 }
 0x3ad   :  { %18766 = vst [vmem:[#allocation11_spill] sm:$0xff] %v12687_v19  ;;  %v18094_v48 = vrot.slane %v12684_v63, 2  ;;  %v18092_v51 = vrot.slane %v12684_v63, 4  ;;  %v18798_v18 = vrot.slane %v12684_v63, 4 }
 0x3ae   :  { %v12696_v17 = vpop.permute.xlu2 %9563  ;;  %v12701_v13 = vsel %vm3087_vm8, %v18088_v52, %v3096_v46  ;;  %v12706_v33 = vsel %vm3087_vm8, %v3096_v46, %v18095_v62  ;;  %v18775_v62 = vrot.slane %v12559_v43, 4 }
 0x3af   :  { %18767 = vst [vmem:[#allocation76_spill] sm:$0xff] %v12701_v13  ;;  %v18093_v55 = vunpack.i.h.bf16 %v12696_v17  ;;  %v9565_v14 = vunpack.i.l.bf16 %v12696_v17  ;;  %v12719_v36 = vsel %vm445_vm6, %v18089_v4, %v18094_v48  ;;  %v12726_v46 = vsel %vm2954_vm9, %v18091_v60, %v18092_v51 }
 0x3b0   :  { %18768 = vst [vmem:[#allocation77_spill] sm:$0xff] %v12706_v33  ;;  %v18772_v51 = vrot.slane %v12511_v61, 2  ;;  %v18796_v33 = vrot.slane %v12684_v63, 2 }
 0x3b1   :  { %18769 = vst [vmem:[#allocation78_spill] sm:$0xff] %v12719_v36  ;;  %v2479_v34 = vsel %vm2468_vm7, %v9565_v14, %v18093_v55  ;;  %v18773_v55 = vrot.slane %v12559_v43, 6 }
 0x3b2   :  { %18770 = vst [vmem:[#allocation79_spill] sm:$0xff] %v12726_v46  ;;  %v12732_v38 = vmax.f32 %v18717_v56, %v2479_v34  ;;  %v2857_v14 = vsel %vm445_vm6, %v18772_v51, %v2856_v8 }
 0x3b4   :  { %18771 = vst [vmem:[#allocation80_spill] sm:$0xff] %v12732_v38  ;;  %v18100_v52 = vrot.slane %v12732_v38, 2  ;;  %v3126_v4 = vrot.slane %v12732_v38, 6  ;;  %v2993_v30 = vrot.slane %v12732_v38, 4  ;;  %v18810_v36 = vrot.slane %v12732_v38, 2 }
 0x3b6   :  { %v12740_v60 = vpop.permute.xlu2 %9578  ;;  %v2861_v34 = vsel %vm445_vm6, %v2856_v8, %v18100_v52  ;;  %v12751_v48 = vsel %vm3087_vm8, %v18773_v55, %v3126_v4  ;;  %v12756_v26 = vsel %vm2954_vm9, %v18775_v62, %v2993_v30 }
 0x3b7   :  { %18774 = vst [vmem:[#allocation81_spill] sm:$0xff] %v12751_v48  ;;  %v18101_v29 = vunpack.i.h.bf16 %v12740_v60  ;;  %v9580_v27 = vunpack.i.l.bf16 %v12740_v60  ;;  %v9612_v61 = vpack.i.bf16 %v2861_v34, %v2857_v14 }
 0x3b8   :  { %18776 = vst [vmem:[#allocation82_spill] sm:$0xff] %v12756_v26 }
 0x3b9   :  { %v2480_v8 = vsel %vm2468_vm7, %v9580_v27, %v18101_v29  ;;  %9613 = vrot.lane.b32.xlu0 %v9612_v61, %s10576_s15  ;;  %v9627_v29 = vpack.i.bf16 %v11791_v21, %v18717_v56 }
 0x3ba   :  { %v12767_v55 = vmax.f32 %v11791_v21, %v2480_v8  ;;  %v18783_v21 = vld [vmem:[#allocation23_spill] sm:$0xff] }
 0x3bb   :  { %v9642_v56 = vpack.i.bf16 %v12303_v24, %v18783_v21 }
 0x3bc   :  { %18777 = vst [vmem:[#allocation83_spill] sm:$0xff] %v12767_v55  ;;  %v12771_v62 = vpack.c.bf16 %v12767_v55, %v12732_v38  ;;  %v18103_v52 = vrot.slane %v12767_v55, 6  ;;  %v18102_v14 = vrot.slane %v12767_v55, 4 }
 0x3be   :  { %18778 = vst [vmem:[#allocation84_spill] sm:$0xff] %v12771_v62  ;;  %v12775_v34 = vpop.permute.xlu0 %9553  ;;  %5122 = vmatmul.bf16.gmra.mxu2 %v12771_v62  ;;  %v12781_v27 = vsel %vm3087_vm8, %v3126_v4, %v18103_v52  ;;  %v12786_v61 = vsel %vm2954_vm9, %v2993_v30, %v18102_v14 }
 0x3bf   :  { %18779 = vst [vmem:[#allocation85_spill] sm:$0xff] %v12775_v34  ;;  %v18112_v8 = vunpack.i.h.bf16 %v12775_v34  ;;  %v18108_v51 = vunpack.i.l.bf16 %v12775_v34 }
 0x3c0   :  { %18780 = vst [vmem:[#allocation86_spill] sm:$0xff] %v12781_v27 }
 0x3c1   :  { %18781 = vst [vmem:[#allocation87_spill] sm:$0xff] %v12786_v61  ;;  %9628 = vrot.lane.b32.xlu0 %v9627_v29, %s10575_s22  ;;  %v4160_v4 = vsel %vm3350_vm11, %v12687_v19, %v18108_v51  ;;  %v4161_v30 = vsel %vm3350_vm11, %v12684_v63, %v18112_v8  ;;  %v18784_v29 = vld [vmem:[#allocation46_spill] sm:$0xff]  ;;  %v18786_v51 = vld [vmem:[#allocation20_spill] sm:$0xff] }
 0x3c2   :  { %v12801_v14 = vpack.c.bf16 %v4161_v30, %v4160_v4  ;;  %v18785_v26 = vunpack.i.h.bf16 %v18784_v29  ;;  %v18787_v47 = vunpack.i.h.bf16 %v18786_v51  ;;  %v18788_v4 = vld [vmem:[#allocation33_spill] sm:$0xff]  ;;  %v18790_v8 = vld [vmem:[#allocation12_spill] sm:$0xff] }
 0x3c4   :  { %18782 = vst [vmem:[#allocation88_spill] sm:$0xff] %v12801_v14  ;;  %5191 = vmatmul.bf16.gmra.mxu3 %v12801_v14 }
 0x3c6   :  { %v9569_v52 = vpop.permute.xlu0 %9568 }
 0x3c7   :  { %v9571_v62 = vunpack.i.h.bf16 %v9569_v52  ;;  %v9570_v12 = vunpack.i.l.bf16 %v9569_v52 }
 0x3c9   :  { %v2667_v43 = vsel %vm2661_vm10, %v18785_v26, %v9571_v62  ;;  %v2666_v34 = vsel %vm2661_vm10, %v18787_v47, %v9570_v12  ;;  %9643 = vrot.lane.b32.xlu0 %v9642_v56, %s10574_s0  ;;  %v18794_v56 = vrot.slane %v12684_v63, 6  ;;  %v2864_v63 = vrot.slane %v12767_v55, 2 }
 0x3ca   :  { %v12814_v30 = vmax.f32 %v18788_v4, %v2667_v43  ;;  %v12817_v14 = vmax.f32 %v18790_v8, %v2666_v34  ;;  %v18793_v34 = vld [vmem:[#allocation4_spill] sm:$0xff] }
 0x3cb   :  { %v9657_v8 = vpack.i.bf16 %v12344_v6, %v18793_v34 }
 0x3cc   :  { %18789 = vst [vmem:[#allocation23_spill] sm:$0xff] %v12814_v30  ;;  %v3104_v52 = vrot.slane %v12817_v14, 6  ;;  %v2838_v29 = vrot.slane %v12817_v14, 2  ;;  %v2971_v26 = vrot.slane %v12817_v14, 4  ;;  %v18800_v7 = vrot.slane %v12814_v30, 6 }
 0x3cd   :  { %18791 = vst [vmem:[#allocation46_spill] sm:$0xff] %v12817_v14  ;;  %v12823_v62 = vpop.permute.xlu2 %9593  ;;  %v18802_v12 = vrot.slane %v12814_v30, 2  ;;  %v18804_v43 = vrot.slane %v12814_v30, 4  ;;  %v18837_v2 = vrot.slane %v12814_v30, 2 }
 0x3ce   :  { %18792 = vst [vmem:[#allocation20_spill] sm:$0xff] %v12823_v62  ;;  %v12829_v51 = vpop.permute.xlu0 %9583  ;;  %v12836_v4 = vsel %vm3087_vm8, %v18794_v56, %v3104_v52  ;;  %v12841_v19 = vsel %vm445_vm6, %v18796_v33, %v2838_v29  ;;  %v12852_v56 = vsel %vm2954_vm9, %v18798_v18, %v2971_v26  ;;  %v12857_v33 = vsel %vm3087_vm8, %v3104_v52, %v18800_v7 }
 0x3cf   :  { %18795 = vst [vmem:[#allocation33_spill] sm:$0xff] %v12836_v4  ;;  %v9585_v47 = vunpack.i.l.bf16 %v12829_v51  ;;  %v12862_v13 = vsel %vm445_vm6, %v2838_v29, %v18802_v12  ;;  %v12867_v49 = vsel %vm2954_vm9, %v2971_v26, %v18804_v43  ;;  %v18806_v20 = vunpack.i.h.bf16 %v12829_v51 }
 0x3d0   :  { %18797 = vst [vmem:[#allocation12_spill] sm:$0xff] %v12841_v19  ;;  %v2865_v7 = vsel %vm445_vm6, %v18810_v36, %v2864_v63  ;;  %v18812_v36 = vrot.slane %v12767_v55, 6 }
 0x3d1   :  { %18799 = vst [vmem:[#allocation4_spill] sm:$0xff] %v12852_v56  ;;  %v2481_v18 = vsel %vm2468_vm7, %v9585_v47, %v18806_v20  ;;  %9658 = vrot.lane.b32.xlu0 %v9657_v8, %s10574_s0 }
 0x3d2   :  { %18801 = vst [vmem:[#allocation89_spill] sm:$0xff] %v12857_v33  ;;  %v12879_v12 = vmax.f32 %v11801_v37, %v2481_v18 }
 0x3d3   :  { %18803 = vst [vmem:[#allocation90_spill] sm:$0xff] %v12862_v13 }
 0x3d4   :  { %18805 = vst [vmem:[#allocation91_spill] sm:$0xff] %v12867_v49  ;;  %v3134_v43 = vrot.slane %v12879_v12, 6  ;;  %v18811_v33 = vrot.slane %v12879_v12, 2 }
 0x3d5   :  { %18808 = vst [vmem:[#allocation92_spill] sm:$0xff] %v12879_v12  ;;  %v12885_v47 = vpop.permute.xlu1 %9573  ;;  %v12887_v8 = vpop.permute.xlu2 %9608 }
 0x3d6   :  { %18809 = vst [vmem:[#allocation93_spill] sm:$0xff] %v12885_v47  ;;  %v12892_v46 = vpop.permute.xlu0 %9598  ;;  %v18133_v29 = vunpack.i.l.bf16 %v12885_v47  ;;  %v9610_v26 = vunpack.i.l.bf16 %v12887_v8  ;;  %v2869_v38 = vsel %vm445_vm6, %v2864_v63, %v18811_v33  ;;  %v12906_v19 = vsel %vm3087_vm8, %v18812_v36, %v3134_v43 }
 0x3d7   :  { %v18134_v20 = vunpack.i.h.bf16 %v12892_v46  ;;  %v9600_v52 = vunpack.i.l.bf16 %v12892_v46  ;;  %18813 = vst [vmem:[#allocation94_spill] sm:$0xff] %v12906_v19  ;;  %v9632_v18 = vpack.i.bf16 %v2869_v38, %v2865_v7  ;;  %v18814_v24 = vunpack.i.h.bf16 %v12885_v47 }
 0x3d8   :  { %v4162_v4 = vsel %vm3350_vm11, %v12817_v14, %v18133_v29  ;;  %v18817_v7 = vrot.slane %v12879_v12, 4  ;;  %v18818_v36 = vrot.slane %v12767_v55, 4 }
 0x3d9   :  { %v2482_v56 = vsel %vm2468_vm7, %v9600_v52, %v18134_v20  ;;  %v4163_v63 = vsel %vm3350_vm11, %v12814_v30, %v18814_v24  ;;  %9633 = vrot.lane.b32.xlu1 %v9632_v18, %s10576_s15  ;;  %v18820_v52 = vunpack.i.h.bf16 %v12481_v31  ;;  %v18824_v31 = vunpack.i.h.bf16 %v12420_v16  ;;  %v18830_v16 = vld [vmem:[#allocation34_spill] sm:$0xff] }
 0x3da   :  { %v12920_v33 = vmax.f32 %v18726_v50, %v2482_v56  ;;  %v12923_v38 = vpack.c.bf16 %v4163_v63, %v4162_v4  ;;  %v12930_v29 = vsel %vm2954_vm9, %v18818_v36, %v18817_v7  ;;  %v18822_v63 = vld [vmem:[#allocation14_spill] sm:$0xff]  ;;  %v9647_v18 = vpack.i.bf16 %v18726_v50, %v11801_v37 }
 0x3db   :  { %18819 = vst [vmem:[#allocation97_spill] sm:$0xff] %v12930_v29  ;;  %v2670_v20 = vsel %vm2661_vm10, %v18820_v52, %v9610_v26  ;;  %v18825_v52 = vunpack.i.h.bf16 %v12385_v3  ;;  %v18147_v3 = vunpack.i.h.bf16 %v12823_v62  ;;  %v18833_v50 = vrot.slane %v12814_v30, 6 }
 0x3dc   :  { %18815 = vst [vmem:[#allocation95_spill] sm:$0xff] %v12920_v33  ;;  %5196 = vmatmul.bf16.gmra.mxu3 %v12923_v38  ;;  %v12938_v24 = vpack.c.bf16 %v12920_v33, %v12879_v12  ;;  %v12944_v14 = vmax.f32 %v18822_v63, %v2670_v20  ;;  %v18826_v20 = vrot.slane %v12920_v33, 6  ;;  %v18839_v29 = vrot.slane %v12814_v30, 4 }
 0x3dd   :  { %18816 = vst [vmem:[#allocation96_spill] sm:$0xff] %v12923_v38  ;;  %v9589_v56 = vpop.permute.xlu1 %9588  ;;  %v12953_v4 = vpop.permute.xlu2 %9623 }
 0x3de   :  { %18821 = vst [vmem:[#allocation98_spill] sm:$0xff] %v12938_v24  ;;  %v9591_v7 = vunpack.i.h.bf16 %v9589_v56  ;;  %v9590_v36 = vunpack.i.l.bf16 %v9589_v56  ;;  %5127 = vmatmul.bf16.gmra.mxu2 %v12938_v24  ;;  %v12960_v63 = vsel %vm3087_vm8, %v3134_v43, %v18826_v20  ;;  %v18828_v56 = vld [vmem:[#allocation13_spill] sm:$0xff] }
 0x3df   :  { %18823 = vst [vmem:[#allocation14_spill] sm:$0xff] %v12944_v14 }
 0x3e0   :  { %v2669_v26 = vsel %vm2661_vm10, %v18824_v31, %v9591_v7  ;;  %v2668_v38 = vsel %vm2661_vm10, %v18825_v52, %v9590_v36  ;;  %18827 = vst [vmem:[#allocation99_spill] sm:$0xff] %v12960_v63  ;;  %v18144_v7 = vunpack.i.l.bf16 %v12823_v62  ;;  %v18832_v36 = vld [vmem:[#allocation22_spill] sm:$0xff]  ;;  %v9625_v52 = vunpack.i.l.bf16 %v12953_v4 }
 0x3e1   :  { %v12963_v24 = vmax.f32 %v18828_v56, %v2669_v26  ;;  %v12966_v47 = vmax.f32 %v18830_v16, %v2668_v38  ;;  %9648 = vrot.lane.b32.xlu1 %v9647_v18, %s10575_s22  ;;  %v9662_v37 = vpack.i.bf16 %v12372_v28, %v18832_v36  ;;  %v2872_v26 = vrot.slane %v12920_v33, 2 }
 0x3e3   :  { %18829 = vst [vmem:[#allocation13_spill] sm:$0xff] %v12963_v24  ;;  %v3112_v31 = vrot.slane %v12966_v47, 6  ;;  %v3116_v20 = vrot.slane %v12963_v24, 6  ;;  %v2846_v56 = vrot.slane %v12966_v47, 2  ;;  %v2979_v18 = vrot.slane %v12966_v47, 4 }
 0x3e4   :  { %18831 = vst [vmem:[#allocation34_spill] sm:$0xff] %v12966_v47  ;;  %v4164_v43 = vsel %vm3350_vm11, %v12966_v47, %v18144_v7  ;;  %v4165_v38 = vsel %vm3350_vm11, %v12963_v24, %v18147_v3  ;;  %v2850_v28 = vrot.slane %v12963_v24, 2  ;;  %v2983_v7 = vrot.slane %v12963_v24, 4 }
 0x3e5   :  { %v12982_v16 = vpop.permute.xlu1 %9603  ;;  %v12996_v61 = vsel %vm3087_vm8, %v18833_v50, %v3112_v31  ;;  %v18835_v3 = vrot.slane %v12944_v14, 6  ;;  %v13012_v50 = vsel %vm445_vm6, %v18837_v2, %v2846_v56  ;;  %v13017_v11 = vsel %vm2954_vm9, %v18839_v29, %v2979_v18  ;;  %v13119_v30 = vpop.permute.xlu2 %9638 }
 0x3e6   :  { %18834 = vst [vmem:[#allocation22_spill] sm:$0xff] %v12996_v61  ;;  %v9605_v55 = vunpack.i.l.bf16 %v12982_v16  ;;  %v18841_v24 = vunpack.i.h.bf16 %v12953_v4  ;;  %v18842_v62 = vunpack.i.h.bf16 %v12982_v16  ;;  %v13032_v10 = vpack.c.bf16 %v4165_v38, %v4164_v43 }
 0x3e7   :  { %v13007_v6 = vsel %vm3087_vm8, %v3116_v20, %v18835_v3  ;;  %18838 = vst [vmem:[#allocation101_spill] sm:$0xff] %v13012_v50  ;;  %v13051_v43 = vsel %vm2954_vm9, %v2979_v18, %v2983_v7  ;;  %v18854_v18 = vrot.slane %v12920_v33, 6 }
 0x3e8   :  { %18836 = vst [vmem:[#allocation100_spill] sm:$0xff] %v13007_v6  ;;  %v2485_v1 = vsel %vm2468_vm7, %v9625_v52, %v18841_v24  ;;  %v2483_v25 = vsel %vm2468_vm7, %v9605_v55, %v18842_v62  ;;  %v13037_v24 = vsel %vm3087_vm8, %v3112_v31, %v3116_v20  ;;  %v13043_v62 = vsel %vm445_vm6, %v2846_v56, %v2850_v28 }
 0x3e9   :  { %18840 = vst [vmem:[#allocation102_spill] sm:$0xff] %v13017_v11  ;;  %v13030_v61 = vmax.f32 %v18732_v41, %v2483_v25  ;;  %9663 = vrot.lane.b32.xlu1 %v9662_v37, %s10574_s0  ;;  %v18847_v52 = vrot.slane %v12944_v14, 2  ;;  %v3005_v37 = vrot.slane %v12920_v33, 4  ;;  %v18850_v20 = vrot.slane %v12944_v14, 4 }
 0x3ea   :  { %18844 = vst [vmem:[#allocation104_spill] sm:$0xff] %v13032_v10  ;;  %v18853_v31 = vrot.slane %v12879_v12, 2 }
 0x3eb   :  { %18843 = vst [vmem:[#allocation103_spill] sm:$0xff] %v13030_v61  ;;  %v13048_v25 = vsel %vm445_vm6, %v2850_v28, %v18847_v52  ;;  %v2876_v38 = vrot.slane %v13030_v61, 2  ;;  %v13061_v56 = vsel %vm2954_vm9, %v2983_v7, %v18850_v20  ;;  %v3142_v28 = vrot.slane %v13030_v61, 6  ;;  %v18858_v7 = vld [vmem:[#allocation5_spill] sm:$0xff] }
 0x3ec   :  { %18845 = vst [vmem:[#allocation105_spill] sm:$0xff] %v13037_v24  ;;  %5201 = vmatmul.bf16.gmra.mxu3 %v13032_v10  ;;  %v13067_v52 = vmax.f32 %v18745_v22, %v2485_v1  ;;  %v2873_v55 = vsel %vm445_vm6, %v18853_v31, %v2872_v26 }
 0x3ed   :  { %18846 = vst [vmem:[#allocation106_spill] sm:$0xff] %v13043_v62  ;;  %v13069_v29 = vpop.permute.xlu1 %9618  ;;  %v2877_v2 = vsel %vm445_vm6, %v2872_v26, %v2876_v38  ;;  %v13082_v1 = vsel %vm3087_vm8, %v18854_v18, %v3142_v28  ;;  %v18856_v62 = vrot.slane %v12879_v12, 4  ;;  %v3009_v26 = vrot.slane %v13030_v61, 4 }
 0x3ee   :  { %18848 = vst [vmem:[#allocation107_spill] sm:$0xff] %v13048_v25  ;;  %v18160_v20 = vunpack.i.h.bf16 %v13069_v29  ;;  %v9620_v3 = vunpack.i.l.bf16 %v13069_v29  ;;  %v9652_v10 = vpack.i.bf16 %v2877_v2, %v2873_v55  ;;  %v9677_v2 = vpack.i.bf16 %v12395_v57, %v18858_v7 }
 0x3ef   :  { %18849 = vst [vmem:[#allocation108_spill] sm:$0xff] %v13051_v43  ;;  %v13087_v25 = vsel %vm2954_vm9, %v18856_v62, %v3005_v37  ;;  %v13102_v62 = vsel %vm2954_vm9, %v3005_v37, %v3009_v26  ;;  %v18862_v47 = vrot.slane %v13067_v52, 2 }
 0x3f0   :  { %18851 = vst [vmem:[#allocation109_spill] sm:$0xff] %v13061_v56  ;;  %v2484_v31 = vsel %vm2468_vm7, %v9620_v3, %v18160_v20  ;;  %9653 = vrot.lane.b32.xlu2 %v9652_v10, %s10576_s15  ;;  %v9667_v10 = vpack.i.bf16 %v18741_v54, %v18732_v41  ;;  %v18866_v41 = vrot.slane %v13067_v52, 4 }
 0x3f1   :  { %18852 = vst [vmem:[#allocation110_spill] sm:$0xff] %v13067_v52  ;;  %v13099_v18 = vmax.f32 %v18741_v54, %v2484_v31  ;;  %9678 = vrot.lane.b32.xlu1 %v9677_v2, %s10574_s0 }
 0x3f2   :  { %18855 = vst [vmem:[#allocation111_spill] sm:$0xff] %v13082_v1 }
 0x3f3   :  { %18857 = vst [vmem:[#allocation112_spill] sm:$0xff] %v13087_v25  ;;  %v13111_v20 = vpack.c.bf16 %v13099_v18, %v13030_v61  ;;  %v2880_v55 = vrot.slane %v13099_v18, 2  ;;  %v3146_v31 = vrot.slane %v13099_v18, 6  ;;  %v3013_v2 = vrot.slane %v13099_v18, 4 }
 0x3f4   :  { %18859 = vst [vmem:[#allocation5_spill] sm:$0xff] %v13099_v18 }
 0x3f5   :  { %18860 = vst [vmem:[#allocation113_spill] sm:$0xff] %v13102_v62  ;;  %5132 = vmatmul.bf16.gmra.mxu2 %v13111_v20  ;;  %v2881_v3 = vsel %vm445_vm6, %v2876_v38, %v2880_v55  ;;  %v2885_v25 = vsel %vm445_vm6, %v2880_v55, %v18862_v47  ;;  %v18863_v62 = vrot.slane %v13067_v52, 6  ;;  %v13134_v33 = vsel %vm3087_vm8, %v3142_v28, %v3146_v31  ;;  %v18868_v28 = vld [vmem:[#allocation25_spill] sm:$0xff] }
 0x3f6   :  { %18861 = vst [vmem:[#allocation114_spill] sm:$0xff] %v13111_v20  ;;  %v9672_v18 = vpack.i.bf16 %v2885_v25, %v2881_v3  ;;  %v13137_v20 = vsel %vm2954_vm9, %v3009_v26, %v3013_v2  ;;  %v13142_v54 = vsel %vm2954_vm9, %v3013_v2, %v18866_v41  ;;  %v18167_v38 = vunpack.i.h.bf16 %v13119_v30  ;;  %v18872_v2 = vld [vmem:[#allocation24_spill] sm:$0xff] }
 0x3f7   :  { %v13131_v37 = vsel %vm3087_vm8, %v3146_v31, %v18863_v62  ;;  %18864 = vst [vmem:[#allocation115_spill] sm:$0xff] %v13134_v33  ;;  %v9640_v55 = vunpack.i.l.bf16 %v13119_v30  ;;  %v9682_v26 = vpack.i.bf16 %v12457_v40, %v18868_v28  ;;  %v9687_v62 = vpack.i.bf16 %v18747_v44, %v18745_v22 }
 0x3f8   :  { %18865 = vst [vmem:[#allocation116_spill] sm:$0xff] %v13137_v20  ;;  %9668 = vrot.lane.b32.xlu2 %v9667_v10, %s10575_s22  ;;  %9673 = vrot.lane.b32.xlu0 %v9672_v18, %s10576_s15  ;;  %v18871_v10 = vld [vmem:[#allocation6_spill] sm:$0xff]  ;;  %v9702_v41 = vpack.i.bf16 %v12563_v23, %v18872_v2 }
 0x3f9   :  { %18867 = vst [vmem:[#allocation117_spill] sm:$0xff] %v13142_v54  ;;  %v2486_v25 = vsel %vm2468_vm7, %v9640_v55, %v18167_v38  ;;  %v9697_v31 = vpack.i.bf16 %v12498_v5, %v18871_v10  ;;  %v4503_v55 = vld [vmem:[%s17966_s4] sm:$0x3] }
 0x3fa   :  { %v13158_v3 = vmax.f32 %v18747_v44, %v2486_v25  ;;  %v18873_v44 = vld [vmem:[#allocation7_spill] sm:$0xff]  ;;  %v13179_v25 = vperm.slane %v4503_v55, 0 }
 0x3fb   :  { %v9717_v22 = vpack.i.bf16 %v12603_v42, %v18873_v44 }
 0x3fc   :  { %18869 = vst [vmem:[#allocation25_spill] sm:$0xff] %v13158_v3  ;;  %v13164_v18 = vpack.c.bf16 %v13158_v3, %v13067_v52  ;;  %v2888_v27 = vrot.slane %v13158_v3, 2 }
 0x3fe   :  { %18870 = vst [vmem:[#allocation118_spill] sm:$0xff] %v13164_v18 }
 0x400   :  { %9683 = vrot.lane.b32.xlu2 %v9682_v26, %s10574_s0  ;;  %9688 = vrot.lane.b32.xlu0 %v9687_v62, %s10575_s22  ;;  %v5098_v26 = vpop.f32.mrf.mxu2  ;;  %v9611_v62 = vunpack.i.h.bf16 %v12887_v8 }
 0x401   :  { %v5099_v47 = vadd.f32 %v5098_v26, %v13179_v25 }
 0x405   :  { %5137 = vmatmul.bf16.gmra.mxu2 %v13164_v18 }
 0x408   :  { %9698 = vrot.lane.b32.xlu2 %v9697_v31, %s10574_s0  ;;  %9703 = vrot.lane.b32.xlu0 %v9702_v41, %s10574_s0  ;;  %v18875_v41 = vunpack.i.h.bf16 %v12528_v9 }
 0x40a   :  { %v2671_v18 = vsel %vm2661_vm10, %v18875_v41, %v9611_v62  ;;  %v18881_v41 = vunpack.i.h.bf16 %v12740_v60 }
 0x410   :  { %9718 = vrot.lane.b32.xlu0 %v9717_v22, %s10574_s0  ;;  %v18877_v22 = vld [vmem:[#allocation15_spill] sm:$0xff] }
 0x411   :  { %v13191_v54 = vmax.f32 %v18877_v22, %v2671_v18 }
 0x413   :  { %18878 = vst [vmem:[#allocation7_spill] sm:$0xff] %v13191_v54 }
 0x427   :  { %v5187_v38 = vpop.f32.mrf.mxu3 }
 0x428   :  { %v13183_v31 = vadd.f32 %v5187_v38, %v5099_v47  ;;  %v13206_v38 = vpop.f32.mrf.mxu2 }
 0x429   :  { %18880 = vst [vmem:[#allocation119_spill] sm:$0xff] %v13206_v38 }
 0x42a   :  { %18874 = vst [vmem:[#allocation6_spill] sm:$0xff] %v13183_v31 }
 0x42b   :  { %v13188_v20 = vpop.permute.xlu0 %9613 }
 0x42c   :  { %18876 = vst [vmem:[#allocation24_spill] sm:$0xff] %v13188_v20  ;;  %v18175_v55 = vunpack.i.h.bf16 %v13188_v20  ;;  %v18172_v61 = vunpack.i.l.bf16 %v13188_v20 }
 0x42e   :  { %v4166_v8 = vsel %vm3350_vm11, %v12944_v14, %v18172_v61  ;;  %v4167_v9 = vsel %vm3350_vm11, %v13191_v54, %v18175_v55  ;;  %v18882_v61 = vunpack.i.h.bf16 %v12696_v17 }
 0x42f   :  { %v13203_v47 = vpack.c.bf16 %v4167_v9, %v4166_v8  ;;  %v18176_v9 = vrot.slane %v13191_v54, 6  ;;  %v13262_v38 = vpop.f32.mrf.mxu3 }
 0x430   :  { %18891 = vst [vmem:[#allocation125_spill] sm:$0xff] %v13262_v38 }
 0x431   :  { %18879 = vst [vmem:[#allocation15_spill] sm:$0xff] %v13203_v47  ;;  %5206 = vmatmul.bf16.gmra.mxu3 %v13203_v47 }
 0x433   :  { %v9629_v18 = vpop.permute.xlu0 %9628 }
 0x434   :  { %v9631_v26 = vunpack.i.h.bf16 %v9629_v18  ;;  %v9630_v62 = vunpack.i.l.bf16 %v9629_v18 }
 0x436   :  { %v2673_v22 = vsel %vm2661_vm10, %v18881_v41, %v9631_v26  ;;  %v2672_v31 = vsel %vm2661_vm10, %v18882_v61, %v9630_v62  ;;  %v5103_v26 = vpop.f32.mrf.mxu2 }
 0x437   :  { %v13215_v20 = vmax.f32 %v12126_v15, %v2673_v22  ;;  %v13218_v8 = vmax.f32 %v12101_v59, %v2672_v31 }
 0x439   :  { %18883 = vst [vmem:[#allocation120_spill] sm:$0xff] %v13215_v20  ;;  %v3128_v55 = vrot.slane %v13218_v8, 6  ;;  %v18177_v18 = vrot.slane %v13215_v20, 6  ;;  %v18180_v60 = vrot.slane %v13218_v8, 2  ;;  %v18181_v17 = vrot.slane %v13215_v20, 2 }
 0x43a   :  { %18884 = vst [vmem:[#allocation121_spill] sm:$0xff] %v13218_v8  ;;  %v18922_v13 = vrot.slane %v13215_v20, 6 }
 0x43b   :  { %v13227_v62 = vpop.permute.xlu0 %9643  ;;  %v13232_v59 = vsel %vm3087_vm8, %v18176_v9, %v3128_v55  ;;  %v13237_v15 = vsel %vm3087_vm8, %v3128_v55, %v18177_v18  ;;  %v13250_v9 = vsel %vm445_vm6, %v18180_v60, %v18181_v17  ;;  %v18887_v55 = vrot.slane %v13215_v20, 4 }
 0x43c   :  { %18885 = vst [vmem:[#allocation122_spill] sm:$0xff] %v13232_v59  ;;  %v9645_v41 = vunpack.i.l.bf16 %v13227_v62  ;;  %v18888_v18 = vrot.slane %v13218_v8, 4  ;;  %v18890_v22 = vunpack.i.h.bf16 %v13227_v62  ;;  %v3021_v60 = vrot.slane %v13158_v3, 4 }
 0x43d   :  { %18886 = vst [vmem:[#allocation123_spill] sm:$0xff] %v13237_v15 }
 0x43e   :  { %v13257_v31 = vsel %vm2954_vm9, %v18888_v18, %v18887_v55  ;;  %v2487_v47 = vsel %vm2468_vm7, %v9645_v41, %v18890_v22  ;;  %v18893_v18 = vrot.slane %v13067_v52, 2  ;;  %v18894_v22 = vrot.slane %v13067_v52, 4 }
 0x43f   :  { %18889 = vst [vmem:[#allocation124_spill] sm:$0xff] %v13257_v31  ;;  %v13265_v61 = vmax.f32 %v18783_v21, %v2487_v47 }
 0x440   :  { %v2889_v55 = vsel %vm445_vm6, %v18893_v18, %v2888_v27  ;;  %v13280_v47 = vsel %vm2954_vm9, %v18894_v22, %v3021_v60  ;;  %v5104_v18 = vadd.f32 %v5103_v26, %v13179_v25  ;;  %v13294_v22 = vpop.f32.mrf.mxu2 }
 0x441   :  { %18892 = vst [vmem:[#allocation126_spill] sm:$0xff] %v13265_v61  ;;  %v2892_v17 = vrot.slane %v13265_v61, 2  ;;  %v3025_v15 = vrot.slane %v13265_v61, 4  ;;  %v18195_v26 = vrot.slane %v13265_v61, 6 }
 0x442   :  { %18895 = vst [vmem:[#allocation127_spill] sm:$0xff] %v13280_v47 }
 0x443   :  { %v13271_v43 = vpop.permute.xlu0 %9658  ;;  %v2893_v41 = vsel %vm445_vm6, %v2888_v27, %v2892_v17  ;;  %v13283_v38 = vsel %vm2954_vm9, %v3021_v60, %v3025_v15  ;;  %18897 = vst [vmem:[#allocation129_spill] sm:$0xff] %v13294_v22 }
 0x444   :  { %18896 = vst [vmem:[#allocation128_spill] sm:$0xff] %v13283_v38  ;;  %v18193_v56 = vunpack.i.h.bf16 %v13271_v43  ;;  %v9660_v12 = vunpack.i.l.bf16 %v13271_v43  ;;  %v9692_v14 = vpack.i.bf16 %v2893_v41, %v2889_v55  ;;  %v9737_v38 = vpack.i.bf16 %v12626_v39, %v18912_v45 }
 0x446   :  { %v2488_v27 = vsel %vm2468_vm7, %v9660_v12, %v18193_v56  ;;  %9693 = vrot.lane.b32.xlu1 %v9692_v14, %s10576_s15 }
 0x447   :  { %v13297_v60 = vmax.f32 %v18793_v34, %v2488_v27  ;;  %v5192_v52 = vpop.f32.mrf.mxu3 }
 0x448   :  { %v13299_v49 = vadd.f32 %v5192_v52, %v5104_v18  ;;  %v9707_v18 = vpack.i.bf16 %v18793_v34, %v18783_v21 }
 0x449   :  { %18898 = vst [vmem:[#allocation130_spill] sm:$0xff] %v13297_v60  ;;  %v13303_v55 = vpack.c.bf16 %v13297_v60, %v13265_v61  ;;  %v18197_v41 = vrot.slane %v13297_v60, 6  ;;  %v18196_v12 = vrot.slane %v13297_v60, 4  ;;  %v18943_v31 = vrot.slane %v13297_v60, 2 }
 0x44a   :  { %18899 = vst [vmem:[#allocation131_spill] sm:$0xff] %v13299_v49  ;;  %v13308_v54 = vpop.permute.xlu2 %9653 }
 0x44b   :  { %18900 = vst [vmem:[#allocation132_spill] sm:$0xff] %v13303_v55  ;;  %5142 = vmatmul.bf16.gmra.mxu2 %v13303_v55  ;;  %v13316_v14 = vsel %vm3087_vm8, %v18195_v26, %v18197_v41  ;;  %v13318_v52 = vpop.permute.xlu1 %9633  ;;  %v13325_v27 = vsel %vm2954_vm9, %v3025_v15, %v18196_v12  ;;  %v5108_v15 = vpop.f32.mrf.mxu2  ;;  %v18924_v48 = vunpack.i.h.bf16 %v13308_v54 }
 0x44c   :  { %18901 = vst [vmem:[#allocation133_spill] sm:$0xff] %v13308_v54  ;;  %v18203_v56 = vunpack.i.h.bf16 %v13318_v52  ;;  %v18200_v55 = vunpack.i.l.bf16 %v13318_v52 }
 0x44d   :  { %18902 = vst [vmem:[#allocation134_spill] sm:$0xff] %v13316_v14 }
 0x44e   :  { %18903 = vst [vmem:[#allocation135_spill] sm:$0xff] %v13318_v52  ;;  %9708 = vrot.lane.b32.xlu1 %v9707_v18, %s10575_s22  ;;  %v4168_v26 = vsel %vm3350_vm11, %v13218_v8, %v18200_v55  ;;  %v4169_v21 = vsel %vm3350_vm11, %v13215_v20, %v18203_v56  ;;  %v18906_v18 = vld [vmem:[#allocation26_spill] sm:$0xff]  ;;  %v18907_v55 = vunpack.i.h.bf16 %v13069_v29  ;;  %v18908_v56 = vunpack.i.h.bf16 %v12982_v16 }
 0x44f   :  { %18904 = vst [vmem:[#allocation136_spill] sm:$0xff] %v13325_v27  ;;  %v13338_v34 = vpack.c.bf16 %v4169_v21, %v4168_v26  ;;  %v9722_v47 = vpack.i.bf16 %v12618_v35, %v18906_v18  ;;  %v5109_v29 = vadd.f32 %v5108_v15, %v13179_v25  ;;  %v13361_v16 = vpop.f32.mrf.mxu3 }
 0x450   :  { %18913 = vst [vmem:[#allocation8_spill] sm:$0xff] %v13361_v16 }
 0x451   :  { %18905 = vst [vmem:[#allocation137_spill] sm:$0xff] %v13338_v34  ;;  %5211 = vmatmul.bf16.gmra.mxu3 %v13338_v34 }
 0x452   :  { %v9669_v12 = vpop.permute.xlu2 %9668 }
 0x453   :  { %v9671_v41 = vunpack.i.h.bf16 %v9669_v12  ;;  %v9670_v22 = vunpack.i.l.bf16 %v9669_v12  ;;  %v9649_v49 = vpop.permute.xlu1 %9648  ;;  %v18910_v12 = vld [vmem:[#allocation19_spill] sm:$0xff] }
 0x454   :  { %v9651_v21 = vunpack.i.h.bf16 %v9649_v49  ;;  %v9650_v8 = vunpack.i.l.bf16 %v9649_v49 }
 0x455   :  { %v2677_v52 = vsel %vm2661_vm10, %v18907_v55, %v9671_v41  ;;  %v2676_v26 = vsel %vm2661_vm10, %v18908_v56, %v9670_v22  ;;  %v18914_v56 = vunpack.i.h.bf16 %v12892_v46  ;;  %v18212_v41 = vunpack.i.l.bf16 %v13308_v54 }
 0x456   :  { %v13351_v34 = vmax.f32 %v12180_v0, %v2677_v52  ;;  %v13354_v11 = vmax.f32 %v18910_v12, %v2676_v26  ;;  %9723 = vrot.lane.b32.xlu1 %v9722_v47, %s10574_s0  ;;  %v18915_v0 = vunpack.i.h.bf16 %v12829_v51  ;;  %v18916_v47 = vld [vmem:[#allocation36_spill] sm:$0xff]  ;;  %v18918_v26 = vld [vmem:[#allocation35_spill] sm:$0xff]  ;;  %v18920_v55 = vrot.slane %v13297_v60, 2 }
 0x457   :  { %v2675_v49 = vsel %vm2661_vm10, %v18914_v56, %v9651_v21  ;;  %v18927_v54 = vrot.slane %v13215_v20, 4 }
 0x458   :  { %18909 = vst [vmem:[#allocation26_spill] sm:$0xff] %v13351_v34  ;;  %v2674_v22 = vsel %vm2661_vm10, %v18915_v0, %v9650_v8  ;;  %v13371_v52 = vmax.f32 %v18916_v47, %v2675_v49  ;;  %v3144_v15 = vrot.slane %v13354_v11, 6  ;;  %v13380_v46 = vsel %vm445_vm6, %v2892_v17, %v18920_v55 }
 0x459   :  { %18911 = vst [vmem:[#allocation19_spill] sm:$0xff] %v13354_v11  ;;  %v13374_v12 = vmax.f32 %v18918_v26, %v2674_v22  ;;  %v2878_v51 = vrot.slane %v13354_v11, 2  ;;  %v3011_v8 = vrot.slane %v13354_v11, 4  ;;  %v13391_v26 = vpop.f32.mrf.mxu2 }
 0x45a   :  { %18917 = vst [vmem:[#allocation36_spill] sm:$0xff] %v13371_v52  ;;  %v13385_v56 = vpop.permute.xlu2 %9683  ;;  %v3140_v0 = vrot.slane %v13371_v52, 6  ;;  %v4171_v59 = vsel %vm3350_vm11, %v13371_v52, %v18924_v48 }
 0x45b   :  { %18919 = vst [vmem:[#allocation35_spill] sm:$0xff] %v13374_v12  ;;  %v3136_v49 = vrot.slane %v13374_v12, 6  ;;  %v9685_v55 = vunpack.i.l.bf16 %v13385_v56  ;;  %v4170_v21 = vsel %vm3350_vm11, %v13374_v12, %v18212_v41  ;;  %v2870_v16 = vrot.slane %v13374_v12, 2  ;;  %v13400_v24 = vpop.permute.xlu1 %9663 }
 0x45c   :  { %18921 = vst [vmem:[#allocation138_spill] sm:$0xff] %v13391_v26  ;;  %v13408_v47 = vsel %vm3087_vm8, %v3140_v0, %v3144_v15  ;;  %v3003_v17 = vrot.slane %v13374_v12, 4  ;;  %v9665_v41 = vunpack.i.l.bf16 %v13400_v24  ;;  %v18925_v53 = vunpack.i.h.bf16 %v13385_v56 }
 0x45d   :  { %v13405_v22 = vsel %vm3087_vm8, %v18922_v13, %v3136_v49  ;;  %18923 = vst [vmem:[#allocation139_spill] sm:$0xff] %v13408_v47  ;;  %v13412_v26 = vsel %vm3087_vm8, %v3136_v49, %v3140_v0  ;;  %v18926_v0 = vrot.slane %v13215_v20, 2  ;;  %v18929_v13 = vunpack.i.h.bf16 %v13400_v24 }
 0x45e   :  { %v2491_v6 = vsel %vm2468_vm7, %v9685_v55, %v18925_v53  ;;  %9738 = vrot.lane.b32.xlu1 %v9737_v38, %s10574_s0  ;;  %v13436_v48 = vsel %vm2954_vm9, %v18927_v54, %v3003_v17  ;;  %v13452_v54 = vpack.c.bf16 %v4171_v59, %v4170_v21  ;;  %v2874_v47 = vrot.slane %v13371_v52, 2 }
 0x45f   :  { %v13431_v50 = vsel %vm445_vm6, %v18926_v0, %v2870_v16  ;;  %18928 = vst [vmem:[#allocation140_spill] sm:$0xff] %v13436_v48  ;;  %v2489_v19 = vsel %vm2468_vm7, %v9665_v41, %v18929_v13  ;;  %v5197_v53 = vpop.f32.mrf.mxu3  ;;  %v3007_v41 = vrot.slane %v13371_v52, 4  ;;  %v18933_v13 = vrot.slane %v13351_v34, 6 }
 0x460   :  { %v13448_v49 = vmax.f32 %v18832_v36, %v2489_v19  ;;  %v13450_v1 = vadd.f32 %v5197_v53, %v5109_v29  ;;  %18932 = vst [vmem:[#allocation143_spill] sm:$0xff] %v13452_v54  ;;  %v18935_v55 = vrot.slane %v13351_v34, 2  ;;  %v18937_v19 = vrot.slane %v13351_v34, 4 }
 0x461   :  { %v13459_v38 = vsel %vm3087_vm8, %v3144_v15, %v18933_v13  ;;  %v13472_v59 = vmax.f32 %v18868_v28, %v2491_v6  ;;  %5216 = vmatmul.bf16.gmra.mxu3 %v13452_v54  ;;  %v13479_v53 = vsel %vm445_vm6, %v2870_v16, %v2874_v47  ;;  %v13497_v48 = vsel %vm2954_vm9, %v3007_v41, %v3011_v8  ;;  %v5113_v13 = vpop.f32.mrf.mxu2 }
 0x462   :  { %18930 = vst [vmem:[#allocation141_spill] sm:$0xff] %v13448_v49  ;;  %v13464_v0 = vsel %vm445_vm6, %v2878_v51, %v18935_v55  ;;  %v13469_v29 = vsel %vm2954_vm9, %v3011_v8, %v18937_v19  ;;  %v13475_v21 = vpop.permute.xlu2 %9698  ;;  %v2900_v15 = vrot.slane %v13448_v49, 2  ;;  %v13482_v55 = vsel %vm445_vm6, %v2874_v47, %v2878_v51 }
 0x463   :  { %18931 = vst [vmem:[#allocation142_spill] sm:$0xff] %v13450_v1  ;;  %v9700_v19 = vunpack.i.l.bf16 %v13475_v21  ;;  %v13489_v1 = vsel %vm2954_vm9, %v3003_v17, %v3007_v41  ;;  %v13491_v54 = vpop.permute.xlu1 %9678  ;;  %v3166_v47 = vrot.slane %v13448_v49, 6  ;;  %v18945_v6 = vunpack.i.h.bf16 %v13475_v21 }
 0x464   :  { %18934 = vst [vmem:[#allocation144_spill] sm:$0xff] %v13459_v38  ;;  %v2901_v16 = vsel %vm445_vm6, %v18943_v31, %v2900_v15  ;;  %v18947_v41 = vrot.slane %v13297_v60, 6  ;;  %v18954_v12 = vrot.slane %v13472_v59, 2 }
 0x465   :  { %18936 = vst [vmem:[#allocation145_spill] sm:$0xff] %v13464_v0  ;;  %v2492_v17 = vsel %vm2468_vm7, %v9700_v19, %v18945_v6  ;;  %v9712_v63 = vpack.i.bf16 %v2901_v16, %v13380_v46  ;;  %v3033_v16 = vrot.slane %v13448_v49, 4  ;;  %v9727_v19 = vpack.i.bf16 %v18858_v7, %v18832_v36 }
 0x466   :  { %18938 = vst [vmem:[#allocation146_spill] sm:$0xff] %v13469_v29  ;;  %v13509_v31 = vmax.f32 %v18871_v10, %v2492_v17  ;;  %v13516_v51 = vsel %vm3087_vm8, %v18947_v41, %v3166_v47  ;;  %v5114_v17 = vadd.f32 %v5113_v13, %v13179_v25 }
 0x467   :  { %18939 = vst [vmem:[#allocation147_spill] sm:$0xff] %v13472_v59  ;;  %9713 = vrot.lane.b32.xlu2 %v9712_v63, %s10576_s15  ;;  %v13524_v46 = vpop.f32.mrf.mxu3 }
 0x468   :  { %18940 = vst [vmem:[#allocation148_spill] sm:$0xff] %v13479_v53  ;;  %v18229_v53 = vunpack.i.h.bf16 %v13491_v54 }
 0x469   :  { %18941 = vst [vmem:[#allocation149_spill] sm:$0xff] %v13482_v55  ;;  %v9680_v55 = vunpack.i.l.bf16 %v13491_v54 }
 0x46a   :  { %18942 = vst [vmem:[#allocation150_spill] sm:$0xff] %v13489_v1  ;;  %v3174_v1 = vrot.slane %v13472_v59, 6 }
 0x46b   :  { %18944 = vst [vmem:[#allocation151_spill] sm:$0xff] %v13497_v48  ;;  %v2490_v6 = vsel %vm2468_vm7, %v9680_v55, %v18229_v53  ;;  %v18950_v55 = vrot.slane %v13297_v60, 4  ;;  %v3041_v53 = vrot.slane %v13472_v59, 4 }
 0x46c   :  { %18946 = vst [vmem:[#allocation152_spill] sm:$0xff] %v13509_v31  ;;  %v13529_v8 = vmax.f32 %v18858_v7, %v2490_v6 }
 0x46d   :  { %18948 = vst [vmem:[#allocation153_spill] sm:$0xff] %v13524_v46  ;;  %v13538_v63 = vsel %vm2954_vm9, %v18950_v55, %v3033_v16  ;;  %v13543_v46 = vpop.permute.xlu0 %9673 }
 0x46e   :  { %18949 = vst [vmem:[#allocation154_spill] sm:$0xff] %v13529_v8  ;;  %v13547_v6 = vpack.c.bf16 %v13529_v8, %v13448_v49  ;;  %v2904_v36 = vrot.slane %v13529_v8, 2  ;;  %v18237_v60 = vunpack.i.l.bf16 %v13543_v46  ;;  %v3170_v48 = vrot.slane %v13529_v8, 6 }
 0x46f   :  { %18951 = vst [vmem:[#allocation155_spill] sm:$0xff] %v13538_v63  ;;  %v3037_v7 = vrot.slane %v13529_v8, 4  ;;  %v18955_v13 = vunpack.i.h.bf16 %v13543_v46  ;;  %9728 = vrot.lane.b32.xlu2 %v9727_v19, %s10575_s22  ;;  %v8750_v19 = vld [vmem:[%s17965_s3 + $0x270] sm:$0xf]  ;;  %v18983_v63 = vld [vmem:[#allocation39_spill] sm:$0xff] }
 0x470   :  { %18952 = vst [vmem:[#allocation156_spill] sm:$0xff] %v13543_v46  ;;  %5147 = vmatmul.bf16.gmra.mxu2 %v13547_v6  ;;  %v2905_v20 = vsel %vm445_vm6, %v2900_v15, %v2904_v36  ;;  %v2909_v49 = vsel %vm445_vm6, %v2904_v36, %v18954_v12  ;;  %v4172_v33 = vsel %vm3350_vm11, %v13354_v11, %v18237_v60  ;;  %v5202_v60 = vpop.f32.mrf.mxu3  ;;  %v18966_v46 = vld [vmem:[#allocation37_spill] sm:$0xff] }
 0x471   :  { %18953 = vst [vmem:[#allocation157_spill] sm:$0xff] %v13547_v6  ;;  %v9732_v55 = vpack.i.bf16 %v2909_v49, %v2905_v20  ;;  %v4173_v15 = vsel %vm3350_vm11, %v13351_v34, %v18955_v13  ;;  %v13574_v6 = vsel %vm3087_vm8, %v3170_v48, %v3174_v1  ;;  %v13579_v36 = vsel %vm3087_vm8, %v3166_v47, %v3170_v48 }
 0x472   :  { %v13576_v12 = vpack.c.bf16 %v4173_v15, %v4172_v33  ;;  %18957 = vst [vmem:[#allocation159_spill] sm:$0xff] %v13579_v36  ;;  %v13582_v20 = vsel %vm2954_vm9, %v3033_v16, %v3037_v7  ;;  %v13585_v49 = vsel %vm2954_vm9, %v3037_v7, %v3041_v53  ;;  %v18960_v33 = vrot.slane %v13509_v31, 6 }
 0x473   :  { %18958 = vst [vmem:[#allocation160_spill] sm:$0xff] %v13582_v20  ;;  %9733 = vrot.lane.b32.xlu0 %v9732_v55, %s10576_s15  ;;  %v18962_v48 = vrot.slane %v13509_v31, 4  ;;  %v13601_v16 = vadd.f32 %v5202_v60, %v5114_v17  ;;  %v9393_v55 = vld [vmem:[%s17965_s3 + $0x274] sm:$0xf0]  ;;  %v9747_v11 = vpack.i.bf16 %v18871_v10, %v18868_v28  ;;  %v9359_v10 = vld [vmem:[%s17965_s3 + $0x164] sm:$0xf0] }
 0x474   :  { %18956 = vst [vmem:[#allocation158_spill] sm:$0xff] %v13576_v12  ;;  %v13594_v15 = vsel %vm3087_vm8, %v3174_v1, %v18960_v33  ;;  %v8622_v1 = vld [vmem:[%s17965_s3 + $0x170] sm:$0xf]  ;;  %5221 = vmatmul.bf16.gmra.mxu3 %v13576_v12  ;;  %v8751_v60 = vor.u32 %v9393_v55, %v8750_v19  ;;  %v9361_v17 = vld [vmem:[%s17965_s3 + $0x174] sm:$0xf0] }
 0x475   :  { %18959 = vst [vmem:[#allocation161_spill] sm:$0xff] %v13585_v49  ;;  %v13599_v47 = vsel %vm2954_vm9, %v3041_v53, %v18962_v48  ;;  %v13615_v53 = vpop.permute.xlu0 %9688  ;;  %v8814_v33 = vld [vmem:[%s17965_s3 + $0x2f0] sm:$0xf]  ;;  %v9409_v48 = vld [vmem:[%s17965_s3 + $0x2f4] sm:$0xf0]  ;;  %v8623_v13 = vor.u32 %v9361_v17, %v8622_v1  ;;  %v9742_v1 = vpack.i.bf16 %v12632_v58, %v18966_v46  ;;  %v18980_v49 = vld [vmem:[#allocation30_spill] sm:$0xff] }
 0x476   :  { %18961 = vst [vmem:[#allocation162_spill] sm:$0xff] %v13594_v15  ;;  %v9690_v7 = vunpack.i.l.bf16 %v13615_v53  ;;  %v8815_v41 = vor.u32 %v9409_v48, %v8814_v33  ;;  %v8686_v19 = vld [vmem:[%s17965_s3 + $0x1f0] sm:$0xf]  ;;  %v9377_v55 = vld [vmem:[%s17965_s3 + $0x1f4] sm:$0xf0]  ;;  %5445 = vmatpush.bf16.msrb.mxu2 %v8751_v60 }
 0x477   :  { %18963 = vst [vmem:[#allocation163_spill] sm:$0xff] %v13599_v47  ;;  %v8687_v12 = vor.u32 %v9377_v55, %v8686_v19  ;;  %5267 = vmatpush.bf16.msrb.mxu0 %v8623_v13  ;;  %v8742_v17 = vld [vmem:[%s17965_s3 + $0x260] sm:$0xf]  ;;  %v9391_v60 = vld [vmem:[%s17965_s3 + $0x264] sm:$0xf0]  ;;  %9743 = vrot.lane.b32.xlu2 %v9742_v1, %s10574_s0  ;;  %v13670_v19 = vpack.c.bf16 %v13509_v31, %v13472_v59  ;;  %v18970_v1 = vrot.slane %v13351_v34, 2 }
 0x478   :  { %18964 = vst [vmem:[#allocation164_spill] sm:$0xff] %v13601_v16  ;;  %v18965_v16 = vunpack.i.h.bf16 %v12953_v4  ;;  %5534 = vmatpush.bf16.msrb.mxu3 %v8815_v41  ;;  %v8614_v4 = vld [vmem:[%s17965_s3 + $0x160] sm:$0xf]  ;;  %v8743_v28 = vor.u32 %v9391_v60, %v8742_v17  ;;  %v9407_v13 = vld [vmem:[%s17965_s3 + $0x2e4] sm:$0xf0]  ;;  %v18979_v20 = vld [vmem:[#allocation41_spill] sm:$0xff] }
 0x479   :  { %5356 = vmatpush.bf16.msrb.mxu1 %v8687_v12  ;;  %v8806_v41 = vld [vmem:[%s17965_s3 + $0x2e0] sm:$0xf]  ;;  %18968 = vst [vmem:[#allocation165_spill] sm:$0xff] %v13670_v19  ;;  %v19088_v15 = vld [vmem:[#allocation33_spill] sm:$0xff] }
 0x47a   :  { %v2678_v52 = vsel %vm2661_vm10, %v18965_v16, %v9690_v7  ;;  %5446 = vmatpush.bf16.msrb.mxu2 %v8743_v28 }
 0x47b   :  { %v13650_v16 = vmax.f32 %v12203_v32, %v2678_v52  ;;  %9748 = vrot.lane.b32.xlu0 %v9747_v11, %s10575_s22  ;;  %v8615_v32 = vor.u32 %v9359_v10, %v8614_v4  ;;  %v8807_v52 = vor.u32 %v9407_v13, %v8806_v41  ;;  %v18969_v11 = vrot.slane %v13351_v34, 6 }
 0x47c   :  { %v18972_v41 = vrot.slane %v13351_v34, 4 }
 0x47d   :  { %18967 = vst [vmem:[#allocation37_spill] sm:$0xff] %v13650_v16  ;;  %v18244_v12 = vrot.slane %v13650_v16, 6  ;;  %v18243_v7 = vrot.slane %v13650_v16, 2  ;;  %5268 = vmatpush.bf16.msrb.mxu0 %v8615_v32  ;;  %5535 = vmatpush.bf16.msrb.mxu3 %v8807_v52  ;;  %v18249_v33 = vrot.slane %v13650_v16, 4  ;;  %v13666_v48 = vpop.permute.xlu0 %9703  ;;  %v18974_v52 = vld [vmem:[#allocation42_spill] sm:$0xff] }
 0x47e   :  { %v18251_v60 = vunpack.i.h.bf16 %v13666_v48  ;;  %v9705_v4 = vunpack.i.l.bf16 %v13666_v48 }
 0x47f   :  { %v13677_v55 = vsel %vm3087_vm8, %v18969_v11, %v18244_v12  ;;  %v13684_v17 = vsel %vm445_vm6, %v18970_v1, %v18243_v7  ;;  %v13698_v13 = vsel %vm2954_vm9, %v18972_v41, %v18249_v33  ;;  %v18975_v11 = vld [vmem:[#allocation75_spill] sm:$0xff]  ;;  %v18976_v7 = vld [vmem:[#allocation9_spill] sm:$0xff]  ;;  %v18981_v41 = vld [vmem:[#allocation10_spill] sm:$0xff] }
 0x480   :  { %18971 = vst [vmem:[#allocation166_spill] sm:$0xff] %v13684_v17  ;;  %5152 = vmatmul.bf16.gmra.mxu2 %v13670_v19  ;;  %v2493_v32 = vsel %vm2468_vm7, %v9705_v4, %v18251_v60  ;;  %v9762_v1 = vpack.i.bf16 %v18975_v11, %v18974_v52  ;;  %v18977_v12 = vld [vmem:[#allocation27_spill] sm:$0xff]  ;;  %v2211_v33 = vsel %vm304_vm1, %v18981_v41, %v18980_v49  ;;  %v2912_v4 = vrot.slane %v13509_v31, 2 }
 0x481   :  { %18973 = vst [vmem:[#allocation167_spill] sm:$0xff] %v13698_v13  ;;  %v9757_v28 = vpack.i.bf16 %v18977_v12, %v18976_v7  ;;  %v18978_v19 = vld [vmem:[#allocation31_spill] sm:$0xff]  ;;  %v13716_v27 = vmax.f32 %v18872_v2, %v2493_v32  ;;  %v18984_v49 = vmax.f32 %v18983_v63, 0.0  ;;  %v18985_v32 = vld [vmem:[#allocation21_spill] sm:$0xff]  ;;  %v18990_v63 = vrot.slane %v13509_v31, 6 }
 0x482   :  { %v2210_v34 = vsel %vm304_vm1, %v18979_v20, %v18978_v19  ;;  %v18986_v8 = vmax.f32 %v18985_v32, 0.0  ;;  %v19019_v13 = vunpack.i.h.bf16 %v13491_v54  ;;  %v19025_v54 = vld [vmem:[#allocation18_spill] sm:$0xff]  ;;  %vm6960_vm1 = vcmask 130048  }
 0x483   :  { %18982 = vst [vmem:[#allocation42_spill] sm:$0xff] %v13716_v27  ;;  %9763 = vrot.lane.b32.xlu0 %v9762_v1, %s10574_s0  ;;  %9758 = vrot.lane.b32.xlu2 %v9757_v28, %s10574_s0  ;;  %v13728_v41 = vmax.f32 %v18984_v49, %v2210_v34  ;;  %v18987_v28 = vrot.slane %v13472_v59, 2  ;;  %v18988_v10 = vrot.slane %v13716_v27, 2  ;;  %v18989_v19 = vrot.slane %v13716_v27, 6 }
 0x484   :  { %v13732_v29 = vmax.f32 %v18986_v8, %v2211_v33  ;;  %v18992_v8 = vrot.slane %v13716_v27, 4  ;;  %v18993_v33 = vrot.slane %v13509_v31, 4 }
 0x485   :  { %v13734_v1 = vpop.permute.xlu0 %9718  ;;  %v2913_v60 = vsel %vm445_vm6, %v18987_v28, %v2912_v4  ;;  %v2917_v20 = vsel %vm445_vm6, %v2912_v4, %v18988_v10  ;;  %v13747_v34 = vsel %vm3087_vm8, %v18990_v63, %v18989_v19 }
 0x486   :  { %18991 = vst [vmem:[#allocation75_spill] sm:$0xff] %v13747_v34  ;;  %v13754_v49 = vsel %vm2954_vm9, %v18993_v33, %v18992_v8  ;;  %v18256_v32 = vunpack.i.h.bf16 %v13734_v1  ;;  %v9720_v28 = vunpack.i.l.bf16 %v13734_v1  ;;  %v9752_v59 = vpack.i.bf16 %v2917_v20, %v2913_v60  ;;  %v8678_v33 = vld [vmem:[%s17965_s3 + $0x1e0] sm:$0xf] }
 0x487   :  { %18994 = vst [vmem:[#allocation9_spill] sm:$0xff] %v13754_v49  ;;  %v9777_v19 = vpack.i.bf16 %v13732_v29, %v13728_v41  ;;  %v9767_v20 = vpack.i.bf16 %v18873_v44, %v18872_v2  ;;  %v9782_v8 = vpack.i.bf16 %v18912_v45, %v18906_v18  ;;  %v9375_v2 = vld [vmem:[%s17965_s3 + $0x1e4] sm:$0xf0] }
 0x488   :  { %v2494_v4 = vsel %vm2468_vm7, %v9720_v28, %v18256_v32  ;;  %9753 = vrot.lane.b32.xlu1 %v9752_v59, %s10576_s15  ;;  %v9792_v59 = vpack.i.bf16 %v18976_v7, %v18966_v46  ;;  %v13790_v28 = vpop.f32.mrf.mxu2  ;;  %v8734_v32 = vld [vmem:[%s17965_s3 + $0x250] sm:$0xf] }
 0x489   :  { %v13767_v63 = vmax.f32 %v18873_v44, %v2494_v4  ;;  %v8679_v44 = vor.u32 %v9375_v2, %v8678_v33  ;;  %18997 = vst [vmem:[#allocation41_spill] sm:$0xff] %v13790_v28  ;;  %v13792_v4 = vpop.f32.mrf.mxu3  ;;  %v9389_v33 = vld [vmem:[%s17965_s3 + $0x254] sm:$0xf0]  ;;  %v8606_v2 = vld [vmem:[%s17965_s3 + $0x150] sm:$0xf] }
 0x48a   :  { %18998 = vst [vmem:[#allocation30_spill] sm:$0xff] %v13792_v4 }
 0x48b   :  { %18995 = vst [vmem:[#allocation27_spill] sm:$0xff] %v13767_v63  ;;  %9778 = vrot.lane.b32.xlu0 %v9777_v19, %s10574_s0  ;;  %v13772_v60 = vpack.c.bf16 %v13767_v63, %v13716_v27  ;;  %5357 = vmatpush.bf16.msrb.mxu1 %v8679_v44  ;;  %v19000_v44 = vunpack.i.h.bf16 %v13119_v30  ;;  %v8670_v30 = vld [vmem:[%s17965_s3 + $0x1d0] sm:$0xf] }
 0x48d   :  { %18996 = vst [vmem:[#allocation31_spill] sm:$0xff] %v13772_v60 }
 0x490   :  { %5157 = vmatmul.bf16.gmra.mxu2 %v13772_v60  ;;  %9768 = vrot.lane.b32.xlu1 %v9767_v20, %s10575_s22  ;;  %v5118_v19 = vpop.f32.mrf.mxu2  ;;  %v9691_v20 = vunpack.i.h.bf16 %v13615_v53  ;;  %v9405_v60 = vld [vmem:[%s17965_s3 + $0x2d4] sm:$0xf0] }
 0x492   :  { %v2679_v53 = vsel %vm2661_vm10, %v19000_v44, %v9691_v20  ;;  %v19002_v44 = vld [vmem:[#allocation48_spill] sm:$0xff] }
 0x493   :  { %9793 = vrot.lane.b32.xlu0 %v9792_v59, %s10575_s22  ;;  %v5119_v59 = vadd.f32 %v5118_v19, %v13179_v25  ;;  %v8735_v19 = vor.u32 %v9389_v33, %v8734_v32  ;;  %v9373_v32 = vld [vmem:[%s17965_s3 + $0x1d4] sm:$0xf0]  ;;  %v13828_v28 = vmax.f32 %v19002_v44, %v2679_v53  ;;  %v19008_v44 = vunpack.i.h.bf16 %v13227_v62 }
 0x494   :  { %v8671_v33 = vor.u32 %v9373_v32, %v8670_v30  ;;  %v19007_v32 = vunpack.i.h.bf16 %v13271_v43 }
 0x495   :  { %5447 = vmatpush.bf16.msrb.mxu2 %v8735_v19  ;;  %19003 = vst [vmem:[#allocation21_spill] sm:$0xff] %v13828_v28  ;;  %v18276_v43 = vrot.slane %v13828_v28, 6 }
 0x496   :  { %5358 = vmatpush.bf16.msrb.mxu1 %v8671_v33 }
 0x498   :  { %9783 = vrot.lane.b32.xlu1 %v9782_v8, %s10575_s22 }
 0x4b4   :  { %v5207_v8 = vpop.f32.mrf.mxu3 }
 0x4b5   :  { %v13796_v10 = vadd.f32 %v5207_v8, %v5119_v59  ;;  %v9357_v59 = vld [vmem:[%s17965_s3 + $0x154] sm:$0xf0]  ;;  %v8798_v8 = vld [vmem:[%s17965_s3 + $0x2d0] sm:$0xf] }
 0x4b6   :  { %v8799_v4 = vor.u32 %v9405_v60, %v8798_v8  ;;  %v13843_v8 = vpop.f32.mrf.mxu2 }
 0x4b7   :  { %18999 = vst [vmem:[#allocation10_spill] sm:$0xff] %v13796_v10  ;;  %v8607_v10 = vor.u32 %v9357_v59, %v8606_v2 }
 0x4b8   :  { %v13825_v20 = vpop.permute.xlu1 %9693  ;;  %5536 = vmatpush.bf16.msrb.mxu3 %v8799_v4  ;;  %19005 = vst [vmem:[#allocation168_spill] sm:$0xff] %v13843_v8  ;;  %v18264_v8 = vrot.slane %v13158_v3, 6 }
 0x4b9   :  { %19001 = vst [vmem:[#allocation39_spill] sm:$0xff] %v13825_v20  ;;  %v18260_v47 = vunpack.i.h.bf16 %v13825_v20  ;;  %v18259_v2 = vunpack.i.l.bf16 %v13825_v20  ;;  %5269 = vmatpush.bf16.msrb.mxu0 %v8607_v10 }
 0x4bb   :  { %v4174_v60 = vsel %vm3350_vm11, %v13650_v16, %v18259_v2  ;;  %v4175_v19 = vsel %vm3350_vm11, %v13828_v28, %v18260_v47  ;;  %v19009_v47 = vld [vmem:[#allocation59_spill] sm:$0xff] }
 0x4bc   :  { %v13840_v59 = vpack.c.bf16 %v4175_v19, %v4174_v60  ;;  %v19011_v19 = vld [vmem:[#allocation54_spill] sm:$0xff]  ;;  %v13925_v0 = vpop.f32.mrf.mxu3 }
 0x4bd   :  { %19023 = vst [vmem:[#allocation175_spill] sm:$0xff] %v13925_v0 }
 0x4be   :  { %19004 = vst [vmem:[#allocation48_spill] sm:$0xff] %v13840_v59  ;;  %5226 = vmatmul.bf16.gmra.mxu3 %v13840_v59  ;;  %v5123_v49 = vpop.f32.mrf.mxu2 }
 0x4c0   :  { %v9709_v53 = vpop.permute.xlu1 %9708 }
 0x4c1   :  { %v13845_v10 = vpop.permute.xlu2 %9713  ;;  %v9711_v4 = vunpack.i.h.bf16 %v9709_v53  ;;  %v9710_v30 = vunpack.i.l.bf16 %v9709_v53 }
 0x4c2   :  { %19006 = vst [vmem:[#allocation169_spill] sm:$0xff] %v13845_v10  ;;  %v18269_v20 = vunpack.i.h.bf16 %v13845_v10  ;;  %v18265_v53 = vunpack.i.l.bf16 %v13845_v10 }
 0x4c3   :  { %v2681_v33 = vsel %vm2661_vm10, %v19007_v32, %v9711_v4  ;;  %v2680_v2 = vsel %vm2661_vm10, %v19008_v44, %v9710_v30  ;;  %v19013_v4 = vrot.slane %v13265_v61, 6  ;;  %v19020_v61 = vunpack.i.h.bf16 %v13400_v24 }
 0x4c4   :  { %v13854_v60 = vmax.f32 %v19009_v47, %v2681_v33  ;;  %v13857_v59 = vmax.f32 %v19011_v19, %v2680_v2  ;;  %v5124_v24 = vadd.f32 %v5123_v49, %v13179_v25 }
 0x4c5   :  { %v13868_v62 = vsel %vm3087_vm8, %v18264_v8, %v19013_v4 }
 0x4c6   :  { %19010 = vst [vmem:[#allocation59_spill] sm:$0xff] %v13854_v60  ;;  %v3160_v47 = vrot.slane %v13857_v59, 6  ;;  %v3164_v2 = vrot.slane %v13854_v60, 6  ;;  %v4176_v30 = vsel %vm3350_vm11, %v13857_v59, %v18265_v53  ;;  %v4177_v32 = vsel %vm3350_vm11, %v13854_v60, %v18269_v20 }
 0x4c7   :  { %19012 = vst [vmem:[#allocation54_spill] sm:$0xff] %v13857_v59  ;;  %v2898_v44 = vrot.slane %v13854_v60, 2  ;;  %v3031_v10 = vrot.slane %v13854_v60, 4  ;;  %v13902_v8 = vpack.c.bf16 %v4177_v32, %v4176_v30  ;;  %v19017_v17 = vrot.slane %v13857_v59, 2 }
 0x4c8   :  { %19014 = vst [vmem:[#allocation170_spill] sm:$0xff] %v13868_v62  ;;  %v13882_v19 = vpop.permute.xlu1 %9723  ;;  %v13887_v4 = vsel %vm3087_vm8, %v18276_v43, %v3160_v47  ;;  %v13891_v53 = vsel %vm3087_vm8, %v3160_v47, %v3164_v2  ;;  %v2920_v43 = vrot.slane %v13767_v63, 2  ;;  %v19021_v30 = vrot.slane %v13857_v59, 4 }
 0x4c9   :  { %19015 = vst [vmem:[#allocation171_spill] sm:$0xff] %v13891_v53  ;;  %v9729_v20 = vpop.permute.xlu2 %9728  ;;  %v18283_v33 = vunpack.i.h.bf16 %v13882_v19  ;;  %v9725_v31 = vunpack.i.l.bf16 %v13882_v19  ;;  %v13909_v38 = vsel %vm445_vm6, %v19017_v17, %v2898_v44 }
 0x4ca   :  { %v9731_v16 = vunpack.i.h.bf16 %v9729_v20  ;;  %v9730_v28 = vunpack.i.l.bf16 %v9729_v20  ;;  %19016 = vst [vmem:[#allocation172_spill] sm:$0xff] %v13902_v8  ;;  %v13923_v32 = vsel %vm2954_vm9, %v19021_v30, %v3031_v10 }
 0x4cb   :  { %v2495_v47 = vsel %vm2468_vm7, %v9725_v31, %v18283_v33  ;;  %19018 = vst [vmem:[#allocation173_spill] sm:$0xff] %v13909_v38 }
 0x4cc   :  { %v2683_v20 = vsel %vm2661_vm10, %v19019_v13, %v9731_v16  ;;  %v2682_v3 = vsel %vm2661_vm10, %v19020_v61, %v9730_v28  ;;  %v13918_v31 = vmax.f32 %v18906_v18, %v2495_v47  ;;  %19022 = vst [vmem:[#allocation174_spill] sm:$0xff] %v13923_v32  ;;  %v19027_v61 = vrot.slane %v13716_v27, 2 }
 0x4cd   :  { %v13928_v17 = vmax.f32 %v12395_v57, %v2683_v20  ;;  %v13931_v33 = vmax.f32 %v19025_v54, %v2682_v3  ;;  %v3053_v13 = vrot.slane %v13767_v63, 4 }
 0x4ce   :  { %5231 = vmatmul.bf16.gmra.mxu3 %v13902_v8  ;;  %v2921_v18 = vsel %vm445_vm6, %v19027_v61, %v2920_v43  ;;  %v2924_v16 = vrot.slane %v13918_v31, 2  ;;  %v13964_v61 = vpop.f32.mrf.mxu2 }
 0x4cf   :  { %19024 = vst [vmem:[#allocation176_spill] sm:$0xff] %v13928_v17  ;;  %v3168_v28 = vrot.slane %v13931_v33, 6  ;;  %v2902_v47 = vrot.slane %v13931_v33, 2  ;;  %v3035_v30 = vrot.slane %v13931_v33, 4 }
 0x4d0   :  { %19026 = vst [vmem:[#allocation18_spill] sm:$0xff] %v13931_v33  ;;  %v13944_v20 = vpop.permute.xlu1 %9738  ;;  %v2925_v49 = vsel %vm445_vm6, %v2920_v43, %v2924_v16 }
 0x4d1   :  { %v13950_v8 = vpop.permute.xlu2 %9743  ;;  %v18290_v0 = vunpack.i.h.bf16 %v13944_v20  ;;  %v9740_v57 = vunpack.i.l.bf16 %v13944_v20  ;;  %v9772_v14 = vpack.i.bf16 %v2925_v49, %v2921_v18  ;;  %v13955_v53 = vsel %vm3087_vm8, %v3164_v2, %v3168_v28  ;;  %19029 = vst [vmem:[#allocation178_spill] sm:$0xff] %v13964_v61 }
 0x4d2   :  { %v18291_v3 = vunpack.i.h.bf16 %v13950_v8  ;;  %v9745_v43 = vunpack.i.l.bf16 %v13950_v8  ;;  %v13962_v54 = vsel %vm445_vm6, %v2898_v44, %v2902_v47  ;;  %v13973_v18 = vsel %vm2954_vm9, %v3031_v10, %v3035_v30 }
 0x4d3   :  { %19028 = vst [vmem:[#allocation177_spill] sm:$0xff] %v13962_v54  ;;  %v2496_v62 = vsel %vm2468_vm7, %v9740_v57, %v18290_v0  ;;  %9773 = vrot.lane.b32.xlu2 %v9772_v14, %s10576_s15  ;;  %v19031_v49 = vrot.slane %v13928_v17, 6 }
 0x4d4   :  { %19030 = vst [vmem:[#allocation179_spill] sm:$0xff] %v13973_v18  ;;  %v2497_v44 = vsel %vm2468_vm7, %v9745_v43, %v18291_v3  ;;  %v13984_v61 = vmax.f32 %v18912_v45, %v2496_v62  ;;  %v5212_v2 = vpop.f32.mrf.mxu3  ;;  %v9387_v43 = vld [vmem:[%s17965_s3 + $0x244] sm:$0xf0]  ;;  %v8598_v45 = vld [vmem:[%s17965_s3 + $0x140] sm:$0xf]  ;;  %v19035_v62 = vrot.slane %v13928_v17, 2 }
 0x4d5   :  { %v13978_v59 = vsel %vm3087_vm8, %v3168_v28, %v19031_v49  ;;  %v13991_v10 = vmax.f32 %v18966_v46, %v2497_v44  ;;  %v8726_v28 = vld [vmem:[%s17965_s3 + $0x240] sm:$0xf]  ;;  %v19037_v46 = vrot.slane %v13716_v27, 4  ;;  %v14014_v57 = vadd.f32 %v5212_v2, %v5124_v24  ;;  %v9403_v24 = vld [vmem:[%s17965_s3 + $0x2c4] sm:$0xf0] }
 0x4d6   :  { %19032 = vst [vmem:[#allocation180_spill] sm:$0xff] %v13978_v59  ;;  %v14005_v49 = vsel %vm445_vm6, %v2902_v47, %v19035_v62  ;;  %v14018_v0 = vpack.c.bf16 %v13984_v61, %v13918_v31  ;;  %v2928_v3 = vrot.slane %v13984_v61, 2  ;;  %v8727_v32 = vor.u32 %v9387_v43, %v8726_v28  ;;  %v9355_v47 = vld [vmem:[%s17965_s3 + $0x144] sm:$0xf0]  ;;  %v8790_v62 = vld [vmem:[%s17965_s3 + $0x2c0] sm:$0xf] }
 0x4d7   :  { %19033 = vst [vmem:[#allocation181_spill] sm:$0xff] %v13984_v61  ;;  %v14010_v44 = vsel %vm2954_vm9, %v19037_v46, %v3053_v13  ;;  %v8599_v14 = vor.u32 %v9355_v47, %v8598_v45  ;;  %v8662_v2 = vld [vmem:[%s17965_s3 + $0x1c0] sm:$0xf]  ;;  %v19041_v43 = vrot.slane %v13918_v31, 4  ;;  %v8791_v45 = vor.u32 %v9403_v24, %v8790_v62  ;;  %v9371_v47 = vld [vmem:[%s17965_s3 + $0x1c4] sm:$0xf0] }
 0x4d8   :  { %19034 = vst [vmem:[#allocation182_spill] sm:$0xff] %v13991_v10  ;;  %5162 = vmatmul.bf16.gmra.mxu2 %v14018_v0  ;;  %v2929_v46 = vsel %vm445_vm6, %v2924_v16, %v2928_v3  ;;  %v3194_v60 = vrot.slane %v13984_v61, 6  ;;  %v3198_v18 = vrot.slane %v13991_v10, 6  ;;  %v19043_v28 = vrot.slane %v13991_v10, 2 }
 0x4d9   :  { %19036 = vst [vmem:[#allocation183_spill] sm:$0xff] %v14005_v49  ;;  %5448 = vmatpush.bf16.msrb.mxu2 %v8727_v32  ;;  %5270 = vmatpush.bf16.msrb.mxu0 %v8599_v14  ;;  %v19044_v16 = vrot.slane %v13928_v17, 4  ;;  %v3061_v24 = vrot.slane %v13984_v61, 4  ;;  %v19046_v14 = vrot.slane %v13918_v31, 6 }
 0x4da   :  { %19038 = vst [vmem:[#allocation184_spill] sm:$0xff] %v14010_v44  ;;  %5537 = vmatpush.bf16.msrb.mxu3 %v8791_v45  ;;  %v14061_v54 = vsel %vm3087_vm8, %v3194_v60, %v3198_v18 }
 0x4db   :  { %19039 = vst [vmem:[#allocation185_spill] sm:$0xff] %v14014_v57  ;;  %v14038_v57 = vsel %vm2954_vm9, %v3053_v13, %v19041_v43  ;;  %v2933_v13 = vsel %vm445_vm6, %v2928_v3, %v19043_v28  ;;  %v8663_v43 = vor.u32 %v9371_v47, %v8662_v2  ;;  %v14055_v62 = vsel %vm2954_vm9, %v3035_v30, %v19044_v16  ;;  %v5128_v3 = vpop.f32.mrf.mxu2 }
 0x4dc   :  { %19040 = vst [vmem:[#allocation186_spill] sm:$0xff] %v14018_v0  ;;  %v9787_v38 = vpack.i.bf16 %v2933_v13, %v2929_v46  ;;  %v14070_v2 = vsel %vm3087_vm8, %v19046_v14, %v3194_v60  ;;  %v19047_v28 = vrot.slane %v13918_v31, 4  ;;  %v3065_v47 = vrot.slane %v13991_v10, 4 }
 0x4dd   :  { %19042 = vst [vmem:[#allocation187_spill] sm:$0xff] %v14038_v57  ;;  %v14047_v36 = vpop.permute.xlu2 %9758  ;;  %5359 = vmatpush.bf16.msrb.mxu1 %v8663_v43  ;;  %v14085_v43 = vpop.f32.mrf.mxu3  ;;  %v5129_v30 = vadd.f32 %v5128_v3, %v13179_v25 }
 0x4de   :  { %19045 = vst [vmem:[#allocation188_spill] sm:$0xff] %v14055_v62  ;;  %v18300_v0 = vunpack.i.h.bf16 %v14047_v36  ;;  %v9760_v59 = vunpack.i.l.bf16 %v14047_v36  ;;  %v14075_v46 = vsel %vm2954_vm9, %v19047_v28, %v3061_v24  ;;  %9788 = vrot.lane.b32.xlu2 %v9787_v38, %s10576_s15  ;;  %v14088_v60 = vsel %vm2954_vm9, %v3061_v24, %v3065_v47 }
 0x4df   :  { %19048 = vst [vmem:[#allocation189_spill] sm:$0xff] %v14075_v46  ;;  %v9802_v24 = vpack.i.bf16 %v13728_v41, %v18974_v52 }
 0x4e0   :  { %v2498_v45 = vsel %vm2468_vm7, %v9760_v59, %v18300_v0  ;;  %19050 = vst [vmem:[#allocation191_spill] sm:$0xff] %v14085_v43 }
 0x4e1   :  { %v14083_v13 = vmax.f32 %v18976_v7, %v2498_v45  ;;  %19051 = vst [vmem:[#allocation192_spill] sm:$0xff] %v14088_v60 }
 0x4e3   :  { %19049 = vst [vmem:[#allocation190_spill] sm:$0xff] %v14083_v13  ;;  %v18301_v16 = vrot.slane %v14083_v13, 6  ;;  %v18303_v28 = vrot.slane %v14083_v13, 4  ;;  %v14120_v0 = vpop.f32.mrf.mxu2  ;;  %v14128_v3 = vpack.c.bf16 %v14083_v13, %v13991_v10  ;;  %v19083_v62 = vrot.slane %v14083_v13, 6 }
 0x4e4   :  { %19055 = vst [vmem:[#allocation196_spill] sm:$0xff] %v14120_v0 }
 0x4e5   :  { %v14094_v59 = vpop.permute.xlu0 %9733  ;;  %v14099_v38 = vsel %vm3087_vm8, %v3198_v18, %v18301_v16  ;;  %v14108_v14 = vsel %vm2954_vm9, %v3065_v47, %v18303_v28  ;;  %v5217_v16 = vpop.f32.mrf.mxu3  ;;  %19058 = vst [vmem:[#allocation199_spill] sm:$0xff] %v14128_v3 }
 0x4e6   :  { %19052 = vst [vmem:[#allocation193_spill] sm:$0xff] %v14094_v59  ;;  %v18304_v7 = vunpack.i.h.bf16 %v14094_v59  ;;  %v18302_v45 = vunpack.i.l.bf16 %v14094_v59  ;;  %9803 = vrot.lane.b32.xlu2 %v9802_v24, %s10575_s22  ;;  %v14124_v47 = vadd.f32 %v5217_v16, %v5129_v30  ;;  %s10577_s22 = smov 120   ;;  %v19061_v16 = vld [vmem:[#allocation76_spill] sm:$0xff] }
 0x4e7   :  { %19053 = vst [vmem:[#allocation194_spill] sm:$0xff] %v14099_v38 }
 0x4e8   :  { %19054 = vst [vmem:[#allocation195_spill] sm:$0xff] %v14108_v14  ;;  %v4178_v18 = vsel %vm3350_vm11, %v13931_v33, %v18302_v45  ;;  %v4179_v32 = vsel %vm3350_vm11, %v13928_v17, %v18304_v7  ;;  %5167 = vmatmul.bf16.gmra.mxu2 %v14128_v3  ;;  %v19059_v7 = vunpack.i.h.bf16 %v13475_v21 }
 0x4e9   :  { %v14122_v43 = vpack.c.bf16 %v4179_v32, %v4178_v18  ;;  %19057 = vst [vmem:[#allocation198_spill] sm:$0xff] %v14124_v47  ;;  %v19060_v32 = vunpack.i.h.bf16 %v13385_v56  ;;  %v19062_v18 = vld [vmem:[#allocation53_spill] sm:$0xff] }
 0x4ea   :  { %v19063_v47 = vpack.i.bf16 %v19061_v16, %v19062_v18  ;;  %v8782_v18 = vld [vmem:[%s17965_s3 + $0x2b0] sm:$0xf]  ;;  %v9401_v56 = vld [vmem:[%s17965_s3 + $0x2b4] sm:$0xf0] }
 0x4eb   :  { %19056 = vst [vmem:[#allocation197_spill] sm:$0xff] %v14122_v43  ;;  %5236 = vmatmul.bf16.gmra.mxu3 %v14122_v43  ;;  %v5133_v43 = vpop.f32.mrf.mxu2  ;;  %v8783_v44 = vor.u32 %v9401_v56, %v8782_v18  ;;  %v19074_v56 = vld [vmem:[#allocation50_spill] sm:$0xff] }
 0x4ed   :  { %v9749_v24 = vpop.permute.xlu0 %9748  ;;  %v14148_v21 = vpop.f32.mrf.mxu3  ;;  %5538 = vmatpush.bf16.msrb.mxu3 %v8783_v44 }
 0x4ee   :  { %v9751_v45 = vunpack.i.h.bf16 %v9749_v24  ;;  %v9750_v28 = vunpack.i.l.bf16 %v9749_v24  ;;  %9818 = vrot.lane.b32.xlu2 %v19063_v47, %s10577_s22  ;;  %19066 = vst [vmem:[#allocation200_spill] sm:$0xff] %v14148_v21  ;;  %v19067_v21 = vrot.slane %v13928_v17, 6  ;;  %v19068_v47 = vrot.slane %v13928_v17, 2 }
 0x4f0   :  { %v2685_v0 = vsel %vm2661_vm10, %v19059_v7, %v9751_v45  ;;  %v2684_v30 = vsel %vm2661_vm10, %v19060_v32, %v9750_v28  ;;  %v5134_v32 = vadd.f32 %v5133_v43, %v13179_v25  ;;  %v9353_v43 = vld [vmem:[%s17965_s3 + $0x134] sm:$0xf0] }
 0x4f1   :  { %v14143_v3 = vmax.f32 %v12498_v5, %v2685_v0  ;;  %v14146_v24 = vmax.f32 %v12457_v40, %v2684_v30  ;;  %v8718_v5 = vld [vmem:[%s17965_s3 + $0x230] sm:$0xf]  ;;  %v9385_v40 = vld [vmem:[%s17965_s3 + $0x234] sm:$0xf0] }
 0x4f2   :  { %v8590_v0 = vld [vmem:[%s17965_s3 + $0x130] sm:$0xf]  ;;  %v8719_v16 = vor.u32 %v9385_v40, %v8718_v5  ;;  %v19070_v40 = vrot.slane %v13928_v17, 4 }
 0x4f3   :  { %19064 = vst [vmem:[#allocation76_spill] sm:$0xff] %v14143_v3  ;;  %v3176_v7 = vrot.slane %v14146_v24, 6  ;;  %v2910_v28 = vrot.slane %v14146_v24, 2  ;;  %v3043_v45 = vrot.slane %v14146_v24, 4  ;;  %v8591_v60 = vor.u32 %v9353_v43, %v8590_v0 }
 0x4f4   :  { %19065 = vst [vmem:[#allocation53_spill] sm:$0xff] %v14146_v24  ;;  %5449 = vmatpush.bf16.msrb.mxu2 %v8719_v16  ;;  %v19072_v17 = vrot.slane %v14143_v3, 6  ;;  %v19075_v16 = vld [vmem:[#allocation44_spill] sm:$0xff]  ;;  %v18317_v57 = vrot.slane %v14143_v3, 4 }
 0x4f5   :  { %v14166_v30 = vpop.permute.xlu0 %9763  ;;  %v14180_v59 = vsel %vm3087_vm8, %v19067_v21, %v3176_v7  ;;  %v14185_v5 = vsel %vm445_vm6, %v19068_v47, %v2910_v28  ;;  %v14190_v33 = vsel %vm2954_vm9, %v19070_v40, %v3043_v45  ;;  %v19076_v43 = vpack.i.bf16 %v19074_v56, %v19075_v16  ;;  %5271 = vmatpush.bf16.msrb.mxu0 %v8591_v60  ;;  %v8654_v56 = vld [vmem:[%s17965_s3 + $0x1b0] sm:$0xf]  ;;  %v9369_v60 = vld [vmem:[%s17965_s3 + $0x1b4] sm:$0xf0] }
 0x4f6   :  { %19069 = vst [vmem:[#allocation201_spill] sm:$0xff] %v14185_v5  ;;  %v18315_v38 = vunpack.i.h.bf16 %v14166_v30  ;;  %v9765_v46 = vunpack.i.l.bf16 %v14166_v30  ;;  %v14203_v40 = vsel %vm3087_vm8, %v3176_v7, %v19072_v17  ;;  %v18316_v47 = vrot.slane %v14143_v3, 2 }
 0x4f7   :  { %19071 = vst [vmem:[#allocation202_spill] sm:$0xff] %v14190_v33  ;;  %9833 = vrot.lane.b32.xlu2 %v19076_v43, %s10578_s28  ;;  %v5222_v7 = vpop.f32.mrf.mxu3  ;;  %v8655_v18 = vor.u32 %v9369_v60, %v8654_v56  ;;  %v14236_v44 = vsel %vm2954_vm9, %v3043_v45, %v18317_v57  ;;  %v19081_v60 = vld [vmem:[#allocation38_spill] sm:$0xff]  ;;  %v19082_v57 = vrot.slane %v13991_v10, 2  ;;  %v19084_v56 = vrot.slane %v14083_v13, 4 }
 0x4f8   :  { %19073 = vst [vmem:[#allocation203_spill] sm:$0xff] %v14203_v40  ;;  %v2499_v0 = vsel %vm2468_vm7, %v9765_v46, %v18315_v38  ;;  %v2936_v46 = vrot.slane %v14083_v13, 2  ;;  %v14226_v43 = vadd.f32 %v5222_v7, %v5134_v32  ;;  %v19093_v40 = vld [vmem:[#allocation40_spill] sm:$0xff]  ;;  %v19095_v14 = vrot.slane %v19081_v60, 6 }
 0x4f9   :  { %v14217_v17 = vmax.f32 %v18974_v52, %v2499_v0  ;;  %v14231_v52 = vsel %vm445_vm6, %v2910_v28, %v18316_v47  ;;  %19079 = vst [vmem:[#allocation204_spill] sm:$0xff] %v14236_v44  ;;  %5360 = vmatpush.bf16.msrb.mxu1 %v8655_v18  ;;  %v19094_v13 = vrot.slane %v19093_v40, 6 }
 0x4fa   :  { %19078 = vst [vmem:[#allocation44_spill] sm:$0xff] %v14226_v43  ;;  %v14238_v0 = vpop.permute.xlu1 %9753  ;;  %v2937_v43 = vsel %vm445_vm6, %v19082_v57, %v2936_v46 }
 0x4fb   :  { %19077 = vst [vmem:[#allocation50_spill] sm:$0xff] %v14217_v17  ;;  %v2940_v21 = vrot.slane %v14217_v17, 2  ;;  %v3206_v38 = vrot.slane %v14217_v17, 6  ;;  %v3073_v7 = vrot.slane %v14217_v17, 4  ;;  %v19086_v10 = vunpack.i.l.bf16 %v14238_v0 }
 0x4fc   :  { %19080 = vst [vmem:[#allocation205_spill] sm:$0xff] %v14238_v0 }
 0x4fd   :  { %v14248_v45 = vpop.permute.xlu0 %9778  ;;  %v2941_v61 = vsel %vm445_vm6, %v2936_v46, %v2940_v21  ;;  %v14257_v32 = vsel %vm3087_vm8, %v19083_v62, %v3206_v38  ;;  %v14262_v28 = vsel %vm2954_vm9, %v19084_v56, %v3073_v7  ;;  %v4180_v57 = vsel %vm3350_vm11, %v14146_v24, %v19086_v10 }
 0x4fe   :  { %19085 = vst [vmem:[#allocation206_spill] sm:$0xff] %v14262_v28  ;;  %v18329_v18 = vunpack.i.h.bf16 %v14248_v45  ;;  %v9780_v47 = vunpack.i.l.bf16 %v14248_v45  ;;  %v9797_v33 = vpack.i.bf16 %v2941_v61, %v2937_v43  ;;  %v19087_v46 = vunpack.i.h.bf16 %v14238_v0  ;;  %v19089_v61 = vld [vmem:[#allocation60_spill] sm:$0xff]  ;;  %v19092_v0 = vld [vmem:[#allocation43_spill] sm:$0xff] }
 0x4ff   :  { %v19090_v43 = vpack.i.bf16 %v19088_v15, %v19089_v61  ;;  %v18331_v24 = vrot.slane %v19092_v0, 6  ;;  %v19096_v15 = vrot.slane %v19075_v16, 6  ;;  %v2826_v61 = vrot.slane %v19093_v40, 2  ;;  %v19099_v28 = vld [vmem:[#allocation11_spill] sm:$0xff] }
 0x500   :  { %v4181_v62 = vsel %vm3350_vm11, %v14143_v3, %v19087_v46  ;;  %v2500_v56 = vsel %vm2468_vm7, %v9780_v47, %v18329_v18  ;;  %9798 = vrot.lane.b32.xlu1 %v9797_v33, %s10576_s15  ;;  %v3093_v47 = vsel %vm3087_vm8, %v19095_v14, %v19094_v13  ;;  %vm7138_vm7 = vcmask 1046534  }
 0x501   :  { %9848 = vrot.lane.b32.xlu2 %v19090_v43, %s10577_s22  ;;  %v14284_v10 = vpack.c.bf16 %v4181_v62, %v4180_v57  ;;  %v14288_v46 = vmax.f32 %v13728_v41, %v2500_v56  ;;  %v3090_v33 = vsel %vm3087_vm8, %v18331_v24, %v19096_v15  ;;  %v19098_v24 = vrot.slane %v19092_v0, 2 }
 0x502   :  { %v9769_v62 = vpop.permute.xlu1 %9768  ;;  %v9812_v16 = vpack.i.bf16 %v3093_v47, %v3090_v33  ;;  %v19102_v33 = vunpack.i.h.bf16 %v13734_v1  ;;  %v19107_v1 = vld [vmem:[#allocation47_spill] sm:$0xff] }
 0x503   :  { %19091 = vst [vmem:[#allocation33_spill] sm:$0xff] %v14284_v10  ;;  %5241 = vmatmul.bf16.gmra.mxu3 %v14284_v10  ;;  %v14304_v41 = vpack.c.bf16 %v14288_v46, %v14217_v17  ;;  %v2944_v56 = vrot.slane %v14288_v46, 2  ;;  %v18337_v13 = vrot.slane %v14288_v46, 6  ;;  %v9771_v14 = vunpack.i.h.bf16 %v9769_v62 }
 0x504   :  { %v9770_v43 = vunpack.i.l.bf16 %v9769_v62  ;;  %v3077_v18 = vrot.slane %v14288_v46, 4  ;;  %v19100_v17 = vrot.slane %v19099_v28, 2 }
 0x505   :  { %19097 = vst [vmem:[#allocation60_spill] sm:$0xff] %v14304_v41  ;;  %v14310_v10 = vpop.permute.xlu0 %9793  ;;  %5172 = vmatmul.bf16.gmra.mxu2 %v14304_v41  ;;  %v2945_v15 = vsel %vm445_vm6, %v2940_v21, %v2944_v56  ;;  %v2952_v57 = vsel %vm445_vm6, %v2944_v56, %v19098_v24  ;;  %v14323_v47 = vsel %vm3087_vm8, %v3206_v38, %v18337_v13  ;;  %v19103_v41 = vunpack.i.h.bf16 %v13666_v48 }
 0x506   :  { %v2831_v49 = vsel %vm445_vm6, %v2826_v61, %v19100_v17  ;;  %19101 = vst [vmem:[#allocation207_spill] sm:$0xff] %v14323_v47  ;;  %v2687_v62 = vsel %vm2661_vm10, %v19102_v33, %v9771_v14  ;;  %v9795_v5 = vunpack.i.l.bf16 %v14310_v10  ;;  %v3186_v24 = vrot.slane %v13767_v63, 6  ;;  %v19108_v14 = vld [vmem:[#allocation57_spill] sm:$0xff]  ;;  %v19228_v47 = vld [vmem:[#allocation82_spill] sm:$0xff] }
 0x507   :  { %v2686_v21 = vsel %vm2661_vm10, %v19103_v41, %v9770_v43  ;;  %v14334_v56 = vmax.f32 %v12603_v42, %v2687_v62  ;;  %v9807_v38 = vpack.i.bf16 %v2952_v57, %v2945_v15  ;;  %v14340_v13 = vsel %vm2954_vm9, %v3073_v7, %v3077_v18 }
 0x508   :  { %v14337_v17 = vmax.f32 %v12563_v23, %v2686_v21  ;;  %19106 = vst [vmem:[#allocation210_spill] sm:$0xff] %v14340_v13  ;;  %v19109_v48 = vpack.i.bf16 %v19107_v1, %v19108_v14  ;;  %9813 = vrot.lane.b32.xlu1 %v9812_v16, %s10577_s22  ;;  %v2959_v43 = vrot.slane %v19093_v40, 4  ;;  %v19110_v42 = vunpack.i.h.bf16 %v13950_v8  ;;  %v19148_v13 = vld [vmem:[#allocation78_spill] sm:$0xff] }
 0x509   :  { %19104 = vst [vmem:[#allocation208_spill] sm:$0xff] %v14334_v56  ;;  %9808 = vrot.lane.b32.xlu0 %v9807_v38, %s10576_s15  ;;  %v19111_v7 = vrot.slane %v19081_v60, 2  ;;  %v3188_v33 = vrot.slane %v14334_v56, 6  ;;  %v2922_v1 = vrot.slane %v14334_v56, 2  ;;  %v19113_v14 = vrot.slane %v13716_v27, 6 }
 0x50a   :  { %19105 = vst [vmem:[#allocation209_spill] sm:$0xff] %v14337_v17  ;;  %9863 = vrot.lane.b32.xlu2 %v19109_v48, %s10578_s28  ;;  %v2690_v23 = vsel %vm2661_vm10, %v19110_v42, %v9795_v5  ;;  %v3184_v15 = vrot.slane %v14337_v17, 6  ;;  %v2918_v16 = vrot.slane %v14337_v17, 2  ;;  %v3051_v21 = vrot.slane %v14337_v17, 4  ;;  %v9784_v8 = vpop.permute.xlu1 %9783  ;;  %v9351_v27 = vld [vmem:[%s17965_s3 + $0x124] sm:$0xf0] }
 0x50b   :  { %v2827_v57 = vsel %vm445_vm6, %v19111_v7, %v2826_v61  ;;  %v19112_v5 = vrot.slane %v14143_v3, 6  ;;  %v14369_v61 = vsel %vm3087_vm8, %v19113_v14, %v3186_v24  ;;  %v14376_v42 = vmax.f32 %v12632_v58, %v2690_v23 }
 0x50c   :  { %v9822_v62 = vpack.i.bf16 %v2831_v49, %v2827_v57  ;;  %v14372_v48 = vsel %vm3087_vm8, %v3184_v15, %v3188_v33  ;;  %v3055_v49 = vrot.slane %v14334_v56, 4  ;;  %v9786_v7 = vunpack.i.h.bf16 %v9784_v8 }
 0x50d   :  { %v14364_v38 = vsel %vm3087_vm8, %v19112_v5, %v3184_v15  ;;  %v9785_v57 = vunpack.i.l.bf16 %v9784_v8  ;;  %v19114_v5 = vrot.slane %v14143_v3, 2  ;;  %v19115_v14 = vrot.slane %v14143_v3, 4  ;;  %v19178_v3 = vld [vmem:[#allocation91_spill] sm:$0xff] }
 0x50e   :  { %v14393_v58 = vsel %vm445_vm6, %v2918_v16, %v2922_v1  ;;  %v19117_v23 = vunpack.i.h.bf16 %v13882_v19  ;;  %v19118_v41 = vunpack.i.h.bf16 %v13944_v20  ;;  %v14412_v19 = vsel %vm2954_vm9, %v3051_v21, %v3055_v49 }
 0x50f   :  { %v14383_v40 = vsel %vm445_vm6, %v19114_v5, %v2918_v16  ;;  %v14388_v15 = vsel %vm2954_vm9, %v19115_v14, %v3051_v21  ;;  %v19131_v63 = vrot.slane %v13918_v31, 6 }
 0x510   :  { %19116 = vst [vmem:[#allocation47_spill] sm:$0xff] %v14388_v15  ;;  %v2688_v8 = vsel %vm2661_vm10, %v19117_v23, %v9785_v57  ;;  %v2689_v5 = vsel %vm2661_vm10, %v19118_v41, %v9786_v7  ;;  %v19121_v57 = vrot.slane %v19092_v0, 4  ;;  %v19123_v41 = vld [vmem:[#allocation22_spill] sm:$0xff]  ;;  %v18348_v15 = vrot.slane %v14376_v42, 4 }
 0x511   :  { %v14406_v34 = vmax.f32 %v12618_v35, %v2688_v8  ;;  %v14409_v16 = vmax.f32 %v12626_v39, %v2689_v5  ;;  %v19124_v7 = vld [vmem:[#allocation66_spill] sm:$0xff]  ;;  %v19126_v35 = vld [vmem:[#allocation56_spill] sm:$0xff]  ;;  %v19127_v8 = vld [vmem:[#allocation55_spill] sm:$0xff]  ;;  %9823 = vrot.lane.b32.xlu0 %v9822_v62, %s10576_s15 }
 0x512   :  { %v14417_v20 = vsel %vm2954_vm9, %v3077_v18, %v19121_v57  ;;  %v19125_v23 = vpack.i.bf16 %v19123_v41, %v19124_v7  ;;  %v19128_v14 = vpack.i.bf16 %v19126_v35, %v19127_v8  ;;  %v19129_v41 = vrot.slane %v19081_v60, 4  ;;  %v8710_v62 = vld [vmem:[%s17965_s3 + $0x220] sm:$0xf]  ;;  %v9383_v35 = vld [vmem:[%s17965_s3 + $0x224] sm:$0xf0] }
 0x513   :  { %19119 = vst [vmem:[#allocation57_spill] sm:$0xff] %v14406_v34  ;;  %v3192_v21 = vrot.slane %v14406_v34, 6  ;;  %v3196_v18 = vrot.slane %v14409_v16, 6  ;;  %v2926_v5 = vrot.slane %v14406_v34, 2  ;;  %v3059_v57 = vrot.slane %v14406_v34, 4 }
 0x514   :  { %19120 = vst [vmem:[#allocation211_spill] sm:$0xff] %v14409_v16  ;;  %9878 = vrot.lane.b32.xlu2 %v19125_v23, %s10577_s22  ;;  %9828 = vrot.lane.b32.xlu1 %v19128_v14, %s10579_s13  ;;  %v2960_v7 = vsel %vm2954_vm9, %v19129_v41, %v2959_v43  ;;  %v19130_v23 = vrot.slane %v19099_v28, 4  ;;  %v8582_v8 = vld [vmem:[%s17965_s3 + $0x120] sm:$0xf]  ;;  %v14451_v41 = vsel %vm3087_vm8, %v3186_v24, %v19131_v63  ;;  %v9399_v28 = vld [vmem:[%s17965_s3 + $0x2a4] sm:$0xf0] }
 0x515   :  { %19122 = vst [vmem:[#allocation212_spill] sm:$0xff] %v14417_v20  ;;  %v8774_v39 = vld [vmem:[%s17965_s3 + $0x2a0] sm:$0xf]  ;;  %v14465_v44 = vsel %vm3087_vm8, %v3188_v33, %v3192_v21  ;;  %v19132_v63 = vrot.slane %v14376_v42, 6  ;;  %v18347_v20 = vrot.slane %v14376_v42, 2 }
 0x516   :  { %v2964_v14 = vsel %vm2954_vm9, %v2959_v43, %v19130_v23  ;;  %v8711_v23 = vor.u32 %v9383_v35, %v8710_v62  ;;  %v14473_v62 = vsel %vm445_vm6, %v2922_v1, %v2926_v5  ;;  %v8583_v35 = vor.u32 %v9351_v27, %v8582_v8  ;;  %v19136_v27 = vld [vmem:[#allocation77_spill] sm:$0xff] }
 0x517   :  { %v14470_v24 = vsel %vm3087_vm8, %v3196_v18, %v19132_v63  ;;  %v8775_v43 = vor.u32 %v9399_v28, %v8774_v39  ;;  %v14483_v63 = vsel %vm2954_vm9, %v3055_v49, %v3059_v57  ;;  %v14486_v1 = vsel %vm3087_vm8, %v3192_v21, %v3196_v18  ;;  %v19133_v18 = vld [vmem:[#allocation65_spill] sm:$0xff]  ;;  %v19145_v21 = vld [vmem:[#allocation62_spill] sm:$0xff] }
 0x518   :  { %5450 = vmatpush.bf16.msrb.mxu2 %v8711_v23  ;;  %5272 = vmatpush.bf16.msrb.mxu0 %v8583_v35  ;;  %v2930_v39 = vrot.slane %v14409_v16, 2  ;;  %v3063_v8 = vrot.slane %v14409_v16, 4  ;;  %v9837_v23 = vpack.i.bf16 %v2964_v14, %v2960_v7  ;;  %v19137_v28 = vld [vmem:[#allocation61_spill] sm:$0xff] }
 0x519   :  { %5539 = vmatpush.bf16.msrb.mxu3 %v8775_v43  ;;  %v19134_v43 = vld [vmem:[#allocation49_spill] sm:$0xff]  ;;  %v19138_v33 = vpack.i.bf16 %v19136_v27, %v19137_v28  ;;  %v19154_v28 = vld [vmem:[#allocation51_spill] sm:$0xff] }
 0x51a   :  { %v19135_v35 = vpack.i.bf16 %v19133_v18, %v19134_v43  ;;  %v14508_v7 = vsel %vm445_vm6, %v2926_v5, %v2930_v39  ;;  %v14513_v14 = vsel %vm445_vm6, %v2930_v39, %v18347_v20  ;;  %v14516_v49 = vsel %vm2954_vm9, %v3059_v57, %v3063_v8  ;;  %9838 = vrot.lane.b32.xlu0 %v9837_v23, %s10579_s13  ;;  %v8646_v18 = vld [vmem:[%s17965_s3 + $0x1a0] sm:$0xf]  ;;  %v19141_v39 = vld [vmem:[#allocation100_spill] sm:$0xff]  ;;  %v19142_v23 = vld [vmem:[#allocation17_spill] sm:$0xff] }
 0x51b   :  { %19139 = vst [vmem:[#allocation22_spill] sm:$0xff] %v14516_v49  ;;  %v14530_v27 = vsel %vm2954_vm9, %v3063_v8, %v18348_v15  ;;  %v19143_v43 = vpack.i.bf16 %v19141_v39, %v19142_v23  ;;  %v19147_v5 = vld [vmem:[#allocation12_spill] sm:$0xff] }
 0x51c   :  { %9893 = vrot.lane.b32.xlu2 %v19135_v35, %s10578_s28  ;;  %9843 = vrot.lane.b32.xlu1 %v19138_v33, %s10577_s22  ;;  %v9367_v33 = vld [vmem:[%s17965_s3 + $0x1a4] sm:$0xf0]  ;;  %19140 = vst [vmem:[#allocation66_spill] sm:$0xff] %v14530_v27  ;;  %v19149_v8 = vpack.i.bf16 %v19147_v5, %v19148_v13  ;;  %v19156_v23 = vld [vmem:[#allocation4_spill] sm:$0xff] }
 0x51d   :  { %v8647_v57 = vor.u32 %v9367_v33, %v8646_v18  ;;  %v19144_v35 = vld [vmem:[#allocation63_spill] sm:$0xff]  ;;  %v19151_v33 = vld [vmem:[#allocation16_spill] sm:$0xff] }
 0x51e   :  { %v19146_v20 = vpack.i.bf16 %v19144_v35, %v19145_v21  ;;  %v19150_v18 = vld [vmem:[#allocation71_spill] sm:$0xff]  ;;  %v19160_v35 = vld [vmem:[#allocation81_spill] sm:$0xff] }
 0x51f   :  { %5361 = vmatpush.bf16.msrb.mxu1 %v8647_v57  ;;  %v19152_v15 = vpack.i.bf16 %v19150_v18, %v19151_v33  ;;  %v19153_v57 = vld [vmem:[#allocation89_spill] sm:$0xff]  ;;  %v19162_v5 = vld [vmem:[#allocation67_spill] sm:$0xff]  ;;  %v19166_v33 = vld [vmem:[#allocation90_spill] sm:$0xff] }
 0x520   :  { %v19155_v39 = vpack.i.bf16 %v19153_v57, %v19154_v28 }
 0x522   :  { %9853 = vrot.lane.b32.xlu0 %v19149_v8, %s10576_s15  ;;  %v19163_v8 = vld [vmem:[#allocation52_spill] sm:$0xff] }
 0x523   :  { %v19164_v18 = vpack.i.bf16 %v19162_v5, %v19163_v8  ;;  %v9381_v5 = vld [vmem:[%s17965_s3 + $0x214] sm:$0xf0]  ;;  %v8574_v8 = vld [vmem:[%s17965_s3 + $0x110] sm:$0xf] }
 0x524   :  { %9908 = vrot.lane.b32.xlu2 %v19143_v43, %s10577_s22  ;;  %9858 = vrot.lane.b32.xlu1 %v19146_v20, %s10579_s13  ;;  %v19157_v43 = vld [vmem:[#allocation79_spill] sm:$0xff]  ;;  %v19159_v20 = vld [vmem:[#allocation122_spill] sm:$0xff] }
 0x525   :  { %v19158_v21 = vpack.i.bf16 %v19156_v23, %v19157_v43  ;;  %v19161_v13 = vpack.i.bf16 %v19159_v20, %v19160_v35  ;;  %v14582_v20 = vpop.f32.mrf.mxu2 }
 0x526   :  { %19169 = vst [vmem:[#allocation55_spill] sm:$0xff] %v14582_v20 }
 0x52a   :  { %9868 = vrot.lane.b32.xlu0 %v19158_v21, %s10579_s13 }
 0x52c   :  { %9923 = vrot.lane.b32.xlu2 %v19152_v15, %s10578_s28  ;;  %9873 = vrot.lane.b32.xlu1 %v19155_v39, %s10577_s22  ;;  %v19165_v15 = vld [vmem:[#allocation101_spill] sm:$0xff] }
 0x52d   :  { %v19167_v28 = vpack.i.bf16 %v19165_v15, %v19166_v33  ;;  %v14570_v57 = vpop.permute.xlu2 %9773  ;;  %v9349_v15 = vld [vmem:[%s17965_s3 + $0x114] sm:$0xf0]  ;;  %v8766_v33 = vld [vmem:[%s17965_s3 + $0x290] sm:$0xf] }
 0x52e   :  { %19168 = vst [vmem:[#allocation56_spill] sm:$0xff] %v14570_v57  ;;  %v18349_v39 = vunpack.i.h.bf16 %v14570_v57  ;;  %v18350_v23 = vunpack.i.l.bf16 %v14570_v57  ;;  %v19177_v57 = vld [vmem:[#allocation102_spill] sm:$0xff] }
 0x530   :  { %v4182_v43 = vsel %vm3350_vm11, %v14337_v17, %v18350_v23  ;;  %v4183_v21 = vsel %vm3350_vm11, %v14334_v56, %v18349_v39  ;;  %v19174_v23 = vld [vmem:[#allocation105_spill] sm:$0xff]  ;;  %v19179_v17 = vpack.i.bf16 %v19177_v57, %v19178_v3  ;;  %v8638_v56 = vld [vmem:[%s17965_s3 + $0x190] sm:$0xf]  ;;  %v14627_v3 = vpop.f32.mrf.mxu3 }
 0x531   :  { %v14584_v35 = vpack.c.bf16 %v4183_v21, %v4182_v43  ;;  %v19171_v43 = vld [vmem:[#allocation80_spill] sm:$0xff]  ;;  %v19172_v21 = vld [vmem:[#allocation73_spill] sm:$0xff]  ;;  %19181 = vst [vmem:[#allocation77_spill] sm:$0xff] %v14627_v3  ;;  %v19192_v3 = vld [vmem:[#allocation7_spill] sm:$0xff] }
 0x532   :  { %9883 = vrot.lane.b32.xlu0 %v19167_v28, %s10576_s15  ;;  %v9397_v28 = vld [vmem:[%s17965_s3 + $0x294] sm:$0xf0]  ;;  %v19173_v39 = vpack.i.bf16 %v19171_v43, %v19172_v21 }
 0x533   :  { %19170 = vst [vmem:[#allocation65_spill] sm:$0xff] %v14584_v35  ;;  %5246 = vmatmul.bf16.gmra.mxu3 %v14584_v35  ;;  %v8575_v35 = vor.u32 %v9349_v15, %v8574_v8  ;;  %v8767_v20 = vor.u32 %v9397_v28, %v8766_v33  ;;  %v19186_v28 = vld [vmem:[#allocation70_spill] sm:$0xff] }
 0x534   :  { %9938 = vrot.lane.b32.xlu2 %v19161_v13, %s10577_s22  ;;  %9888 = vrot.lane.b32.xlu1 %v19164_v18, %s10579_s13  ;;  %v8702_v13 = vld [vmem:[%s17965_s3 + $0x210] sm:$0xf] }
 0x535   :  { %v8703_v18 = vor.u32 %v9381_v5, %v8702_v13  ;;  %v19175_v13 = vld [vmem:[#allocation69_spill] sm:$0xff]  ;;  %5273 = vmatpush.bf16.msrb.mxu0 %v8575_v35  ;;  %5540 = vmatpush.bf16.msrb.mxu3 %v8767_v20  ;;  %v5138_v35 = vpop.f32.mrf.mxu2 }
 0x536   :  { %v19176_v5 = vpack.i.bf16 %v19174_v23, %v19175_v13  ;;  %v19188_v13 = vunpack.i.h.bf16 %v14047_v36 }
 0x537   :  { %5451 = vmatpush.bf16.msrb.mxu2 %v8703_v18  ;;  %v19183_v18 = vld [vmem:[#allocation94_spill] sm:$0xff] }
 0x538   :  { %v14623_v43 = vpop.permute.xlu2 %9788  ;;  %v19184_v33 = vpack.i.bf16 %v13405_v22, %v19183_v18  ;;  %v19193_v22 = vrot.slane %v19192_v3, 6  ;;  %v19194_v18 = vld [vmem:[#allocation14_spill] sm:$0xff] }
 0x539   :  { %19180 = vst [vmem:[#allocation49_spill] sm:$0xff] %v14623_v43  ;;  %v18357_v8 = vunpack.i.h.bf16 %v14623_v43  ;;  %v18358_v15 = vunpack.i.l.bf16 %v14623_v43 }
 0x53a   :  { %9898 = vrot.lane.b32.xlu0 %v19179_v17, %s10579_s13  ;;  %v9796_v17 = vunpack.i.h.bf16 %v14310_v10  ;;  %v19185_v10 = vld [vmem:[#allocation72_spill] sm:$0xff] }
 0x53b   :  { %v4184_v57 = vsel %vm3350_vm11, %v14406_v34, %v18358_v15  ;;  %v4185_v20 = vsel %vm3350_vm11, %v14409_v16, %v18357_v8  ;;  %v19187_v21 = vpack.i.bf16 %v19185_v10, %v19186_v28  ;;  %v5139_v10 = vadd.f32 %v5138_v35, %v13179_v25  ;;  %v19201_v35 = vld [vmem:[#allocation28_spill] sm:$0xff] }
 0x53c   :  { %9953 = vrot.lane.b32.xlu2 %v19173_v39, %s10578_s28  ;;  %9903 = vrot.lane.b32.xlu1 %v19176_v5, %s10577_s22  ;;  %v9365_v39 = vld [vmem:[%s17965_s3 + $0x194] sm:$0xf0]  ;;  %v2691_v5 = vsel %vm2661_vm10, %v19188_v13, %v9796_v17  ;;  %v19196_v17 = vunpack.i.h.bf16 %v14248_v45  ;;  %v19202_v45 = vld [vmem:[#allocation92_spill] sm:$0xff] }
 0x53d   :  { %v8639_v23 = vor.u32 %v9365_v39, %v8638_v56  ;;  %v14638_v56 = vpack.c.bf16 %v4185_v20, %v4184_v57  ;;  %v19189_v39 = vld [vmem:[#allocation107_spill] sm:$0xff]  ;;  %v14662_v36 = vmax.f32 %v18977_v12, %v2691_v5 }
 0x53f   :  { %5362 = vmatpush.bf16.msrb.mxu1 %v8639_v23  ;;  %19182 = vst [vmem:[#allocation61_spill] sm:$0xff] %v14638_v56  ;;  %v19190_v23 = vld [vmem:[#allocation106_spill] sm:$0xff] }
 0x540   :  { %v19191_v57 = vpack.i.bf16 %v19189_v39, %v19190_v23  ;;  %v9804_v20 = vpop.permute.xlu2 %9803 }
 0x541   :  { %v9806_v8 = vunpack.i.h.bf16 %v9804_v20  ;;  %v9805_v15 = vunpack.i.l.bf16 %v9804_v20  ;;  %v5227_v39 = vpop.f32.mrf.mxu3 }
 0x542   :  { %9913 = vrot.lane.b32.xlu0 %v19191_v57, %s10576_s15  ;;  %v14676_v20 = vadd.f32 %v5227_v39, %v5139_v10  ;;  %v2858_v39 = vrot.slane %v19192_v3, 2 }
 0x543   :  { %v2693_v28 = vsel %vm2661_vm10, %v19196_v17, %v9806_v8  ;;  %5251 = vmatmul.bf16.gmra.mxu3 %v14638_v56  ;;  %v19203_v8 = vld [vmem:[#allocation83_spill] sm:$0xff] }
 0x544   :  { %9968 = vrot.lane.b32.xlu2 %v19184_v33, %s10577_s22  ;;  %9918 = vrot.lane.b32.xlu1 %v19187_v21, %s10579_s13  ;;  %v19195_v33 = vrot.slane %v19194_v18, 6  ;;  %v19197_v21 = vunpack.i.h.bf16 %v14166_v30  ;;  %v14671_v23 = vmax.f32 %v13732_v29, %v2693_v28  ;;  %19200 = vst [vmem:[#allocation63_spill] sm:$0xff] %v14676_v20  ;;  %v19204_v5 = vpack.i.bf16 %v19202_v45, %v19203_v8 }
 0x545   :  { %v18361_v30 = vrot.slane %v14662_v36, 6  ;;  %v19210_v45 = vrot.slane %v14288_v46, 6  ;;  %v19223_v20 = vrot.slane %v19081_v60, 4 }
 0x546   :  { %v3125_v43 = vsel %vm3087_vm8, %v19195_v33, %v19193_v22  ;;  %v2692_v13 = vsel %vm2661_vm10, %v19197_v21, %v9805_v15  ;;  %19198 = vst [vmem:[#allocation100_spill] sm:$0xff] %v14671_v23  ;;  %v14689_v22 = vpop.f32.mrf.mxu2  ;;  %v19207_v33 = vld [vmem:[#allocation108_spill] sm:$0xff]  ;;  %v2946_v28 = vrot.slane %v14671_v23, 2  ;;  %v3079_v21 = vrot.slane %v14671_v23, 4 }
 0x547   :  { %v14674_v57 = vmax.f32 %v18975_v11, %v2692_v13  ;;  %v9932_v12 = vpack.i.bf16 %v3125_v43, %v19201_v35  ;;  %v3212_v11 = vrot.slane %v14671_v23, 6  ;;  %19205 = vst [vmem:[#allocation62_spill] sm:$0xff] %v14689_v22  ;;  %v19206_v43 = vld [vmem:[#allocation109_spill] sm:$0xff]  ;;  %v19218_v22 = vrot.slane %v19081_v60, 2 }
 0x548   :  { %v19208_v10 = vpack.i.bf16 %v19206_v43, %v19207_v33  ;;  %v14698_v13 = vpop.permute.xlu2 %9818  ;;  %v14755_v33 = vsel %vm2954_vm9, %v3079_v21, %v19223_v20  ;;  %v2991_v20 = vrot.slane %v19192_v3, 4  ;;  %vm7141_vm10 = vcmask 1047559  }
 0x549   :  { %19199 = vst [vmem:[#allocation17_spill] sm:$0xff] %v14674_v57  ;;  %v3208_v29 = vrot.slane %v14674_v57, 6 }
 0x54a   :  { %9928 = vrot.lane.b32.xlu0 %v19208_v10, %s10579_s13  ;;  %v14740_v10 = vsel %vm445_vm6, %v2946_v28, %v19218_v22  ;;  %19224 = vst [vmem:[#allocation51_spill] sm:$0xff] %v14755_v33  ;;  %v9347_v22 = vld [vmem:[%s17965_s3 + $0x104] sm:$0xf0] }
 0x54b   :  { %v14704_v35 = vsel %vm3087_vm8, %v18361_v30, %v3208_v29  ;;  %v19212_v30 = vld [vmem:[#allocation121_spill] sm:$0xff]  ;;  %v14726_v56 = vsel %vm3087_vm8, %v3208_v29, %v3212_v11  ;;  %19219 = vst [vmem:[#allocation16_spill] sm:$0xff] %v14740_v10 }
 0x54c   :  { %9983 = vrot.lane.b32.xlu2 %v19204_v5, %s10578_s28  ;;  %9933 = vrot.lane.b32.xlu1 %v9932_v12, %s10577_s22  ;;  %v19209_v12 = vrot.slane %v19092_v0, 6  ;;  %v19211_v5 = vrot.slane %v19081_v60, 6  ;;  %v19213_v17 = vrot.slane %v19212_v30, 2  ;;  %19214 = vst [vmem:[#allocation12_spill] sm:$0xff] %v14726_v56  ;;  %v19287_v10 = vld [vmem:[#allocation37_spill] sm:$0xff] }
 0x54e   :  { %v14711_v8 = vsel %vm3087_vm8, %v19210_v45, %v19209_v12  ;;  %v14716_v43 = vsel %vm3087_vm8, %v3212_v11, %v19211_v5  ;;  %v2863_v15 = vsel %vm445_vm6, %v2858_v39, %v19213_v17  ;;  %v19215_v12 = vrot.slane %v14674_v57, 2  ;;  %v14733_v5 = vpop.f32.mrf.mxu3 }
 0x54f   :  { %19217 = vst [vmem:[#allocation71_spill] sm:$0xff] %v14733_v5  ;;  %v19220_v17 = vrot.slane %v14674_v57, 4  ;;  %v19222_v11 = vrot.slane %v19194_v18, 2  ;;  %v5143_v5 = vpop.f32.mrf.mxu2 }
 0x550   :  { %v14731_v45 = vsel %vm445_vm6, %v19215_v12, %v2946_v28  ;;  %v19225_v28 = vld [vmem:[#allocation139_spill] sm:$0xff] }
 0x551   :  { %19216 = vst [vmem:[#allocation78_spill] sm:$0xff] %v14731_v45  ;;  %v14745_v29 = vsel %vm2954_vm9, %v19220_v17, %v3079_v21  ;;  %v2859_v12 = vsel %vm445_vm6, %v19222_v11, %v2858_v39  ;;  %v19226_v17 = vld [vmem:[#allocation111_spill] sm:$0xff]  ;;  %v19229_v39 = vld [vmem:[#allocation2_spill] sm:$0xff]  ;;  %v14768_v60 = vpop.permute.xlu2 %9833  ;;  %v19231_v21 = vrot.slane %v19212_v30, 4 }
 0x552   :  { %19221 = vst [vmem:[#allocation89_spill] sm:$0xff] %v14745_v29  ;;  %v9942_v34 = vpack.i.bf16 %v2863_v15, %v2859_v12  ;;  %v19227_v16 = vpack.i.bf16 %v19225_v28, %v19226_v17  ;;  %v19230_v11 = vpack.i.bf16 %v19228_v47, %v19229_v39  ;;  %v5144_v15 = vadd.f32 %v5143_v5, %v13179_v25  ;;  %v9379_v5 = vld [vmem:[%s17965_s3 + $0x204] sm:$0xf0] }
 0x553   :  { %v2996_v12 = vsel %vm2954_vm9, %v2991_v20, %v19231_v21  ;;  %v19233_v17 = vrot.slane %v19194_v18, 4  ;;  %v19235_v21 = vld [vmem:[#allocation95_spill] sm:$0xff] }
 0x554   :  { %9998 = vrot.lane.b32.xlu2 %v19227_v16, %s10577_s22  ;;  %9948 = vrot.lane.b32.xlu1 %v19230_v11, %s10579_s13  ;;  %v8566_v11 = vld [vmem:[%s17965_s3 + $0x100] sm:$0xf] }
 0x555   :  { %9943 = vrot.lane.b32.xlu0 %v9942_v34, %s10576_s15  ;;  %v2992_v47 = vsel %vm2954_vm9, %v19233_v17, %v2991_v20  ;;  %v8694_v34 = vld [vmem:[%s17965_s3 + $0x200] sm:$0xf]  ;;  %v19237_v20 = vld [vmem:[#allocation123_spill] sm:$0xff]  ;;  %v8567_v18 = vor.u32 %v9347_v22, %v8566_v11  ;;  %v19240_v22 = vpack.i.bf16 %v13677_v55, %v13131_v37  ;;  %v19248_v37 = vld [vmem:[#allocation5_spill] sm:$0xff] }
 0x556   :  { %v5232_v28 = vpop.f32.mrf.mxu3  ;;  %v9957_v39 = vpack.i.bf16 %v2996_v12, %v2992_v47  ;;  %v19238_v12 = vld [vmem:[#allocation86_spill] sm:$0xff]  ;;  %v8695_v47 = vor.u32 %v9379_v5, %v8694_v34  ;;  %v9363_v34 = vld [vmem:[%s17965_s3 + $0x184] sm:$0xf0] }
 0x557   :  { %v14775_v16 = vadd.f32 %v5232_v28, %v5144_v15  ;;  %v19234_v15 = vld [vmem:[#allocation103_spill] sm:$0xff]  ;;  %v19239_v17 = vpack.i.bf16 %v19237_v20, %v19238_v12  ;;  %5274 = vmatpush.bf16.msrb.mxu0 %v8567_v18 }
 0x558   :  { %v19236_v28 = vpack.i.bf16 %v19234_v15, %v19235_v21  ;;  %v9395_v15 = vld [vmem:[%s17965_s3 + $0x284] sm:$0xf0]  ;;  %v8630_v21 = vld [vmem:[%s17965_s3 + $0x180] sm:$0xf]  ;;  %5452 = vmatpush.bf16.msrb.mxu2 %v8695_v47 }
 0x559   :  { %19232 = vst [vmem:[#allocation4_spill] sm:$0xff] %v14775_v16  ;;  %v8758_v16 = vld [vmem:[%s17965_s3 + $0x280] sm:$0xf]  ;;  %v8631_v20 = vor.u32 %v9363_v34, %v8630_v21  ;;  %v19242_v11 = vld [vmem:[#allocation87_spill] sm:$0xff] }
 0x55a   :  { %v19250_v21 = vld [vmem:[#allocation99_spill] sm:$0xff] }
 0x55b   :  { %v14813_v5 = vpop.permute.xlu2 %9848  ;;  %5363 = vmatpush.bf16.msrb.mxu1 %v8631_v20  ;;  %v19251_v34 = vpack.i.bf16 %v13412_v26, %v19250_v21  ;;  %v19258_v26 = vld [vmem:[#allocation113_spill] sm:$0xff] }
 0x55c   :  { %10013 = vrot.lane.b32.xlu2 %v19236_v28, %s10578_s28  ;;  %9963 = vrot.lane.b32.xlu1 %v19239_v17, %s10577_s22  ;;  %v8759_v28 = vor.u32 %v9395_v15, %v8758_v16  ;;  %v19244_v17 = vpack.i.bf16 %v13431_v50, %v13250_v9  ;;  %v14827_v16 = vpop.f32.mrf.mxu2  ;;  %v19247_v15 = vld [vmem:[#allocation110_spill] sm:$0xff]  ;;  %v19253_v50 = vld [vmem:[#allocation124_spill] sm:$0xff] }
 0x55d   :  { %9958 = vrot.lane.b32.xlu0 %v9957_v39, %s10579_s13  ;;  %v19241_v39 = vld [vmem:[#allocation97_spill] sm:$0xff]  ;;  %19245 = vst [vmem:[#allocation79_spill] sm:$0xff] %v14827_v16  ;;  %v19249_v55 = vpack.i.bf16 %v19247_v15, %v19248_v37 }
 0x55e   :  { %5541 = vmatpush.bf16.msrb.mxu3 %v8759_v28  ;;  %v19243_v12 = vpack.i.bf16 %v19241_v39, %v19242_v11  ;;  %v14831_v47 = vpop.f32.mrf.mxu3  ;;  %v19252_v28 = vld [vmem:[#allocation140_spill] sm:$0xff] }
 0x55f   :  { %19246 = vst [vmem:[#allocation122_spill] sm:$0xff] %v14831_v47  ;;  %v19254_v9 = vpack.i.bf16 %v19252_v28, %v19253_v50  ;;  %v19262_v28 = vld [vmem:[#allocation148_spill] sm:$0xff] }
 0x564   :  { %10028 = vrot.lane.b32.xlu2 %v19240_v22, %s10577_s22  ;;  %9978 = vrot.lane.b32.xlu1 %v19243_v12, %s10579_s13  ;;  %v14829_v18 = vpop.permute.xlu2 %9863  ;;  %v5148_v20 = vpop.f32.mrf.mxu2 }
 0x565   :  { %9973 = vrot.lane.b32.xlu0 %v19244_v17, %s10576_s15  ;;  %v5149_v39 = vadd.f32 %v5148_v20, %v13179_v25  ;;  %v19256_v17 = vld [vmem:[#allocation170_spill] sm:$0xff] }
 0x566   :  { %v19257_v37 = vpack.i.bf16 %v13887_v4, %v19256_v17 }
 0x56c   :  { %10043 = vrot.lane.b32.xlu2 %v19249_v55, %s10578_s28  ;;  %9993 = vrot.lane.b32.xlu1 %v19251_v34, %s10577_s22  ;;  %v19259_v55 = vld [vmem:[#allocation112_spill] sm:$0xff]  ;;  %v19261_v34 = vld [vmem:[#allocation149_spill] sm:$0xff] }
 0x56d   :  { %9988 = vrot.lane.b32.xlu0 %v19254_v9, %s10579_s13  ;;  %v19260_v21 = vpack.i.bf16 %v19258_v26, %v19259_v55  ;;  %v19263_v50 = vpack.i.bf16 %v19261_v34, %v19262_v28  ;;  %v19266_v26 = vld [vmem:[#allocation25_spill] sm:$0xff]  ;;  %v19267_v55 = vld [vmem:[#allocation126_spill] sm:$0xff]  ;;  %v9344_v28 = vld [vmem:[%s17965_s3 + $0xf4] sm:$0xf] }
 0x56e   :  { %v14845_v22 = vpop.permute.xlu2 %9878  ;;  %v5237_v11 = vpop.f32.mrf.mxu3 }
 0x56f   :  { %v14848_v12 = vadd.f32 %v5237_v11, %v5149_v39 }
 0x571   :  { %19255 = vst [vmem:[#allocation81_spill] sm:$0xff] %v14848_v12 }
 0x572   :  { %v14864_v20 = vpop.permute.xlu1 %9798 }
 0x573   :  { %19264 = vst [vmem:[#allocation67_spill] sm:$0xff] %v14864_v20  ;;  %v18369_v39 = vunpack.i.h.bf16 %v14864_v20  ;;  %v18368_v11 = vunpack.i.l.bf16 %v14864_v20  ;;  %v18376_v20 = vunpack.i.h.bf16 %v14698_v13 }
 0x574   :  { %10058 = vrot.lane.b32.xlu2 %v19257_v37, %s10577_s22  ;;  %10008 = vrot.lane.b32.xlu1 %v19260_v21, %s10579_s13  ;;  %v14876_v37 = vpop.f32.mrf.mxu2  ;;  %v10072_v21 = vpack.i.bf16 %v19267_v55, %v19266_v26  ;;  %v9360_v55 = vld [vmem:[%s17965_s3 + $0x174] sm:$0xf] }
 0x575   :  { %10003 = vrot.lane.b32.xlu0 %v19263_v50, %s10576_s15  ;;  %v4186_v4 = vsel %vm3350_vm11, %v14376_v42, %v18368_v11  ;;  %v4187_v17 = vsel %vm3350_vm11, %v14662_v36, %v18369_v39  ;;  %19265 = vst [vmem:[#allocation52_spill] sm:$0xff] %v14876_v37  ;;  %v8560_v50 = vld [vmem:[%s17965_s3 + $0xf8] sm:$0xf0]  ;;  %v4502_v11 = vld [vmem:[%s17965_s3 + $0x340] sm:$0xff]  ;;  %v19270_v37 = vld [vmem:[#allocation115_spill] sm:$0xff] }
 0x576   :  { %v14862_v9 = vpop.permute.xlu2 %9893  ;;  %v14880_v34 = vpack.c.bf16 %v4187_v17, %v4186_v4  ;;  %v8563_v39 = vor.u32 %v9344_v28, %v8560_v50  ;;  %v4822_v12 = vunpack.c.l.b16 %v4502_v11  ;;  %v8624_v4 = vld [vmem:[%s17965_s3 + $0x178] sm:$0xf0]  ;;  %v19269_v17 = vld [vmem:[#allocation144_spill] sm:$0xff]  ;;  %v18377_v11 = vunpack.i.l.bf16 %v14698_v13  ;;  %v19272_v28 = vld [vmem:[#allocation151_spill] sm:$0xff] }
 0x577   :  { %v19271_v47 = vpack.i.bf16 %v19269_v17, %v19270_v37  ;;  %v8627_v16 = vor.u32 %v9360_v55, %v8624_v4  ;;  %v19273_v50 = vld [vmem:[#allocation150_spill] sm:$0xff]  ;;  %v8496_v37 = vld [vmem:[%s17965_s3 + $0x78] sm:$0xf0] }
 0x578   :  { %19268 = vst [vmem:[#allocation101_spill] sm:$0xff] %v14880_v34  ;;  %v19274_v29 = vpack.i.bf16 %v19272_v28, %v19273_v50  ;;  %5256 = vmatmul.bf16.gmra.mxu3 %v14880_v34  ;;  %v4928_v33 = vpack.c.b16 %v4822_v12, %v4822_v12  ;;  %5801 = vmatpush.bf16.msra.mxu2 %v8563_v39  ;;  %v14929_v39 = vpop.f32.mrf.mxu3 }
 0x579   :  { %5890 = vmatpush.bf16.msra.mxu3 %v8627_v16  ;;  %v3806_v16 = vsel %vm3804_vm12, %v18377_v11, %v18376_v20  ;;  %19276 = vst [vmem:[#allocation80_spill] sm:$0xff] %v14929_v39  ;;  %v19279_v20 = vld [vmem:[#allocation117_spill] sm:$0xff]  ;;  %v19280_v11 = vld [vmem:[#allocation116_spill] sm:$0xff] }
 0x57a   :  { %v14911_v45 = vpop.permute.xlu1 %9813  ;;  %v5084_v4 = vsel %vm2954_vm9, %v4928_v33, 0  ;;  %v19281_v39 = vpack.i.bf16 %v19279_v20, %v19280_v11  ;;  %v19285_v33 = vld [vmem:[#allocation21_spill] sm:$0xff] }
 0x57b   :  { %v14919_v55 = vpop.permute.xlu0 %9808  ;;  %v9815_v12 = vunpack.i.l.bf16 %v14911_v45  ;;  %5626 = vmatpush.bf16.msra.mxu0 %v5084_v4  ;;  %v19282_v4 = vld [vmem:[#allocation166_spill] sm:$0xff] }
 0x57c   :  { %10073 = vrot.lane.b32.xlu2 %v10072_v21, %s10578_s28  ;;  %10023 = vrot.lane.b32.xlu1 %v19271_v47, %s10577_s22  ;;  %v9328_v47 = vld [vmem:[%s17965_s3 + $0x74] sm:$0xf]  ;;  %19275 = vst [vmem:[#allocation90_spill] sm:$0xff] %v14919_v55  ;;  %v5153_v34 = vpop.f32.mrf.mxu2 }
 0x57d   :  { %10018 = vrot.lane.b32.xlu0 %v19274_v29, %s10579_s13  ;;  %v18378_v29 = vunpack.i.h.bf16 %v14911_v45  ;;  %v8499_v17 = vor.u32 %v9328_v47, %v8496_v37  ;;  %v19278_v37 = vpack.i.bf16 %v13955_v53, %v13516_v51  ;;  %v19286_v47 = vrot.slane %v19285_v33, 6 }
 0x57e   :  { %v14909_v21 = vpop.permute.xlu2 %9908  ;;  %v19288_v51 = vrot.slane %v19287_v10, 6 }
 0x57f   :  { %v3805_v28 = vsel %vm3804_vm12, %v9815_v12, %v18378_v29  ;;  %5712 = vmatpush.bf16.msra.mxu1 %v8499_v17 }
 0x580   :  { %v14934_v50 = vpack.c.bf16 %v3806_v16, %v3805_v28  ;;  %v19283_v16 = vld [vmem:[#allocation145_spill] sm:$0xff]  ;;  %v3157_v53 = vsel %vm3087_vm8, %v19288_v51, %v19286_v47  ;;  %v19291_v47 = vrot.slane %v19266_v26, 6 }
 0x581   :  { %v19284_v28 = vpack.i.bf16 %v19282_v4, %v19283_v16  ;;  %v19289_v16 = vunpack.i.l.bf16 %v14919_v55 }
 0x582   :  { %19277 = vst [vmem:[#allocation73_spill] sm:$0xff] %v14934_v50  ;;  %5453 = vmatmul.bf16.vlgmr.msrb.gmra.mxu2 %v14934_v50  ;;  %v19290_v50 = vunpack.i.h.bf16 %v14919_v55 }
 0x583   :  { %v9824_v20 = vpop.permute.xlu0 %9823 }
 0x584   :  { %10088 = vrot.lane.b32.xlu2 %v19278_v37, %s10577_s22  ;;  %10038 = vrot.lane.b32.xlu1 %v19281_v39, %s10579_s13  ;;  %v5154_v37 = vadd.f32 %v5153_v34, %v13179_v25  ;;  %v9826_v56 = vunpack.i.h.bf16 %v9824_v20  ;;  %v9825_v4 = vunpack.i.l.bf16 %v9824_v20  ;;  %v4189_v30 = vsel %vm3350_vm11, %v14671_v23, %v19290_v50 }
 0x585   :  { %10033 = vrot.lane.b32.xlu0 %v19284_v28, %s10576_s15  ;;  %v4188_v28 = vsel %vm3350_vm11, %v14674_v57, %v19289_v16  ;;  %v19292_v34 = vrot.slane %v19247_v15, 6 }
 0x586   :  { %v14951_v17 = vpop.permute.xlu2 %9923  ;;  %v9829_v29 = vpop.permute.xlu1 %9828  ;;  %v14982_v26 = vpack.c.bf16 %v4189_v30, %v4188_v28 }
 0x587   :  { %v9831_v11 = vunpack.i.h.bf16 %v9829_v29  ;;  %v9830_v39 = vunpack.i.l.bf16 %v9829_v29  ;;  %v5242_v3 = vpop.f32.mrf.mxu3  ;;  %v3155_v51 = vsel %vm3087_vm8, %v19292_v34, %v19291_v47  ;;  %v19293_v29 = vld [vmem:[#allocation3_spill] sm:$0xff]  ;;  %v19298_v47 = vld [vmem:[#allocation141_spill] sm:$0xff]  ;;  %v19299_v34 = vld [vmem:[#allocation130_spill] sm:$0xff] }
 0x588   :  { %v19294_v49 = vunpack.i.h.bf16 %v19293_v29  ;;  %v19295_v27 = vunpack.i.l.bf16 %v19293_v29  ;;  %v14978_v57 = vadd.f32 %v5242_v3, %v5154_v37  ;;  %v10052_v55 = vpack.i.bf16 %v3157_v53, %v3155_v51  ;;  %19297 = vst [vmem:[#allocation69_spill] sm:$0xff] %v14982_v26  ;;  %v19301_v3 = vld [vmem:[#allocation167_spill] sm:$0xff]  ;;  %5261 = vmatmul.bf16.gmra.mxu3 %v14982_v26  ;;  %v19304_v29 = vld [vmem:[#allocation54_spill] sm:$0xff] }
 0x589   :  { %v19300_v0 = vpack.i.bf16 %v19298_v47, %v19299_v34 }
 0x58a   :  { %v3352_v20 = vsel %vm3350_vm11, %v19294_v49, %v9826_v56  ;;  %v3351_v16 = vsel %vm3350_vm11, %v19295_v27, %v9825_v4  ;;  %19296 = vst [vmem:[#allocation105_spill] sm:$0xff] %v14978_v57  ;;  %v18397_v49 = vunpack.i.h.bf16 %v14813_v5  ;;  %v18398_v27 = vunpack.i.l.bf16 %v14813_v5  ;;  %v19302_v56 = vld [vmem:[#allocation146_spill] sm:$0xff] }
 0x58b   :  { %v4191_v50 = vsel %vm3577_vm13, %v3352_v20, %v9831_v11  ;;  %v4190_v23 = vsel %vm3577_vm13, %v3351_v16, %v9830_v39  ;;  %v19303_v53 = vpack.i.bf16 %v19301_v3, %v19302_v56  ;;  %v19305_v20 = vrot.slane %v19304_v29, 2 }
 0x58c   :  { %v14984_v15 = vpack.c.bf16 %v4191_v50, %v4190_v23  ;;  %10103 = vrot.lane.b32.xlu2 %v19300_v0, %s10578_s28  ;;  %10053 = vrot.lane.b32.xlu1 %v10052_v55, %s10577_s22  ;;  %v2890_v0 = vrot.slane %v19285_v33, 2  ;;  %v9839_v55 = vpop.permute.xlu0 %9838  ;;  %v3808_v47 = vsel %vm3804_vm12, %v18398_v27, %v18397_v49  ;;  %v19306_v56 = vrot.slane %v19287_v10, 2 }
 0x58d   :  { %10048 = vrot.lane.b32.xlu0 %v19303_v53, %s10579_s13  ;;  %v9841_v28 = vunpack.i.h.bf16 %v9839_v55  ;;  %v9840_v51 = vunpack.i.l.bf16 %v9839_v55 }
 0x58e   :  { %5275 = vmatmul.bf16.vlgmr.msrb.gmra.mxu0 %v14984_v15  ;;  %v14999_v23 = vpop.permute.xlu2 %9938  ;;  %v15001_v30 = vpop.permute.xlu1 %9843  ;;  %v2895_v16 = vsel %vm445_vm6, %v2890_v0, %v19305_v20  ;;  %v2891_v53 = vsel %vm445_vm6, %v19306_v56, %v2890_v0 }
 0x58f   :  { %v18392_v37 = vunpack.i.h.bf16 %v15001_v30  ;;  %v18393_v4 = vunpack.i.l.bf16 %v15001_v30  ;;  %v3578_v34 = vsel %vm3577_vm13, %v9830_v39, %v9840_v51  ;;  %v3579_v3 = vsel %vm3577_vm13, %v9831_v11, %v9841_v28  ;;  %v19311_v11 = vld [vmem:[#allocation128_spill] sm:$0xff]  ;;  %v19312_v28 = vld [vmem:[#allocation127_spill] sm:$0xff] }
 0x590   :  { %v4222_v20 = vsel %vm3804_vm12, %v3578_v34, %v9815_v12  ;;  %v10062_v26 = vpack.i.bf16 %v2895_v16, %v2891_v53  ;;  %v19310_v39 = vpack.i.bf16 %v14180_v59, %v13574_v6  ;;  %v19313_v0 = vpack.i.bf16 %v19311_v11, %v19312_v28 }
 0x591   :  { %v3807_v50 = vsel %vm3804_vm12, %v18393_v4, %v18392_v37  ;;  %v19308_v37 = vunpack.i.l.bf16 %v14698_v13  ;;  %v3023_v12 = vrot.slane %v19285_v33, 4  ;;  %v19315_v34 = vunpack.i.h.bf16 %v14911_v45 }
 0x592   :  { %v15024_v55 = vpack.c.bf16 %v3808_v47, %v3807_v50  ;;  %v19314_v47 = vrot.slane %v19304_v29, 4  ;;  %v19317_v11 = vunpack.i.h.bf16 %v14698_v13  ;;  %v9358_v13 = vld [vmem:[%s17965_s3 + $0x164] sm:$0xf] }
 0x593   :  { %v4223_v4 = vsel %vm3804_vm12, %v3579_v3, %v19308_v37  ;;  %v18396_v37 = vunpack.i.h.bf16 %v14768_v60 }
 0x594   :  { %19307 = vst [vmem:[#allocation102_spill] sm:$0xff] %v15024_v55  ;;  %v15030_v57 = vpack.c.bf16 %v4223_v4, %v4222_v20  ;;  %10118 = vrot.lane.b32.xlu2 %v19310_v39, %s10577_s22  ;;  %10068 = vrot.lane.b32.xlu1 %v19313_v0, %s10579_s13  ;;  %v18395_v4 = vunpack.i.l.bf16 %v14768_v60  ;;  %v9854_v59 = vpop.permute.xlu0 %9853  ;;  %v19316_v20 = vrot.slane %v19287_v10, 4  ;;  %v19318_v0 = vld [vmem:[#allocation85_spill] sm:$0xff] }
 0x595   :  { %10063 = vrot.lane.b32.xlu0 %v10062_v26, %s10576_s15  ;;  %5458 = vmatmul.bf16.gmra.mxu2 %v15024_v55  ;;  %v3028_v26 = vsel %vm2954_vm9, %v3023_v12, %v19314_v47  ;;  %v9856_v56 = vunpack.i.h.bf16 %v9854_v59  ;;  %v9855_v53 = vunpack.i.l.bf16 %v9854_v59  ;;  %v4255_v28 = vsel %vm4061_vm14, %v19317_v11, %v18396_v37  ;;  %v9342_v59 = vld [vmem:[%s17965_s3 + $0xe4] sm:$0xf] }
 0x596   :  { %19309 = vst [vmem:[#allocation91_spill] sm:$0xff] %v15030_v57  ;;  %5364 = vmatmul.bf16.vlgmr.msrb.gmra.mxu1 %v15030_v57  ;;  %v15046_v51 = vpop.permute.xlu2 %9953  ;;  %v9859_v6 = vpop.permute.xlu1 %9858  ;;  %v4254_v3 = vsel %vm4061_vm14, %v19315_v34, %v18395_v4  ;;  %v3024_v39 = vsel %vm2954_vm9, %v19316_v20, %v3023_v12  ;;  %v19320_v45 = vunpack.i.l.bf16 %v19318_v0  ;;  %v8552_v12 = vld [vmem:[%s17965_s3 + $0xe8] sm:$0xf0]  ;;  %v19326_v37 = vld [vmem:[#allocation134_spill] sm:$0xff] }
 0x597   :  { %v9861_v16 = vunpack.i.h.bf16 %v9859_v6  ;;  %v9860_v50 = vunpack.i.l.bf16 %v9859_v6  ;;  %v19319_v6 = vunpack.i.h.bf16 %v19318_v0  ;;  %v10077_v4 = vpack.i.bf16 %v3028_v26, %v3024_v39  ;;  %v8616_v26 = vld [vmem:[%s17965_s3 + $0x168] sm:$0xf0]  ;;  %v19323_v0 = vld [vmem:[#allocation154_spill] sm:$0xff] }
 0x598   :  { %v3353_v34 = vsel %vm3350_vm11, %v19320_v45, %v9855_v53  ;;  %v15079_v20 = vpack.c.bf16 %v4255_v28, %v4254_v3  ;;  %v8555_v53 = vor.u32 %v9342_v59, %v8552_v12  ;;  %v19322_v39 = vld [vmem:[#allocation147_spill] sm:$0xff]  ;;  %v8619_v28 = vor.u32 %v9358_v13, %v8616_v26 }
 0x599   :  { %v3354_v47 = vsel %vm3350_vm11, %v19319_v6, %v9856_v56  ;;  %v4192_v56 = vsel %vm3577_vm13, %v3353_v34, %v9860_v50  ;;  %v19324_v6 = vpack.i.bf16 %v19322_v39, %v19323_v0  ;;  %v19325_v45 = vld [vmem:[#allocation171_spill] sm:$0xff]  ;;  %v18402_v34 = vunpack.i.l.bf16 %v14845_v22 }
 0x59a   :  { %19321 = vst [vmem:[#allocation94_spill] sm:$0xff] %v15079_v20  ;;  %v4193_v11 = vsel %vm3577_vm13, %v3354_v47, %v9861_v16  ;;  %v19327_v49 = vpack.i.bf16 %v19325_v45, %v19326_v37  ;;  %v18401_v47 = vunpack.i.h.bf16 %v14845_v22  ;;  %5542 = vmatmul.bf16.vlgmr.msrb.gmra.mxu3 %v15079_v20  ;;  %5802 = vmatpush.bf16.msra.mxu2 %v8555_v53  ;;  %v8488_v37 = vld [vmem:[%s17965_s3 + $0x68] sm:$0xf0] }
 0x59b   :  { %v15094_v3 = vpack.c.bf16 %v4193_v11, %v4192_v56  ;;  %5891 = vmatpush.bf16.msra.mxu3 %v8619_v28  ;;  %v19329_v28 = vunpack.i.l.bf16 %v15001_v30 }
 0x59c   :  { %10133 = vrot.lane.b32.xlu2 %v19324_v6, %s10578_s28  ;;  %10083 = vrot.lane.b32.xlu1 %v19327_v49, %s10577_s22  ;;  %v9326_v49 = vld [vmem:[%s17965_s3 + $0x64] sm:$0xf]  ;;  %v9869_v13 = vpop.permute.xlu0 %9868  ;;  %v3810_v0 = vsel %vm3804_vm12, %v18402_v34, %v18401_v47 }
 0x59d   :  { %10078 = vrot.lane.b32.xlu0 %v10077_v4, %s10579_s13  ;;  %v9871_v11 = vunpack.i.h.bf16 %v9869_v13  ;;  %v9870_v26 = vunpack.i.l.bf16 %v9869_v13  ;;  %v8491_v39 = vor.u32 %v9326_v49, %v8488_v37  ;;  %v19330_v37 = vunpack.i.l.bf16 %v14813_v5 }
 0x59e   :  { %5280 = vmatmul.bf16.gmra.mxu0 %v15094_v3  ;;  %v15101_v59 = vpop.permute.xlu2 %9968  ;;  %v15103_v12 = vpop.permute.xlu1 %9873 }
 0x59f   :  { %v18399_v4 = vunpack.i.h.bf16 %v15103_v12  ;;  %v9875_v56 = vunpack.i.l.bf16 %v15103_v12  ;;  %v3580_v6 = vsel %vm3577_vm13, %v9860_v50, %v9870_v26  ;;  %v3581_v45 = vsel %vm3577_vm13, %v9861_v16, %v9871_v11  ;;  %5713 = vmatpush.bf16.msra.mxu1 %v8491_v39  ;;  %v19333_v50 = vld [vmem:[#allocation155_spill] sm:$0xff]  ;;  %v19334_v26 = vld [vmem:[#allocation136_spill] sm:$0xff]  ;;  %v19337_v39 = vld [vmem:[#allocation177_spill] sm:$0xff] }
 0x5a0   :  { %v4224_v49 = vsel %vm3804_vm12, %v3580_v6, %v19329_v28  ;;  %v4225_v13 = vsel %vm3804_vm12, %v3581_v45, %v19330_v37  ;;  %v19335_v16 = vpack.i.bf16 %v19333_v50, %v19334_v26  ;;  %v18405_v6 = vunpack.i.h.bf16 %v14829_v18 }
 0x5a1   :  { %v3809_v53 = vsel %vm3804_vm12, %v9875_v56, %v18399_v4  ;;  %v19331_v4 = vld [vmem:[#allocation75_spill] sm:$0xff]  ;;  %v15139_v11 = vpack.c.bf16 %v4225_v13, %v4224_v49  ;;  %v18403_v45 = vunpack.i.l.bf16 %v14829_v18  ;;  %v19340_v50 = vunpack.i.h.bf16 %v15001_v30 }
 0x5a2   :  { %v15123_v27 = vpack.c.bf16 %v3810_v0, %v3809_v53  ;;  %v19332_v55 = vpack.i.bf16 %v14364_v38, %v19331_v4  ;;  %v19338_v53 = vld [vmem:[#allocation173_spill] sm:$0xff] }
 0x5a3   :  { %19336 = vst [vmem:[#allocation70_spill] sm:$0xff] %v15139_v11  ;;  %v19339_v0 = vpack.i.bf16 %v19337_v39, %v19338_v53  ;;  %v4256_v26 = vsel %vm4061_vm14, %v19340_v50, %v18403_v45  ;;  %v19346_v45 = vld [vmem:[#allocation42_spill] sm:$0xff] }
 0x5a4   :  { %19328 = vst [vmem:[#allocation72_spill] sm:$0xff] %v15123_v27  ;;  %10148 = vrot.lane.b32.xlu2 %v19332_v55, %s10577_s22  ;;  %10098 = vrot.lane.b32.xlu1 %v19335_v16, %s10579_s13  ;;  %v9884_v4 = vpop.permute.xlu0 %9883  ;;  %v19341_v16 = vld [vmem:[#allocation93_spill] sm:$0xff] }
 0x5a5   :  { %10093 = vrot.lane.b32.xlu0 %v19339_v0, %s10576_s15  ;;  %5463 = vmatmul.bf16.gmra.mxu2 %v15123_v27  ;;  %v9886_v37 = vunpack.i.h.bf16 %v9884_v4  ;;  %v9885_v13 = vunpack.i.l.bf16 %v9884_v4  ;;  %v19342_v39 = vunpack.i.h.bf16 %v19341_v16  ;;  %v19343_v0 = vunpack.i.l.bf16 %v19341_v16  ;;  %v19347_v27 = vld [vmem:[#allocation152_spill] sm:$0xff] }
 0x5a6   :  { %5369 = vmatmul.bf16.gmra.mxu1 %v15139_v11  ;;  %v15149_v38 = vpop.permute.xlu2 %9983  ;;  %v9889_v55 = vpop.permute.xlu1 %9888  ;;  %v19349_v16 = vld [vmem:[#allocation180_spill] sm:$0xff]  ;;  %v19356_v11 = vunpack.i.l.bf16 %v14845_v22 }
 0x5a7   :  { %v9891_v28 = vunpack.i.h.bf16 %v9889_v55  ;;  %v9890_v49 = vunpack.i.l.bf16 %v9889_v55  ;;  %v3356_v53 = vsel %vm3350_vm11, %v19342_v39, %v9886_v37  ;;  %v3355_v47 = vsel %vm3350_vm11, %v19343_v0, %v9885_v13  ;;  %v19350_v13 = vld [vmem:[#allocation159_spill] sm:$0xff] }
 0x5a8   :  { %v19344_v55 = vunpack.i.h.bf16 %v14813_v5  ;;  %v19348_v37 = vpack.i.bf16 %v19346_v45, %v19347_v27  ;;  %v19351_v39 = vpack.i.bf16 %v19349_v16, %v19350_v13  ;;  %v18409_v5 = vunpack.i.h.bf16 %v14909_v21  ;;  %v15191_v45 = vpop.f32.mrf.mxu2 }
 0x5a9   :  { %v4194_v30 = vsel %vm3577_vm13, %v3355_v47, %v9890_v49  ;;  %v4195_v50 = vsel %vm3577_vm13, %v3356_v53, %v9891_v28  ;;  %v19352_v47 = vld [vmem:[#allocation179_spill] sm:$0xff] }
 0x5aa   :  { %v4257_v4 = vsel %vm4061_vm14, %v19344_v55, %v18405_v6  ;;  %v15179_v0 = vpack.c.bf16 %v4195_v50, %v4194_v30  ;;  %v19353_v55 = vld [vmem:[#allocation174_spill] sm:$0xff] }
 0x5ab   :  { %v15167_v34 = vpack.c.bf16 %v4257_v4, %v4256_v26  ;;  %v18410_v26 = vunpack.i.l.bf16 %v14909_v21  ;;  %v19354_v53 = vpack.i.bf16 %v19352_v47, %v19353_v55 }
 0x5ac   :  { %10163 = vrot.lane.b32.xlu2 %v19348_v37, %s10578_s28  ;;  %10113 = vrot.lane.b32.xlu1 %v19351_v39, %s10577_s22  ;;  %v9899_v4 = vpop.permute.xlu0 %9898 }
 0x5ad   :  { %19345 = vst [vmem:[#allocation107_spill] sm:$0xff] %v15167_v34  ;;  %10108 = vrot.lane.b32.xlu0 %v19354_v53, %s10579_s13  ;;  %5547 = vmatmul.bf16.gmra.mxu3 %v15167_v34  ;;  %v9901_v37 = vunpack.i.h.bf16 %v9899_v4  ;;  %v9900_v16 = vunpack.i.l.bf16 %v9899_v4  ;;  %v3812_v47 = vsel %vm3804_vm12, %v18410_v26, %v18409_v5  ;;  %v8846_v4 = vld [vmem:[%s17965_s3 + $0x330] sm:$0xf] }
 0x5ae   :  { %5285 = vmatmul.bf16.gmra.mxu0 %v15179_v0  ;;  %v15189_v27 = vpop.permute.xlu1 %9903  ;;  %v15195_v13 = vpop.permute.xlu2 %9998 }
 0x5af   :  { %v18406_v30 = vunpack.i.h.bf16 %v15189_v27  ;;  %v18407_v50 = vunpack.i.l.bf16 %v15189_v27  ;;  %v3582_v55 = vsel %vm3577_vm13, %v9890_v49, %v9900_v16  ;;  %v3583_v53 = vsel %vm3577_vm13, %v9891_v28, %v9901_v37  ;;  %v19358_v49 = vld [vmem:[#allocation161_spill] sm:$0xff]  ;;  %v19359_v37 = vld [vmem:[#allocation160_spill] sm:$0xff] }
 0x5b0   :  { %v4227_v5 = vsel %vm3804_vm12, %v3583_v53, %v19356_v11  ;;  %v19357_v28 = vpack.i.bf16 %v14465_v44, %v14451_v41  ;;  %v19360_v16 = vpack.i.bf16 %v19358_v49, %v19359_v37  ;;  %v15239_v41 = vpop.f32.mrf.mxu3  ;;  %v19365_v49 = vunpack.i.h.bf16 %v15103_v12 }
 0x5b1   :  { %v3811_v39 = vsel %vm3804_vm12, %v18407_v50, %v18406_v30  ;;  %v9417_v30 = vld [vmem:[%s17965_s3 + $0x334] sm:$0xf0]  ;;  %v4226_v50 = vsel %vm3804_vm12, %v3582_v55, %v9875_v56  ;;  %v19363_v56 = vld [vmem:[#allocation183_spill] sm:$0xff]  ;;  %v19371_v12 = vunpack.i.h.bf16 %v14845_v22 }
 0x5b2   :  { %v15209_v6 = vpack.c.bf16 %v3812_v47, %v3811_v39  ;;  %v8847_v26 = vor.u32 %v9417_v30, %v8846_v4  ;;  %v15229_v39 = vpack.c.bf16 %v4227_v5, %v4226_v50  ;;  %v19362_v47 = vld [vmem:[#allocation201_spill] sm:$0xff]  ;;  %v18413_v30 = vunpack.i.l.bf16 %v14862_v9 }
 0x5b3   :  { %v19364_v55 = vpack.i.bf16 %v19362_v47, %v19363_v56  ;;  %v19366_v47 = vld [vmem:[#allocation20_spill] sm:$0xff] }
 0x5b4   :  { %19355 = vst [vmem:[#allocation106_spill] sm:$0xff] %v15209_v6  ;;  %10178 = vrot.lane.b32.xlu2 %v19357_v28, %s10577_s22  ;;  %10128 = vrot.lane.b32.xlu1 %v19360_v16, %s10579_s13  ;;  %v9914_v53 = vpop.permute.xlu0 %9913  ;;  %v4258_v37 = vsel %vm4061_vm14, %v19365_v49, %v18413_v30  ;;  %v5158_v16 = vpop.f32.mrf.mxu2  ;;  %v19367_v56 = vunpack.i.h.bf16 %v19366_v47  ;;  %v9340_v30 = vld [vmem:[%s17965_s3 + $0xd4] sm:$0xf] }
 0x5b5   :  { %19361 = vst [vmem:[#allocation28_spill] sm:$0xff] %v15229_v39  ;;  %10123 = vrot.lane.b32.xlu0 %v19364_v55, %s10576_s15  ;;  %5468 = vmatmul.bf16.gmra.mxu2 %v15209_v6  ;;  %v9916_v4 = vunpack.i.h.bf16 %v9914_v53  ;;  %v9915_v28 = vunpack.i.l.bf16 %v9914_v53 }
 0x5b6   :  { %5374 = vmatmul.bf16.gmra.mxu1 %v15229_v39  ;;  %v9919_v44 = vpop.permute.xlu1 %9918  ;;  %5627 = vmatpush.bf16.msra.mxu0 %v8847_v26  ;;  %v19368_v26 = vunpack.i.l.bf16 %v19366_v47  ;;  %v15252_v6 = vpop.permute.xlu2 %10013  ;;  %v19370_v39 = vunpack.i.h.bf16 %v14862_v9 }
 0x5b7   :  { %v9921_v5 = vunpack.i.h.bf16 %v9919_v44  ;;  %v9920_v50 = vunpack.i.l.bf16 %v9919_v44  ;;  %v3358_v55 = vsel %vm3350_vm11, %v19367_v56, %v9916_v4  ;;  %v19369_v44 = vld [vmem:[#allocation27_spill] sm:$0xff]  ;;  %v8544_v4 = vld [vmem:[%s17965_s3 + $0xd8] sm:$0xf0] }
 0x5b8   :  { %v3357_v11 = vsel %vm3350_vm11, %v19368_v26, %v9915_v28  ;;  %v10192_v53 = vpack.i.bf16 %v13918_v31, %v19369_v44  ;;  %v4259_v49 = vsel %vm4061_vm14, %v19371_v12, %v19370_v39  ;;  %v9356_v28 = vld [vmem:[%s17965_s3 + $0x154] sm:$0xf]  ;;  %v8547_v56 = vor.u32 %v9340_v30, %v8544_v4  ;;  %v8608_v39 = vld [vmem:[%s17965_s3 + $0x158] sm:$0xf0]  ;;  %v19373_v26 = vld [vmem:[#allocation203_spill] sm:$0xff] }
 0x5b9   :  { %v15270_v47 = vpack.c.bf16 %v4259_v49, %v4258_v37  ;;  %v4196_v31 = vsel %vm3577_vm13, %v3357_v11, %v9920_v50  ;;  %v4197_v22 = vsel %vm3577_vm13, %v3358_v55, %v9921_v5  ;;  %v19374_v44 = vld [vmem:[#allocation162_spill] sm:$0xff]  ;;  %v8611_v37 = vor.u32 %v9356_v28, %v8608_v39  ;;  %v19377_v55 = vld [vmem:[#allocation188_spill] sm:$0xff] }
 0x5ba   :  { %v19375_v12 = vpack.i.bf16 %v19373_v26, %v19374_v44  ;;  %v15282_v34 = vpack.c.bf16 %v4197_v22, %v4196_v31  ;;  %v18419_v49 = vunpack.i.h.bf16 %v14999_v23  ;;  %v18420_v11 = vunpack.i.l.bf16 %v14999_v23  ;;  %v19376_v30 = vld [vmem:[#allocation202_spill] sm:$0xff]  ;;  %5803 = vmatpush.bf16.msra.mxu2 %v8547_v56  ;;  %v9324_v28 = vld [vmem:[%s17965_s3 + $0x54] sm:$0xf]  ;;  %v8480_v31 = vld [vmem:[%s17965_s3 + $0x58] sm:$0xf0] }
 0x5bb   :  { %19372 = vst [vmem:[#allocation92_spill] sm:$0xff] %v15270_v47  ;;  %v19378_v4 = vpack.i.bf16 %v19376_v30, %v19377_v55  ;;  %5892 = vmatpush.bf16.msra.mxu3 %v8611_v37  ;;  %v8483_v56 = vor.u32 %v9324_v28, %v8480_v31  ;;  %v19380_v28 = vunpack.i.l.bf16 %v15189_v27 }
 0x5bc   :  { %10193 = vrot.lane.b32.xlu2 %v10192_v53, %s10578_s28  ;;  %10143 = vrot.lane.b32.xlu1 %v19375_v12, %s10577_s22  ;;  %v5159_v53 = vadd.f32 %v5158_v16, %v13179_v25  ;;  %v9929_v22 = vpop.permute.xlu0 %9928  ;;  %v5247_v12 = vpop.f32.mrf.mxu3 }
 0x5bd   :  { %10138 = vrot.lane.b32.xlu0 %v19378_v4, %s10579_s13  ;;  %5552 = vmatmul.bf16.gmra.mxu3 %v15270_v47  ;;  %v9931_v16 = vunpack.i.h.bf16 %v9929_v22  ;;  %v9930_v30 = vunpack.i.l.bf16 %v9929_v22  ;;  %v3814_v47 = vsel %vm3804_vm12, %v18420_v11, %v18419_v49 }
 0x5be   :  { %5290 = vmatmul.bf16.gmra.mxu0 %v15282_v34  ;;  %v15293_v26 = vpop.permute.xlu1 %9933  ;;  %v15303_v55 = vadd.f32 %v5247_v12, %v5159_v53  ;;  %5714 = vmatpush.bf16.msra.mxu1 %v8483_v56  ;;  %v15319_v53 = vpop.f32.mrf.mxu2  ;;  %v19381_v12 = vunpack.i.l.bf16 %v14909_v21  ;;  %v18422_v56 = vunpack.i.h.bf16 %v14951_v17 }
 0x5bf   :  { %v18417_v39 = vunpack.i.h.bf16 %v15293_v26  ;;  %v18418_v44 = vunpack.i.l.bf16 %v15293_v26  ;;  %v3584_v57 = vsel %vm3577_vm13, %v9920_v50, %v9930_v30  ;;  %v3585_v37 = vsel %vm3577_vm13, %v9921_v5, %v9931_v16  ;;  %v19383_v5 = vld [vmem:[#allocation9_spill] sm:$0xff] }
 0x5c0   :  { %v4228_v31 = vsel %vm3804_vm12, %v3584_v57, %v19380_v28  ;;  %v19382_v50 = vpack.i.bf16 %v14470_v24, %v14061_v54  ;;  %v19387_v57 = vpack.i.bf16 %v14383_v40, %v14231_v52  ;;  %v19388_v40 = vunpack.i.h.bf16 %v15189_v27 }
 0x5c1   :  { %v3813_v4 = vsel %vm3804_vm12, %v18418_v44, %v18417_v39  ;;  %v4229_v39 = vsel %vm3804_vm12, %v3585_v37, %v19381_v12  ;;  %v15327_v44 = vpop.permute.xlu2 %10028 }
 0x5c2   :  { %v15317_v22 = vpack.c.bf16 %v3814_v47, %v3813_v4  ;;  %v19384_v47 = vld [vmem:[#allocation163_spill] sm:$0xff]  ;;  %v15337_v30 = vpack.c.bf16 %v4229_v39, %v4228_v31  ;;  %v18421_v4 = vunpack.i.l.bf16 %v14951_v17 }
 0x5c3   :  { %v19385_v16 = vpack.i.bf16 %v19383_v5, %v19384_v47 }
 0x5c4   :  { %19379 = vst [vmem:[#allocation83_spill] sm:$0xff] %v15317_v22  ;;  %10208 = vrot.lane.b32.xlu2 %v19382_v50, %s10577_s22  ;;  %v15347_v12 = vpop.f32.mrf.mxu3  ;;  %v4260_v52 = vsel %vm4061_vm14, %v19388_v40, %v18421_v4  ;;  %v19389_v50 = vld [vmem:[#allocation24_spill] sm:$0xff]  ;;  %v19394_v4 = vld [vmem:[#allocation182_spill] sm:$0xff] }
 0x5c5   :  { %10158 = vrot.lane.b32.xlu1 %v19385_v16, %s10579_s13  ;;  %19386 = vst [vmem:[#allocation109_spill] sm:$0xff] %v15337_v30  ;;  %10153 = vrot.lane.b32.xlu0 %v19387_v57, %s10576_s15  ;;  %v19390_v5 = vunpack.i.h.bf16 %v19389_v50  ;;  %v19391_v16 = vunpack.i.l.bf16 %v19389_v50  ;;  %v18425_v50 = vunpack.i.h.bf16 %v15101_v59 }
 0x5c6   :  { %5473 = vmatmul.bf16.gmra.mxu2 %v15317_v22  ;;  %5379 = vmatmul.bf16.gmra.mxu1 %v15337_v30  ;;  %v9949_v54 = vpop.permute.xlu1 %9948  ;;  %v5163_v49 = vpop.f32.mrf.mxu2 }
 0x5c7   :  { %v9944_v24 = vpop.permute.xlu0 %9943  ;;  %v9951_v37 = vunpack.i.h.bf16 %v9949_v54  ;;  %v9950_v28 = vunpack.i.l.bf16 %v9949_v54  ;;  %v19392_v54 = vunpack.i.h.bf16 %v14909_v21 }
 0x5c8   :  { %v9946_v39 = vunpack.i.h.bf16 %v9944_v24  ;;  %v9945_v31 = vunpack.i.l.bf16 %v9944_v24 }
 0x5c9   :  { %v4261_v24 = vsel %vm4061_vm14, %v19392_v54, %v18422_v56  ;;  %v15387_v54 = vpop.permute.xlu2 %10043 }
 0x5ca   :  { %v3360_v47 = vsel %vm3350_vm11, %v19390_v5, %v9946_v39  ;;  %v3359_v57 = vsel %vm3350_vm11, %v19391_v16, %v9945_v31  ;;  %v15365_v11 = vpack.c.bf16 %v4261_v24, %v4260_v52  ;;  %v19395_v39 = vld [vmem:[#allocation181_spill] sm:$0xff]  ;;  %v19397_v31 = vpack.i.bf16 %v14372_v48, %v14369_v61  ;;  %v19398_v16 = vld [vmem:[#allocation47_spill] sm:$0xff] }
 0x5cb   :  { %v4198_v27 = vsel %vm3577_vm13, %v3359_v57, %v9950_v28  ;;  %v4199_v40 = vsel %vm3577_vm13, %v3360_v47, %v9951_v37  ;;  %v19396_v5 = vpack.i.bf16 %v19394_v4, %v19395_v39  ;;  %v18428_v52 = vunpack.i.l.bf16 %v15101_v59  ;;  %v19399_v57 = vld [vmem:[#allocation204_spill] sm:$0xff] }
 0x5cc   :  { %19393 = vst [vmem:[#allocation108_spill] sm:$0xff] %v15365_v11  ;;  %v15377_v21 = vpack.c.bf16 %v4199_v40, %v4198_v27  ;;  %v19400_v47 = vpack.i.bf16 %v19398_v16, %v19399_v57  ;;  %v5164_v4 = vadd.f32 %v5163_v49, %v13179_v25  ;;  %v5252_v40 = vpop.f32.mrf.mxu3 }
 0x5cd   :  { %10223 = vrot.lane.b32.xlu2 %v19396_v5, %s10578_s28  ;;  %10173 = vrot.lane.b32.xlu1 %v19397_v31, %s10577_s22  ;;  %v3816_v16 = vsel %vm3804_vm12, %v18428_v52, %v18425_v50  ;;  %v19405_v50 = vld [vmem:[#allocation187_spill] sm:$0xff]  ;;  %v19419_v52 = vpack.i.bf16 %v14486_v1, %v14070_v2  ;;  %v9322_v2 = vld [vmem:[%s17965_s3 + $0x44] sm:$0xf] }
 0x5ce   :  { %10168 = vrot.lane.b32.xlu0 %v19400_v47, %s10579_s13  ;;  %5557 = vmatmul.bf16.gmra.mxu3 %v15365_v11  ;;  %v15390_v61 = vpop.permute.xlu1 %9963  ;;  %v15394_v31 = vadd.f32 %v5252_v40, %v5164_v4  ;;  %v19402_v4 = vunpack.i.l.bf16 %v15293_v26  ;;  %v19403_v40 = vunpack.i.l.bf16 %v14999_v23  ;;  %v8472_v1 = vld [vmem:[%s17965_s3 + $0x48] sm:$0xf0] }
 0x5cf   :  { %5295 = vmatmul.bf16.gmra.mxu0 %v15377_v21  ;;  %v9959_v48 = vpop.permute.xlu0 %9958  ;;  %v18423_v24 = vunpack.i.h.bf16 %v15390_v61  ;;  %v18424_v27 = vunpack.i.l.bf16 %v15390_v61 }
 0x5d0   :  { %v9961_v39 = vunpack.i.h.bf16 %v9959_v48  ;;  %v9960_v5 = vunpack.i.l.bf16 %v9959_v48 }
 0x5d1   :  { %v3815_v49 = vsel %vm3804_vm12, %v18424_v27, %v18423_v24  ;;  %v19404_v27 = vpack.i.bf16 %v14704_v35, %v14257_v32 }
 0x5d2   :  { %v3586_v57 = vsel %vm3577_vm13, %v9950_v28, %v9960_v5  ;;  %v3587_v47 = vsel %vm3577_vm13, %v9951_v37, %v9961_v39  ;;  %v15408_v56 = vpack.c.bf16 %v3816_v16, %v3815_v49  ;;  %v19406_v28 = vld [vmem:[#allocation184_spill] sm:$0xff]  ;;  %v19409_v39 = vpack.i.bf16 %v14473_v62, %v14393_v58  ;;  %v15439_v62 = vpop.permute.xlu2 %10058 }
 0x5d3   :  { %v4230_v48 = vsel %vm3804_vm12, %v3586_v57, %v19402_v4  ;;  %v4231_v24 = vsel %vm3804_vm12, %v3587_v47, %v19403_v40  ;;  %v19407_v5 = vpack.i.bf16 %v19405_v50, %v19406_v28  ;;  %v18427_v49 = vunpack.i.h.bf16 %v15046_v51  ;;  %v15441_v4 = vpop.f32.mrf.mxu2 }
 0x5d4   :  { %19401 = vst [vmem:[#allocation139_spill] sm:$0xff] %v15408_v56  ;;  %v15424_v37 = vpack.c.bf16 %v4231_v24, %v4230_v48  ;;  %v18426_v16 = vunpack.i.l.bf16 %v15046_v51  ;;  %v19410_v47 = vunpack.i.h.bf16 %v15293_v26  ;;  %v19411_v48 = vld [vmem:[#allocation135_spill] sm:$0xff] }
 0x5d5   :  { %10238 = vrot.lane.b32.xlu2 %v19404_v27, %s10577_s22  ;;  %10188 = vrot.lane.b32.xlu1 %v19407_v5, %s10579_s13  ;;  %v19412_v40 = vunpack.i.h.bf16 %v19411_v48  ;;  %v19413_v5 = vunpack.i.l.bf16 %v19411_v48 }
 0x5d6   :  { %19408 = vst [vmem:[#allocation111_spill] sm:$0xff] %v15424_v37  ;;  %10183 = vrot.lane.b32.xlu0 %v19409_v39, %s10576_s15  ;;  %5478 = vmatmul.bf16.gmra.mxu2 %v15408_v56  ;;  %v9979_v32 = vpop.permute.xlu1 %9978  ;;  %v4262_v58 = vsel %vm4061_vm14, %v19410_v47, %v18426_v16  ;;  %v8536_v47 = vld [vmem:[%s17965_s3 + $0xc8] sm:$0xf0]  ;;  %v19417_v16 = vld [vmem:[#allocation190_spill] sm:$0xff] }
 0x5d7   :  { %5384 = vmatmul.bf16.gmra.mxu1 %v15424_v37  ;;  %v9974_v35 = vpop.permute.xlu0 %9973  ;;  %v9981_v27 = vunpack.i.h.bf16 %v9979_v32  ;;  %v9980_v50 = vunpack.i.l.bf16 %v9979_v32  ;;  %v19414_v32 = vunpack.i.h.bf16 %v14999_v23  ;;  %v19464_v37 = vrot.slane %v14376_v42, 4 }
 0x5d8   :  { %v9976_v57 = vunpack.i.h.bf16 %v9974_v35  ;;  %v9975_v24 = vunpack.i.l.bf16 %v9974_v35  ;;  %v9338_v35 = vld [vmem:[%s17965_s3 + $0xc4] sm:$0xf] }
 0x5d9   :  { %v4263_v26 = vsel %vm4061_vm14, %v19414_v32, %v18427_v49  ;;  %v19416_v32 = vld [vmem:[#allocation50_spill] sm:$0xff] }
 0x5da   :  { %v3362_v28 = vsel %vm3350_vm11, %v19412_v40, %v9976_v57  ;;  %v3361_v39 = vsel %vm3350_vm11, %v19413_v5, %v9975_v24  ;;  %v9354_v57 = vld [vmem:[%s17965_s3 + $0x144] sm:$0xf]  ;;  %v15463_v48 = vpack.c.bf16 %v4263_v26, %v4262_v58  ;;  %v8539_v40 = vor.u32 %v9338_v35, %v8536_v47  ;;  %v8600_v5 = vld [vmem:[%s17965_s3 + $0x148] sm:$0xf0] }
 0x5db   :  { %v4200_v24 = vsel %vm3577_vm13, %v3361_v39, %v9980_v50  ;;  %v4201_v23 = vsel %vm3577_vm13, %v3362_v28, %v9981_v27  ;;  %v19418_v49 = vpack.i.bf16 %v19416_v32, %v19417_v16  ;;  %v8603_v39 = vor.u32 %v9354_v57, %v8600_v5 }
 0x5dc   :  { %19415 = vst [vmem:[#allocation82_spill] sm:$0xff] %v15463_v48  ;;  %v15478_v58 = vpack.c.bf16 %v4201_v23, %v4200_v24  ;;  %v18429_v28 = vunpack.i.h.bf16 %v15195_v13  ;;  %v18431_v26 = vunpack.i.l.bf16 %v15195_v13  ;;  %v19420_v35 = vpack.i.bf16 %v14483_v63, %v14412_v19  ;;  %5804 = vmatpush.bf16.msra.mxu2 %v8539_v40 }
 0x5dd   :  { %10243 = vrot.lane.b32.xlu2 %v19418_v49, %s10578_s28  ;;  %10203 = vrot.lane.b32.xlu1 %v19419_v52, %s10577_s22  ;;  %v8475_v57 = vor.u32 %v9322_v2, %v8472_v1  ;;  %v15518_v2 = vpop.permute.xlu2 %10073  ;;  %v19422_v1 = vunpack.i.l.bf16 %v15390_v61 }
 0x5de   :  { %10198 = vrot.lane.b32.xlu0 %v19420_v35, %s10579_s13  ;;  %5562 = vmatmul.bf16.gmra.mxu3 %v15463_v48  ;;  %v15488_v49 = vpop.permute.xlu1 %9993  ;;  %v3818_v23 = vsel %vm3804_vm12, %v18431_v26, %v18429_v28  ;;  %v9415_v35 = vld [vmem:[%s17965_s3 + $0x324] sm:$0xf0]  ;;  %v19465_v48 = vunpack.i.h.bf16 %v15252_v6 }
 0x5df   :  { %5300 = vmatmul.bf16.gmra.mxu0 %v15478_v58  ;;  %v9989_v52 = vpop.permute.xlu0 %9988  ;;  %v18430_v16 = vunpack.i.h.bf16 %v15488_v49  ;;  %v18432_v19 = vunpack.i.l.bf16 %v15488_v49  ;;  %5893 = vmatpush.bf16.msra.mxu3 %v8603_v39  ;;  %v8838_v39 = vld [vmem:[%s17965_s3 + $0x320] sm:$0xf] }
 0x5e0   :  { %v9991_v63 = vunpack.i.h.bf16 %v9989_v52  ;;  %v9990_v47 = vunpack.i.l.bf16 %v9989_v52  ;;  %5715 = vmatpush.bf16.msra.mxu1 %v8475_v57  ;;  %v19424_v57 = vpack.i.bf16 %v14716_v43, %v14711_v8 }
 0x5e1   :  { %v3817_v24 = vsel %vm3804_vm12, %v18432_v19, %v18430_v16 }
 0x5e2   :  { %v3588_v40 = vsel %vm3577_vm13, %v9980_v50, %v9990_v47  ;;  %v3589_v5 = vsel %vm3577_vm13, %v9981_v27, %v9991_v63  ;;  %v15510_v32 = vpack.c.bf16 %v3818_v23, %v3817_v24  ;;  %v19423_v50 = vunpack.i.l.bf16 %v15101_v59  ;;  %v15526_v47 = vpop.f32.mrf.mxu2  ;;  %v19425_v24 = vld [vmem:[#allocation192_spill] sm:$0xff]  ;;  %v19426_v23 = vld [vmem:[#allocation189_spill] sm:$0xff] }
 0x5e3   :  { %v4232_v52 = vsel %vm3804_vm12, %v3588_v40, %v19422_v1  ;;  %v8839_v63 = vor.u32 %v9415_v35, %v8838_v39  ;;  %v19427_v28 = vpack.i.bf16 %v19425_v24, %v19426_v23  ;;  %v19429_v40 = vpack.i.bf16 %v14513_v14, %v14508_v7  ;;  %v19433_v24 = vld [vmem:[#allocation43_spill] sm:$0xff]  ;;  %v19434_v23 = vld [vmem:[#allocation133_spill] sm:$0xff] }
 0x5e4   :  { %19421 = vst [vmem:[#allocation2_spill] sm:$0xff] %v15510_v32  ;;  %v4233_v27 = vsel %vm3804_vm12, %v3589_v5, %v19423_v50  ;;  %v18434_v5 = vunpack.i.h.bf16 %v15149_v38  ;;  %v18433_v39 = vunpack.i.l.bf16 %v15149_v38  ;;  %v19430_v1 = vrot.slane %v14662_v36, 6 }
 0x5e5   :  { %10268 = vrot.lane.b32.xlu2 %v19424_v57, %s10577_s22  ;;  %10218 = vrot.lane.b32.xlu1 %v19427_v28, %s10579_s13  ;;  %v15536_v16 = vpack.c.bf16 %v4233_v27, %v4232_v52  ;;  %v19431_v52 = vrot.slane %v14376_v42, 6  ;;  %v19432_v27 = vunpack.i.h.bf16 %v15390_v61  ;;  %v19436_v26 = vunpack.i.l.bf16 %v19434_v23 }
 0x5e6   :  { %10213 = vrot.lane.b32.xlu0 %v19429_v40, %s10576_s15  ;;  %5483 = vmatmul.bf16.gmra.mxu2 %v15510_v32  ;;  %v10009_v8 = vpop.permute.xlu1 %10008  ;;  %v19435_v40 = vunpack.i.h.bf16 %v19434_v23 }
 0x5e7   :  { %19428 = vst [vmem:[#allocation103_spill] sm:$0xff] %v15536_v16  ;;  %5389 = vmatmul.bf16.gmra.mxu1 %v15536_v16  ;;  %5628 = vmatpush.bf16.msra.mxu0 %v8839_v63  ;;  %v10004_v43 = vpop.permute.xlu0 %10003  ;;  %v10011_v35 = vunpack.i.h.bf16 %v10009_v8  ;;  %v10010_v28 = vunpack.i.l.bf16 %v10009_v8  ;;  %v3205_v7 = vsel %vm3087_vm8, %v19431_v52, %v19430_v1  ;;  %v4264_v57 = vsel %vm4061_vm14, %v19432_v27, %v18433_v39  ;;  %v19437_v1 = vld [vmem:[#allocation194_spill] sm:$0xff] }
 0x5e8   :  { %v10006_v14 = vunpack.i.h.bf16 %v10004_v43  ;;  %v10005_v50 = vunpack.i.l.bf16 %v10004_v43  ;;  %v10282_v63 = vpack.i.bf16 %v19433_v24, %v14288_v46  ;;  %v10232_v52 = vpack.i.bf16 %v3205_v7, %v19437_v1 }
 0x5e9   :  { %v19438_v43 = vunpack.i.h.bf16 %v15101_v59  ;;  %v18442_v7 = vunpack.i.l.bf16 %v15327_v44  ;;  %v19441_v59 = vld [vmem:[#allocation66_spill] sm:$0xff]  ;;  %v19448_v16 = vunpack.i.l.bf16 %v15488_v49 }
 0x5ea   :  { %v3364_v8 = vsel %vm3350_vm11, %v19435_v40, %v10006_v14  ;;  %v3363_v19 = vsel %vm3350_vm11, %v19436_v26, %v10005_v50  ;;  %v18441_v26 = vunpack.i.h.bf16 %v15327_v44  ;;  %v15580_v50 = vpop.permute.xlu2 %10088  ;;  %v2938_v40 = vrot.slane %v14662_v36, 2 }
 0x5eb   :  { %v4265_v61 = vsel %vm4061_vm14, %v19438_v43, %v18434_v5  ;;  %v4202_v46 = vsel %vm3577_vm13, %v3363_v19, %v10010_v28  ;;  %v4203_v24 = vsel %vm3577_vm13, %v3364_v8, %v10011_v35  ;;  %v15587_v19 = vpop.f32.mrf.mxu2  ;;  %v19446_v5 = vrot.slane %v14376_v42, 2 }
 0x5ec   :  { %v15570_v27 = vpack.c.bf16 %v4265_v61, %v4264_v57  ;;  %v15576_v14 = vpack.c.bf16 %v4203_v24, %v4202_v46  ;;  %v19442_v57 = vld [vmem:[#allocation22_spill] sm:$0xff]  ;;  %v19444_v46 = vld [vmem:[#allocation17_spill] sm:$0xff] }
 0x5ed   :  { %10283 = vrot.lane.b32.xlu2 %v10282_v63, %s10578_s28  ;;  %10233 = vrot.lane.b32.xlu1 %v10232_v52, %s10577_s22  ;;  %v19443_v23 = vpack.i.bf16 %v19441_v59, %v19442_v57  ;;  %v19445_v24 = vrot.slane %v19444_v46, 2 }
 0x5ee   :  { %19439 = vst [vmem:[#allocation95_spill] sm:$0xff] %v15570_v27  ;;  %5567 = vmatmul.bf16.gmra.mxu3 %v15570_v27  ;;  %v15590_v63 = vpop.permute.xlu1 %10023 }
 0x5ef   :  { %19440 = vst [vmem:[#allocation123_spill] sm:$0xff] %v15576_v14  ;;  %10228 = vrot.lane.b32.xlu0 %v19443_v23, %s10579_s13  ;;  %5305 = vmatmul.bf16.gmra.mxu0 %v15576_v14  ;;  %v10019_v8 = vpop.permute.xlu0 %10018  ;;  %v18438_v1 = vunpack.i.h.bf16 %v15590_v63  ;;  %v18439_v52 = vunpack.i.l.bf16 %v15590_v63  ;;  %v2943_v59 = vsel %vm445_vm6, %v2938_v40, %v19445_v24  ;;  %v3820_v23 = vsel %vm3804_vm12, %v18442_v7, %v18441_v26  ;;  %v19450_v26 = vld [vmem:[#allocation46_spill] sm:$0xff]  ;;  %v19460_v7 = vld [vmem:[#allocation121_spill] sm:$0xff] }
 0x5f0   :  { %v10021_v43 = vunpack.i.h.bf16 %v10019_v8  ;;  %v10020_v61 = vunpack.i.l.bf16 %v10019_v8  ;;  %v2939_v24 = vsel %vm445_vm6, %v19446_v5, %v2938_v40 }
 0x5f1   :  { %v3819_v57 = vsel %vm3804_vm12, %v18439_v52, %v18438_v1  ;;  %v10247_v56 = vpack.i.bf16 %v2943_v59, %v2939_v24  ;;  %v19449_v52 = vunpack.i.l.bf16 %v15195_v13  ;;  %v3071_v59 = vrot.slane %v14662_v36, 4 }
 0x5f2   :  { %v3590_v39 = vsel %vm3577_vm13, %v10010_v28, %v10020_v61  ;;  %v3591_v8 = vsel %vm3577_vm13, %v10011_v35, %v10021_v43  ;;  %v15613_v32 = vpack.c.bf16 %v3820_v23, %v3819_v57  ;;  %v19451_v28 = vld [vmem:[#allocation32_spill] sm:$0xff]  ;;  %v19453_v35 = vld [vmem:[#allocation206_spill] sm:$0xff]  ;;  %v19454_v43 = vld [vmem:[#allocation195_spill] sm:$0xff]  ;;  %v15639_v57 = vpop.permute.xlu2 %10103 }
 0x5f3   :  { %v4234_v1 = vsel %vm3804_vm12, %v3590_v39, %v19448_v16  ;;  %v4235_v22 = vsel %vm3804_vm12, %v3591_v8, %v19449_v52  ;;  %v19452_v61 = vpack.i.bf16 %v19450_v26, %v19451_v28  ;;  %v19455_v5 = vpack.i.bf16 %v19453_v35, %v19454_v43  ;;  %v15633_v16 = vpop.f32.mrf.mxu2  ;;  %v15641_v8 = vpop.f32.mrf.mxu3 }
 0x5f4   :  { %19447 = vst [vmem:[#allocation86_spill] sm:$0xff] %v15613_v32  ;;  %v15629_v40 = vpack.c.bf16 %v4235_v22, %v4234_v1  ;;  %v18448_v52 = vunpack.i.l.bf16 %v15252_v6  ;;  %v19457_v28 = vrot.slane %v19444_v46, 4  ;;  %v19458_v35 = vunpack.i.h.bf16 %v15488_v49 }
 0x5f5   :  { %10298 = vrot.lane.b32.xlu2 %v19452_v61, %s10578_s28  ;;  %10253 = vrot.lane.b32.xlu1 %v19455_v5, %s10579_s13  ;;  %v19459_v5 = vld [vmem:[#allocation7_spill] sm:$0xff]  ;;  %v19466_v49 = vunpack.i.h.bf16 %v15195_v13  ;;  %v9336_v13 = vld [vmem:[%s17965_s3 + $0xb4] sm:$0xf] }
 0x5f6   :  { %19456 = vst [vmem:[#allocation97_spill] sm:$0xff] %v15629_v40  ;;  %5488 = vmatmul.bf16.gmra.mxu2 %v15613_v32  ;;  %v10039_v26 = vpop.permute.xlu1 %10038  ;;  %v3076_v61 = vsel %vm2954_vm9, %v3071_v59, %v19457_v28  ;;  %v4266_v43 = vsel %vm4061_vm14, %v19458_v35, %v18448_v52  ;;  %v10312_v39 = vpack.i.bf16 %v19460_v7, %v19459_v5  ;;  %v19461_v32 = vld [vmem:[#allocation156_spill] sm:$0xff] }
 0x5f7   :  { %10248 = vrot.lane.b32.xlu0 %v10247_v56, %s10576_s15  ;;  %5394 = vmatmul.bf16.gmra.mxu1 %v15629_v40  ;;  %v10034_v23 = vpop.permute.xlu0 %10033  ;;  %v10041_v22 = vunpack.i.h.bf16 %v10039_v26  ;;  %v10040_v1 = vunpack.i.l.bf16 %v10039_v26  ;;  %v19462_v40 = vunpack.i.h.bf16 %v19461_v32  ;;  %v19463_v27 = vunpack.i.l.bf16 %v19461_v32  ;;  %v19468_v32 = vld [vmem:[#allocation12_spill] sm:$0xff] }
 0x5f8   :  { %v10036_v56 = vunpack.i.h.bf16 %v10034_v23  ;;  %v10035_v24 = vunpack.i.l.bf16 %v10034_v23  ;;  %v3072_v28 = vsel %vm2954_vm9, %v19464_v37, %v3071_v59  ;;  %v4267_v35 = vsel %vm4061_vm14, %v19466_v49, %v19465_v48  ;;  %v8528_v48 = vld [vmem:[%s17965_s3 + $0xb8] sm:$0xf0] }
 0x5f9   :  { %v10257_v52 = vpack.i.bf16 %v3076_v61, %v3072_v28  ;;  %v15667_v7 = vpack.c.bf16 %v4267_v35, %v4266_v43  ;;  %v18452_v59 = vunpack.i.h.bf16 %v15439_v62  ;;  %v9352_v61 = vld [vmem:[%s17965_s3 + $0x134] sm:$0xf]  ;;  %v8592_v43 = vld [vmem:[%s17965_s3 + $0x138] sm:$0xf0]  ;;  %v5169_v49 = vadd.f32 %v15526_v47, %v13179_v25 }
 0x5fa   :  { %v3366_v26 = vsel %vm3350_vm11, %v19462_v40, %v10036_v56  ;;  %v3365_v23 = vsel %vm3350_vm11, %v19463_v27, %v10035_v24  ;;  %v19469_v27 = vld [vmem:[#allocation207_spill] sm:$0xff]  ;;  %v18453_v24 = vunpack.i.l.bf16 %v15439_v62  ;;  %v8464_v28 = vld [vmem:[%s17965_s3 + $0x38] sm:$0xf0] }
 0x5fb   :  { %19467 = vst [vmem:[#allocation87_spill] sm:$0xff] %v15667_v7  ;;  %v4204_v5 = vsel %vm3577_vm13, %v3365_v23, %v10040_v1  ;;  %v4205_v40 = vsel %vm3577_vm13, %v3366_v26, %v10041_v22  ;;  %v19470_v56 = vpack.i.bf16 %v19468_v32, %v19469_v27  ;;  %v8595_v23 = vor.u32 %v9352_v61, %v8592_v43  ;;  %v15707_v32 = vpop.f32.mrf.mxu2  ;;  %v15709_v61 = vpop.permute.xlu2 %10118 }
 0x5fc   :  { %v15676_v37 = vpack.c.bf16 %v4205_v40, %v4204_v5  ;;  %19472 = vst [vmem:[#allocation5_spill] sm:$0xff] %v15707_v32 }
 0x5fd   :  { %10313 = vrot.lane.b32.xlu2 %v10312_v39, %s10578_s28  ;;  %10263 = vrot.lane.b32.xlu1 %v19470_v56, %s10577_s22  ;;  %v8531_v39 = vor.u32 %v9336_v13, %v8528_v48  ;;  %v5257_v13 = vpop.f32.mrf.mxu3 }
 0x5fe   :  { %19471 = vst [vmem:[#allocation110_spill] sm:$0xff] %v15676_v37  ;;  %5572 = vmatmul.bf16.gmra.mxu3 %v15667_v7  ;;  %v15695_v26 = vpop.permute.xlu1 %10053  ;;  %v15711_v43 = vadd.f32 %v5257_v13, %v5169_v49  ;;  %v19475_v13 = vunpack.i.l.bf16 %v15590_v63 }
 0x5ff   :  { %10258 = vrot.lane.b32.xlu0 %v10257_v52, %s10579_s13  ;;  %5310 = vmatmul.bf16.gmra.mxu0 %v15676_v37  ;;  %v9320_v52 = vld [vmem:[%s17965_s3 + $0x34] sm:$0xf]  ;;  %v10049_v35 = vpop.permute.xlu0 %10048  ;;  %v18449_v5 = vunpack.i.h.bf16 %v15695_v26  ;;  %v18450_v40 = vunpack.i.l.bf16 %v15695_v26  ;;  %v19508_v37 = vunpack.i.l.bf16 %v15695_v26 }
 0x600   :  { %5805 = vmatpush.bf16.msra.mxu2 %v8531_v39  ;;  %v10051_v27 = vunpack.i.h.bf16 %v10049_v35  ;;  %v10050_v56 = vunpack.i.l.bf16 %v10049_v35  ;;  %5894 = vmatpush.bf16.msra.mxu3 %v8595_v23  ;;  %v8467_v48 = vor.u32 %v9320_v52, %v8464_v28  ;;  %v3822_v39 = vsel %vm3804_vm12, %v18453_v24, %v18452_v59  ;;  %v19473_v52 = vld [vmem:[#allocation26_spill] sm:$0xff] }
 0x601   :  { %v3821_v47 = vsel %vm3804_vm12, %v18450_v40, %v18449_v5  ;;  %v10327_v28 = vpack.i.bf16 %v19287_v10, %v19473_v52  ;;  %v19476_v40 = vunpack.i.l.bf16 %v15327_v44  ;;  %v19481_v10 = vld [vmem:[#allocation16_spill] sm:$0xff] }
 0x602   :  { %v3592_v35 = vsel %vm3577_vm13, %v10040_v1, %v10050_v56  ;;  %v3593_v23 = vsel %vm3577_vm13, %v10041_v22, %v10051_v27  ;;  %v15727_v49 = vpack.c.bf16 %v3822_v39, %v3821_v47  ;;  %5716 = vmatpush.bf16.msra.mxu1 %v8467_v48  ;;  %v19477_v1 = vld [vmem:[#allocation212_spill] sm:$0xff]  ;;  %v19478_v56 = vld [vmem:[#allocation210_spill] sm:$0xff]  ;;  %v19489_v39 = vld [vmem:[#allocation11_spill] sm:$0xff] }
 0x603   :  { %v4236_v5 = vsel %vm3804_vm12, %v3592_v35, %v19475_v13  ;;  %v4237_v7 = vsel %vm3804_vm12, %v3593_v23, %v19476_v40  ;;  %v19479_v22 = vpack.i.bf16 %v19477_v1, %v19478_v56  ;;  %v19482_v48 = vld [vmem:[#allocation78_spill] sm:$0xff]  ;;  %v18457_v40 = vunpack.i.l.bf16 %v15387_v54 }
 0x604   :  { %19474 = vst [vmem:[#allocation99_spill] sm:$0xff] %v15727_v49  ;;  %v15740_v27 = vpack.c.bf16 %v4237_v7, %v4236_v5  ;;  %v19483_v47 = vpack.i.bf16 %v19481_v10, %v19482_v48  ;;  %v19484_v56 = vunpack.i.h.bf16 %v15590_v63  ;;  %v19485_v10 = vld [vmem:[#allocation39_spill] sm:$0xff]  ;;  %v15770_v63 = vpop.permute.xlu2 %10133 }
 0x605   :  { %10328 = vrot.lane.b32.xlu2 %v10327_v28, %s10578_s28  ;;  %10278 = vrot.lane.b32.xlu1 %v19479_v22, %s10579_s13  ;;  %v15750_v5 = vpop.f32.mrf.mxu3  ;;  %v5454_v1 = vpop.f32.mrf.mxu2  ;;  %v19486_v48 = vunpack.i.h.bf16 %v19485_v10  ;;  %v19487_v59 = vunpack.i.l.bf16 %v19485_v10  ;;  %19492 = vst [vmem:[#allocation124_spill] sm:$0xff] %v15770_v63 }
 0x606   :  { %19480 = vst [vmem:[#allocation140_spill] sm:$0xff] %v15740_v27  ;;  %5493 = vmatmul.bf16.gmra.mxu2 %v15727_v49  ;;  %v10069_v35 = vpop.permute.xlu1 %10068  ;;  %v4268_v22 = vsel %vm4061_vm14, %v19484_v56, %v18457_v40  ;;  %v19490_v49 = vunpack.i.h.bf16 %v15387_v54 }
 0x607   :  { %10273 = vrot.lane.b32.xlu0 %v19483_v47, %s10576_s15  ;;  %5399 = vmatmul.bf16.gmra.mxu1 %v15740_v27  ;;  %v10064_v23 = vpop.permute.xlu0 %10063  ;;  %v10071_v52 = vunpack.i.h.bf16 %v10069_v35  ;;  %v10070_v28 = vunpack.i.l.bf16 %v10069_v35  ;;  %v19488_v35 = vld [vmem:[#allocation40_spill] sm:$0xff]  ;;  %v19491_v27 = vunpack.i.h.bf16 %v15327_v44 }
 0x608   :  { %v10066_v13 = vunpack.i.h.bf16 %v10064_v23  ;;  %v10065_v7 = vunpack.i.l.bf16 %v10064_v23  ;;  %v10292_v23 = vpack.i.bf16 %v19489_v39, %v19488_v35  ;;  %v19496_v39 = vld [vmem:[#allocation176_spill] sm:$0xff] }
 0x609   :  { %v4269_v30 = vsel %vm4061_vm14, %v19491_v27, %v19490_v49  ;;  %v18465_v49 = vunpack.i.h.bf16 %v15580_v50  ;;  %v19499_v27 = vld [vmem:[#allocation51_spill] sm:$0xff] }
 0x60a   :  { %v3368_v47 = vsel %vm3350_vm11, %v19486_v48, %v10066_v13  ;;  %v3367_v24 = vsel %vm3350_vm11, %v19487_v59, %v10065_v7  ;;  %v15772_v40 = vpack.c.bf16 %v4269_v30, %v4268_v22  ;;  %v19494_v48 = vld [vmem:[#allocation6_spill] sm:$0xff]  ;;  %v19495_v7 = vld [vmem:[#allocation53_spill] sm:$0xff] }
 0x60b   :  { %v5276_v56 = vpop.f32.mrf.mxu0  ;;  %v4206_v13 = vsel %vm3577_vm13, %v3367_v24, %v10070_v28  ;;  %v4207_v10 = vsel %vm3577_vm13, %v3368_v47, %v10071_v52  ;;  %v19497_v35 = vpack.i.bf16 %v19495_v7, %v19496_v39  ;;  %v19500_v24 = vld [vmem:[#allocation89_spill] sm:$0xff] }
 0x60c   :  { %19493 = vst [vmem:[#allocation170_spill] sm:$0xff] %v15772_v40  ;;  %v5277_v59 = vadd.f32 %v5276_v56, %v19494_v48  ;;  %v15782_v44 = vpack.c.bf16 %v4207_v10, %v4206_v13  ;;  %v19501_v22 = vpack.i.bf16 %v19499_v27, %v19500_v24  ;;  %v19503_v24 = vld [vmem:[#allocation13_spill] sm:$0xff] }
 0x60d   :  { %10343 = vrot.lane.b32.xlu2 %v19497_v35, %s10578_s28  ;;  %10293 = vrot.lane.b32.xlu1 %v10292_v23, %s10578_s28  ;;  %v5174_v23 = vadd.f32 %v15633_v16, %v13179_v25  ;;  %v5262_v39 = vpop.f32.mrf.mxu3  ;;  %v15798_v35 = vpop.f32.mrf.mxu2 }
 0x60e   :  { %19498 = vst [vmem:[#allocation113_spill] sm:$0xff] %v15782_v44  ;;  %5577 = vmatmul.bf16.gmra.mxu3 %v15772_v40  ;;  %v15792_v47 = vpop.permute.xlu1 %10083  ;;  %v19505_v40 = vunpack.i.l.bf16 %v15580_v50 }
 0x60f   :  { %10288 = vrot.lane.b32.xlu0 %v19501_v22, %s10579_s13  ;;  %5315 = vmatmul.bf16.gmra.mxu0 %v15782_v44  ;;  %v10079_v56 = vpop.permute.xlu0 %10078  ;;  %v18463_v13 = vunpack.i.h.bf16 %v15792_v47  ;;  %v18464_v10 = vunpack.i.l.bf16 %v15792_v47  ;;  %v15800_v27 = vadd.f32 %v5262_v39, %v5174_v23  ;;  %v19504_v22 = vld [vmem:[#allocation14_spill] sm:$0xff]  ;;  %v19506_v39 = vld [vmem:[#allocation211_spill] sm:$0xff] }
 0x610   :  { %v10081_v48 = vunpack.i.h.bf16 %v10079_v56  ;;  %v10080_v7 = vunpack.i.l.bf16 %v10079_v56  ;;  %v10307_v30 = vpack.i.bf16 %v19504_v22, %v19503_v24  ;;  %v3824_v56 = vsel %vm3804_vm12, %v19505_v40, %v18465_v49 }
 0x611   :  { %19502 = vst [vmem:[#allocation112_spill] sm:$0xff] %v15800_v27  ;;  %v3823_v16 = vsel %vm3804_vm12, %v18464_v10, %v18463_v13  ;;  %v10357_v20 = vpack.i.bf16 %v14376_v42, %v19506_v39  ;;  %v19509_v10 = vunpack.i.l.bf16 %v15439_v62  ;;  %v19511_v42 = vld [vmem:[#allocation119_spill] sm:$0xff] }
 0x612   :  { %v3594_v11 = vsel %vm3577_vm13, %v10070_v28, %v10080_v7  ;;  %v3595_v23 = vsel %vm3577_vm13, %v10071_v52, %v10081_v48  ;;  %v15818_v24 = vpack.c.bf16 %v3824_v56, %v3823_v16  ;;  %v5101_v28 = vadd.f32 %v19511_v42, %v13179_v25  ;;  %v15832_v48 = vpop.permute.xlu2 %10148  ;;  %v19512_v7 = vld [vmem:[#allocation34_spill] sm:$0xff]  ;;  %v19513_v16 = vld [vmem:[#allocation23_spill] sm:$0xff] }
 0x613   :  { %v5278_v22 = vpop.f32.mrf.mxu0  ;;  %v5365_v44 = vpop.f32.mrf.mxu1  ;;  %v4238_v13 = vsel %vm3804_vm12, %v3594_v11, %v19508_v37  ;;  %v4239_v32 = vsel %vm3804_vm12, %v3595_v23, %v19509_v10  ;;  %v19514_v11 = vpack.i.bf16 %v19512_v7, %v19513_v16 }
 0x614   :  { %19507 = vst [vmem:[#allocation149_spill] sm:$0xff] %v15818_v24  ;;  %v5366_v40 = vadd.f32 %v5365_v44, %v5277_v59  ;;  %v15828_v52 = vpack.c.bf16 %v4239_v32, %v4238_v13  ;;  %v8830_v44 = vld [vmem:[%s17965_s3 + $0x310] sm:$0xf]  ;;  %v19515_v13 = vld [vmem:[#allocation125_spill] sm:$0xff] }
 0x615   :  { %10358 = vrot.lane.b32.xlu2 %v10357_v20, %s10578_s28  ;;  %10308 = vrot.lane.b32.xlu1 %v10307_v30, %s10578_s28  ;;  %v18469_v20 = vunpack.i.l.bf16 %v15518_v2  ;;  %v9413_v30 = vld [vmem:[%s17965_s3 + $0x314] sm:$0xf0]  ;;  %v5190_v10 = vadd.f32 %v19515_v13, %v5101_v28  ;;  %v15849_v16 = vpop.f32.mrf.mxu3 }
 0x616   :  { %19510 = vst [vmem:[#allocation148_spill] sm:$0xff] %v15828_v52  ;;  %5498 = vmatmul.bf16.gmra.mxu2 %v15818_v24  ;;  %v10099_v32 = vpop.permute.xlu1 %10098  ;;  %v5455_v59 = vadd.f32 %v5454_v1, %v5366_v40  ;;  %v19517_v1 = vunpack.i.h.bf16 %v15695_v26  ;;  %v8831_v49 = vor.u32 %v9413_v30, %v8830_v44  ;;  %v19518_v24 = vld [vmem:[#allocation169_spill] sm:$0xff] }
 0x617   :  { %10303 = vrot.lane.b32.xlu0 %v19514_v11, %s10578_s28  ;;  %5404 = vmatmul.bf16.gmra.mxu1 %v15828_v52  ;;  %v10094_v56 = vpop.permute.xlu0 %10093  ;;  %v10101_v23 = vunpack.i.h.bf16 %v10099_v32  ;;  %v10100_v39 = vunpack.i.l.bf16 %v10099_v32  ;;  %19516 = vst [vmem:[#allocation25_spill] sm:$0xff] %v15849_v16  ;;  %v5279_v37 = vadd.f32 %v5278_v22, %v5190_v10  ;;  %v19519_v52 = vunpack.i.h.bf16 %v19518_v24  ;;  %v19525_v10 = vld [vmem:[#allocation19_spill] sm:$0xff] }
 0x618   :  { %v10096_v42 = vunpack.i.h.bf16 %v10094_v56  ;;  %v10095_v7 = vunpack.i.l.bf16 %v10094_v56  ;;  %v15851_v11 = vpop.f32.mrf.mxu2  ;;  %v4270_v40 = vsel %vm4061_vm14, %v19517_v1, %v18469_v20  ;;  %v19520_v32 = vunpack.i.l.bf16 %v19518_v24  ;;  %5629 = vmatpush.bf16.msra.mxu0 %v8831_v49  ;;  %v9334_v49 = vld [vmem:[%s17965_s3 + $0xa4] sm:$0xf] }
 0x619   :  { %v19521_v56 = vunpack.i.h.bf16 %v15518_v2  ;;  %v19522_v16 = vunpack.i.h.bf16 %v15439_v62 }
 0x61a   :  { %v3370_v28 = vsel %vm3350_vm11, %v19519_v52, %v10096_v42  ;;  %v3369_v13 = vsel %vm3350_vm11, %v19520_v32, %v10095_v7  ;;  %v19524_v52 = vld [vmem:[#allocation131_spill] sm:$0xff]  ;;  %v19526_v42 = vld [vmem:[#allocation36_spill] sm:$0xff] }
 0x61b   :  { %v4271_v14 = vsel %vm4061_vm14, %v19522_v16, %v19521_v56  ;;  %v5281_v26 = vpop.f32.mrf.mxu0  ;;  %v5367_v27 = vpop.f32.mrf.mxu1  ;;  %v4208_v22 = vsel %vm3577_vm13, %v3369_v13, %v10100_v39  ;;  %v4209_v44 = vsel %vm3577_vm13, %v3370_v28, %v10101_v23  ;;  %v19527_v7 = vpack.i.bf16 %v19525_v10, %v19526_v42  ;;  %v9350_v13 = vld [vmem:[%s17965_s3 + $0x124] sm:$0xf]  ;;  %v8584_v56 = vld [vmem:[%s17965_s3 + $0x128] sm:$0xf0] }
 0x61c   :  { %v15869_v1 = vpack.c.bf16 %v4271_v14, %v4270_v40  ;;  %v5282_v30 = vadd.f32 %v5281_v26, %v19524_v52  ;;  %v5368_v24 = vadd.f32 %v5367_v27, %v5279_v37  ;;  %v15878_v62 = vpack.c.bf16 %v4209_v44, %v4208_v22  ;;  %v8520_v14 = vld [vmem:[%s17965_s3 + $0xa8] sm:$0xf0]  ;;  %v19530_v37 = vld [vmem:[#allocation120_spill] sm:$0xff]  ;;  %v9318_v52 = vld [vmem:[%s17965_s3 + $0x24] sm:$0xf]  ;;  %v15909_v42 = vpop.permute.xlu2 %10163 }
 0x61d   :  { %10323 = vrot.lane.b32.xlu1 %v19527_v7, %s10578_s28  ;;  %v18472_v16 = vunpack.i.h.bf16 %v15709_v61  ;;  %v18473_v40 = vunpack.i.l.bf16 %v15709_v61  ;;  %v19529_v27 = vld [vmem:[#allocation35_spill] sm:$0xff]  ;;  %v8523_v32 = vor.u32 %v9334_v49, %v8520_v14  ;;  %v8587_v44 = vor.u32 %v9350_v13, %v8584_v56  ;;  %19532 = vst [vmem:[#allocation115_spill] sm:$0xff] %v15909_v42 }
 0x61e   :  { %19523 = vst [vmem:[#allocation126_spill] sm:$0xff] %v15869_v1  ;;  %v19531_v28 = vpack.i.bf16 %v19529_v27, %v19530_v37  ;;  %5582 = vmatmul.bf16.gmra.mxu3 %v15869_v1  ;;  %v15900_v26 = vpop.permute.xlu1 %10113  ;;  %v5457_v22 = vadd.f32 %v15798_v35, %v5368_v24  ;;  %v8456_v10 = vld [vmem:[%s17965_s3 + $0x28] sm:$0xf0]  ;;  %v5543_v24 = vpop.f32.mrf.mxu3 }
 0x61f   :  { %19528 = vst [vmem:[#allocation144_spill] sm:$0xff] %v15878_v62  ;;  %5320 = vmatmul.bf16.gmra.mxu0 %v15878_v62  ;;  %v10109_v7 = vpop.permute.xlu0 %10108  ;;  %v18470_v49 = vunpack.i.h.bf16 %v15900_v26  ;;  %v18471_v14 = vunpack.i.l.bf16 %v15900_v26  ;;  %5806 = vmatpush.bf16.msra.mxu2 %v8523_v32  ;;  %v15913_v13 = vadd.f32 %v5543_v24, %v5455_v59  ;;  %v3826_v32 = vsel %vm3804_vm12, %v18473_v40, %v18472_v16 }
 0x620   :  { %10318 = vrot.lane.b32.xlu0 %v19531_v28, %s10578_s28  ;;  %v10111_v27 = vunpack.i.h.bf16 %v10109_v7  ;;  %v10110_v37 = vunpack.i.l.bf16 %v10109_v7  ;;  %v5461_v35 = vpop.f32.mrf.mxu2  ;;  %5895 = vmatpush.bf16.msra.mxu3 %v8587_v44  ;;  %v8459_v28 = vor.u32 %v9318_v52, %v8456_v10  ;;  %v10332_v10 = vpack.i.bf16 %v19304_v29, %v19285_v33  ;;  %v19540_v33 = vld [vmem:[#allocation129_spill] sm:$0xff] }
 0x621   :  { %v3825_v56 = vsel %vm3804_vm12, %v18471_v14, %v18470_v49  ;;  %v19534_v24 = vunpack.i.l.bf16 %v15792_v47  ;;  %v19535_v14 = vunpack.i.l.bf16 %v15580_v50  ;;  %v5106_v29 = vadd.f32 %v19540_v33, %v13179_v25 }
 0x622   :  { %v3596_v7 = vsel %vm3577_vm13, %v10100_v39, %v10110_v37  ;;  %v3597_v20 = vsel %vm3577_vm13, %v10101_v23, %v10111_v27  ;;  %v15927_v44 = vpack.c.bf16 %v3826_v32, %v3825_v56  ;;  %5717 = vmatpush.bf16.msra.mxu1 %v8459_v28  ;;  %v19536_v39 = vld [vmem:[#allocation18_spill] sm:$0xff]  ;;  %v19537_v23 = vld [vmem:[#allocation59_spill] sm:$0xff]  ;;  %v18476_v56 = vunpack.i.l.bf16 %v15639_v57 }
 0x623   :  { %v5283_v59 = vpop.f32.mrf.mxu0  ;;  %v5370_v52 = vpop.f32.mrf.mxu1  ;;  %v4240_v49 = vsel %vm3804_vm12, %v3596_v7, %v19534_v24  ;;  %v4241_v16 = vsel %vm3804_vm12, %v3597_v20, %v19535_v14  ;;  %v19538_v27 = vpack.i.bf16 %v19536_v39, %v19537_v23  ;;  %v19542_v23 = vunpack.i.h.bf16 %v15792_v47 }
 0x624   :  { %19533 = vst [vmem:[#allocation151_spill] sm:$0xff] %v15927_v44  ;;  %v5371_v40 = vadd.f32 %v5370_v52, %v5282_v30  ;;  %v15941_v37 = vpack.c.bf16 %v4241_v16, %v4240_v49  ;;  %v19541_v49 = vld [vmem:[#allocation8_spill] sm:$0xff]  ;;  %v15959_v28 = vpop.permute.xlu2 %10178 }
 0x625   :  { %10338 = vrot.lane.b32.xlu1 %v19538_v27, %s10578_s28  ;;  %v5195_v7 = vadd.f32 %v19541_v49, %v5106_v29  ;;  %v4272_v27 = vsel %vm4061_vm14, %v19542_v23, %v18476_v56  ;;  %v19546_v49 = vunpack.i.h.bf16 %v15639_v57  ;;  %v19549_v56 = vld [vmem:[#allocation142_spill] sm:$0xff] }
 0x626   :  { %19539 = vst [vmem:[#allocation150_spill] sm:$0xff] %v15941_v37  ;;  %5503 = vmatmul.bf16.gmra.mxu2 %v15927_v44  ;;  %v10129_v20 = vpop.permute.xlu1 %10128  ;;  %v5460_v30 = vadd.f32 %v15851_v11, %v5371_v40  ;;  %v5545_v39 = vpop.f32.mrf.mxu3  ;;  %v19543_v40 = vld [vmem:[#allocation193_spill] sm:$0xff] }
 0x627   :  { %5409 = vmatmul.bf16.gmra.mxu1 %v15941_v37  ;;  %v10124_v14 = vpop.permute.xlu0 %10123  ;;  %v10131_v32 = vunpack.i.h.bf16 %v10129_v20  ;;  %v10130_v16 = vunpack.i.l.bf16 %v10129_v20  ;;  %v15957_v33 = vadd.f32 %v5545_v39, %v5457_v22  ;;  %v5284_v11 = vadd.f32 %v5283_v59, %v5195_v7 }
 0x628   :  { %10333 = vrot.lane.b32.xlu0 %v10332_v10, %s10578_s28  ;;  %v10126_v52 = vunpack.i.h.bf16 %v10124_v14  ;;  %v10125_v10 = vunpack.i.l.bf16 %v10124_v14  ;;  %v5464_v24 = vpop.f32.mrf.mxu2  ;;  %v19544_v44 = vunpack.i.h.bf16 %v19543_v40  ;;  %v19545_v29 = vunpack.i.l.bf16 %v19543_v40  ;;  %v19550_v40 = vld [vmem:[#allocation57_spill] sm:$0xff] }
 0x629   :  { %v19547_v37 = vunpack.i.h.bf16 %v15580_v50  ;;  %v18482_v50 = vunpack.i.h.bf16 %v15832_v48 }
 0x62a   :  { %v3372_v20 = vsel %vm3350_vm11, %v19544_v44, %v10126_v52  ;;  %v3371_v14 = vsel %vm3350_vm11, %v19545_v29, %v10125_v10  ;;  %v19551_v10 = vld [vmem:[#allocation208_spill] sm:$0xff] }
 0x62b   :  { %v4273_v47 = vsel %vm4061_vm14, %v19547_v37, %v19546_v49  ;;  %v5286_v23 = vpop.f32.mrf.mxu0  ;;  %v5372_v22 = vpop.f32.mrf.mxu1  ;;  %v4210_v59 = vsel %vm3577_vm13, %v3371_v14, %v10130_v16  ;;  %v4211_v7 = vsel %vm3577_vm13, %v3372_v20, %v10131_v32  ;;  %v19552_v29 = vpack.i.bf16 %v19550_v40, %v19551_v10  ;;  %v19555_v49 = vld [vmem:[#allocation76_spill] sm:$0xff] }
 0x62c   :  { %v15972_v39 = vpack.c.bf16 %v4273_v47, %v4272_v27  ;;  %v5287_v44 = vadd.f32 %v5286_v23, %v19549_v56  ;;  %v5373_v52 = vadd.f32 %v5372_v22, %v5284_v11  ;;  %v15981_v1 = vpack.c.bf16 %v4211_v7, %v4210_v59  ;;  %v19554_v27 = vld [vmem:[#allocation209_spill] sm:$0xff] }
 0x62d   :  { %10353 = vrot.lane.b32.xlu1 %v19552_v29, %s10578_s28  ;;  %v18483_v37 = vunpack.i.l.bf16 %v15832_v48  ;;  %v19556_v14 = vpack.i.bf16 %v19554_v27, %v19555_v49  ;;  %v19557_v49 = vld [vmem:[#allocation100_spill] sm:$0xff] }
 0x62e   :  { %19548 = vst [vmem:[#allocation117_spill] sm:$0xff] %v15972_v39  ;;  %5587 = vmatmul.bf16.gmra.mxu3 %v15972_v39  ;;  %v15991_v56 = vpop.permute.xlu1 %10143  ;;  %v5462_v11 = vadd.f32 %v5461_v35, %v5373_v52 }
 0x62f   :  { %19553 = vst [vmem:[#allocation116_spill] sm:$0xff] %v15981_v1  ;;  %5325 = vmatmul.bf16.gmra.mxu0 %v15981_v1  ;;  %v10139_v20 = vpop.permute.xlu0 %10138  ;;  %v18479_v47 = vunpack.i.h.bf16 %v15991_v56  ;;  %v18480_v23 = vunpack.i.l.bf16 %v15991_v56  ;;  %v3828_v35 = vsel %vm3804_vm12, %v18483_v37, %v18482_v50  ;;  %v19561_v50 = vunpack.i.l.bf16 %v15709_v61 }
 0x630   :  { %10348 = vrot.lane.b32.xlu0 %v19556_v14, %s10578_s28  ;;  %v10141_v22 = vunpack.i.h.bf16 %v10139_v20  ;;  %v10140_v59 = vunpack.i.l.bf16 %v10139_v20  ;;  %v5466_v7 = vpop.f32.mrf.mxu2  ;;  %v5548_v40 = vpop.f32.mrf.mxu3  ;;  %v19558_v14 = vld [vmem:[#allocation38_spill] sm:$0xff] }
 0x631   :  { %v15995_v10 = vadd.f32 %v5548_v40, %v5460_v30  ;;  %v3827_v29 = vsel %vm3804_vm12, %v18480_v23, %v18479_v47  ;;  %v10367_v30 = vpack.i.bf16 %v19558_v14, %v19557_v49  ;;  %v10362_v47 = vpack.i.bf16 %v19444_v46, %v14662_v36  ;;  %v19563_v36 = vld [vmem:[#allocation138_spill] sm:$0xff] }
 0x632   :  { %v3598_v52 = vsel %vm3577_vm13, %v10130_v16, %v10140_v59  ;;  %v3599_v27 = vsel %vm3577_vm13, %v10131_v32, %v10141_v22  ;;  %v16011_v20 = vpack.c.bf16 %v3828_v35, %v3827_v29  ;;  %v19560_v23 = vunpack.i.l.bf16 %v15900_v26  ;;  %v16024_v22 = vpop.permute.xlu2 %10193 }
 0x633   :  { %v5288_v40 = vpop.f32.mrf.mxu0  ;;  %v5375_v39 = vpop.f32.mrf.mxu1  ;;  %v4243_v16 = vsel %vm3804_vm12, %v3599_v27, %v19561_v50  ;;  %v5111_v46 = vadd.f32 %v19563_v36, %v13179_v25  ;;  %v18487_v29 = vunpack.i.l.bf16 %v15770_v63 }
 0x634   :  { %19559 = vst [vmem:[#allocation166_spill] sm:$0xff] %v16011_v20  ;;  %v4242_v1 = vsel %vm3804_vm12, %v3598_v52, %v19560_v23  ;;  %v5376_v59 = vadd.f32 %v5375_v39, %v5287_v44  ;;  %v19564_v52 = vld [vmem:[#allocation153_spill] sm:$0xff] }
 0x635   :  { %10368 = vrot.lane.b32.xlu1 %v10367_v30, %s10578_s28  ;;  %v16022_v32 = vpack.c.bf16 %v4243_v16, %v4242_v1  ;;  %v5200_v27 = vadd.f32 %v19564_v52, %v5111_v46  ;;  %v19565_v16 = vunpack.i.h.bf16 %v15900_v26  ;;  %v19570_v52 = vunpack.i.h.bf16 %v15709_v61  ;;  %v8512_v61 = vld [vmem:[%s17965_s3 + $0x98] sm:$0xf0] }
 0x636   :  { %5508 = vmatmul.bf16.gmra.mxu2 %v16011_v20  ;;  %v5465_v44 = vadd.f32 %v5464_v24, %v5376_v59  ;;  %v19566_v20 = vld [vmem:[#allocation205_spill] sm:$0xff] }
 0x637   :  { %19562 = vst [vmem:[#allocation145_spill] sm:$0xff] %v16022_v32  ;;  %5414 = vmatmul.bf16.gmra.mxu1 %v16022_v32  ;;  %v10159_v39 = vpop.permute.xlu1 %10158  ;;  %v10154_v50 = vpop.permute.xlu0 %10153  ;;  %v4274_v36 = vsel %vm4061_vm14, %v19565_v16, %v18487_v29  ;;  %v5289_v23 = vadd.f32 %v5288_v40, %v5200_v27  ;;  %v19567_v24 = vunpack.i.h.bf16 %v19566_v20  ;;  %v19572_v27 = vld [vmem:[#allocation164_spill] sm:$0xff] }
 0x638   :  { %10363 = vrot.lane.b32.xlu0 %v10362_v47, %s10578_s28  ;;  %v10161_v1 = vunpack.i.h.bf16 %v10159_v39  ;;  %v10160_v35 = vunpack.i.l.bf16 %v10159_v39  ;;  %v10156_v49 = vunpack.i.h.bf16 %v10154_v50  ;;  %v10155_v47 = vunpack.i.l.bf16 %v10154_v50  ;;  %v5469_v14 = vpop.f32.mrf.mxu2  ;;  %v5550_v30 = vpop.f32.mrf.mxu3 }
 0x639   :  { %v16039_v37 = vadd.f32 %v5550_v30, %v5462_v11  ;;  %v19568_v39 = vunpack.i.l.bf16 %v19566_v20  ;;  %v19569_v50 = vunpack.i.h.bf16 %v15770_v63 }
 0x63a   :  { %v3374_v59 = vsel %vm3350_vm11, %v19567_v24, %v10156_v49 }
 0x63b   :  { %v3373_v46 = vsel %vm3350_vm11, %v19568_v39, %v10155_v47  ;;  %v4275_v32 = vsel %vm4061_vm14, %v19570_v52, %v19569_v50  ;;  %v5291_v26 = vpop.f32.mrf.mxu0  ;;  %v5377_v62 = vpop.f32.mrf.mxu1  ;;  %v4213_v40 = vsel %vm3577_vm13, %v3374_v59, %v10161_v1  ;;  %v9332_v47 = vld [vmem:[%s17965_s3 + $0x94] sm:$0xf]  ;;  %v8448_v52 = vld [vmem:[%s17965_s3 + $0x18] sm:$0xf0] }
 0x63c   :  { %v16052_v16 = vpack.c.bf16 %v4275_v32, %v4274_v36  ;;  %v4212_v11 = vsel %vm3577_vm13, %v3373_v46, %v10160_v35  ;;  %v5292_v49 = vadd.f32 %v5291_v26, %v19572_v27  ;;  %v5378_v30 = vadd.f32 %v5377_v62, %v5289_v23  ;;  %v9348_v62 = vld [vmem:[%s17965_s3 + $0x114] sm:$0xf]  ;;  %v8576_v23 = vld [vmem:[%s17965_s3 + $0x118] sm:$0xf0]  ;;  %v16083_v26 = vpop.permute.xlu2 %10208 }
 0x63d   :  { %v16057_v20 = vpack.c.bf16 %v4213_v40, %v4212_v11  ;;  %v18492_v32 = vunpack.i.h.bf16 %v15959_v28  ;;  %v18493_v36 = vunpack.i.l.bf16 %v15959_v28  ;;  %v8515_v24 = vor.u32 %v9332_v47, %v8512_v61  ;;  %v9316_v50 = vld [vmem:[%s17965_s3 + $0x14] sm:$0xf] }
 0x63e   :  { %19571 = vst [vmem:[#allocation21_spill] sm:$0xff] %v16052_v16  ;;  %5592 = vmatmul.bf16.gmra.mxu3 %v16052_v16  ;;  %v5467_v39 = vadd.f32 %v5466_v7, %v5378_v30  ;;  %v8579_v46 = vor.u32 %v9348_v62, %v8576_v23  ;;  %v8451_v62 = vor.u32 %v9316_v50, %v8448_v52  ;;  %v19576_v52 = vunpack.i.l.bf16 %v15991_v56 }
 0x63f   :  { %19573 = vst [vmem:[#allocation37_spill] sm:$0xff] %v16057_v20  ;;  %5330 = vmatmul.bf16.gmra.mxu0 %v16057_v20  ;;  %v16075_v59 = vpop.permute.xlu1 %10173  ;;  %5807 = vmatpush.bf16.msra.mxu2 %v8515_v24  ;;  %v3830_v24 = vsel %vm3804_vm12, %v18493_v36, %v18492_v32 }
 0x640   :  { %v10169_v11 = vpop.permute.xlu0 %10168  ;;  %v18489_v40 = vunpack.i.h.bf16 %v16075_v59  ;;  %v18490_v27 = vunpack.i.l.bf16 %v16075_v59  ;;  %v5471_v7 = vpop.f32.mrf.mxu2  ;;  %5896 = vmatpush.bf16.msra.mxu3 %v8579_v46  ;;  %5718 = vmatpush.bf16.msra.mxu1 %v8451_v62 }
 0x641   :  { %v10171_v47 = vunpack.i.h.bf16 %v10169_v11  ;;  %v10170_v61 = vunpack.i.l.bf16 %v10169_v11  ;;  %v5553_v30 = vpop.f32.mrf.mxu3 }
 0x642   :  { %v16087_v23 = vadd.f32 %v5553_v30, %v5465_v44  ;;  %v3829_v29 = vsel %vm3804_vm12, %v18490_v27, %v18489_v40  ;;  %v19577_v40 = vunpack.i.l.bf16 %v15832_v48 }
 0x643   :  { %v3600_v11 = vsel %vm3577_vm13, %v10160_v35, %v10170_v61  ;;  %v3601_v16 = vsel %vm3577_vm13, %v10161_v1, %v10171_v47  ;;  %v16101_v46 = vpack.c.bf16 %v3830_v24, %v3829_v29  ;;  %v5293_v44 = vpop.f32.mrf.mxu0  ;;  %v5380_v50 = vpop.f32.mrf.mxu1  ;;  %v19579_v1 = vld [vmem:[#allocation41_spill] sm:$0xff]  ;;  %v18496_v47 = vunpack.i.l.bf16 %v15909_v42 }
 0x644   :  { %19574 = vst [vmem:[#allocation3_spill] sm:$0xff] %v16087_v23  ;;  %v4244_v30 = vsel %vm3804_vm12, %v3600_v11, %v19576_v52  ;;  %v4245_v27 = vsel %vm3804_vm12, %v3601_v16, %v19577_v40  ;;  %v5381_v20 = vadd.f32 %v5380_v50, %v5292_v49  ;;  %v5116_v29 = vadd.f32 %v19579_v1, %v13179_v25  ;;  %v19580_v16 = vld [vmem:[#allocation30_spill] sm:$0xff]  ;;  %v16125_v35 = vpop.permute.xlu2 %10223 }
 0x645   :  { %19575 = vst [vmem:[#allocation141_spill] sm:$0xff] %v16101_v46  ;;  %v16109_v23 = vpack.c.bf16 %v4245_v27, %v4244_v30  ;;  %v19581_v1 = vunpack.i.h.bf16 %v15991_v56 }
 0x646   :  { %5513 = vmatmul.bf16.gmra.mxu2 %v16101_v46  ;;  %v5470_v62 = vadd.f32 %v5469_v14, %v5381_v20  ;;  %v5205_v49 = vadd.f32 %v19580_v16, %v5116_v29  ;;  %19583 = vst [vmem:[#allocation146_spill] sm:$0xff] %v16125_v35  ;;  %v19584_v20 = vld [vmem:[#allocation56_spill] sm:$0xff]  ;;  %v19587_v16 = vunpack.i.h.bf16 %v15909_v42  ;;  %v19600_v42 = vld [vmem:[#allocation49_spill] sm:$0xff] }
 0x647   :  { %19578 = vst [vmem:[#allocation130_spill] sm:$0xff] %v16109_v23  ;;  %5419 = vmatmul.bf16.gmra.mxu1 %v16109_v23  ;;  %v10189_v61 = vpop.permute.xlu1 %10188  ;;  %v4276_v32 = vsel %vm4061_vm14, %v19581_v1, %v18496_v47  ;;  %v19585_v46 = vunpack.i.l.bf16 %v19584_v20  ;;  %v19586_v29 = vunpack.i.h.bf16 %v19584_v20  ;;  %v19588_v23 = vunpack.i.h.bf16 %v15832_v48  ;;  %v19590_v48 = vld [vmem:[#allocation10_spill] sm:$0xff] }
 0x648   :  { %v10184_v24 = vpop.permute.xlu0 %10183  ;;  %v10191_v11 = vunpack.i.h.bf16 %v10189_v61  ;;  %v10190_v52 = vunpack.i.l.bf16 %v10189_v61  ;;  %v5294_v14 = vadd.f32 %v5293_v44, %v5205_v49  ;;  %v9411_v44 = vld [vmem:[%s17965_s3 + $0x304] sm:$0xf0]  ;;  %v18502_v47 = vunpack.i.l.bf16 %v16083_v26 }
 0x649   :  { %v10186_v40 = vunpack.i.h.bf16 %v10184_v24  ;;  %v10185_v27 = vunpack.i.l.bf16 %v10184_v24  ;;  %v5474_v50 = vpop.f32.mrf.mxu2  ;;  %v5555_v30 = vpop.f32.mrf.mxu3  ;;  %v4277_v56 = vsel %vm4061_vm14, %v19588_v23, %v19587_v16  ;;  %v18501_v16 = vunpack.i.h.bf16 %v16083_v26 }
 0x64a   :  { %v16123_v36 = vadd.f32 %v5555_v30, %v5467_v39  ;;  %v8822_v39 = vld [vmem:[%s17965_s3 + $0x300] sm:$0xf] }
 0x64b   :  { %v3375_v61 = vsel %vm3350_vm11, %v19585_v46, %v10185_v27  ;;  %v3376_v24 = vsel %vm3350_vm11, %v19586_v29, %v10186_v40  ;;  %v5382_v46 = vpop.f32.mrf.mxu1  ;;  %v16144_v27 = vpack.c.bf16 %v4277_v56, %v4276_v32  ;;  %v8823_v1 = vor.u32 %v9411_v44, %v8822_v39 }
 0x64c   :  { %19582 = vst [vmem:[#allocation167_spill] sm:$0xff] %v16123_v36  ;;  %v5296_v49 = vpop.f32.mrf.mxu0  ;;  %v4214_v40 = vsel %vm3577_vm13, %v3375_v61, %v10190_v52  ;;  %v4215_v30 = vsel %vm3577_vm13, %v3376_v24, %v10191_v11  ;;  %v5383_v23 = vadd.f32 %v5382_v46, %v5294_v14 }
 0x64d   :  { %19589 = vst [vmem:[#allocation54_spill] sm:$0xff] %v16144_v27  ;;  %v5297_v20 = vadd.f32 %v5296_v49, %v19590_v48  ;;  %v16149_v29 = vpack.c.bf16 %v4215_v30, %v4214_v40  ;;  %5630 = vmatpush.bf16.msra.mxu0 %v8823_v1 }
 0x64e   :  { %5597 = vmatmul.bf16.gmra.mxu3 %v16144_v27  ;;  %v5472_v61 = vadd.f32 %v5471_v7, %v5383_v23  ;;  %v3832_v7 = vsel %vm3804_vm12, %v18502_v47, %v18501_v16  ;;  %v16183_v16 = vpop.permute.xlu2 %10238 }
 0x64f   :  { %19591 = vst [vmem:[#allocation128_spill] sm:$0xff] %v16149_v29  ;;  %5335 = vmatmul.bf16.gmra.mxu0 %v16149_v29  ;;  %v16155_v32 = vpop.permute.xlu1 %10203 }
 0x650   :  { %v10199_v56 = vpop.permute.xlu0 %10198  ;;  %v18498_v24 = vunpack.i.h.bf16 %v16155_v32  ;;  %v18499_v39 = vunpack.i.l.bf16 %v16155_v32 }
 0x651   :  { %v10201_v14 = vunpack.i.h.bf16 %v10199_v56  ;;  %v10200_v44 = vunpack.i.l.bf16 %v10199_v56  ;;  %v5476_v49 = vpop.f32.mrf.mxu2  ;;  %v5558_v46 = vpop.f32.mrf.mxu3 }
 0x652   :  { %v16159_v40 = vadd.f32 %v5558_v46, %v5470_v62  ;;  %v3831_v30 = vsel %vm3804_vm12, %v18499_v39, %v18498_v24  ;;  %v19594_v46 = vunpack.i.l.bf16 %v16075_v59  ;;  %v19595_v24 = vunpack.i.l.bf16 %v15959_v28 }
 0x653   :  { %v3602_v1 = vsel %vm3577_vm13, %v10190_v52, %v10200_v44  ;;  %v3603_v48 = vsel %vm3577_vm13, %v10191_v11, %v10201_v14  ;;  %v16173_v23 = vpack.c.bf16 %v3832_v7, %v3831_v30  ;;  %v19597_v11 = vld [vmem:[#allocation168_spill] sm:$0xff]  ;;  %v18509_v44 = vunpack.i.l.bf16 %v16024_v22 }
 0x654   :  { %19592 = vst [vmem:[#allocation127_spill] sm:$0xff] %v16159_v40  ;;  %v5298_v62 = vpop.f32.mrf.mxu0  ;;  %v5385_v56 = vpop.f32.mrf.mxu1  ;;  %v4246_v27 = vsel %vm3804_vm12, %v3602_v1, %v19594_v46  ;;  %v4247_v39 = vsel %vm3804_vm12, %v3603_v48, %v19595_v24  ;;  %v5121_v52 = vadd.f32 %v19597_v11, %v13179_v25  ;;  %v19599_v11 = vunpack.i.h.bf16 %v16075_v59 }
 0x655   :  { %19593 = vst [vmem:[#allocation85_spill] sm:$0xff] %v16173_v23  ;;  %v5386_v29 = vadd.f32 %v5385_v56, %v5297_v20  ;;  %v16181_v40 = vpack.c.bf16 %v4247_v39, %v4246_v27  ;;  %v19598_v27 = vld [vmem:[#allocation175_spill] sm:$0xff] }
 0x656   :  { %5518 = vmatmul.bf16.gmra.mxu2 %v16173_v23  ;;  %v5210_v39 = vadd.f32 %v19598_v27, %v5121_v52  ;;  %v4278_v14 = vsel %vm4061_vm14, %v19599_v11, %v18509_v44  ;;  %v19604_v27 = vunpack.i.h.bf16 %v15959_v28  ;;  %v8504_v28 = vld [vmem:[%s17965_s3 + $0x88] sm:$0xf0] }
 0x657   :  { %19596 = vst [vmem:[#allocation147_spill] sm:$0xff] %v16181_v40  ;;  %5424 = vmatmul.bf16.gmra.mxu1 %v16181_v40  ;;  %v10219_v30 = vpop.permute.xlu1 %10218  ;;  %v5475_v7 = vadd.f32 %v5474_v50, %v5386_v29  ;;  %v19601_v50 = vunpack.i.l.bf16 %v19600_v42 }
 0x658   :  { %v10214_v1 = vpop.permute.xlu0 %10213  ;;  %v10221_v24 = vunpack.i.h.bf16 %v10219_v30  ;;  %v10220_v20 = vunpack.i.l.bf16 %v10219_v30  ;;  %v5299_v40 = vadd.f32 %v5298_v62, %v5210_v39  ;;  %v19602_v30 = vunpack.i.h.bf16 %v19600_v42  ;;  %v19606_v62 = vld [vmem:[#allocation185_spill] sm:$0xff] }
 0x659   :  { %v10216_v48 = vunpack.i.h.bf16 %v10214_v1  ;;  %v10215_v56 = vunpack.i.l.bf16 %v10214_v1  ;;  %v5479_v46 = vpop.f32.mrf.mxu2  ;;  %v5560_v47 = vpop.f32.mrf.mxu3  ;;  %v19603_v1 = vunpack.i.h.bf16 %v16024_v22 }
 0x65a   :  { %v16197_v23 = vadd.f32 %v5560_v47, %v5472_v61 }
 0x65b   :  { %v3377_v29 = vsel %vm3350_vm11, %v19601_v50, %v10215_v56  ;;  %v3378_v52 = vsel %vm3350_vm11, %v19602_v30, %v10216_v48  ;;  %v4279_v36 = vsel %vm4061_vm14, %v19604_v27, %v19603_v1  ;;  %v9330_v48 = vld [vmem:[%s17965_s3 + $0x84] sm:$0xf]  ;;  %v8440_v27 = vld [vmem:[%s17965_s3 + $0x8] sm:$0xf0] }
 0x65c   :  { %v5301_v59 = vpop.f32.mrf.mxu0  ;;  %v5387_v63 = vpop.f32.mrf.mxu1  ;;  %v16210_v11 = vpack.c.bf16 %v4279_v36, %v4278_v14  ;;  %v4216_v47 = vsel %vm3577_vm13, %v3377_v29, %v10220_v20  ;;  %v4217_v61 = vsel %vm3577_vm13, %v3378_v52, %v10221_v24  ;;  %v18514_v36 = vunpack.i.h.bf16 %v16183_v16  ;;  %v9314_v1 = vld [vmem:[%s17965_s3 + $0x4] sm:$0xf] }
 0x65d   :  { %v5302_v39 = vadd.f32 %v5301_v59, %v19606_v62  ;;  %v5388_v56 = vadd.f32 %v5387_v63, %v5299_v40  ;;  %v16215_v42 = vpack.c.bf16 %v4217_v61, %v4216_v47  ;;  %v18515_v14 = vunpack.i.l.bf16 %v16183_v16  ;;  %v9346_v63 = vld [vmem:[%s17965_s3 + $0x104] sm:$0xf]  ;;  %v8568_v40 = vld [vmem:[%s17965_s3 + $0x108] sm:$0xf0]  ;;  %v16241_v59 = vpop.permute.xlu2 %10243 }
 0x65e   :  { %19605 = vst [vmem:[#allocation154_spill] sm:$0xff] %v16210_v11  ;;  %5602 = vmatmul.bf16.gmra.mxu3 %v16210_v11  ;;  %v8507_v50 = vor.u32 %v9330_v48, %v8504_v28  ;;  %v8571_v52 = vor.u32 %v9346_v63, %v8568_v40  ;;  %v8443_v63 = vor.u32 %v9314_v1, %v8440_v27  ;;  %v19610_v27 = vunpack.i.l.bf16 %v16155_v32 }
 0x65f   :  { %19607 = vst [vmem:[#allocation171_spill] sm:$0xff] %v16215_v42  ;;  %5340 = vmatmul.bf16.gmra.mxu0 %v16215_v42  ;;  %v16233_v29 = vpop.permute.xlu1 %10233  ;;  %v5477_v30 = vadd.f32 %v5476_v49, %v5388_v56 }
 0x660   :  { %v18511_v61 = vunpack.i.h.bf16 %v16233_v29  ;;  %v18512_v62 = vunpack.i.l.bf16 %v16233_v29  ;;  %5808 = vmatpush.bf16.msra.mxu2 %v8507_v50  ;;  %5897 = vmatpush.bf16.msra.mxu3 %v8571_v52  ;;  %v3834_v50 = vsel %vm3804_vm12, %v18515_v14, %v18514_v36 }
 0x661   :  { %v10229_v47 = vpop.permute.xlu0 %10228  ;;  %v5481_v49 = vpop.f32.mrf.mxu2  ;;  %5719 = vmatpush.bf16.msra.mxu1 %v8443_v63 }
 0x662   :  { %v10231_v48 = vunpack.i.h.bf16 %v10229_v47  ;;  %v10230_v28 = vunpack.i.l.bf16 %v10229_v47  ;;  %v5563_v56 = vpop.f32.mrf.mxu3  ;;  %v3833_v44 = vsel %vm3804_vm12, %v18512_v62, %v18511_v61  ;;  %v19611_v61 = vunpack.i.l.bf16 %v16083_v26 }
 0x663   :  { %v16245_v40 = vadd.f32 %v5563_v56, %v5475_v7  ;;  %v16259_v52 = vpack.c.bf16 %v3834_v50, %v3833_v44 }
 0x664   :  { %v3604_v47 = vsel %vm3577_vm13, %v10220_v20, %v10230_v28  ;;  %v3605_v11 = vsel %vm3577_vm13, %v10221_v24, %v10231_v48  ;;  %v5303_v7 = vpop.f32.mrf.mxu0  ;;  %v5390_v1 = vpop.f32.mrf.mxu1  ;;  %v19613_v24 = vld [vmem:[#allocation178_spill] sm:$0xff]  ;;  %v18518_v48 = vunpack.i.l.bf16 %v16125_v35 }
 0x665   :  { %19608 = vst [vmem:[#allocation134_spill] sm:$0xff] %v16245_v40  ;;  %v4248_v56 = vsel %vm3804_vm12, %v3604_v47, %v19610_v27  ;;  %v4249_v62 = vsel %vm3804_vm12, %v3605_v11, %v19611_v61  ;;  %v5391_v42 = vadd.f32 %v5390_v1, %v5302_v39  ;;  %v5126_v44 = vadd.f32 %v19613_v24, %v13179_v25  ;;  %v19614_v11 = vld [vmem:[#allocation191_spill] sm:$0xff]  ;;  %v16283_v20 = vpop.permute.xlu2 %10268 }
 0x666   :  { %19609 = vst [vmem:[#allocation75_spill] sm:$0xff] %v16259_v52  ;;  %v16267_v40 = vpack.c.bf16 %v4249_v62, %v4248_v56  ;;  %5523 = vmatmul.bf16.gmra.mxu2 %v16259_v52  ;;  %v19615_v24 = vunpack.i.h.bf16 %v16155_v32 }
 0x667   :  { %v10254_v28 = vpop.permute.xlu1 %10253  ;;  %v5480_v63 = vadd.f32 %v5479_v46, %v5391_v42  ;;  %v5215_v39 = vadd.f32 %v19614_v11, %v5126_v44  ;;  %v19617_v42 = vld [vmem:[#allocation67_spill] sm:$0xff]  ;;  %v19620_v11 = vunpack.i.h.bf16 %v16125_v35 }
 0x668   :  { %19612 = vst [vmem:[#allocation155_spill] sm:$0xff] %v16267_v40  ;;  %5429 = vmatmul.bf16.gmra.mxu1 %v16267_v40  ;;  %v10256_v47 = vunpack.i.h.bf16 %v10254_v28  ;;  %v10255_v27 = vunpack.i.l.bf16 %v10254_v28  ;;  %v4280_v36 = vsel %vm4061_vm14, %v19615_v24, %v18518_v48  ;;  %v19618_v52 = vunpack.i.l.bf16 %v19617_v42  ;;  %v19623_v48 = vld [vmem:[#allocation198_spill] sm:$0xff] }
 0x669   :  { %v10249_v50 = vpop.permute.xlu0 %10248  ;;  %v5484_v1 = vpop.f32.mrf.mxu2  ;;  %v5304_v46 = vadd.f32 %v5303_v7, %v5215_v39  ;;  %v19619_v44 = vunpack.i.h.bf16 %v19617_v42  ;;  %v19621_v40 = vunpack.i.h.bf16 %v16083_v26 }
 0x66a   :  { %v10251_v61 = vunpack.i.h.bf16 %v10249_v50  ;;  %v10250_v62 = vunpack.i.l.bf16 %v10249_v50  ;;  %v5565_v56 = vpop.f32.mrf.mxu3 }
 0x66b   :  { %v16281_v14 = vadd.f32 %v5565_v56, %v5477_v30  ;;  %v4281_v32 = vsel %vm4061_vm14, %v19621_v40, %v19620_v11 }
 0x66c   :  { %v3379_v28 = vsel %vm3350_vm11, %v19618_v52, %v10250_v62  ;;  %v3380_v50 = vsel %vm3350_vm11, %v19619_v44, %v10251_v61  ;;  %v5306_v24 = vpop.f32.mrf.mxu0  ;;  %v5392_v30 = vpop.f32.mrf.mxu1  ;;  %v16296_v56 = vpack.c.bf16 %v4281_v32, %v4280_v36  ;;  %v18523_v61 = vunpack.i.h.bf16 %v16283_v20 }
 0x66d   :  { %19616 = vst [vmem:[#allocation136_spill] sm:$0xff] %v16281_v14  ;;  %v4218_v7 = vsel %vm3577_vm13, %v3379_v28, %v10255_v27  ;;  %v4219_v39 = vsel %vm3577_vm13, %v3380_v50, %v10256_v47  ;;  %v5307_v52 = vadd.f32 %v5306_v24, %v19623_v48  ;;  %v5393_v62 = vadd.f32 %v5392_v30, %v5304_v46 }
 0x66e   :  { %19622 = vst [vmem:[#allocation177_spill] sm:$0xff] %v16296_v56  ;;  %v16301_v42 = vpack.c.bf16 %v4219_v39, %v4218_v7  ;;  %v18524_v44 = vunpack.i.l.bf16 %v16283_v20  ;;  %5607 = vmatmul.bf16.gmra.mxu3 %v16296_v56 }
 0x66f   :  { %v16307_v26 = vpop.permute.xlu1 %10263  ;;  %v5482_v36 = vadd.f32 %v5481_v49, %v5393_v62 }
 0x670   :  { %19624 = vst [vmem:[#allocation173_spill] sm:$0xff] %v16301_v42  ;;  %5345 = vmatmul.bf16.gmra.mxu0 %v16301_v42  ;;  %v18520_v28 = vunpack.i.h.bf16 %v16307_v26  ;;  %v18521_v50 = vunpack.i.l.bf16 %v16307_v26  ;;  %v3836_v49 = vsel %vm3804_vm12, %v18524_v44, %v18523_v61 }
 0x671   :  { %v10259_v40 = vpop.permute.xlu0 %10258  ;;  %v5486_v11 = vpop.f32.mrf.mxu2 }
 0x672   :  { %v10261_v48 = vunpack.i.h.bf16 %v10259_v40  ;;  %v10260_v46 = vunpack.i.l.bf16 %v10259_v40  ;;  %v5568_v32 = vpop.f32.mrf.mxu3  ;;  %v3835_v30 = vsel %vm3804_vm12, %v18521_v50, %v18520_v28  ;;  %v19628_v28 = vunpack.i.l.bf16 %v16183_v16 }
 0x673   :  { %v16311_v24 = vadd.f32 %v5568_v32, %v5480_v63  ;;  %v16325_v62 = vpack.c.bf16 %v3836_v49, %v3835_v30  ;;  %v19627_v32 = vunpack.i.l.bf16 %v16233_v29 }
 0x674   :  { %v3606_v7 = vsel %vm3577_vm13, %v10255_v27, %v10260_v46  ;;  %v3607_v39 = vsel %vm3577_vm13, %v10256_v47, %v10261_v48  ;;  %v5308_v63 = vpop.f32.mrf.mxu0  ;;  %v5395_v40 = vpop.f32.mrf.mxu1  ;;  %v19630_v27 = vld [vmem:[#allocation196_spill] sm:$0xff]  ;;  %v18529_v46 = vunpack.i.l.bf16 %v16241_v59 }
 0x675   :  { %19625 = vst [vmem:[#allocation93_spill] sm:$0xff] %v16311_v24  ;;  %v4250_v56 = vsel %vm3804_vm12, %v3606_v7, %v19627_v32  ;;  %v4251_v50 = vsel %vm3804_vm12, %v3607_v39, %v19628_v28  ;;  %v5396_v42 = vadd.f32 %v5395_v40, %v5307_v52  ;;  %v5131_v47 = vadd.f32 %v19630_v27, %v13179_v25  ;;  %v19631_v28 = vld [vmem:[#allocation200_spill] sm:$0xff] }
 0x676   :  { %19626 = vst [vmem:[#allocation42_spill] sm:$0xff] %v16325_v62  ;;  %v16333_v24 = vpack.c.bf16 %v4251_v50, %v4250_v56  ;;  %5528 = vmatmul.bf16.gmra.mxu2 %v16325_v62  ;;  %v19632_v27 = vunpack.i.h.bf16 %v16233_v29 }
 0x677   :  { %v10279_v30 = vpop.permute.xlu1 %10278  ;;  %v5485_v49 = vadd.f32 %v5484_v1, %v5396_v42  ;;  %v5220_v52 = vadd.f32 %v19631_v28, %v5131_v47  ;;  %v19637_v28 = vunpack.i.h.bf16 %v16183_v16  ;;  %v8816_v16 = vld [vmem:[%s17965_s3 + $0x2f8] sm:$0xf0] }
 0x678   :  { %19629 = vst [vmem:[#allocation152_spill] sm:$0xff] %v16333_v24  ;;  %5434 = vmatmul.bf16.gmra.mxu1 %v16333_v24  ;;  %v10281_v32 = vunpack.i.h.bf16 %v10279_v30  ;;  %v10280_v61 = vunpack.i.l.bf16 %v10279_v30  ;;  %v4282_v44 = vsel %vm4061_vm14, %v19632_v27, %v18529_v46  ;;  %v19633_v24 = vld [vmem:[#allocation90_spill] sm:$0xff] }
 0x679   :  { %v10274_v7 = vpop.permute.xlu0 %10273  ;;  %v5489_v39 = vpop.f32.mrf.mxu2  ;;  %v5309_v62 = vadd.f32 %v5308_v63, %v5220_v52  ;;  %v19634_v1 = vunpack.i.h.bf16 %v19633_v24  ;;  %v19635_v30 = vunpack.i.l.bf16 %v19633_v24  ;;  %v19639_v52 = vld [vmem:[#allocation44_spill] sm:$0xff] }
 0x67a   :  { %v10276_v56 = vunpack.i.h.bf16 %v10274_v7  ;;  %v10275_v50 = vunpack.i.l.bf16 %v10274_v7  ;;  %v5570_v40 = vpop.f32.mrf.mxu3  ;;  %v19636_v7 = vunpack.i.h.bf16 %v16241_v59 }
 0x67b   :  { %v16347_v48 = vadd.f32 %v5570_v40, %v5482_v36 }
 0x67c   :  { %v3382_v42 = vsel %vm3350_vm11, %v19634_v1, %v10276_v56  ;;  %v3381_v47 = vsel %vm3350_vm11, %v19635_v30, %v10275_v50  ;;  %v4283_v35 = vsel %vm4061_vm14, %v19637_v28, %v19636_v7  ;;  %v5311_v29 = vpop.f32.mrf.mxu0  ;;  %v5397_v14 = vpop.f32.mrf.mxu1  ;;  %v9408_v50 = vld [vmem:[%s17965_s3 + $0x2f4] sm:$0xf] }
 0x67d   :  { %v16360_v27 = vpack.c.bf16 %v4283_v35, %v4282_v44  ;;  %v4220_v36 = vsel %vm3577_vm13, %v3381_v47, %v10280_v61  ;;  %v4221_v63 = vsel %vm3577_vm13, %v3382_v42, %v10281_v32  ;;  %v5312_v56 = vadd.f32 %v5311_v29, %v19639_v52  ;;  %v9376_v44 = vld [vmem:[%s17965_s3 + $0x1f4] sm:$0xf] }
 0x67e   :  { %v5398_v40 = vadd.f32 %v5397_v14, %v5309_v62  ;;  %v16365_v24 = vpack.c.bf16 %v4221_v63, %v4220_v36  ;;  %v8819_v35 = vor.u32 %v9408_v50, %v8816_v16  ;;  %v8688_v14 = vld [vmem:[%s17965_s3 + $0x1f8] sm:$0xf0]  ;;  %v10572_v62 = vld [vmem:[%s17965_s3 + $0x340] sm:$0xff]  ;;  %v16387_v16 = vpop.permute.xlu2 %10283 }
 0x67f   :  { %19638 = vst [vmem:[#allocation180_spill] sm:$0xff] %v16360_v27  ;;  %5612 = vmatmul.bf16.gmra.mxu3 %v16360_v27  ;;  %v4823_v1 = vunpack.c.h.b16 %v10572_v62  ;;  %v8691_v30 = vor.u32 %v9376_v44, %v8688_v14  ;;  %v19640_v44 = vunpack.i.l.bf16 %v16307_v26  ;;  %v19645_v27 = vld [vmem:[#allocation77_spill] sm:$0xff] }
 0x680   :  { %5350 = vmatmul.bf16.gmra.mxu0 %v16365_v24  ;;  %v5487_v42 = vadd.f32 %v5486_v11, %v5398_v40  ;;  %6157 = vmatpush.bf16.msrb.mxu2 %v8819_v35  ;;  %v10294_v11 = vpop.permute.xlu1 %10293 }
 0x681   :  { %v10289_v47 = vpop.permute.xlu0 %10288  ;;  %v4929_v7 = vpack.c.b16 %v4823_v1, %v4823_v1  ;;  %v5491_v36 = vpop.f32.mrf.mxu2  ;;  %5979 = vmatpush.bf16.msrb.mxu0 %v8691_v30  ;;  %v19641_v1 = vunpack.i.l.bf16 %v16283_v20  ;;  %v9392_v30 = vld [vmem:[%s17965_s3 + $0x274] sm:$0xf] }
 0x682   :  { %v10291_v28 = vunpack.i.h.bf16 %v10289_v47  ;;  %v10290_v29 = vunpack.i.l.bf16 %v10289_v47  ;;  %v5573_v63 = vpop.f32.mrf.mxu3 }
 0x683   :  { %v16384_v52 = vadd.f32 %v5573_v63, %v5485_v49  ;;  %v5087_v50 = vsel %vm2954_vm9, %v4929_v7, 0  ;;  %v19643_v63 = vld [vmem:[#allocation29_spill] sm:$0xff] }
 0x684   :  { %v3608_v62 = vsel %vm3577_vm13, %v10280_v61, %v10290_v29  ;;  %v3609_v46 = vsel %vm3577_vm13, %v10281_v32, %v10291_v28  ;;  %6249 = vmatpush.bf16.msrb.mxu3 %v5087_v50  ;;  %v5313_v40 = vpop.f32.mrf.mxu0  ;;  %v5400_v35 = vpop.f32.mrf.mxu1  ;;  %v8752_v61 = vld [vmem:[%s17965_s3 + $0x278] sm:$0xf0]  ;;  %v10296_v28 = vunpack.i.h.bf16 %v10294_v11  ;;  %v10295_v29 = vunpack.i.l.bf16 %v10294_v11  ;;  %v19644_v50 = vld [vmem:[#allocation55_spill] sm:$0xff] }
 0x685   :  { %v4252_v14 = vsel %vm3804_vm12, %v3608_v62, %v19640_v44  ;;  %v4253_v49 = vsel %vm3804_vm12, %v3609_v46, %v19641_v1  ;;  %v5401_v32 = vadd.f32 %v5400_v35, %v5312_v56  ;;  %v8755_v7 = vor.u32 %v9392_v30, %v8752_v61 }
 0x686   :  { %v16403_v47 = vpack.c.bf16 %v4253_v49, %v4252_v14  ;;  %5809 = vmatmul.bf16.vlgmr.msra.gmra.mxu2 %v19643_v63  ;;  %v5136_v62 = vadd.f32 %v19644_v50, %v13179_v25  ;;  %v18532_v46 = vunpack.i.h.bf16 %v16387_v16  ;;  %v18531_v44 = vunpack.i.l.bf16 %v16387_v16 }
 0x687   :  { %v5490_v1 = vadd.f32 %v5489_v39, %v5401_v32  ;;  %6068 = vmatpush.bf16.msrb.mxu1 %v8755_v7  ;;  %v19646_v11 = vunpack.i.h.bf16 %v16307_v26  ;;  %v19647_v30 = vunpack.i.h.bf16 %v14768_v60  ;;  %v19648_v63 = vunpack.i.l.bf16 %v14768_v60 }
 0x688   :  { %19642 = vst [vmem:[#allocation159_spill] sm:$0xff] %v16403_v47  ;;  %5439 = vmatmul.bf16.gmra.mxu1 %v16403_v47  ;;  %v5225_v56 = vadd.f32 %v19645_v27, %v5136_v62  ;;  %v19649_v27 = vunpack.i.h.bf16 %v16283_v20 }
 0x689   :  { %v5494_v35 = vpop.f32.mrf.mxu2  ;;  %v4284_v49 = vsel %vm4061_vm14, %v19646_v11, %v18531_v44  ;;  %v4063_v61 = vsel %vm4061_vm14, %v19647_v30, %v10296_v28  ;;  %v4062_v50 = vsel %vm4061_vm14, %v19648_v63, %v10295_v29  ;;  %v19651_v28 = vld [vmem:[#allocation63_spill] sm:$0xff] }
 0x68a   :  { %v5575_v14 = vpop.f32.mrf.mxu3  ;;  %v5314_v32 = vadd.f32 %v5313_v40, %v5225_v56  ;;  %v4285_v7 = vsel %vm4061_vm14, %v19649_v27, %v18532_v46  ;;  %v16432_v44 = vpack.c.bf16 %v4063_v61, %v4062_v50  ;;  %v10299_v56 = vpop.permute.xlu2 %10298  ;;  %v19652_v50 = vld [vmem:[#allocation88_spill] sm:$0xff] }
 0x68b   :  { %v16423_v39 = vadd.f32 %v5575_v14, %v5487_v42  ;;  %v16430_v11 = vpack.c.bf16 %v4285_v7, %v4284_v49  ;;  %v10301_v27 = vunpack.i.h.bf16 %v10299_v56  ;;  %v10300_v61 = vunpack.i.l.bf16 %v10299_v56 }
 0x68c   :  { %v5316_v26 = vpop.f32.mrf.mxu0  ;;  %v5402_v62 = vpop.f32.mrf.mxu1 }
 0x68d   :  { %19650 = vst [vmem:[#allocation179_spill] sm:$0xff] %v16430_v11  ;;  %v5317_v60 = vadd.f32 %v5316_v26, %v19651_v28  ;;  %v5403_v30 = vadd.f32 %v5402_v62, %v5314_v32  ;;  %v19653_v32 = vld [vmem:[#allocation62_spill] sm:$0xff]  ;;  %v19654_v26 = vld [vmem:[#allocation45_spill] sm:$0xff]  ;;  %v19655_v28 = vld [vmem:[#allocation71_spill] sm:$0xff] }
 0x68e   :  { %v5141_v7 = vadd.f32 %v19653_v32, %v13179_v25 }
 0x68f   :  { %5617 = vmatmul.bf16.gmra.mxu3 %v16430_v11  ;;  %v5492_v42 = vadd.f32 %v5491_v36, %v5403_v30 }
 0x690   :  { %8852 = vmatmul.msk.bf16.vlgmr.msra.gmra.mxu0 %vm5034_vm15, %v16432_v44  ;;  %v5230_v36 = vadd.f32 %v19655_v28, %v5141_v7 }
 0x691   :  { %v5496_v40 = vpop.f32.mrf.mxu2 }
 0x692   :  { %v5578_v20 = vpop.f32.mrf.mxu3 }
 0x693   :  { %v16438_v29 = vadd.f32 %v5578_v20, %v5490_v1  ;;  %v19656_v1 = vunpack.i.h.bf16 %v14829_v18 }
 0x694   :  { %v5318_v14 = vpop.f32.mrf.mxu0  ;;  %v5405_v49 = vpop.f32.mrf.mxu1 }
 0x695   :  { %v5406_v63 = vadd.f32 %v5405_v49, %v5317_v60  ;;  %v4065_v20 = vsel %vm4061_vm14, %v19656_v1, %v10301_v27  ;;  %v19657_v60 = vunpack.i.l.bf16 %v14829_v18  ;;  %v8808_v18 = vld [vmem:[%s17965_s3 + $0x2e8] sm:$0xf0] }
 0x696   :  { %5814 = vmatmul.bf16.gmra.mxu2 %v19652_v50  ;;  %v5319_v50 = vadd.f32 %v5318_v14, %v5230_v36 }
 0x697   :  { %v5495_v62 = vadd.f32 %v5494_v35, %v5406_v63  ;;  %v4064_v56 = vsel %vm4061_vm14, %v19657_v60, %v10300_v61  ;;  %v19659_v35 = vld [vmem:[#allocation4_spill] sm:$0xff]  ;;  %v9390_v61 = vld [vmem:[%s17965_s3 + $0x264] sm:$0xf]  ;;  %v10304_v60 = vpop.permute.xlu0 %10303 }
 0x698   :  { %5720 = vmatmul.bf16.vlgmr.msra.gmra.mxu1 %v19654_v26  ;;  %v16453_v11 = vpack.c.bf16 %v4065_v20, %v4064_v56  ;;  %v9406_v26 = vld [vmem:[%s17965_s3 + $0x2e4] sm:$0xf] }
 0x699   :  { %v5499_v30 = vpop.f32.mrf.mxu2 }
 0x69a   :  { %v5580_v46 = vpop.f32.mrf.mxu3  ;;  %19658 = vst [vmem:[#allocation174_spill] sm:$0xff] %v16453_v11 }
 0x69b   :  { %v16451_v49 = vadd.f32 %v5580_v46, %v5492_v42  ;;  %v8811_v46 = vor.u32 %v9406_v26, %v8808_v18  ;;  %v9374_v42 = vld [vmem:[%s17965_s3 + $0x1e4] sm:$0xf]  ;;  %v19661_v26 = vld [vmem:[#allocation79_spill] sm:$0xff] }
 0x69c   :  { %v5321_v47 = vpop.f32.mrf.mxu0  ;;  %v5407_v32 = vpop.f32.mrf.mxu1  ;;  %v5146_v18 = vadd.f32 %v19661_v26, %v13179_v25 }
 0x69d   :  { %v5322_v63 = vadd.f32 %v5321_v47, %v19659_v35  ;;  %v5408_v7 = vadd.f32 %v5407_v32, %v5319_v50  ;;  %v8680_v47 = vld [vmem:[%s17965_s3 + $0x1e8] sm:$0xf0]  ;;  %6158 = vmatpush.bf16.msrb.mxu2 %v8811_v46  ;;  %v10306_v32 = vunpack.i.h.bf16 %v10304_v60  ;;  %v10305_v35 = vunpack.i.l.bf16 %v10304_v60 }
 0x69e   :  { %v8683_v27 = vor.u32 %v9374_v42, %v8680_v47  ;;  %v19662_v42 = vld [vmem:[#allocation58_spill] sm:$0xff] }
 0x69f   :  { %5898 = vmatmul.bf16.vlgmr.msra.gmra.mxu3 %v14984_v15  ;;  %v5497_v14 = vadd.f32 %v5496_v40, %v5408_v7  ;;  %v8744_v15 = vld [vmem:[%s17965_s3 + $0x268] sm:$0xf0]  ;;  %v19660_v7 = vld [vmem:[#allocation96_spill] sm:$0xff]  ;;  %v19663_v47 = vld [vmem:[#allocation122_spill] sm:$0xff] }
 0x6a0   :  { %8853 = vmatmul.msk.bf16.gmra.mxu0 %vm5034_vm15, %v16453_v11  ;;  %v8747_v28 = vor.u32 %v9390_v61, %v8744_v15  ;;  %v5235_v61 = vadd.f32 %v19663_v47, %v5146_v18  ;;  %v19664_v15 = vunpack.i.h.bf16 %v14862_v9 }
 0x6a1   :  { %v5501_v36 = vpop.f32.mrf.mxu2  ;;  %5980 = vmatpush.bf16.msrb.mxu0 %v8683_v27 }
 0x6a2   :  { %v5583_v1 = vpop.f32.mrf.mxu3  ;;  %6069 = vmatpush.bf16.msrb.mxu1 %v8747_v28  ;;  %v4067_v28 = vsel %vm4061_vm14, %v19664_v15, %v10306_v32 }
 0x6a3   :  { %v16477_v20 = vadd.f32 %v5583_v1, %v5495_v62 }
 0x6a4   :  { %v5323_v56 = vpop.f32.mrf.mxu0  ;;  %v5410_v40 = vpop.f32.mrf.mxu1 }
 0x6a5   :  { %v5411_v50 = vadd.f32 %v5410_v40, %v5322_v63  ;;  %v19665_v63 = vunpack.i.l.bf16 %v14862_v9  ;;  %v5324_v40 = vadd.f32 %v5323_v56, %v5235_v61  ;;  %v8848_v56 = vld [vmem:[%s17965_s3 + $0x338] sm:$0xf0] }
 0x6a6   :  { %5819 = vmatmul.bf16.gmra.mxu2 %v19660_v7 }
 0x6a7   :  { %v5500_v46 = vadd.f32 %v5499_v30, %v5411_v50  ;;  %v4066_v1 = vsel %vm4061_vm14, %v19665_v63, %v10305_v35  ;;  %v19667_v30 = vld [vmem:[#allocation81_spill] sm:$0xff]  ;;  %v10309_v35 = vpop.permute.xlu1 %10308  ;;  %v19668_v63 = vld [vmem:[#allocation104_spill] sm:$0xff] }
 0x6a8   :  { %5725 = vmatmul.bf16.gmra.mxu1 %v19662_v42  ;;  %v16492_v11 = vpack.c.bf16 %v4067_v28, %v4066_v1  ;;  %v10311_v28 = vunpack.i.h.bf16 %v10309_v35 }
 0x6a9   :  { %v5504_v27 = vpop.f32.mrf.mxu2 }
 0x6aa   :  { %v5585_v62 = vpop.f32.mrf.mxu3  ;;  %19666 = vst [vmem:[#allocation161_spill] sm:$0xff] %v16492_v11 }
 0x6ab   :  { %v16490_v60 = vadd.f32 %v5585_v62, %v5497_v14  ;;  %v9416_v14 = vld [vmem:[%s17965_s3 + $0x334] sm:$0xf] }
 0x6ac   :  { %v5326_v7 = vpop.f32.mrf.mxu0  ;;  %v5412_v26 = vpop.f32.mrf.mxu1  ;;  %v8851_v61 = vor.u32 %v9416_v14, %v8848_v56  ;;  %v19672_v14 = vunpack.i.h.bf16 %v14951_v17 }
 0x6ad   :  { %v5327_v50 = vadd.f32 %v5326_v7, %v19667_v30  ;;  %v5413_v18 = vadd.f32 %v5412_v26, %v5324_v40  ;;  %v19670_v40 = vld [vmem:[#allocation64_spill] sm:$0xff] }
 0x6ae   :  { %6250 = vmatpush.bf16.msrb.mxu3 %v8851_v61  ;;  %v19671_v26 = vld [vmem:[#allocation80_spill] sm:$0xff]  ;;  %v4069_v56 = vsel %vm4061_vm14, %v19672_v14, %v10311_v28  ;;  %v8672_v28 = vld [vmem:[%s17965_s3 + $0x1d8] sm:$0xf0] }
 0x6af   :  { %5903 = vmatmul.bf16.gmra.mxu3 %v15094_v3  ;;  %v5502_v32 = vadd.f32 %v5501_v36, %v5413_v18  ;;  %v10310_v36 = vunpack.i.l.bf16 %v10309_v35 }
 0x6b0   :  { %8854 = vmatmul.msk.bf16.gmra.mxu0 %vm5034_vm15, %v16492_v11 }
 0x6b1   :  { %v5506_v42 = vpop.f32.mrf.mxu2 }
 0x6b2   :  { %v5588_v9 = vpop.f32.mrf.mxu3 }
 0x6b3   :  { %v16498_v47 = vadd.f32 %v5588_v9, %v5500_v46  ;;  %v19669_v46 = vld [vmem:[#allocation52_spill] sm:$0xff] }
 0x6b4   :  { %v5328_v62 = vpop.f32.mrf.mxu0  ;;  %v5415_v3 = vpop.f32.mrf.mxu1  ;;  %v5151_v1 = vadd.f32 %v19669_v46, %v13179_v25 }
 0x6b5   :  { %v5416_v15 = vadd.f32 %v5415_v3, %v5327_v50  ;;  %v19673_v50 = vunpack.i.l.bf16 %v14951_v17  ;;  %v8800_v17 = vld [vmem:[%s17965_s3 + $0x2d8] sm:$0xf0] }
 0x6b6   :  { %5824 = vmatmul.bf16.gmra.mxu2 %v19668_v63  ;;  %v5240_v30 = vadd.f32 %v19671_v26, %v5151_v1 }
 0x6b7   :  { %v5505_v7 = vadd.f32 %v5504_v27, %v5416_v15  ;;  %v4068_v35 = vsel %vm4061_vm14, %v19673_v50, %v10310_v36  ;;  %v19674_v27 = vld [vmem:[#allocation105_spill] sm:$0xff] }
 0x6b8   :  { %5730 = vmatmul.bf16.gmra.mxu1 %v19670_v40  ;;  %v5329_v3 = vadd.f32 %v5328_v62, %v5240_v30  ;;  %v16519_v11 = vpack.c.bf16 %v4069_v56, %v4068_v35  ;;  %v9404_v40 = vld [vmem:[%s17965_s3 + $0x2d4] sm:$0xf]  ;;  %v10314_v35 = vpop.permute.xlu2 %10313 }
 0x6b9   :  { %v5509_v18 = vpop.f32.mrf.mxu2  ;;  %v9372_v62 = vld [vmem:[%s17965_s3 + $0x1d4] sm:$0xf] }
 0x6ba   :  { %v5590_v9 = vpop.f32.mrf.mxu3  ;;  %v8675_v26 = vor.u32 %v9372_v62, %v8672_v28  ;;  %v9388_v30 = vld [vmem:[%s17965_s3 + $0x254] sm:$0xf] }
 0x6bb   :  { %v16517_v61 = vadd.f32 %v5590_v9, %v5502_v32  ;;  %v8803_v32 = vor.u32 %v9404_v40, %v8800_v17  ;;  %v5156_v40 = vadd.f32 %v15191_v45, %v13179_v25  ;;  %v19676_v17 = vld [vmem:[#allocation68_spill] sm:$0xff] }
 0x6bc   :  { %v5331_v63 = vpop.f32.mrf.mxu0  ;;  %v5417_v46 = vpop.f32.mrf.mxu1  ;;  %5981 = vmatpush.bf16.msrb.mxu0 %v8675_v26  ;;  %v19677_v26 = vunpack.i.h.bf16 %v15046_v51 }
 0x6bd   :  { %v5332_v15 = vadd.f32 %v5331_v63, %v19674_v27  ;;  %v5418_v1 = vadd.f32 %v5417_v46, %v5329_v3  ;;  %6159 = vmatpush.bf16.msrb.mxu2 %v8803_v32  ;;  %v10316_v46 = vunpack.i.h.bf16 %v10314_v35  ;;  %v10315_v27 = vunpack.i.l.bf16 %v10314_v35 }
 0x6be   :  { %v5245_v62 = vadd.f32 %v15239_v41, %v5156_v40 }
 0x6bf   :  { %5908 = vmatmul.bf16.gmra.mxu3 %v15179_v0  ;;  %v5507_v36 = vadd.f32 %v5506_v42, %v5418_v1  ;;  %v8736_v0 = vld [vmem:[%s17965_s3 + $0x258] sm:$0xf0]  ;;  %v19675_v1 = vld [vmem:[#allocation15_spill] sm:$0xff] }
 0x6c0   :  { %8855 = vmatmul.msk.bf16.gmra.mxu0 %vm5034_vm15, %v16519_v11  ;;  %v8739_v9 = vor.u32 %v9388_v30, %v8736_v0  ;;  %v4071_v30 = vsel %vm4061_vm14, %v19677_v26, %v10316_v46 }
 0x6c1   :  { %v5511_v14 = vpop.f32.mrf.mxu2 }
 0x6c2   :  { %v5593_v56 = vpop.f32.mrf.mxu3  ;;  %6070 = vmatpush.bf16.msrb.mxu1 %v8739_v9 }
 0x6c3   :  { %v16543_v50 = vadd.f32 %v5593_v56, %v5505_v7 }
 0x6c4   :  { %v5333_v3 = vpop.f32.mrf.mxu0  ;;  %v5420_v42 = vpop.f32.mrf.mxu1 }
 0x6c5   :  { %v5421_v63 = vadd.f32 %v5420_v42, %v5332_v15  ;;  %v19678_v15 = vunpack.i.l.bf16 %v15046_v51  ;;  %v5334_v56 = vadd.f32 %v5333_v3, %v5245_v62 }
 0x6c6   :  { %5829 = vmatmul.bf16.gmra.mxu2 %v19675_v1 }
 0x6c7   :  { %v5510_v32 = vadd.f32 %v5509_v18, %v5421_v63  ;;  %v4070_v0 = vsel %vm4061_vm14, %v19678_v15, %v10315_v27 }
 0x6c8   :  { %5735 = vmatmul.bf16.gmra.mxu1 %v19676_v17  ;;  %v16558_v42 = vpack.c.bf16 %v4071_v30, %v4070_v0 }
 0x6c9   :  { %v5514_v28 = vpop.f32.mrf.mxu2 }
 0x6ca   :  { %v5595_v7 = vpop.f32.mrf.mxu3 }
 0x6cb   :  { %v16556_v9 = vadd.f32 %v5595_v7, %v5507_v36  ;;  %v10319_v36 = vpop.permute.xlu0 %10318  ;;  %v19679_v7 = vld [vmem:[#allocation137_spill] sm:$0xff] }
 0x6cc   :  { %v5336_v35 = vpop.f32.mrf.mxu0  ;;  %v5422_v45 = vpop.f32.mrf.mxu1  ;;  %v10321_v17 = vunpack.i.h.bf16 %v10319_v36  ;;  %v10320_v62 = vunpack.i.l.bf16 %v10319_v36  ;;  %v9402_v36 = vld [vmem:[%s17965_s3 + $0x2c4] sm:$0xf] }
 0x6cd   :  { %v5337_v18 = vadd.f32 %v5336_v35, %v15303_v55  ;;  %v5423_v41 = vadd.f32 %v5422_v45, %v5334_v56  ;;  %v5161_v55 = vadd.f32 %v15319_v53, %v13179_v25  ;;  %v19682_v56 = vunpack.i.l.bf16 %v15149_v38 }
 0x6cf   :  { %5913 = vmatmul.bf16.gmra.mxu3 %v15282_v34  ;;  %v5512_v63 = vadd.f32 %v5511_v14, %v5423_v41  ;;  %v19680_v34 = vld [vmem:[#allocation74_spill] sm:$0xff]  ;;  %v5250_v14 = vadd.f32 %v15347_v12, %v5161_v55  ;;  %v4072_v35 = vsel %vm4061_vm14, %v19682_v56, %v10320_v62  ;;  %v8840_v56 = vld [vmem:[%s17965_s3 + $0x328] sm:$0xf0] }
 0x6d0   :  { %8856 = vmatmul.msk.bf16.gmra.mxu0 %vm5034_vm15, %v16558_v42 }
 0x6d1   :  { %v5516_v46 = vpop.f32.mrf.mxu2 }
 0x6d2   :  { %v5598_v51 = vpop.f32.mrf.mxu3 }
 0x6d3   :  { %v16564_v1 = vadd.f32 %v5598_v51, %v5510_v32  ;;  %v19681_v32 = vunpack.i.h.bf16 %v15149_v38  ;;  %v8792_v38 = vld [vmem:[%s17965_s3 + $0x2c8] sm:$0xf0] }
 0x6d4   :  { %v5338_v27 = vpop.f32.mrf.mxu0  ;;  %v5425_v3 = vpop.f32.mrf.mxu1 }
 0x6d5   :  { %v5426_v40 = vadd.f32 %v5425_v3, %v5337_v18  ;;  %v4073_v0 = vsel %vm4061_vm14, %v19681_v32, %v10321_v17  ;;  %v5339_v18 = vadd.f32 %v5338_v27, %v5250_v14  ;;  %v9370_v27 = vld [vmem:[%s17965_s3 + $0x1c4] sm:$0xf]  ;;  %v10324_v14 = vpop.permute.xlu1 %10323 }
 0x6d6   :  { %5834 = vmatmul.bf16.gmra.mxu2 %v19679_v7  ;;  %v16579_v51 = vpack.c.bf16 %v4073_v0, %v4072_v35  ;;  %v9386_v17 = vld [vmem:[%s17965_s3 + $0x244] sm:$0xf]  ;;  %v10326_v35 = vunpack.i.h.bf16 %v10324_v14 }
 0x6d7   :  { %v5515_v26 = vadd.f32 %v5514_v28, %v5426_v40  ;;  %v9414_v0 = vld [vmem:[%s17965_s3 + $0x324] sm:$0xf] }
 0x6d8   :  { %5740 = vmatmul.bf16.gmra.mxu1 %v19680_v34 }
 0x6d9   :  { %v5519_v30 = vpop.f32.mrf.mxu2 }
 0x6da   :  { %v5600_v15 = vpop.f32.mrf.mxu3 }
 0x6db   :  { %v16577_v45 = vadd.f32 %v5600_v15, %v5512_v63  ;;  %v8795_v63 = vor.u32 %v9402_v36, %v8792_v38 }
 0x6dc   :  { %v5341_v41 = vpop.f32.mrf.mxu0  ;;  %v5427_v53 = vpop.f32.mrf.mxu1 }
 0x6dd   :  { %v5342_v28 = vadd.f32 %v5341_v41, %v15394_v31  ;;  %v5428_v12 = vadd.f32 %v5427_v53, %v5339_v18  ;;  %v8664_v31 = vld [vmem:[%s17965_s3 + $0x1c8] sm:$0xf0]  ;;  %6160 = vmatpush.bf16.msrb.mxu2 %v8795_v63  ;;  %v10325_v18 = vunpack.i.l.bf16 %v10324_v14  ;;  %v8843_v53 = vor.u32 %v9414_v0, %v8840_v56  ;;  %v10329_v56 = vpop.permute.xlu2 %10328 }
 0x6de   :  { %v8667_v40 = vor.u32 %v9370_v27, %v8664_v31  ;;  %v19683_v41 = vld [vmem:[#allocation143_spill] sm:$0xff]  ;;  %v19685_v27 = vunpack.i.h.bf16 %v15252_v6 }
 0x6df   :  { %5918 = vmatmul.bf16.gmra.mxu3 %v15377_v21  ;;  %v5517_v3 = vadd.f32 %v5516_v46, %v5428_v12  ;;  %v8728_v21 = vld [vmem:[%s17965_s3 + $0x248] sm:$0xf0]  ;;  %v19684_v12 = vld [vmem:[#allocation84_spill] sm:$0xff] }
 0x6e0   :  { %8857 = vmatmul.msk.bf16.gmra.mxu0 %vm5034_vm15, %v16579_v51  ;;  %v8731_v62 = vor.u32 %v9386_v17, %v8728_v21  ;;  %6251 = vmatpush.bf16.msrb.mxu3 %v8843_v53  ;;  %v4075_v31 = vsel %vm4061_vm14, %v19685_v27, %v10326_v35  ;;  %v10331_v53 = vunpack.i.h.bf16 %v10329_v56 }
 0x6e1   :  { %v5521_v7 = vpop.f32.mrf.mxu2  ;;  %5982 = vmatpush.bf16.msrb.mxu0 %v8667_v40  ;;  %v19686_v40 = vunpack.i.l.bf16 %v15252_v6  ;;  %v5171_v6 = vadd.f32 %v15587_v19, %v13179_v25 }
 0x6e2   :  { %v5603_v55 = vpop.f32.mrf.mxu3  ;;  %6071 = vmatpush.bf16.msrb.mxu1 %v8731_v62 }
 0x6e3   :  { %v16603_v34 = vadd.f32 %v5603_v55, %v5515_v26  ;;  %v5166_v26 = vadd.f32 %v15441_v4, %v13179_v25  ;;  %v4074_v17 = vsel %vm4061_vm14, %v19686_v40, %v10325_v18 }
 0x6e4   :  { %v5343_v15 = vpop.f32.mrf.mxu0  ;;  %v16624_v14 = vpack.c.bf16 %v4075_v31, %v4074_v17 }
 0x6e5   :  { %v5430_v46 = vpop.f32.mrf.mxu1 }
 0x6e6   :  { %v5431_v32 = vadd.f32 %v5430_v46, %v5342_v28  ;;  %5839 = vmatmul.bf16.gmra.mxu2 %v19683_v41  ;;  %v5255_v28 = vadd.f32 %v15641_v8, %v5166_v26  ;;  %v19687_v26 = vld [vmem:[#allocation158_spill] sm:$0xff] }
 0x6e8   :  { %5745 = vmatmul.bf16.gmra.mxu1 %v19684_v12  ;;  %v5520_v36 = vadd.f32 %v5519_v30, %v5431_v32  ;;  %v5344_v62 = vadd.f32 %v5343_v15, %v5255_v28  ;;  %v5260_v15 = vadd.f32 %v15750_v5, %v5171_v6  ;;  %v19688_v12 = vld [vmem:[#allocation98_spill] sm:$0xff]  ;;  %v19690_v5 = vunpack.i.l.bf16 %v15387_v54  ;;  %v19693_v6 = vld [vmem:[#allocation5_spill] sm:$0xff] }
 0x6e9   :  { %v5524_v38 = vpop.f32.mrf.mxu2 }
 0x6ea   :  { %v5605_v63 = vpop.f32.mrf.mxu3 }
 0x6eb   :  { %v16622_v21 = vadd.f32 %v5605_v63, %v5517_v3  ;;  %v19689_v63 = vunpack.i.h.bf16 %v15387_v54  ;;  %v5176_v54 = vadd.f32 %v19693_v6, %v13179_v25  ;;  %v9368_v25 = vld [vmem:[%s17965_s3 + $0x1b4] sm:$0xf]  ;;  %v19697_v6 = vunpack.i.h.bf16 %v15518_v2 }
 0x6ed   :  { %v5346_v4 = vpop.f32.mrf.mxu0  ;;  %v5432_v55 = vpop.f32.mrf.mxu1 }
 0x6ee   :  { %v5347_v30 = vadd.f32 %v5346_v4, %v15711_v43  ;;  %v5433_v8 = vadd.f32 %v5432_v55, %v5344_v62  ;;  %v19691_v4 = vld [vmem:[#allocation112_spill] sm:$0xff] }
 0x6ef   :  { %5923 = vmatmul.bf16.gmra.mxu3 %v15478_v58  ;;  %v10330_v58 = vunpack.i.l.bf16 %v10329_v56  ;;  %v19694_v56 = vld [vmem:[#allocation25_spill] sm:$0xff] }
 0x6f0   :  { %8858 = vmatmul.msk.bf16.gmra.mxu0 %vm5034_vm15, %v16624_v14  ;;  %v5522_v46 = vadd.f32 %v5521_v7, %v5433_v8 }
 0x6f1   :  { %v5526_v32 = vpop.f32.mrf.mxu2  ;;  %v4076_v27 = vsel %vm4061_vm14, %v19690_v5, %v10330_v58 }
 0x6f2   :  { %v5608_v3 = vpop.f32.mrf.mxu3 }
 0x6f3   :  { %v16632_v0 = vadd.f32 %v5608_v3, %v5520_v36  ;;  %v4077_v36 = vsel %vm4061_vm14, %v19689_v63, %v10331_v53  ;;  %v8720_v63 = vld [vmem:[%s17965_s3 + $0x238] sm:$0xf0] }
 0x6f4   :  { %v16645_v62 = vpack.c.bf16 %v4077_v36, %v4076_v27  ;;  %v19695_v27 = vld [vmem:[#allocation48_spill] sm:$0xff] }
 0x6f5   :  { %v5348_v35 = vpop.f32.mrf.mxu0  ;;  %v5435_v18 = vpop.f32.mrf.mxu1 }
 0x6f6   :  { %v5349_v43 = vadd.f32 %v5348_v35, %v5260_v15  ;;  %v5436_v41 = vadd.f32 %v5435_v18, %v5347_v30  ;;  %5844 = vmatmul.bf16.gmra.mxu2 %v19687_v26  ;;  %v5265_v35 = vadd.f32 %v19694_v56, %v5176_v54  ;;  %v10334_v18 = vpop.permute.xlu0 %10333 }
 0x6f7   :  { %v10336_v36 = vunpack.i.h.bf16 %v10334_v18  ;;  %v10335_v5 = vunpack.i.l.bf16 %v10334_v18 }
 0x6f8   :  { %5750 = vmatmul.bf16.gmra.mxu1 %v19688_v12  ;;  %v5525_v7 = vadd.f32 %v5524_v38, %v5436_v41  ;;  %v19692_v38 = vld [vmem:[#allocation123_spill] sm:$0xff] }
 0x6f9   :  { %v5529_v28 = vpop.f32.mrf.mxu2  ;;  %v4079_v54 = vsel %vm4061_vm14, %v19697_v6, %v10336_v36 }
 0x6fa   :  { %v5610_v19 = vpop.f32.mrf.mxu3 }
 0x6fb   :  { %v16643_v31 = vadd.f32 %v5610_v19, %v5522_v46  ;;  %v9384_v19 = vld [vmem:[%s17965_s3 + $0x234] sm:$0xf] }
 0x6fd   :  { %v5351_v40 = vpop.f32.mrf.mxu0  ;;  %v5437_v17 = vpop.f32.mrf.mxu1 }
 0x6fe   :  { %v5352_v55 = vadd.f32 %v5351_v40, %v19691_v4  ;;  %v5438_v30 = vadd.f32 %v5437_v17, %v5349_v43  ;;  %v9400_v43 = vld [vmem:[%s17965_s3 + $0x2b4] sm:$0xf]  ;;  %v8723_v17 = vor.u32 %v9384_v19, %v8720_v63  ;;  %v19696_v4 = vld [vmem:[#allocation114_spill] sm:$0xff]  ;;  %v10339_v19 = vpop.permute.xlu1 %10338 }
 0x6ff   :  { %5928 = vmatmul.bf16.gmra.mxu3 %v19692_v38 }
 0x700   :  { %8859 = vmatmul.msk.bf16.gmra.mxu0 %vm5034_vm15, %v16645_v62  ;;  %v5527_v8 = vadd.f32 %v5526_v32, %v5438_v30  ;;  %v8784_v32 = vld [vmem:[%s17965_s3 + $0x2b8] sm:$0xf0]  ;;  %6072 = vmatpush.bf16.msrb.mxu1 %v8723_v17 }
 0x701   :  { %v5531_v3 = vpop.f32.mrf.mxu2  ;;  %v8787_v12 = vor.u32 %v9400_v43, %v8784_v32  ;;  %v19699_v32 = vld [vmem:[#allocation110_spill] sm:$0xff] }
 0x702   :  { %v5613_v15 = vpop.f32.mrf.mxu3 }
 0x703   :  { %v16653_v46 = vadd.f32 %v5613_v15, %v5525_v7  ;;  %v8656_v7 = vld [vmem:[%s17965_s3 + $0x1b8] sm:$0xf0]  ;;  %6161 = vmatpush.bf16.msrb.mxu2 %v8787_v12  ;;  %v19698_v15 = vunpack.i.l.bf16 %v15518_v2  ;;  %v10573_v2 = vld [vmem:[%s17966_s4] sm:$0x3] }
 0x704   :  { %v8659_v40 = vor.u32 %v9368_v25, %v8656_v7 }
 0x705   :  { %v5353_v41 = vpop.f32.mrf.mxu0  ;;  %v5440_v53 = vpop.f32.mrf.mxu1  ;;  %v4078_v56 = vsel %vm4061_vm14, %v19698_v15, %v10335_v5 }
 0x706   :  { %v5354_v58 = vadd.f32 %v5353_v41, %v5265_v35  ;;  %v5441_v26 = vadd.f32 %v5440_v53, %v5352_v55  ;;  %5849 = vmatmul.bf16.gmra.mxu2 %v19695_v27  ;;  %5983 = vmatpush.bf16.msrb.mxu0 %v8659_v40  ;;  %v16684_v53 = vpack.c.bf16 %v4079_v54, %v4078_v56  ;;  %v10341_v27 = vunpack.i.h.bf16 %v10339_v19  ;;  %v19700_v40 = vld [vmem:[#allocation172_spill] sm:$0xff] }
 0x707   :  { %v19702_v56 = vunpack.i.h.bf16 %v15639_v57 }
 0x708   :  { %5755 = vmatmul.bf16.gmra.mxu1 %v19696_v4  ;;  %v5530_v55 = vadd.f32 %v5529_v28, %v5441_v26  ;;  %v19701_v4 = vld [vmem:[#allocation118_spill] sm:$0xff] }
 0x709   :  { %v5810_v38 = vpop.f32.mrf.mxu2 }
 0x70a   :  { %v5615_v30 = vpop.f32.mrf.mxu3 }
 0x70b   :  { %v16682_v35 = vadd.f32 %v5615_v30, %v5527_v8  ;;  %v16693_v8 = vperm.slane %v10573_v2, 1  ;;  %v9412_v2 = vld [vmem:[%s17965_s3 + $0x314] sm:$0xf] }
 0x70d   :  { %v5442_v18 = vpop.f32.mrf.mxu1  ;;  %v5632_v41 = vpop.f32.mrf.mxu0 }
 0x70e   :  { %v5443_v28 = vadd.f32 %v5442_v18, %v5354_v58  ;;  %v5633_v43 = vadd.f32 %v5632_v41, %v15913_v13  ;;  %v4081_v18 = vsel %vm4061_vm14, %v19702_v56, %v10341_v27 }
 0x70f   :  { %5933 = vmatmul.bf16.gmra.mxu3 %v19699_v32 }
 0x710   :  { %8860 = vmatmul.msk.bf16.gmra.mxu0 %vm5034_vm15, %v16684_v53  ;;  %v5532_v25 = vadd.f32 %v5531_v3, %v5443_v28  ;;  %v6335_v13 = vmax.f32 %v5633_v43, 0.0  ;;  %v10340_v3 = vunpack.i.l.bf16 %v10339_v19  ;;  %v8832_v19 = vld [vmem:[%s17965_s3 + $0x318] sm:$0xf0] }
 0x711   :  { %v5812_v12 = vpop.f32.mrf.mxu2 }
 0x712   :  { %v5618_v26 = vpop.f32.mrf.mxu3  ;;  %v6463_v6 = vrot.slane %v6335_v13, 2 }
 0x713   :  { %v16695_v7 = vadd.f32 %v5618_v26, %v5530_v55 }
 0x715   :  { %v5634_v58 = vpop.f32.mrf.mxu0  ;;  %v5721_v63 = vpop.f32.mrf.mxu1 }
 0x716   :  { %v5635_v36 = vadd.f32 %v5634_v58, %v15957_v33  ;;  %v5722_v5 = vadd.f32 %v5721_v63, %v16693_v8  ;;  %5854 = vmatmul.bf16.gmra.mxu2 %v19700_v40  ;;  %v19703_v33 = vunpack.i.l.bf16 %v15639_v57  ;;  %v8835_v63 = vor.u32 %v9412_v2, %v8832_v19 }
 0x718   :  { %v6337_v17 = vmax.f32 %v5635_v36, 0.0  ;;  %5760 = vmatmul.bf16.gmra.mxu1 %v19701_v4  ;;  %v5811_v30 = vadd.f32 %v5810_v38, %v5722_v5  ;;  %v4080_v41 = vsel %vm4061_vm14, %v19703_v33, %v10340_v3  ;;  %v19705_v36 = vld [vmem:[#allocation113_spill] sm:$0xff]  ;;  %6252 = vmatpush.bf16.msrb.mxu3 %v8835_v63  ;;  %v9398_v33 = vld [vmem:[%s17965_s3 + $0x2a4] sm:$0xf] }
 0x719   :  { %v5815_v15 = vpop.f32.mrf.mxu2  ;;  %v16718_v58 = vpack.c.bf16 %v4081_v18, %v4080_v41 }
 0x71a   :  { %v6464_v54 = vrot.slane %v6337_v17, 2  ;;  %v5620_v55 = vpop.f32.mrf.mxu3 }
 0x71b   :  { %v16707_v28 = vadd.f32 %v5620_v55, %v5532_v25  ;;  %19704 = vst [vmem:[#allocation160_spill] sm:$0xff] %v16718_v58 }
 0x71c   :  { %v6465_v43 = vsel %vm445_vm6, %v6463_v6, %v6464_v54  ;;  %v10344_v6 = vpop.permute.xlu2 %10343 }
 0x71d   :  { %v16710_v32 = vmax.f32 %v6335_v13, %v6465_v43  ;;  %v5637_v26 = vpop.f32.mrf.mxu0  ;;  %v5723_v38 = vpop.f32.mrf.mxu1  ;;  %v8648_v43 = vld [vmem:[%s17965_s3 + $0x1a8] sm:$0xf0]  ;;  %v10346_v2 = vunpack.i.h.bf16 %v10344_v6  ;;  %v10345_v19 = vunpack.i.l.bf16 %v10344_v6 }
 0x71e   :  { %v5638_v57 = vadd.f32 %v5637_v26, %v15995_v10  ;;  %v5724_v25 = vadd.f32 %v5723_v38, %v16693_v8  ;;  %v9382_v26 = vld [vmem:[%s17965_s3 + $0x224] sm:$0xf]  ;;  %v8712_v38 = vld [vmem:[%s17965_s3 + $0x228] sm:$0xf0] }
 0x71f   :  { %5938 = vmatmul.bf16.gmra.mxu3 %v19705_v36  ;;  %v19708_v36 = vld [vmem:[#allocation132_spill] sm:$0xff] }
 0x720   :  { %v6339_v13 = vmax.f32 %v5638_v57, 0.0  ;;  %8861 = vmatmul.msk.bf16.gmra.mxu0 %vm5034_vm15, %v16718_v58  ;;  %v5813_v5 = vadd.f32 %v5812_v12, %v5724_v25  ;;  %v8776_v12 = vld [vmem:[%s17965_s3 + $0x2a8] sm:$0xf0]  ;;  %v19707_v57 = vld [vmem:[#allocation197_spill] sm:$0xff]  ;;  %v8715_v25 = vor.u32 %v9382_v26, %v8712_v38  ;;  %v19714_v38 = vld [vmem:[#allocation144_spill] sm:$0xff] }
 0x721   :  { %v5817_v3 = vpop.f32.mrf.mxu2 }
 0x722   :  { %v6469_v27 = vrot.slane %v6339_v13, 2  ;;  %v5899_v40 = vpop.f32.mrf.mxu3  ;;  %6073 = vmatpush.bf16.msrb.mxu1 %v8715_v25 }
 0x723   :  { %v16725_v4 = vadd.f32 %v5899_v40, %v5811_v30  ;;  %v9366_v30 = vld [vmem:[%s17965_s3 + $0x1a4] sm:$0xf] }
 0x724   :  { %v6470_v55 = vsel %vm445_vm6, %v6464_v54, %v6469_v27 }
 0x725   :  { %v16728_v10 = vmax.f32 %v6337_v17, %v6470_v55  ;;  %v5639_v56 = vpop.f32.mrf.mxu0  ;;  %v5726_v18 = vpop.f32.mrf.mxu1  ;;  %v8779_v17 = vor.u32 %v9398_v33, %v8776_v12  ;;  %v19709_v33 = vld [vmem:[#allocation124_spill] sm:$0xff] }
 0x726   :  { %v5640_v41 = vadd.f32 %v5639_v56, %v16039_v37  ;;  %v5727_v54 = vadd.f32 %v5726_v18, %v16693_v8  ;;  %5859 = vmatmul.bf16.gmra.mxu2 %v19707_v57  ;;  %v8651_v37 = vor.u32 %v9366_v30, %v8648_v43  ;;  %v19710_v12 = vunpack.i.h.bf16 %v19709_v33 }
 0x727   :  { %19706 = vst [vmem:[#allocation201_spill] sm:$0xff] %v16728_v10  ;;  %6162 = vmatpush.bf16.msrb.mxu2 %v8779_v17  ;;  %v19711_v6 = vunpack.i.l.bf16 %v19709_v33 }
 0x728   :  { %v6341_v63 = vmax.f32 %v5640_v41, 0.0  ;;  %5765 = vmatmul.bf16.gmra.mxu1 %v19708_v36  ;;  %v5816_v40 = vadd.f32 %v5815_v15, %v5727_v54  ;;  %5984 = vmatpush.bf16.msrb.mxu0 %v8651_v37  ;;  %v4083_v58 = vsel %vm4061_vm14, %v19710_v12, %v10346_v2  ;;  %v19715_v37 = vld [vmem:[#allocation3_spill] sm:$0xff] }
 0x729   :  { %v5820_v56 = vpop.f32.mrf.mxu2  ;;  %v4082_v57 = vsel %vm4061_vm14, %v19711_v6, %v10345_v19 }
 0x72a   :  { %v6473_v55 = vrot.slane %v6341_v63, 2  ;;  %v5901_v18 = vpop.f32.mrf.mxu3  ;;  %v16763_v17 = vpack.c.bf16 %v4083_v58, %v4082_v57  ;;  %v19717_v58 = vld [vmem:[#allocation167_spill] sm:$0xff]  ;;  %v19718_v57 = vld [vmem:[#allocation33_spill] sm:$0xff] }
 0x72b   :  { %v16758_v30 = vadd.f32 %v5901_v18, %v5813_v5 }
 0x72c   :  { %v6474_v41 = vsel %vm445_vm6, %v6469_v27, %v6473_v55  ;;  %19713 = vst [vmem:[#allocation20_spill] sm:$0xff] %v16763_v17 }
 0x72d   :  { %v16761_v43 = vmax.f32 %v6339_v13, %v6474_v41  ;;  %v5642_v15 = vpop.f32.mrf.mxu0  ;;  %v5728_v54 = vpop.f32.mrf.mxu1 }
 0x72e   :  { %v5729_v26 = vadd.f32 %v5728_v54, %v16693_v8  ;;  %v5643_v19 = vadd.f32 %v5642_v15, %v19715_v37  ;;  %v10349_v13 = vpop.permute.xlu0 %10348  ;;  %v19720_v37 = vld [vmem:[#allocation115_spill] sm:$0xff] }
 0x72f   :  { %19712 = vst [vmem:[#allocation183_spill] sm:$0xff] %v16761_v43  ;;  %5943 = vmatmul.bf16.gmra.mxu3 %v19714_v38  ;;  %v10351_v12 = vunpack.i.h.bf16 %v10349_v13  ;;  %v10350_v6 = vunpack.i.l.bf16 %v10349_v13 }
 0x730   :  { %8862 = vmatmul.msk.bf16.gmra.mxu0 %vm5034_vm15, %v16763_v17  ;;  %v5818_v2 = vadd.f32 %v5817_v3, %v5729_v26  ;;  %v6343_v55 = vmax.f32 %v5643_v19, 0.0  ;;  %v19719_v3 = vld [vmem:[#allocation157_spill] sm:$0xff] }
 0x731   :  { %v5822_v5 = vpop.f32.mrf.mxu2 }
 0x732   :  { %v5904_v25 = vpop.f32.mrf.mxu3  ;;  %v6477_v54 = vrot.slane %v6343_v55, 2 }
 0x733   :  { %v16770_v63 = vadd.f32 %v5904_v25, %v5816_v40  ;;  %v19721_v25 = vunpack.i.h.bf16 %v19720_v37 }
 0x735   :  { %19716 = vst [vmem:[#allocation27_spill] sm:$0xff] %v16770_v63  ;;  %v5644_v27 = vpop.f32.mrf.mxu0  ;;  %v5731_v36 = vpop.f32.mrf.mxu1  ;;  %v4085_v19 = vsel %vm4061_vm14, %v19721_v25, %v10351_v12  ;;  %v19725_v63 = vld [vmem:[#allocation116_spill] sm:$0xff] }
 0x736   :  { %v5645_v18 = vadd.f32 %v5644_v27, %v19717_v58  ;;  %v5732_v33 = vadd.f32 %v5731_v36, %v16693_v8  ;;  %5864 = vmatmul.bf16.gmra.mxu2 %v19718_v57  ;;  %v19722_v27 = vunpack.i.l.bf16 %v19720_v37 }
 0x738   :  { %v6345_v41 = vmax.f32 %v5645_v18, 0.0  ;;  %5770 = vmatmul.bf16.gmra.mxu1 %v19719_v3  ;;  %v5821_v15 = vadd.f32 %v5820_v56, %v5732_v33  ;;  %v4084_v36 = vsel %vm4061_vm14, %v19722_v27, %v10350_v6  ;;  %v19724_v3 = vld [vmem:[#allocation127_spill] sm:$0xff] }
 0x739   :  { %v5825_v40 = vpop.f32.mrf.mxu2  ;;  %v16787_v33 = vpack.c.bf16 %v4085_v19, %v4084_v36 }
 0x73a   :  { %v6478_v26 = vrot.slane %v6345_v41, 2  ;;  %v5906_v38 = vpop.f32.mrf.mxu3 }
 0x73b   :  { %v16782_v58 = vadd.f32 %v5906_v38, %v5818_v2  ;;  %19723 = vst [vmem:[#allocation203_spill] sm:$0xff] %v16787_v33 }
 0x73c   :  { %v6479_v13 = vsel %vm445_vm6, %v6477_v54, %v6478_v26 }
 0x73d   :  { %v16785_v18 = vmax.f32 %v6343_v55, %v6479_v13  ;;  %v5647_v57 = vpop.f32.mrf.mxu0  ;;  %v5733_v56 = vpop.f32.mrf.mxu1  ;;  %v8640_v13 = vld [vmem:[%s17965_s3 + $0x198] sm:$0xf0] }
 0x73e   :  { %v5648_v43 = vadd.f32 %v5647_v57, %v19724_v3  ;;  %v5734_v17 = vadd.f32 %v5733_v56, %v16693_v8  ;;  %v10354_v55 = vpop.permute.xlu1 %10353  ;;  %v9380_v57 = vld [vmem:[%s17965_s3 + $0x214] sm:$0xf]  ;;  %v8704_v56 = vld [vmem:[%s17965_s3 + $0x218] sm:$0xf0] }
 0x73f   :  { %5948 = vmatmul.bf16.gmra.mxu3 %v19725_v63  ;;  %v10356_v63 = vunpack.i.h.bf16 %v10354_v55  ;;  %v10355_v3 = vunpack.i.l.bf16 %v10354_v55 }
 0x740   :  { %v6347_v12 = vmax.f32 %v5648_v43, 0.0  ;;  %8863 = vmatmul.msk.bf16.gmra.mxu0 %vm5034_vm15, %v16787_v33  ;;  %v5823_v2 = vadd.f32 %v5822_v5, %v5734_v17  ;;  %v9396_v43 = vld [vmem:[%s17965_s3 + $0x294] sm:$0xf]  ;;  %v8768_v17 = vld [vmem:[%s17965_s3 + $0x298] sm:$0xf0] }
 0x741   :  { %v5827_v38 = vpop.f32.mrf.mxu2  ;;  %v9364_v5 = vld [vmem:[%s17965_s3 + $0x194] sm:$0xf] }
 0x742   :  { %v6483_v6 = vrot.slane %v6347_v12, 2  ;;  %v5909_v54 = vpop.f32.mrf.mxu3 }
 0x743   :  { %v16794_v37 = vadd.f32 %v5909_v54, %v5821_v15  ;;  %v19728_v54 = vld [vmem:[#allocation65_spill] sm:$0xff] }
 0x744   :  { %v6484_v25 = vsel %vm445_vm6, %v6478_v26, %v6483_v6  ;;  %v8771_v26 = vor.u32 %v9396_v43, %v8768_v17  ;;  %v19730_v43 = vld [vmem:[#allocation165_spill] sm:$0xff] }
 0x745   :  { %19726 = vst [vmem:[#allocation162_spill] sm:$0xff] %v16794_v37  ;;  %v16797_v19 = vmax.f32 %v6345_v41, %v6484_v25  ;;  %v5649_v27 = vpop.f32.mrf.mxu0  ;;  %v5736_v36 = vpop.f32.mrf.mxu1  ;;  %v8643_v25 = vor.u32 %v9364_v5, %v8640_v13  ;;  %v19732_v5 = vunpack.i.l.bf16 %v16024_v22 }
 0x746   :  { %v5650_v15 = vadd.f32 %v5649_v27, %v16197_v23  ;;  %v5737_v41 = vadd.f32 %v5736_v36, %v16693_v8  ;;  %5869 = vmatmul.bf16.gmra.mxu2 %v19728_v54  ;;  %v8707_v27 = vor.u32 %v9380_v57, %v8704_v56  ;;  %v19731_v54 = vunpack.i.h.bf16 %v16024_v22  ;;  %v9410_v56 = vld [vmem:[%s17965_s3 + $0x304] sm:$0xf] }
 0x747   :  { %19727 = vst [vmem:[#allocation202_spill] sm:$0xff] %v16797_v19  ;;  %v16822_v23 = vpack.i.bf16 %v16797_v19, %v16728_v10  ;;  %6163 = vmatpush.bf16.msrb.mxu2 %v8771_v26  ;;  %5985 = vmatpush.bf16.msrb.mxu0 %v8643_v25  ;;  %v19741_v19 = vld [vmem:[#allocation146_spill] sm:$0xff] }
 0x748   :  { %v6349_v36 = vmax.f32 %v5650_v15, 0.0  ;;  %5775 = vmatmul.bf16.gmra.mxu1 %v19730_v43  ;;  %v5826_v17 = vadd.f32 %v5825_v40, %v5737_v41  ;;  %v4087_v10 = vsel %vm4061_vm14, %v19731_v54, %v10356_v63  ;;  %v4086_v15 = vsel %vm4061_vm14, %v19732_v5, %v10355_v3  ;;  %v8824_v63 = vld [vmem:[%s17965_s3 + $0x308] sm:$0xf0]  ;;  %v10359_v43 = vpop.permute.xlu2 %10358 }
 0x749   :  { %19729 = vst [vmem:[#allocation188_spill] sm:$0xff] %v16822_v23  ;;  %10373 = vrot.lane.b32.xlu0 %v16822_v23, %s10580_s12  ;;  %v5830_v55 = vpop.f32.mrf.mxu2  ;;  %6074 = vmatpush.bf16.msrb.mxu1 %v8707_v27  ;;  %v16844_v25 = vpack.c.bf16 %v4087_v10, %v4086_v15  ;;  %v19738_v15 = vld [vmem:[#allocation136_spill] sm:$0xff] }
 0x74a   :  { %v6487_v33 = vrot.slane %v6349_v36, 2  ;;  %v5911_v37 = vpop.f32.mrf.mxu3 }
 0x74b   :  { %v16833_v13 = vadd.f32 %v5911_v37, %v5823_v2  ;;  %19734 = vst [vmem:[#allocation163_spill] sm:$0xff] %v16844_v25  ;;  %v8827_v2 = vor.u32 %v9410_v56, %v8824_v63  ;;  %v19735_v37 = vld [vmem:[#allocation37_spill] sm:$0xff]  ;;  %v10361_v56 = vunpack.i.h.bf16 %v10359_v43  ;;  %v10360_v63 = vunpack.i.l.bf16 %v10359_v43 }
 0x74c   :  { %v6488_v40 = vsel %vm445_vm6, %v6483_v6, %v6487_v33 }
 0x74d   :  { %v16836_v41 = vmax.f32 %v6347_v12, %v6488_v40  ;;  %v5652_v26 = vpop.f32.mrf.mxu0  ;;  %v5738_v57 = vpop.f32.mrf.mxu1  ;;  %6253 = vmatpush.bf16.msrb.mxu3 %v8827_v2  ;;  %v19736_v12 = vld [vmem:[#allocation134_spill] sm:$0xff] }
 0x74e   :  { %v5739_v22 = vadd.f32 %v5738_v57, %v16693_v8  ;;  %v5653_v6 = vadd.f32 %v5652_v26, %v19736_v12 }
 0x74f   :  { %19733 = vst [vmem:[#allocation9_spill] sm:$0xff] %v16836_v41  ;;  %5953 = vmatmul.bf16.gmra.mxu3 %v19735_v37  ;;  %v19739_v37 = vld [vmem:[#allocation61_spill] sm:$0xff]  ;;  %v19742_v41 = vunpack.i.h.bf16 %v19741_v19 }
 0x750   :  { %8864 = vmatmul.msk.bf16.gmra.mxu0 %vm5034_vm15, %v16844_v25  ;;  %v5828_v33 = vadd.f32 %v5827_v38, %v5739_v22  ;;  %v6351_v5 = vmax.f32 %v5653_v6, 0.0  ;;  %v19740_v22 = vld [vmem:[#allocation31_spill] sm:$0xff] }
 0x751   :  { %v5832_v3 = vpop.f32.mrf.mxu2  ;;  %v4089_v6 = vsel %vm4061_vm14, %v19742_v41, %v10361_v56 }
 0x752   :  { %v5914_v27 = vpop.f32.mrf.mxu3  ;;  %v6491_v2 = vrot.slane %v6351_v5, 2 }
 0x753   :  { %v16851_v36 = vadd.f32 %v5914_v27, %v5826_v17 }
 0x755   :  { %19737 = vst [vmem:[#allocation24_spill] sm:$0xff] %v16851_v36  ;;  %v5654_v54 = vpop.f32.mrf.mxu0  ;;  %v5741_v10 = vpop.f32.mrf.mxu1  ;;  %v19747_v36 = vld [vmem:[#allocation128_spill] sm:$0xff] }
 0x756   :  { %v5655_v40 = vadd.f32 %v5654_v54, %v19738_v15  ;;  %v5742_v57 = vadd.f32 %v5741_v10, %v16693_v8  ;;  %5874 = vmatmul.bf16.gmra.mxu2 %v19739_v37  ;;  %v19743_v54 = vunpack.i.l.bf16 %v19741_v19 }
 0x758   :  { %v6353_v38 = vmax.f32 %v5655_v40, 0.0  ;;  %5780 = vmatmul.bf16.gmra.mxu1 %v19740_v22  ;;  %v5831_v26 = vadd.f32 %v5830_v55, %v5742_v57  ;;  %v4088_v10 = vsel %vm4061_vm14, %v19743_v54, %v10360_v63  ;;  %v19746_v22 = vld [vmem:[#allocation93_spill] sm:$0xff] }
 0x759   :  { %v5835_v17 = vpop.f32.mrf.mxu2  ;;  %v16868_v57 = vpack.c.bf16 %v4089_v6, %v4088_v10 }
 0x75a   :  { %v6492_v12 = vrot.slane %v6353_v38, 2  ;;  %v5916_v27 = vpop.f32.mrf.mxu3 }
 0x75b   :  { %v16863_v15 = vadd.f32 %v5916_v27, %v5828_v33  ;;  %19745 = vst [vmem:[#allocation181_spill] sm:$0xff] %v16868_v57  ;;  %v10364_v27 = vpop.permute.xlu0 %10363 }
 0x75c   :  { %v6493_v43 = vsel %vm445_vm6, %v6491_v2, %v6492_v12 }
 0x75d   :  { %v16866_v40 = vmax.f32 %v6351_v5, %v6493_v43  ;;  %v5657_v37 = vpop.f32.mrf.mxu0  ;;  %v5743_v55 = vpop.f32.mrf.mxu1  ;;  %v8632_v43 = vld [vmem:[%s17965_s3 + $0x188] sm:$0xf0] }
 0x75e   :  { %v5658_v23 = vadd.f32 %v5657_v37, %v19746_v22  ;;  %v5744_v25 = vadd.f32 %v5743_v55, %v16693_v8  ;;  %v9378_v37 = vld [vmem:[%s17965_s3 + $0x204] sm:$0xf]  ;;  %v8696_v55 = vld [vmem:[%s17965_s3 + $0x208] sm:$0xf0]  ;;  %v10366_v22 = vunpack.i.h.bf16 %v10364_v27 }
 0x75f   :  { %19744 = vst [vmem:[#allocation182_spill] sm:$0xff] %v16866_v40  ;;  %5958 = vmatmul.bf16.gmra.mxu3 %v19747_v36  ;;  %v10377_v19 = vpack.i.bf16 %v16866_v40, %v16785_v18 }
 0x760   :  { %v6355_v41 = vmax.f32 %v5658_v23, 0.0  ;;  %8865 = vmatmul.msk.bf16.gmra.mxu0 %vm5034_vm15, %v16868_v57  ;;  %v5833_v33 = vadd.f32 %v5832_v3, %v5744_v25  ;;  %v9394_v23 = vld [vmem:[%s17965_s3 + $0x284] sm:$0xf]  ;;  %v8760_v25 = vld [vmem:[%s17965_s3 + $0x288] sm:$0xf0]  ;;  %v19752_v57 = vunpack.i.l.bf16 %v16241_v59 }
 0x761   :  { %10378 = vrot.lane.b32.xlu1 %v10377_v19, %s10580_s12  ;;  %v5837_v56 = vpop.f32.mrf.mxu2  ;;  %v9362_v3 = vld [vmem:[%s17965_s3 + $0x184] sm:$0xf]  ;;  %v10365_v19 = vunpack.i.l.bf16 %v10364_v27  ;;  %v19753_v27 = vunpack.i.h.bf16 %v16241_v59  ;;  %s10581_s3 = smov 112  }
 0x762   :  { %v6497_v5 = vrot.slane %v6355_v41, 2  ;;  %v5919_v63 = vpop.f32.mrf.mxu3 }
 0x763   :  { %v16878_v2 = vadd.f32 %v5919_v63, %v5831_v26  ;;  %v19750_v63 = vld [vmem:[#allocation101_spill] sm:$0xff] }
 0x764   :  { %v6498_v6 = vsel %vm445_vm6, %v6492_v12, %v6497_v5 }
 0x765   :  { %19748 = vst [vmem:[#allocation47_spill] sm:$0xff] %v16878_v2  ;;  %v16881_v54 = vmax.f32 %v6353_v38, %v6498_v6  ;;  %v5659_v36 = vpop.f32.mrf.mxu0  ;;  %v5746_v10 = vpop.f32.mrf.mxu1  ;;  %v8763_v38 = vor.u32 %v9394_v23, %v8760_v25  ;;  %v8699_v6 = vor.u32 %v9378_v37, %v8696_v55  ;;  %v4090_v2 = vsel %vm4061_vm14, %v19752_v57, %v10365_v19  ;;  %v19755_v55 = vld [vmem:[#allocation171_spill] sm:$0xff] }
 0x766   :  { %v5660_v26 = vadd.f32 %v5659_v36, %v16347_v48  ;;  %v5747_v12 = vadd.f32 %v5746_v10, %v16693_v8  ;;  %5879 = vmatmul.bf16.gmra.mxu2 %v19750_v63  ;;  %v8635_v48 = vor.u32 %v9362_v3, %v8632_v43  ;;  %v19751_v10 = vld [vmem:[#allocation186_spill] sm:$0xff]  ;;  %v4091_v63 = vsel %vm4061_vm14, %v19753_v27, %v10366_v22 }
 0x767   :  { %19749 = vst [vmem:[#allocation204_spill] sm:$0xff] %v16881_v54  ;;  %6164 = vmatpush.bf16.msrb.mxu2 %v8763_v38  ;;  %6075 = vmatpush.bf16.msrb.mxu1 %v8699_v6  ;;  %v16916_v38 = vpack.c.bf16 %v4091_v63, %v4090_v2 }
 0x768   :  { %v6357_v36 = vmax.f32 %v5660_v26, 0.0  ;;  %5785 = vmatmul.bf16.gmra.mxu1 %v19751_v10  ;;  %v5836_v23 = vadd.f32 %v5835_v17, %v5747_v12  ;;  %5986 = vmatpush.bf16.msrb.mxu0 %v8635_v48 }
 0x769   :  { %v5840_v54 = vpop.f32.mrf.mxu2 }
 0x76a   :  { %v6501_v25 = vrot.slane %v6357_v36, 2  ;;  %v5921_v40 = vpop.f32.mrf.mxu3 }
 0x76b   :  { %v16911_v3 = vadd.f32 %v5921_v40, %v5833_v33 }
 0x76c   :  { %v6502_v26 = vsel %vm445_vm6, %v6497_v5, %v6501_v25  ;;  %v19756_v25 = vld [vmem:[#allocation69_spill] sm:$0xff] }
 0x76d   :  { %v16914_v43 = vmax.f32 %v6355_v41, %v6502_v26  ;;  %v5662_v17 = vpop.f32.mrf.mxu0  ;;  %v5748_v12 = vpop.f32.mrf.mxu1 }
 0x76e   :  { %v5749_v37 = vadd.f32 %v5748_v12, %v16693_v8  ;;  %v5663_v57 = vadd.f32 %v5662_v17, %v16384_v52  ;;  %v10369_v41 = vpop.permute.xlu1 %10368  ;;  %v19758_v12 = vunpack.i.h.bf16 %v16387_v16 }
 0x76f   :  { %19754 = vst [vmem:[#allocation187_spill] sm:$0xff] %v16914_v43  ;;  %5963 = vmatmul.bf16.gmra.mxu3 %v19755_v55  ;;  %v10371_v36 = vunpack.i.h.bf16 %v10369_v41  ;;  %v10370_v10 = vunpack.i.l.bf16 %v10369_v41 }
 0x770   :  { %8866 = vmatmul.msk.bf16.gmra.mxu0 %vm5034_vm15, %v16916_v38  ;;  %v5838_v59 = vadd.f32 %v5837_v56, %v5749_v37  ;;  %v6359_v48 = vmax.f32 %v5663_v57, 0.0  ;;  %v19757_v56 = vld [vmem:[#allocation199_spill] sm:$0xff] }
 0x771   :  { %v5842_v40 = vpop.f32.mrf.mxu2  ;;  %v4093_v37 = vsel %vm4061_vm14, %v19758_v12, %v10371_v36 }
 0x772   :  { %v5924_v33 = vpop.f32.mrf.mxu3  ;;  %v6505_v63 = vrot.slane %v6359_v48, 2 }
 0x773   :  { %v16923_v22 = vadd.f32 %v5924_v33, %v5836_v23 }
 0x775   :  { %v5664_v5 = vpop.f32.mrf.mxu0  ;;  %v5751_v19 = vpop.f32.mrf.mxu1 }
 0x776   :  { %v5665_v2 = vadd.f32 %v5664_v5, %v16423_v39  ;;  %v5752_v6 = vadd.f32 %v5751_v19, %v16693_v8  ;;  %5884 = vmatmul.bf16.gmra.mxu2 %v19756_v25  ;;  %v19759_v39 = vunpack.i.l.bf16 %v16387_v16  ;;  %v19760_v25 = vld [vmem:[#allocation173_spill] sm:$0xff] }
 0x778   :  { %v6361_v27 = vmax.f32 %v5665_v2, 0.0  ;;  %5790 = vmatmul.bf16.gmra.mxu1 %v19757_v56  ;;  %v5841_v52 = vadd.f32 %v5840_v54, %v5752_v6  ;;  %v4092_v55 = vsel %vm4061_vm14, %v19759_v39, %v10370_v10 }
 0x779   :  { %v5845_v23 = vpop.f32.mrf.mxu2  ;;  %v16940_v19 = vpack.c.bf16 %v4093_v37, %v4092_v55 }
 0x77a   :  { %v6506_v26 = vrot.slane %v6361_v27, 2  ;;  %v5926_v17 = vpop.f32.mrf.mxu3 }
 0x77b   :  { %v16935_v57 = vadd.f32 %v5926_v17, %v5838_v59 }
 0x77c   :  { %v6507_v33 = vsel %vm445_vm6, %v6505_v63, %v6506_v26 }
 0x77d   :  { %v16938_v41 = vmax.f32 %v6359_v48, %v6507_v33  ;;  %v5667_v5 = vpop.f32.mrf.mxu0  ;;  %v5753_v54 = vpop.f32.mrf.mxu1  ;;  %v19762_v33 = vld [vmem:[#allocation94_spill] sm:$0xff] }
 0x77e   :  { %v5668_v2 = vadd.f32 %v5667_v5, %v16438_v29  ;;  %v5754_v6 = vadd.f32 %v5753_v54, %v16693_v8  ;;  %v19763_v5 = vld [vmem:[#allocation60_spill] sm:$0xff] }
 0x77f   :  { %5968 = vmatmul.bf16.gmra.mxu3 %v19760_v25  ;;  %v10382_v16 = vpack.i.bf16 %v16938_v41, %v16710_v32 }
 0x780   :  { %v6363_v36 = vmax.f32 %v5668_v2, 0.0  ;;  %8867 = vmatmul.msk.bf16.gmra.mxu0 %vm5034_vm15, %v16940_v19  ;;  %v5843_v59 = vadd.f32 %v5842_v40, %v5754_v6 }
 0x781   :  { %10383 = vrot.lane.b32.xlu2 %v10382_v16, %s10580_s12  ;;  %v5847_v10 = vpop.f32.mrf.mxu2 }
 0x782   :  { %v6511_v48 = vrot.slane %v6363_v36, 2  ;;  %v5929_v56 = vpop.f32.mrf.mxu3 }
 0x783   :  { %v16950_v63 = vadd.f32 %v5929_v56, %v5841_v52 }
 0x784   :  { %v6512_v29 = vsel %vm445_vm6, %v6506_v26, %v6511_v48 }
 0x785   :  { %v16953_v17 = vmax.f32 %v6361_v27, %v6512_v29  ;;  %v5669_v12 = vpop.f32.mrf.mxu0  ;;  %v5756_v37 = vpop.f32.mrf.mxu1  ;;  %v19765_v29 = vld [vmem:[#allocation91_spill] sm:$0xff] }
 0x786   :  { %v5670_v39 = vadd.f32 %v5669_v12, %v16451_v49  ;;  %v5757_v55 = vadd.f32 %v5756_v37, %v16693_v8  ;;  %6165 = vmatmul.bf16.vlgmr.msrb.gmra.mxu2 %v19762_v33 }
 0x787   :  { %19761 = vst [vmem:[#allocation184_spill] sm:$0xff] %v16953_v17 }
 0x788   :  { %v6365_v40 = vmax.f32 %v5670_v39, 0.0  ;;  %5795 = vmatmul.bf16.gmra.mxu1 %v19763_v5  ;;  %v5846_v54 = vadd.f32 %v5845_v23, %v5757_v55  ;;  %v19766_v5 = vld [vmem:[#allocation107_spill] sm:$0xff] }
 0x789   :  { %v5850_v6 = vpop.f32.mrf.mxu2 }
 0x78a   :  { %v6515_v2 = vrot.slane %v6365_v40, 2  ;;  %v5931_v52 = vpop.f32.mrf.mxu3 }
 0x78b   :  { %v16959_v25 = vadd.f32 %v5931_v52, %v5843_v59 }
 0x78c   :  { %v6516_v27 = vsel %vm445_vm6, %v6511_v48, %v6515_v2 }
 0x78d   :  { %v16962_v26 = vmax.f32 %v6363_v36, %v6516_v27  ;;  %v5672_v16 = vpop.f32.mrf.mxu0  ;;  %v5758_v56 = vpop.f32.mrf.mxu1 }
 0x78e   :  { %v5759_v49 = vadd.f32 %v5758_v56, %v16693_v8  ;;  %v5673_v23 = vadd.f32 %v5672_v16, %v16477_v20 }
 0x78f   :  { %19764 = vst [vmem:[#allocation135_spill] sm:$0xff] %v16962_v26  ;;  %5973 = vmatmul.bf16.gmra.mxu3 %v16365_v24  ;;  %v19767_v24 = vld [vmem:[#allocation73_spill] sm:$0xff] }
 0x790   :  { %5987 = vmatmul.bf16.vlgmr.msrb.gmra.mxu0 %v19765_v29  ;;  %v5848_v12 = vadd.f32 %v5847_v10, %v5759_v49  ;;  %v6367_v48 = vmax.f32 %v5673_v23, 0.0 }
 0x791   :  { %v5852_v37 = vpop.f32.mrf.mxu2 }
 0x792   :  { %v5934_v39 = vpop.f32.mrf.mxu3  ;;  %v6519_v10 = vrot.slane %v6367_v48, 2 }
 0x793   :  { %v16968_v55 = vadd.f32 %v5934_v39, %v5846_v54 }
 0x795   :  { %v5674_v59 = vpop.f32.mrf.mxu0  ;;  %v5761_v33 = vpop.f32.mrf.mxu1 }
 0x796   :  { %v5675_v36 = vadd.f32 %v5674_v59, %v16490_v60  ;;  %v5762_v40 = vadd.f32 %v5761_v33, %v16693_v8  ;;  %6170 = vmatmul.bf16.gmra.mxu2 %v19766_v5  ;;  %v19768_v59 = vld [vmem:[#allocation70_spill] sm:$0xff] }
 0x798   :  { %v6369_v2 = vmax.f32 %v5675_v36, 0.0  ;;  %6076 = vmatmul.bf16.vlgmr.msrb.gmra.mxu1 %v19767_v24  ;;  %v5851_v52 = vadd.f32 %v5850_v6, %v5762_v40 }
 0x799   :  { %v5855_v20 = vpop.f32.mrf.mxu2 }
 0x79a   :  { %v6520_v27 = vrot.slane %v6369_v2, 2  ;;  %v5936_v16 = vpop.f32.mrf.mxu3 }
 0x79b   :  { %v16974_v56 = vadd.f32 %v5936_v16, %v5848_v12 }
 0x79c   :  { %v6521_v54 = vsel %vm445_vm6, %v6519_v10, %v6520_v27 }
 0x79d   :  { %v16977_v49 = vmax.f32 %v6367_v48, %v6521_v54  ;;  %v5677_v29 = vpop.f32.mrf.mxu0  ;;  %v5763_v60 = vpop.f32.mrf.mxu1 }
 0x79e   :  { %v5678_v23 = vadd.f32 %v5677_v29, %v16498_v47  ;;  %v5764_v39 = vadd.f32 %v5763_v60, %v16693_v8  ;;  %v19771_v60 = vld [vmem:[#allocation102_spill] sm:$0xff] }
 0x79f   :  { %8868 = vmatmul.msk.bf16.vlgmr.msrb.gmra.mxu3 %vm5034_vm15, %v16432_v44  ;;  %v19770_v44 = vld [vmem:[#allocation92_spill] sm:$0xff] }
 0x7a0   :  { %v6371_v6 = vmax.f32 %v5678_v23, 0.0  ;;  %5992 = vmatmul.bf16.gmra.mxu0 %v19768_v59  ;;  %v5853_v33 = vadd.f32 %v5852_v37, %v5764_v39 }
 0x7a1   :  { %v5857_v12 = vpop.f32.mrf.mxu2 }
 0x7a2   :  { %v6525_v36 = vrot.slane %v6371_v6, 2  ;;  %v5939_v40 = vpop.f32.mrf.mxu3 }
 0x7a3   :  { %v16984_v5 = vadd.f32 %v5939_v40, %v5851_v52 }
 0x7a4   :  { %v6526_v48 = vsel %vm445_vm6, %v6520_v27, %v6525_v36 }
 0x7a5   :  { %v16987_v24 = vmax.f32 %v6369_v2, %v6526_v48  ;;  %v5679_v10 = vpop.f32.mrf.mxu0  ;;  %v5766_v47 = vpop.f32.mrf.mxu1 }
 0x7a6   :  { %v5680_v16 = vadd.f32 %v5679_v10, %v16517_v61  ;;  %v5767_v54 = vadd.f32 %v5766_v47, %v16693_v8  ;;  %6175 = vmatmul.bf16.gmra.mxu2 %v19770_v44  ;;  %v19773_v10 = vld [vmem:[#allocation174_spill] sm:$0xff]  ;;  %v19774_v47 = vld [vmem:[#allocation28_spill] sm:$0xff] }
 0x7a7   :  { %19769 = vst [vmem:[#allocation50_spill] sm:$0xff] %v16987_v24 }
 0x7a8   :  { %v6373_v29 = vmax.f32 %v5680_v16, 0.0  ;;  %6081 = vmatmul.bf16.gmra.mxu1 %v19771_v60  ;;  %v5856_v37 = vadd.f32 %v5855_v20, %v5767_v54 }
 0x7a9   :  { %v5860_v39 = vpop.f32.mrf.mxu2 }
 0x7aa   :  { %v6529_v23 = vrot.slane %v6373_v29, 2  ;;  %v5941_v52 = vpop.f32.mrf.mxu3 }
 0x7ab   :  { %v16993_v59 = vadd.f32 %v5941_v52, %v5853_v33  ;;  %v19775_v52 = vld [vmem:[#allocation108_spill] sm:$0xff] }
 0x7ac   :  { %v6530_v2 = vsel %vm445_vm6, %v6525_v36, %v6529_v23 }
 0x7ad   :  { %v16996_v27 = vmax.f32 %v6371_v6, %v6530_v2  ;;  %v5682_v40 = vpop.f32.mrf.mxu0  ;;  %v5768_v48 = vpop.f32.mrf.mxu1 }
 0x7ae   :  { %v5769_v61 = vadd.f32 %v5768_v48, %v16693_v8  ;;  %v5683_v20 = vadd.f32 %v5682_v40, %v16543_v50  ;;  %v19776_v48 = vld [vmem:[#allocation72_spill] sm:$0xff] }
 0x7af   :  { %19772 = vst [vmem:[#allocation190_spill] sm:$0xff] %v16996_v27  ;;  %8869 = vmatmul.msk.bf16.gmra.mxu3 %vm5034_vm15, %v19773_v10  ;;  %v19781_v27 = vld [vmem:[#allocation82_spill] sm:$0xff] }
 0x7b0   :  { %5997 = vmatmul.bf16.gmra.mxu0 %v19774_v47  ;;  %v5858_v16 = vadd.f32 %v5857_v12, %v5769_v61  ;;  %v6375_v6 = vmax.f32 %v5683_v20, 0.0 }
 0x7b1   :  { %v5862_v54 = vpop.f32.mrf.mxu2 }
 0x7b2   :  { %v5944_v44 = vpop.f32.mrf.mxu3  ;;  %v6533_v12 = vrot.slane %v6375_v6, 2 }
 0x7b3   :  { %v17003_v33 = vadd.f32 %v5944_v44, %v5856_v37 }
 0x7b5   :  { %v5684_v29 = vpop.f32.mrf.mxu0  ;;  %v5771_v36 = vpop.f32.mrf.mxu1 }
 0x7b6   :  { %v5685_v60 = vadd.f32 %v5684_v29, %v16556_v9  ;;  %v5772_v23 = vadd.f32 %v5771_v36, %v16693_v8  ;;  %6180 = vmatmul.bf16.gmra.mxu2 %v19775_v52  ;;  %v19779_v52 = vld [vmem:[#allocation109_spill] sm:$0xff] }
 0x7b8   :  { %v6377_v2 = vmax.f32 %v5685_v60, 0.0  ;;  %6086 = vmatmul.bf16.gmra.mxu1 %v19776_v48  ;;  %v5861_v10 = vadd.f32 %v5860_v39, %v5772_v23  ;;  %v19778_v60 = vld [vmem:[#allocation161_spill] sm:$0xff] }
 0x7b9   :  { %v5865_v50 = vpop.f32.mrf.mxu2 }
 0x7ba   :  { %v6534_v61 = vrot.slane %v6377_v2, 2  ;;  %v5946_v40 = vpop.f32.mrf.mxu3 }
 0x7bb   :  { %v17009_v47 = vadd.f32 %v5946_v40, %v5858_v16 }
 0x7bc   :  { %v6535_v37 = vsel %vm445_vm6, %v6533_v12, %v6534_v61 }
 0x7bd   :  { %v17012_v44 = vmax.f32 %v6375_v6, %v6535_v37  ;;  %v5687_v20 = vpop.f32.mrf.mxu0  ;;  %v5773_v9 = vpop.f32.mrf.mxu1 }
 0x7be   :  { %v5688_v29 = vadd.f32 %v5687_v20, %v16564_v1  ;;  %v5774_v36 = vadd.f32 %v5773_v9, %v16693_v8 }
 0x7bf   :  { %19777 = vst [vmem:[#allocation192_spill] sm:$0xff] %v17012_v44  ;;  %8870 = vmatmul.msk.bf16.gmra.mxu3 %vm5034_vm15, %v19778_v60  ;;  %v10387_v39 = vpack.i.bf16 %v17012_v44, %v16977_v49 }
 0x7c0   :  { %v6379_v23 = vmax.f32 %v5688_v29, 0.0  ;;  %6002 = vmatmul.bf16.gmra.mxu0 %v19779_v52  ;;  %v5863_v16 = vadd.f32 %v5862_v54, %v5774_v36  ;;  %v19782_v36 = vld [vmem:[#allocation106_spill] sm:$0xff] }
 0x7c1   :  { %10388 = vrot.lane.b32.xlu0 %v10387_v39, %s10580_s12  ;;  %v5867_v48 = vpop.f32.mrf.mxu2 }
 0x7c2   :  { %v6539_v6 = vrot.slane %v6379_v23, 2  ;;  %v5949_v12 = vpop.f32.mrf.mxu3 }
 0x7c3   :  { %v17022_v40 = vadd.f32 %v5949_v12, %v5861_v10 }
 0x7c4   :  { %v6540_v1 = vsel %vm445_vm6, %v6534_v61, %v6539_v6 }
 0x7c5   :  { %v17025_v37 = vmax.f32 %v6377_v2, %v6540_v1  ;;  %v5689_v20 = vpop.f32.mrf.mxu0  ;;  %v5776_v9 = vpop.f32.mrf.mxu1 }
 0x7c6   :  { %v5690_v60 = vadd.f32 %v5689_v20, %v16577_v45  ;;  %v5777_v29 = vadd.f32 %v5776_v9, %v16693_v8  ;;  %6185 = vmatmul.bf16.gmra.mxu2 %v19781_v27  ;;  %v19784_v27 = vld [vmem:[#allocation111_spill] sm:$0xff] }
 0x7c7   :  { %19780 = vst [vmem:[#allocation189_spill] sm:$0xff] %v17025_v37 }
 0x7c8   :  { %v6381_v54 = vmax.f32 %v5690_v60, 0.0  ;;  %6091 = vmatmul.bf16.gmra.mxu1 %v19782_v36  ;;  %v5866_v39 = vadd.f32 %v5865_v50, %v5777_v29 }
 0x7c9   :  { %v5870_v17 = vpop.f32.mrf.mxu2 }
 0x7ca   :  { %v6543_v52 = vrot.slane %v6381_v54, 2  ;;  %v5951_v10 = vpop.f32.mrf.mxu3 }
 0x7cb   :  { %v17031_v12 = vadd.f32 %v5951_v10, %v5863_v16 }
 0x7cc   :  { %v6544_v2 = vsel %vm445_vm6, %v6539_v6, %v6543_v52 }
 0x7cd   :  { %v17034_v61 = vmax.f32 %v6379_v23, %v6544_v2  ;;  %v5692_v1 = vpop.f32.mrf.mxu0  ;;  %v5778_v44 = vpop.f32.mrf.mxu1 }
 0x7ce   :  { %v5779_v45 = vadd.f32 %v5778_v44, %v16693_v8  ;;  %v5693_v50 = vadd.f32 %v5692_v1, %v16603_v34  ;;  %v19785_v44 = vld [vmem:[#allocation95_spill] sm:$0xff] }
 0x7cf   :  { %19783 = vst [vmem:[#allocation43_spill] sm:$0xff] %v17034_v61  ;;  %8871 = vmatmul.msk.bf16.gmra.mxu3 %vm5034_vm15, %v16519_v11  ;;  %v19786_v11 = vld [vmem:[#allocation83_spill] sm:$0xff] }
 0x7d0   :  { %6007 = vmatmul.bf16.gmra.mxu0 %v19784_v27  ;;  %v5868_v20 = vadd.f32 %v5867_v48, %v5779_v45  ;;  %v6383_v23 = vmax.f32 %v5693_v50, 0.0 }
 0x7d1   :  { %v5872_v9 = vpop.f32.mrf.mxu2 }
 0x7d2   :  { %v5954_v60 = vpop.f32.mrf.mxu3  ;;  %v6547_v48 = vrot.slane %v6383_v23, 2 }
 0x7d3   :  { %v17041_v16 = vadd.f32 %v5954_v60, %v5866_v39 }
 0x7d5   :  { %v5694_v29 = vpop.f32.mrf.mxu0  ;;  %v5781_v6 = vpop.f32.mrf.mxu1 }
 0x7d6   :  { %v5695_v54 = vadd.f32 %v5694_v29, %v16622_v21  ;;  %v5782_v36 = vadd.f32 %v5781_v6, %v16693_v8  ;;  %6190 = vmatmul.bf16.gmra.mxu2 %v19785_v44  ;;  %v19787_v6 = vld [vmem:[#allocation103_spill] sm:$0xff] }
 0x7d8   :  { %v6385_v52 = vmax.f32 %v5695_v54, 0.0  ;;  %6096 = vmatmul.bf16.gmra.mxu1 %v19786_v11  ;;  %v5871_v10 = vadd.f32 %v5870_v17, %v5782_v36 }
 0x7d9   :  { %v5875_v34 = vpop.f32.mrf.mxu2 }
 0x7da   :  { %v6548_v2 = vrot.slane %v6385_v52, 2  ;;  %v5956_v1 = vpop.f32.mrf.mxu3 }
 0x7db   :  { %v17047_v45 = vadd.f32 %v5956_v1, %v5868_v20 }
 0x7dc   :  { %v6549_v39 = vsel %vm445_vm6, %v6547_v48, %v6548_v2 }
 0x7dd   :  { %v17050_v27 = vmax.f32 %v6383_v23, %v6549_v39  ;;  %v5697_v50 = vpop.f32.mrf.mxu0  ;;  %v5783_v21 = vpop.f32.mrf.mxu1 }
 0x7de   :  { %v5698_v60 = vadd.f32 %v5697_v50, %v16632_v0  ;;  %v5784_v29 = vadd.f32 %v5783_v21, %v16693_v8 }
 0x7df   :  { %8872 = vmatmul.msk.bf16.gmra.mxu3 %vm5034_vm15, %v16558_v42  ;;  %v19789_v42 = vld [vmem:[#allocation87_spill] sm:$0xff] }
 0x7e0   :  { %v6387_v17 = vmax.f32 %v5698_v60, 0.0  ;;  %6012 = vmatmul.bf16.gmra.mxu0 %v19787_v6  ;;  %v5873_v54 = vadd.f32 %v5872_v9, %v5784_v29  ;;  %v19790_v60 = vld [vmem:[#allocation139_spill] sm:$0xff] }
 0x7e1   :  { %v5877_v20 = vpop.f32.mrf.mxu2 }
 0x7e2   :  { %v6553_v36 = vrot.slane %v6387_v17, 2  ;;  %v5959_v44 = vpop.f32.mrf.mxu3 }
 0x7e3   :  { %v17057_v11 = vadd.f32 %v5959_v44, %v5871_v10 }
 0x7e4   :  { %v6554_v23 = vsel %vm445_vm6, %v6548_v2, %v6553_v36 }
 0x7e5   :  { %v17060_v48 = vmax.f32 %v6385_v52, %v6554_v23  ;;  %v5699_v1 = vpop.f32.mrf.mxu0  ;;  %v5786_v0 = vpop.f32.mrf.mxu1 }
 0x7e6   :  { %v5700_v39 = vadd.f32 %v5699_v1, %v16643_v31  ;;  %v5787_v50 = vadd.f32 %v5786_v0, %v16693_v8  ;;  %6195 = vmatmul.bf16.gmra.mxu2 %v19789_v42  ;;  %v19792_v1 = vld [vmem:[#allocation97_spill] sm:$0xff] }
 0x7e7   :  { %19788 = vst [vmem:[#allocation133_spill] sm:$0xff] %v17060_v48 }
 0x7e8   :  { %v6389_v21 = vmax.f32 %v5700_v39, 0.0  ;;  %6101 = vmatmul.bf16.gmra.mxu1 %v19790_v60  ;;  %v5876_v9 = vadd.f32 %v5875_v34, %v5787_v50 }
 0x7e9   :  { %v5880_v6 = vpop.f32.mrf.mxu2 }
 0x7ea   :  { %v6557_v29 = vrot.slane %v6389_v21, 2  ;;  %v5961_v10 = vpop.f32.mrf.mxu3 }
 0x7eb   :  { %v17066_v44 = vadd.f32 %v5961_v10, %v5873_v54 }
 0x7ec   :  { %v6558_v52 = vsel %vm445_vm6, %v6553_v36, %v6557_v29 }
 0x7ed   :  { %v17069_v2 = vmax.f32 %v6387_v17, %v6558_v52  ;;  %v5702_v23 = vpop.f32.mrf.mxu0  ;;  %v5788_v61 = vpop.f32.mrf.mxu1 }
 0x7ee   :  { %v5789_v31 = vadd.f32 %v5788_v61, %v16693_v8  ;;  %v5703_v34 = vadd.f32 %v5702_v23, %v16653_v46  ;;  %v19793_v61 = vld [vmem:[#allocation170_spill] sm:$0xff] }
 0x7ef   :  { %19791 = vst [vmem:[#allocation194_spill] sm:$0xff] %v17069_v2  ;;  %8873 = vmatmul.msk.bf16.gmra.mxu3 %vm5034_vm15, %v16579_v51  ;;  %v19794_v51 = vld [vmem:[#allocation2_spill] sm:$0xff] }
 0x7f0   :  { %6017 = vmatmul.bf16.gmra.mxu0 %v19792_v1  ;;  %v5878_v0 = vadd.f32 %v5877_v20, %v5789_v31  ;;  %v6391_v17 = vmax.f32 %v5703_v34, 0.0 }
 0x7f1   :  { %v5882_v39 = vpop.f32.mrf.mxu2 }
 0x7f2   :  { %v5964_v50 = vpop.f32.mrf.mxu3  ;;  %v6561_v20 = vrot.slane %v6391_v17, 2 }
 0x7f3   :  { %v17076_v54 = vadd.f32 %v5964_v50, %v5876_v9 }
 0x7f5   :  { %v5704_v42 = vpop.f32.mrf.mxu0  ;;  %v5791_v36 = vpop.f32.mrf.mxu1 }
 0x7f6   :  { %v5705_v21 = vadd.f32 %v5704_v42, %v16682_v35  ;;  %v5792_v60 = vadd.f32 %v5791_v36, %v16693_v8  ;;  %6200 = vmatmul.bf16.gmra.mxu2 %v19793_v61 }
 0x7f8   :  { %v6393_v29 = vmax.f32 %v5705_v21, 0.0  ;;  %6106 = vmatmul.bf16.gmra.mxu1 %v19794_v51  ;;  %v5881_v10 = vadd.f32 %v5880_v6, %v5792_v60  ;;  %v19796_v21 = vld [vmem:[#allocation140_spill] sm:$0xff] }
 0x7f9   :  { %v5885_v46 = vpop.f32.mrf.mxu2 }
 0x7fa   :  { %v6562_v52 = vrot.slane %v6393_v29, 2  ;;  %v5966_v23 = vpop.f32.mrf.mxu3 }
 0x7fb   :  { %v17082_v31 = vadd.f32 %v5966_v23, %v5878_v0 }
 0x7fc   :  { %v6563_v9 = vsel %vm445_vm6, %v6561_v20, %v6562_v52 }
 0x7fd   :  { %v17085_v1 = vmax.f32 %v6391_v17, %v6563_v9  ;;  %v5707_v34 = vpop.f32.mrf.mxu0  ;;  %v5793_v35 = vpop.f32.mrf.mxu1 }
 0x7fe   :  { %v5708_v50 = vadd.f32 %v5707_v34, %v16695_v7  ;;  %v5794_v42 = vadd.f32 %v5793_v35, %v16693_v8  ;;  %v19797_v35 = vld [vmem:[#allocation126_spill] sm:$0xff] }
 0x7ff   :  { %19795 = vst [vmem:[#allocation66_spill] sm:$0xff] %v17085_v1  ;;  %8874 = vmatmul.msk.bf16.gmra.mxu3 %vm5034_vm15, %v16624_v14  ;;  %v10392_v6 = vpack.i.bf16 %v17085_v1, %v17050_v27 }
 0x800   :  { %v6395_v36 = vmax.f32 %v5708_v50, 0.0  ;;  %6022 = vmatmul.bf16.gmra.mxu0 %v19796_v21  ;;  %v5883_v0 = vadd.f32 %v5882_v39, %v5794_v42  ;;  %v19798_v50 = vld [vmem:[#allocation86_spill] sm:$0xff] }
 0x801   :  { %10393 = vrot.lane.b32.xlu1 %v10392_v6, %s10580_s12  ;;  %v5887_v60 = vpop.f32.mrf.mxu2 }
 0x802   :  { %v6567_v17 = vrot.slane %v6395_v36, 2  ;;  %v5969_v61 = vpop.f32.mrf.mxu3 }
 0x803   :  { %v17095_v51 = vadd.f32 %v5969_v61, %v5881_v10 }
 0x804   :  { %v6568_v7 = vsel %vm445_vm6, %v6562_v52, %v6567_v17 }
 0x805   :  { %v17098_v20 = vmax.f32 %v6393_v29, %v6568_v7  ;;  %v5709_v23 = vpop.f32.mrf.mxu0  ;;  %v5796_v14 = vpop.f32.mrf.mxu1 }
 0x806   :  { %v5710_v9 = vadd.f32 %v5709_v23, %v16707_v28  ;;  %v5797_v34 = vadd.f32 %v5796_v14, %v16693_v8  ;;  %6205 = vmatmul.bf16.gmra.mxu2 %v19797_v35  ;;  %v19800_v23 = vld [vmem:[#allocation148_spill] sm:$0xff] }
 0x808   :  { %v6397_v39 = vmax.f32 %v5710_v9, 0.0  ;;  %6111 = vmatmul.bf16.gmra.mxu1 %v19798_v50  ;;  %v5886_v42 = vadd.f32 %v5885_v46, %v5797_v34 }
 0x809   :  { %v6166_v10 = vpop.f32.mrf.mxu2 }
 0x80a   :  { %v6571_v6 = vrot.slane %v6397_v39, 2  ;;  %v5971_v21 = vpop.f32.mrf.mxu3  ;;  %v19801_v39 = vld [vmem:[#allocation117_spill] sm:$0xff] }
 0x80b   :  { %v17104_v61 = vadd.f32 %v5971_v21, %v5883_v0 }
 0x80c   :  { %v6572_v29 = vsel %vm445_vm6, %v6567_v17, %v6571_v6 }
 0x80d   :  { %v17107_v52 = vmax.f32 %v6395_v36, %v6572_v29  ;;  %v5798_v7 = vpop.f32.mrf.mxu1  ;;  %v5988_v2 = vpop.f32.mrf.mxu0  ;;  %v19802_v36 = vld [vmem:[#allocation99_spill] sm:$0xff] }
 0x80e   :  { %v5799_v28 = vadd.f32 %v5798_v7, %v16693_v8 }
 0x80f   :  { %19799 = vst [vmem:[#allocation22_spill] sm:$0xff] %v17107_v52  ;;  %8875 = vmatmul.msk.bf16.gmra.mxu3 %vm5034_vm15, %v16645_v62  ;;  %v5989_v62 = vadd.f32 %v5988_v2, %v16725_v4  ;;  %v19805_v52 = vld [vmem:[#allocation21_spill] sm:$0xff] }
 0x810   :  { %6027 = vmatmul.bf16.gmra.mxu0 %v19800_v23  ;;  %v5888_v14 = vadd.f32 %v5887_v60, %v5799_v28  ;;  %v19804_v60 = vld [vmem:[#allocation150_spill] sm:$0xff]  ;;  %v19806_v4 = vld [vmem:[#allocation149_spill] sm:$0xff] }
 0x811   :  { %v6168_v9 = vpop.f32.mrf.mxu2 }
 0x812   :  { %v5974_v46 = vpop.f32.mrf.mxu3 }
 0x813   :  { %v17113_v34 = vadd.f32 %v5974_v46, %v5886_v42 }
 0x815   :  { %v5990_v0 = vpop.f32.mrf.mxu0  ;;  %v6077_v35 = vpop.f32.mrf.mxu1 }
 0x816   :  { %6210 = vmatmul.bf16.gmra.mxu2 %v19801_v39  ;;  %v6078_v42 = vadd.f32 %v6077_v35, %v5989_v62  ;;  %v5991_v28 = vadd.f32 %v5990_v0, %v16758_v30 }
 0x818   :  { %6116 = vmatmul.bf16.gmra.mxu1 %v19802_v36  ;;  %v6167_v46 = vadd.f32 %v6166_v10, %v6078_v42 }
 0x819   :  { %v6171_v50 = vpop.f32.mrf.mxu2 }
 0x81a   :  { %v5976_v17 = vpop.f32.mrf.mxu3 }
 0x81b   :  { %v17117_v6 = vadd.f32 %v5976_v17, %v5888_v14 }
 0x81d   :  { %19803 = vst [vmem:[#allocation17_spill] sm:$0xff] %v17117_v6  ;;  %v5993_v8 = vpop.f32.mrf.mxu0  ;;  %v6079_v21 = vpop.f32.mrf.mxu1 }
 0x81e   :  { %v6080_v23 = vadd.f32 %v6079_v21, %v5991_v28 }
 0x81f   :  { %8876 = vmatmul.msk.bf16.gmra.mxu3 %vm5034_vm15, %v16684_v53 }
 0x820   :  { %6032 = vmatmul.bf16.gmra.mxu0 %v19804_v60  ;;  %v6169_v2 = vadd.f32 %v6168_v9, %v6080_v23  ;;  %v19807_v60 = vld [vmem:[#allocation27_spill] sm:$0xff] }
 0x821   :  { %v6173_v29 = vpop.f32.mrf.mxu2  ;;  %v5994_v35 = vadd.f32 %v5993_v8, %v19807_v60 }
 0x822   :  { %v6255_v7 = vpop.f32.mrf.mxu3 }
 0x823   :  { %v6256_v17 = vadd.f32 %v6255_v7, %v6167_v46 }
 0x825   :  { %v5995_v39 = vpop.f32.mrf.mxu0  ;;  %v6082_v36 = vpop.f32.mrf.mxu1  ;;  %v6336_v62 = vmax.f32 %v6256_v17, 0.0 }
 0x826   :  { %v5996_v14 = vadd.f32 %v5995_v39, %v16782_v58  ;;  %6215 = vmatmul.bf16.gmra.mxu2 %v19805_v52  ;;  %v6083_v6 = vadd.f32 %v6082_v36, %v5994_v35  ;;  %v19808_v58 = vld [vmem:[#allocation160_spill] sm:$0xff]  ;;  %v19809_v52 = vld [vmem:[#allocation145_spill] sm:$0xff] }
 0x827   :  { %v6466_v42 = vrot.slane %v6336_v62, 2 }
 0x828   :  { %6121 = vmatmul.bf16.gmra.mxu1 %v19806_v4  ;;  %v6172_v23 = vadd.f32 %v6171_v50, %v6083_v6 }
 0x829   :  { %v6176_v53 = vpop.f32.mrf.mxu2 }
 0x82a   :  { %v6257_v48 = vpop.f32.mrf.mxu3 }
 0x82b   :  { %v6258_v1 = vadd.f32 %v6257_v48, %v6169_v2  ;;  %v19811_v2 = vld [vmem:[#allocation54_spill] sm:$0xff] }
 0x82d   :  { %v6338_v30 = vmax.f32 %v6258_v1, 0.0  ;;  %v5998_v0 = vpop.f32.mrf.mxu0  ;;  %v6084_v10 = vpop.f32.mrf.mxu1 }
 0x82e   :  { %v6085_v21 = vadd.f32 %v6084_v10, %v5996_v14 }
 0x82f   :  { %v6467_v28 = vrot.slane %v6338_v30, 2  ;;  %8877 = vmatmul.msk.bf16.gmra.mxu3 %vm5034_vm15, %v19808_v58  ;;  %v19813_v58 = vld [vmem:[#allocation162_spill] sm:$0xff] }
 0x830   :  { %6037 = vmatmul.bf16.gmra.mxu0 %v19809_v52  ;;  %v6174_v7 = vadd.f32 %v6173_v29, %v6085_v21  ;;  %v19812_v29 = vld [vmem:[#allocation151_spill] sm:$0xff]  ;;  %v5999_v52 = vadd.f32 %v5998_v0, %v19813_v58  ;;  %v19816_v58 = vld [vmem:[#allocation154_spill] sm:$0xff] }
 0x831   :  { %v6468_v9 = vsel %vm445_vm6, %v6466_v42, %v6467_v28  ;;  %v6178_v46 = vpop.f32.mrf.mxu2 }
 0x832   :  { %v6260_v8 = vpop.f32.mrf.mxu3  ;;  %v17132_v39 = vmax.f32 %v6336_v62, %v6468_v9 }
 0x833   :  { %v6261_v48 = vadd.f32 %v6260_v8, %v6172_v23  ;;  %v19814_v23 = vld [vmem:[#allocation20_spill] sm:$0xff]  ;;  %v19815_v8 = vld [vmem:[#allocation130_spill] sm:$0xff] }
 0x834   :  { %19810 = vst [vmem:[#allocation46_spill] sm:$0xff] %v17132_v39  ;;  %v10397_v1 = vpack.i.bf16 %v17132_v39, %v16710_v32 }
 0x835   :  { %v6340_v36 = vmax.f32 %v6261_v48, 0.0  ;;  %v6000_v14 = vpop.f32.mrf.mxu0  ;;  %v6087_v17 = vpop.f32.mrf.mxu1 }
 0x836   :  { %10398 = vrot.lane.b32.xlu2 %v10397_v1, %s10581_s3  ;;  %6220 = vmatmul.bf16.gmra.mxu2 %v19811_v2  ;;  %v6088_v48 = vadd.f32 %v6087_v17, %v5999_v52 }
 0x837   :  { %v6471_v4 = vrot.slane %v6340_v36, 2 }
 0x838   :  { %6126 = vmatmul.bf16.gmra.mxu1 %v19812_v29 }
 0x839   :  { %v6472_v50 = vsel %vm445_vm6, %v6467_v28, %v6471_v4  ;;  %v6181_v60 = vpop.f32.mrf.mxu2 }
 0x83a   :  { %v17140_v6 = vmax.f32 %v6338_v30, %v6472_v50  ;;  %v6262_v35 = vpop.f32.mrf.mxu3  ;;  %v6177_v50 = vadd.f32 %v6176_v53, %v6088_v48 }
 0x83b   :  { %v6263_v62 = vadd.f32 %v6262_v35, %v6174_v7  ;;  %v6001_v7 = vadd.f32 %v6000_v14, %v16833_v13 }
 0x83d   :  { %v6342_v10 = vmax.f32 %v6263_v62, 0.0  ;;  %v6003_v21 = vpop.f32.mrf.mxu0  ;;  %v6089_v42 = vpop.f32.mrf.mxu1 }
 0x83e   :  { %v6090_v29 = vadd.f32 %v6089_v42, %v6001_v7 }
 0x83f   :  { %v6475_v9 = vrot.slane %v6342_v10, 2  ;;  %8878 = vmatmul.msk.bf16.gmra.mxu3 %vm5034_vm15, %v19814_v23  ;;  %v19817_v23 = vld [vmem:[#allocation166_spill] sm:$0xff] }
 0x840   :  { %6042 = vmatmul.bf16.gmra.mxu0 %v19815_v8  ;;  %v6179_v17 = vadd.f32 %v6178_v46, %v6090_v29 }
 0x841   :  { %v6476_v1 = vsel %vm445_vm6, %v6471_v4, %v6475_v9  ;;  %v6183_v30 = vpop.f32.mrf.mxu2 }
 0x842   :  { %v17147_v28 = vmax.f32 %v6340_v36, %v6476_v1  ;;  %v6265_v2 = vpop.f32.mrf.mxu3  ;;  %v19818_v36 = vld [vmem:[#allocation24_spill] sm:$0xff] }
 0x843   :  { %v6266_v10 = vadd.f32 %v6265_v2, %v6177_v50  ;;  %v6004_v9 = vadd.f32 %v6003_v21, %v19818_v36  ;;  %v19820_v2 = vld [vmem:[#allocation147_spill] sm:$0xff]  ;;  %v19822_v36 = vld [vmem:[#allocation177_spill] sm:$0xff] }
 0x845   :  { %v6005_v35 = vpop.f32.mrf.mxu0  ;;  %v6092_v62 = vpop.f32.mrf.mxu1  ;;  %v6344_v8 = vmax.f32 %v6266_v10, 0.0 }
 0x846   :  { %v6006_v0 = vadd.f32 %v6005_v35, %v16863_v15  ;;  %6225 = vmatmul.bf16.gmra.mxu2 %v19816_v58  ;;  %v6093_v39 = vadd.f32 %v6092_v62, %v6004_v9  ;;  %v19819_v15 = vld [vmem:[#allocation203_spill] sm:$0xff] }
 0x847   :  { %v6480_v48 = vrot.slane %v6344_v8, 2 }
 0x848   :  { %6131 = vmatmul.bf16.gmra.mxu1 %v19817_v23  ;;  %v6182_v29 = vadd.f32 %v6181_v60, %v6093_v39 }
 0x849   :  { %v6186_v52 = vpop.f32.mrf.mxu2 }
 0x84a   :  { %v6267_v4 = vpop.f32.mrf.mxu3 }
 0x84b   :  { %v6268_v1 = vadd.f32 %v6267_v4, %v6179_v17 }
 0x84d   :  { %v6346_v13 = vmax.f32 %v6268_v1, 0.0  ;;  %v6008_v14 = vpop.f32.mrf.mxu0  ;;  %v6094_v53 = vpop.f32.mrf.mxu1 }
 0x84e   :  { %v6095_v42 = vadd.f32 %v6094_v53, %v6006_v0 }
 0x84f   :  { %v6481_v7 = vrot.slane %v6346_v13, 2  ;;  %8879 = vmatmul.msk.bf16.gmra.mxu3 %vm5034_vm15, %v19819_v15 }
 0x850   :  { %6047 = vmatmul.bf16.gmra.mxu0 %v19820_v2  ;;  %v6184_v50 = vadd.f32 %v6183_v30, %v6095_v42  ;;  %v19823_v30 = vld [vmem:[#allocation141_spill] sm:$0xff]  ;;  %v19824_v2 = vld [vmem:[#allocation47_spill] sm:$0xff] }
 0x851   :  { %v6482_v46 = vsel %vm445_vm6, %v6480_v48, %v6481_v7  ;;  %v6188_v35 = vpop.f32.mrf.mxu2 }
 0x852   :  { %v6270_v21 = vpop.f32.mrf.mxu3  ;;  %v17158_v10 = vmax.f32 %v6344_v8, %v6482_v46  ;;  %v6009_v46 = vadd.f32 %v6008_v14, %v19824_v2  ;;  %v19828_v2 = vld [vmem:[#allocation85_spill] sm:$0xff] }
 0x853   :  { %v6271_v62 = vadd.f32 %v6270_v21, %v6182_v29  ;;  %v19825_v21 = vld [vmem:[#allocation163_spill] sm:$0xff] }
 0x854   :  { %19821 = vst [vmem:[#allocation32_spill] sm:$0xff] %v17158_v10  ;;  %v10402_v58 = vpack.i.bf16 %v17158_v10, %v16785_v18 }
 0x855   :  { %v6348_v0 = vmax.f32 %v6271_v62, 0.0  ;;  %v6010_v23 = vpop.f32.mrf.mxu0  ;;  %v6097_v17 = vpop.f32.mrf.mxu1 }
 0x856   :  { %10403 = vrot.lane.b32.xlu0 %v10402_v58, %s10581_s3  ;;  %6230 = vmatmul.bf16.gmra.mxu2 %v19822_v36 }
 0x857   :  { %v6485_v4 = vrot.slane %v6348_v0, 2 }
 0x858   :  { %6136 = vmatmul.bf16.gmra.mxu1 %v19823_v30  ;;  %v6011_v30 = vadd.f32 %v6010_v23, %v16911_v3 }
 0x859   :  { %v6486_v39 = vsel %vm445_vm6, %v6481_v7, %v6485_v4  ;;  %v6191_v9 = vpop.f32.mrf.mxu2  ;;  %v19826_v7 = vld [vmem:[#allocation155_spill] sm:$0xff] }
 0x85a   :  { %v17166_v60 = vmax.f32 %v6346_v13, %v6486_v39  ;;  %v6272_v8 = vpop.f32.mrf.mxu3  ;;  %v6098_v13 = vadd.f32 %v6097_v17, %v6009_v46 }
 0x85b   :  { %v6273_v1 = vadd.f32 %v6272_v8, %v6184_v50 }
 0x85c   :  { %v10407_v53 = vpack.i.bf16 %v17166_v60, %v17140_v6  ;;  %v6187_v8 = vadd.f32 %v6186_v52, %v6098_v13  ;;  %v19830_v13 = vld [vmem:[#allocation152_spill] sm:$0xff] }
 0x85d   :  { %v6350_v42 = vmax.f32 %v6273_v1, 0.0  ;;  %v6013_v48 = vpop.f32.mrf.mxu0  ;;  %v6099_v15 = vpop.f32.mrf.mxu1 }
 0x85e   :  { %10408 = vrot.lane.b32.xlu2 %v10407_v53, %s10581_s3  ;;  %v6100_v39 = vadd.f32 %v6099_v15, %v6011_v30  ;;  %v19829_v15 = vld [vmem:[#allocation181_spill] sm:$0xff] }
 0x85f   :  { %v6489_v29 = vrot.slane %v6350_v42, 2  ;;  %8880 = vmatmul.msk.bf16.gmra.mxu3 %vm5034_vm15, %v19825_v21  ;;  %v19827_v42 = vld [vmem:[#allocation180_spill] sm:$0xff] }
 0x860   :  { %6052 = vmatmul.bf16.gmra.mxu0 %v19826_v7  ;;  %v6189_v21 = vadd.f32 %v6188_v35, %v6100_v39 }
 0x861   :  { %v6490_v62 = vsel %vm445_vm6, %v6485_v4, %v6489_v29  ;;  %v6193_v58 = vpop.f32.mrf.mxu2  ;;  %v6014_v4 = vadd.f32 %v6013_v48, %v16923_v22 }
 0x862   :  { %v17176_v50 = vmax.f32 %v6348_v0, %v6490_v62  ;;  %v6275_v36 = vpop.f32.mrf.mxu3 }
 0x863   :  { %v6276_v14 = vadd.f32 %v6275_v36, %v6187_v8 }
 0x865   :  { %v6015_v1 = vpop.f32.mrf.mxu0  ;;  %v6102_v53 = vpop.f32.mrf.mxu1  ;;  %v6352_v0 = vmax.f32 %v6276_v14, 0.0 }
 0x866   :  { %6235 = vmatmul.bf16.gmra.mxu2 %v19827_v42  ;;  %v6103_v29 = vadd.f32 %v6102_v53, %v6014_v4  ;;  %v6016_v22 = vadd.f32 %v6015_v1, %v16935_v57  ;;  %v19831_v53 = vld [vmem:[#allocation182_spill] sm:$0xff] }
 0x867   :  { %v6494_v23 = vrot.slane %v6352_v0, 2 }
 0x868   :  { %6141 = vmatmul.bf16.gmra.mxu1 %v19828_v2  ;;  %v6192_v35 = vadd.f32 %v6191_v9, %v6103_v29  ;;  %v19833_v9 = vld [vmem:[#allocation75_spill] sm:$0xff] }
 0x869   :  { %v6196_v7 = vpop.f32.mrf.mxu2 }
 0x86a   :  { %v6277_v17 = vpop.f32.mrf.mxu3 }
 0x86b   :  { %v6278_v46 = vadd.f32 %v6277_v17, %v6189_v21 }
 0x86d   :  { %v6354_v62 = vmax.f32 %v6278_v46, 0.0  ;;  %v6018_v10 = vpop.f32.mrf.mxu0  ;;  %v6104_v3 = vpop.f32.mrf.mxu1  ;;  %v19832_v46 = vld [vmem:[#allocation179_spill] sm:$0xff] }
 0x86e   :  { %v6105_v42 = vadd.f32 %v6104_v3, %v6016_v22  ;;  %v19834_v22 = vld [vmem:[#allocation159_spill] sm:$0xff] }
 0x86f   :  { %v6495_v52 = vrot.slane %v6354_v62, 2  ;;  %8881 = vmatmul.msk.bf16.gmra.mxu3 %vm5034_vm15, %v19829_v15 }
 0x870   :  { %6057 = vmatmul.bf16.gmra.mxu0 %v19830_v13  ;;  %v6194_v29 = vadd.f32 %v6193_v58, %v6105_v42  ;;  %v9435_v42 = vld [vmem:[%s17967_s5 + $0x88] sm:$0xff] }
 0x871   :  { %v6496_v36 = vsel %vm445_vm6, %v6494_v23, %v6495_v52  ;;  %v6198_v30 = vpop.f32.mrf.mxu2  ;;  %7223 = vmatpush.bf16.msra.mxu3 %v9435_v42 }
 0x872   :  { %v6280_v39 = vpop.f32.mrf.mxu3  ;;  %v17186_v8 = vmax.f32 %v6352_v0, %v6496_v36 }
 0x873   :  { %v6281_v48 = vadd.f32 %v6280_v39, %v6192_v35  ;;  %v6019_v35 = vadd.f32 %v6018_v10, %v16950_v63 }
 0x874   :  { %v10412_v14 = vpack.i.bf16 %v17186_v8, %v19831_v53 }
 0x875   :  { %v6356_v2 = vmax.f32 %v6281_v48, 0.0  ;;  %v6020_v21 = vpop.f32.mrf.mxu0  ;;  %v6107_v17 = vpop.f32.mrf.mxu1 }
 0x876   :  { %10413 = vrot.lane.b32.xlu1 %v10412_v14, %s10581_s3  ;;  %6240 = vmatmul.bf16.gmra.mxu2 %v19832_v46  ;;  %v6108_v48 = vadd.f32 %v6107_v17, %v6019_v35  ;;  %v6021_v46 = vadd.f32 %v6020_v21, %v16959_v25 }
 0x877   :  { %v6499_v4 = vrot.slane %v6356_v2, 2 }
 0x878   :  { %6146 = vmatmul.bf16.gmra.mxu1 %v19833_v9  ;;  %v6197_v10 = vadd.f32 %v6196_v7, %v6108_v48 }
 0x879   :  { %v6500_v0 = vsel %vm445_vm6, %v6495_v52, %v6499_v4  ;;  %v6201_v57 = vpop.f32.mrf.mxu2 }
 0x87a   :  { %v17195_v23 = vmax.f32 %v6354_v62, %v6500_v0  ;;  %v6282_v1 = vpop.f32.mrf.mxu3 }
 0x87b   :  { %v6283_v15 = vadd.f32 %v6282_v1, %v6194_v29  ;;  %v19835_v29 = vld [vmem:[#allocation42_spill] sm:$0xff] }
 0x87d   :  { %v6358_v13 = vmax.f32 %v6283_v15, 0.0  ;;  %v6023_v3 = vpop.f32.mrf.mxu0  ;;  %v6109_v36 = vpop.f32.mrf.mxu1 }
 0x87e   :  { %v6110_v63 = vadd.f32 %v6109_v36, %v6021_v46  ;;  %v6024_v15 = vadd.f32 %v6023_v3, %v16968_v55 }
 0x87f   :  { %v6503_v39 = vrot.slane %v6358_v13, 2  ;;  %8882 = vmatmul.msk.bf16.gmra.mxu3 %vm5034_vm15, %v16916_v38 }
 0x880   :  { %6062 = vmatmul.bf16.gmra.mxu0 %v19834_v22 }
 0x881   :  { %v6504_v52 = vsel %vm445_vm6, %v6499_v4, %v6503_v39  ;;  %v6203_v62 = vpop.f32.mrf.mxu2 }
 0x882   :  { %v17202_v58 = vmax.f32 %v6356_v2, %v6504_v52  ;;  %v6285_v14 = vpop.f32.mrf.mxu3  ;;  %v6199_v2 = vadd.f32 %v6198_v30, %v6110_v63 }
 0x883   :  { %v6286_v17 = vadd.f32 %v6285_v14, %v6197_v10 }
 0x885   :  { %v6025_v9 = vpop.f32.mrf.mxu0  ;;  %v6112_v38 = vpop.f32.mrf.mxu1  ;;  %v6360_v13 = vmax.f32 %v6286_v17, 0.0  ;;  %v9437_v17 = vld [vmem:[%s17967_s5 + $0x98] sm:$0xff] }
 0x886   :  { %v6026_v0 = vadd.f32 %v6025_v9, %v16974_v56  ;;  %v6113_v39 = vadd.f32 %v6112_v38, %v6024_v15  ;;  %7242 = vmatpush.bf16.msra.mxu1 %v9437_v17 }
 0x887   :  { %v6508_v7 = vrot.slane %v6360_v13, 2 }
 0x888   :  { %6151 = vmatmul.bf16.gmra.mxu1 %v19835_v29  ;;  %v6202_v30 = vadd.f32 %v6201_v57, %v6113_v39 }
 0x889   :  { %v6206_v4 = vpop.f32.mrf.mxu2 }
 0x88a   :  { %v6287_v1 = vpop.f32.mrf.mxu3 }
 0x88b   :  { %v6288_v35 = vadd.f32 %v6287_v1, %v6199_v2 }
 0x88d   :  { %v6362_v22 = vmax.f32 %v6288_v35, 0.0  ;;  %v6028_v25 = vpop.f32.mrf.mxu0  ;;  %v6114_v21 = vpop.f32.mrf.mxu1 }
 0x88e   :  { %v6115_v36 = vadd.f32 %v6114_v21, %v6026_v0  ;;  %v6029_v39 = vadd.f32 %v6028_v25, %v16984_v5 }
 0x88f   :  { %v6509_v48 = vrot.slane %v6362_v22, 2  ;;  %8883 = vmatmul.msk.bf16.gmra.mxu3 %vm5034_vm15, %v16940_v19 }
 0x890   :  { %v6204_v56 = vadd.f32 %v6203_v62, %v6115_v36 }
 0x891   :  { %v6510_v52 = vsel %vm445_vm6, %v6508_v7, %v6509_v48  ;;  %v6208_v14 = vpop.f32.mrf.mxu2 }
 0x892   :  { %v6290_v42 = vpop.f32.mrf.mxu3  ;;  %v17214_v46 = vmax.f32 %v6360_v13, %v6510_v52 }
 0x893   :  { %v6291_v55 = vadd.f32 %v6290_v42, %v6202_v30  ;;  %v9425_v30 = vld [vmem:[%s17967_s5 + $0x38] sm:$0xff] }
 0x894   :  { %v10417_v3 = vpack.i.bf16 %v17214_v46, %v16938_v41  ;;  %7343 = vmatpush.bf16.msra.mxu2 %v9425_v30 }
 0x895   :  { %v6364_v63 = vmax.f32 %v6291_v55, 0.0  ;;  %v6030_v10 = vpop.f32.mrf.mxu0  ;;  %v6117_v9 = vpop.f32.mrf.mxu1 }
 0x896   :  { %10418 = vrot.lane.b32.xlu2 %v10417_v3, %s10581_s3  ;;  %v6118_v21 = vadd.f32 %v6117_v9, %v6029_v39  ;;  %v6031_v52 = vadd.f32 %v6030_v10, %v16993_v59 }
 0x897   :  { %v6513_v38 = vrot.slane %v6364_v63, 2 }
 0x898   :  { %v6207_v5 = vadd.f32 %v6206_v4, %v6118_v21 }
 0x899   :  { %v6514_v19 = vsel %vm445_vm6, %v6509_v48, %v6513_v38  ;;  %v6211_v0 = vpop.f32.mrf.mxu2 }
 0x89a   :  { %v17220_v62 = vmax.f32 %v6362_v22, %v6514_v19  ;;  %v6292_v57 = vpop.f32.mrf.mxu3 }
 0x89b   :  { %v6293_v29 = vadd.f32 %v6292_v57, %v6204_v56 }
 0x89c   :  { %v10422_v2 = vpack.i.bf16 %v17220_v62, %v17195_v23 }
 0x89d   :  { %v6366_v1 = vmax.f32 %v6293_v29, 0.0  ;;  %v6033_v15 = vpop.f32.mrf.mxu0  ;;  %v6119_v13 = vpop.f32.mrf.mxu1 }
 0x89e   :  { %v6034_v35 = vadd.f32 %v6033_v15, %v17003_v33  ;;  %10423 = vrot.lane.b32.xlu1 %v10422_v2, %s10581_s3  ;;  %v9434_v33 = vld [vmem:[%s17967_s5 + $0x80] sm:$0xff]  ;;  %v6120_v42 = vadd.f32 %v6119_v13, %v6031_v52 }
 0x89f   :  { %v6517_v22 = vrot.slane %v6366_v1, 2  ;;  %7224 = vmatpush.bf16.msra.mxu3 %v9434_v33 }
 0x8a0   :  { %v6209_v59 = vadd.f32 %v6208_v14, %v6120_v42 }
 0x8a1   :  { %v6518_v36 = vsel %vm445_vm6, %v6513_v38, %v6517_v22  ;;  %v6213_v48 = vpop.f32.mrf.mxu2 }
 0x8a2   :  { %v17231_v7 = vmax.f32 %v6364_v63, %v6518_v36  ;;  %v6295_v56 = vpop.f32.mrf.mxu3 }
 0x8a3   :  { %v6296_v9 = vadd.f32 %v6295_v56, %v6207_v5 }
 0x8a5   :  { %v6035_v25 = vpop.f32.mrf.mxu0  ;;  %v6122_v55 = vpop.f32.mrf.mxu1  ;;  %v6368_v57 = vmax.f32 %v6296_v9, 0.0 }
 0x8a6   :  { %v6036_v3 = vadd.f32 %v6035_v25, %v17009_v47  ;;  %v6123_v63 = vadd.f32 %v6122_v55, %v6034_v35  ;;  %v17255_v55 = vpack.i.bf16 %v16987_v24, %v17025_v37 }
 0x8a7   :  { %v6522_v13 = vrot.slane %v6368_v57, 2 }
 0x8a8   :  { %v6212_v38 = vadd.f32 %v6211_v0, %v6123_v63  ;;  %v9445_v0 = vld [vmem:[%s17967_s5 + $0xd8] sm:$0xff] }
 0x8a9   :  { %v6216_v10 = vpop.f32.mrf.mxu2  ;;  %7532 = vmatpush.bf16.msra.mxu0 %v9445_v0 }
 0x8aa   :  { %v6297_v19 = vpop.f32.mrf.mxu3 }
 0x8ab   :  { %v6298_v17 = vadd.f32 %v6297_v19, %v6209_v59 }
 0x8ad   :  { %v6370_v29 = vmax.f32 %v6298_v17, 0.0  ;;  %v6038_v2 = vpop.f32.mrf.mxu0  ;;  %v6124_v1 = vpop.f32.mrf.mxu1 }
 0x8ae   :  { %v6125_v15 = vadd.f32 %v6124_v1, %v6036_v3  ;;  %v6039_v59 = vadd.f32 %v6038_v2, %v17022_v40 }
 0x8af   :  { %v6523_v4 = vrot.slane %v6370_v29, 2 }
 0x8b0   :  { %v6214_v39 = vadd.f32 %v6213_v48, %v6125_v15  ;;  %v9424_v15 = vld [vmem:[%s17967_s5 + $0x30] sm:$0xff] }
 0x8b1   :  { %v6524_v22 = vsel %vm445_vm6, %v6522_v13, %v6523_v4  ;;  %v6218_v36 = vpop.f32.mrf.mxu2  ;;  %v9433_v13 = vld [vmem:[%s17967_s5 + $0x78] sm:$0xff]  ;;  %7344 = vmatpush.bf16.msra.mxu2 %v9424_v15  ;;  %v19839_v15 = vld [vmem:[#allocation183_spill] sm:$0xff] }
 0x8b2   :  { %v17242_v47 = vmax.f32 %v6368_v57, %v6524_v22  ;;  %v6300_v35 = vpop.f32.mrf.mxu3  ;;  %7225 = vmatpush.bf16.msra.mxu3 %v9433_v13  ;;  %v17282_v13 = vpack.i.bf16 %v16962_v26, %v19839_v15 }
 0x8b3   :  { %v6301_v21 = vadd.f32 %v6300_v35, %v6212_v38  ;;  %v19837_v35 = vld [vmem:[#allocation188_spill] sm:$0xff] }
 0x8b4   :  { %v10427_v14 = vpack.i.bf16 %v17242_v47, %v16977_v49 }
 0x8b5   :  { %v6372_v56 = vmax.f32 %v6301_v21, 0.0  ;;  %v6040_v52 = vpop.f32.mrf.mxu0  ;;  %v6127_v30 = vpop.f32.mrf.mxu1 }
 0x8b6   :  { %10428 = vrot.lane.b32.xlu1 %v10427_v14, %s10581_s3  ;;  %v6128_v57 = vadd.f32 %v6127_v30, %v6039_v59 }
 0x8b7   :  { %v6527_v48 = vrot.slane %v6372_v56, 2 }
 0x8b8   :  { %v6217_v2 = vadd.f32 %v6216_v10, %v6128_v57 }
 0x8b9   :  { %v6528_v33 = vsel %vm445_vm6, %v6523_v4, %v6527_v48  ;;  %v6221_v38 = vpop.f32.mrf.mxu2  ;;  %v6041_v4 = vadd.f32 %v6040_v52, %v17031_v12 }
 0x8ba   :  { %v17251_v42 = vmax.f32 %v6370_v29, %v6528_v33  ;;  %v6302_v5 = vpop.f32.mrf.mxu3 }
 0x8bb   :  { %v6303_v25 = vadd.f32 %v6302_v5, %v6214_v39  ;;  %v19838_v5 = vld [vmem:[#allocation9_spill] sm:$0xff] }
 0x8bc   :  { %v10482_v12 = vpack.i.bf16 %v16914_v43, %v19838_v5 }
 0x8bd   :  { %v6374_v3 = vmax.f32 %v6303_v25, 0.0  ;;  %v6043_v63 = vpop.f32.mrf.mxu0  ;;  %v6129_v9 = vpop.f32.mrf.mxu1 }
 0x8be   :  { %10458 = vrot.lane.b32.xlu1 %v17255_v55, %s10580_s12  ;;  %v6130_v40 = vadd.f32 %v6129_v9, %v6041_v4  ;;  %v6044_v30 = vadd.f32 %v6043_v63, %v17041_v16  ;;  %v9444_v4 = vld [vmem:[%s17967_s5 + $0xd0] sm:$0xff] }
 0x8bf   :  { %v6531_v19 = vrot.slane %v6374_v3, 2  ;;  %7533 = vmatpush.bf16.msra.mxu0 %v9444_v4 }
 0x8c0   :  { %v6219_v0 = vadd.f32 %v6218_v36, %v6130_v40 }
 0x8c1   :  { %v6532_v17 = vsel %vm445_vm6, %v6527_v48, %v6531_v19  ;;  %v6223_v14 = vpop.f32.mrf.mxu2 }
 0x8c2   :  { %v17261_v29 = vmax.f32 %v6372_v56, %v6532_v17  ;;  %v6305_v1 = vpop.f32.mrf.mxu3 }
 0x8c3   :  { %v6306_v21 = vadd.f32 %v6305_v1, %v6217_v2 }
 0x8c4   :  { %19836 = vst [vmem:[#allocation206_spill] sm:$0xff] %v17261_v29 }
 0x8c5   :  { %v6045_v39 = vpop.f32.mrf.mxu0  ;;  %v6132_v22 = vpop.f32.mrf.mxu1  ;;  %v6376_v48 = vmax.f32 %v6306_v21, 0.0 }
 0x8c6   :  { %10468 = vrot.lane.b32.xlu1 %v19837_v35, %s10581_s3  ;;  %v6133_v52 = vadd.f32 %v6132_v22, %v6044_v30  ;;  %v6046_v16 = vadd.f32 %v6045_v39, %v17047_v45 }
 0x8c7   :  { %v6536_v9 = vrot.slane %v6376_v48, 2 }
 0x8c8   :  { %v6222_v57 = vadd.f32 %v6221_v38, %v6133_v52  ;;  %v19840_v38 = vld [vmem:[#allocation192_spill] sm:$0xff] }
 0x8c9   :  { %v6226_v36 = vpop.f32.mrf.mxu2 }
 0x8ca   :  { %v6307_v56 = vpop.f32.mrf.mxu3 }
 0x8cb   :  { %v6308_v33 = vadd.f32 %v6307_v56, %v6219_v0 }
 0x8cd   :  { %v6378_v25 = vmax.f32 %v6308_v33, 0.0  ;;  %v6048_v3 = vpop.f32.mrf.mxu0  ;;  %v6134_v10 = vpop.f32.mrf.mxu1 }
 0x8ce   :  { %10483 = vrot.lane.b32.xlu1 %v10482_v12, %s10580_s12  ;;  %v6135_v40 = vadd.f32 %v6134_v10, %v6046_v16 }
 0x8cf   :  { %v6537_v59 = vrot.slane %v6378_v25, 2 }
 0x8d0   :  { %v6224_v0 = vadd.f32 %v6223_v14, %v6135_v40  ;;  %v9423_v14 = vld [vmem:[%s17967_s5 + $0x28] sm:$0xff] }
 0x8d1   :  { %v6538_v19 = vsel %vm445_vm6, %v6536_v9, %v6537_v59  ;;  %v6228_v33 = vpop.f32.mrf.mxu2  ;;  %v6049_v9 = vadd.f32 %v6048_v3, %v17057_v11  ;;  %7345 = vmatpush.bf16.msra.mxu2 %v9423_v14 }
 0x8d2   :  { %v6310_v17 = vpop.f32.mrf.mxu3  ;;  %v17278_v63 = vmax.f32 %v6376_v48, %v6538_v19 }
 0x8d3   :  { %v6311_v1 = vadd.f32 %v6310_v17, %v6222_v57 }
 0x8d4   :  { %v10432_v21 = vpack.i.bf16 %v17278_v63, %v19840_v38 }
 0x8d5   :  { %v6380_v2 = vmax.f32 %v6311_v1, 0.0  ;;  %v6050_v22 = vpop.f32.mrf.mxu0  ;;  %v6137_v35 = vpop.f32.mrf.mxu1 }
 0x8d6   :  { %10498 = vrot.lane.b32.xlu1 %v17282_v13, %s10580_s12  ;;  %10433 = vrot.lane.b32.xlu0 %v10432_v21, %s10581_s3  ;;  %v6138_v57 = vadd.f32 %v6137_v35, %v6049_v9 }
 0x8d7   :  { %v6541_v45 = vrot.slane %v6380_v2, 2 }
 0x8d8   :  { %v6227_v4 = vadd.f32 %v6226_v36, %v6138_v57 }
 0x8d9   :  { %v6542_v39 = vsel %vm445_vm6, %v6537_v59, %v6541_v45  ;;  %v6051_v59 = vadd.f32 %v6050_v22, %v17066_v44 }
 0x8da   :  { %v17293_v56 = vmax.f32 %v6378_v25, %v6542_v39  ;;  %v6312_v30 = vpop.f32.mrf.mxu3  ;;  %v9432_v25 = vld [vmem:[%s17967_s5 + $0x70] sm:$0xff] }
 0x8db   :  { %v6313_v48 = vadd.f32 %v6312_v30, %v6224_v0  ;;  %7226 = vmatpush.bf16.msra.mxu3 %v9432_v25 }
 0x8dd   :  { %v6382_v12 = vmax.f32 %v6313_v48, 0.0  ;;  %v6139_v52 = vpop.f32.mrf.mxu1  ;;  %v6053_v10 = vpop.f32.mrf.mxu0 }
 0x8de   :  { %v6140_v3 = vadd.f32 %v6139_v52, %v6051_v59 }
 0x8df   :  { %v6545_v19 = vrot.slane %v6382_v12, 2 }
 0x8e0   :  { %v6229_v35 = vadd.f32 %v6228_v33, %v6140_v3  ;;  %v9443_v33 = vld [vmem:[%s17967_s5 + $0xc8] sm:$0xff] }
 0x8e1   :  { %v6546_v17 = vsel %vm445_vm6, %v6541_v45, %v6545_v19  ;;  %v6054_v45 = vadd.f32 %v6053_v10, %v17076_v54  ;;  %7534 = vmatpush.bf16.msra.mxu0 %v9443_v33 }
 0x8e2   :  { %v17297_v16 = vmax.f32 %v6380_v2, %v6546_v17  ;;  %v6315_v1 = vpop.f32.mrf.mxu3  ;;  %v6231_v2 = vpop.f32.mrf.mxu2 }
 0x8e3   :  { %v6316_v44 = vadd.f32 %v6315_v1, %v6227_v4 }
 0x8e4   :  { %19841 = vst [vmem:[#allocation195_spill] sm:$0xff] %v17297_v16  ;;  %v10517_v11 = vpack.i.bf16 %v17098_v20, %v17297_v16 }
 0x8e5   :  { %v6142_v40 = vpop.f32.mrf.mxu1  ;;  %v6055_v22 = vpop.f32.mrf.mxu0  ;;  %v6384_v39 = vmax.f32 %v6316_v44, 0.0 }
 0x8e6   :  { %10518 = vrot.lane.b32.xlu1 %v10517_v11, %s10581_s3  ;;  %v6143_v30 = vadd.f32 %v6142_v40, %v6054_v45  ;;  %v6056_v10 = vadd.f32 %v6055_v22, %v17082_v31  ;;  %v19842_v31 = vld [vmem:[#allocation204_spill] sm:$0xff] }
 0x8e7   :  { %v6550_v9 = vrot.slane %v6384_v39, 2  ;;  %v19843_v22 = vld [vmem:[#allocation184_spill] sm:$0xff] }
 0x8e8   :  { %v6232_v57 = vadd.f32 %v6231_v2, %v6143_v30 }
 0x8ea   :  { %v6317_v21 = vpop.f32.mrf.mxu3  ;;  %v6233_v36 = vpop.f32.mrf.mxu2 }
 0x8eb   :  { %v6318_v0 = vadd.f32 %v6317_v21, %v6229_v35 }
 0x8ed   :  { %v6386_v48 = vmax.f32 %v6318_v0, 0.0  ;;  %v6144_v12 = vpop.f32.mrf.mxu1  ;;  %v6058_v17 = vpop.f32.mrf.mxu0  ;;  %v10442_v0 = vpack.i.bf16 %v19843_v22, %v19842_v31 }
 0x8ee   :  { %v6145_v3 = vadd.f32 %v6144_v12, %v6056_v10 }
 0x8ef   :  { %v6551_v52 = vrot.slane %v6386_v48, 2 }
 0x8f0   :  { %v6234_v35 = vadd.f32 %v6233_v36, %v6145_v3  ;;  %v9431_v36 = vld [vmem:[%s17967_s5 + $0x68] sm:$0xff] }
 0x8f1   :  { %v6552_v19 = vsel %vm445_vm6, %v6550_v9, %v6551_v52  ;;  %7227 = vmatpush.bf16.msra.mxu3 %v9431_v36 }
 0x8f2   :  { %v6320_v59 = vpop.f32.mrf.mxu3  ;;  %v17314_v1 = vmax.f32 %v6384_v39, %v6552_v19  ;;  %v6236_v2 = vpop.f32.mrf.mxu2  ;;  %v6059_v19 = vadd.f32 %v6058_v17, %v17095_v51 }
 0x8f3   :  { %v6321_v54 = vadd.f32 %v6320_v59, %v6232_v57 }
 0x8f4   :  { %v10437_v11 = vpack.i.bf16 %v17314_v1, %v17050_v27 }
 0x8f5   :  { %v6388_v14 = vmax.f32 %v6321_v54, 0.0  ;;  %v6147_v25 = vpop.f32.mrf.mxu1  ;;  %v6060_v45 = vpop.f32.mrf.mxu0 }
 0x8f6   :  { %10438 = vrot.lane.b32.xlu2 %v10437_v11, %s10581_s3  ;;  %v6148_v57 = vadd.f32 %v6147_v25, %v6059_v19  ;;  %v6061_v33 = vadd.f32 %v6060_v45, %v17104_v61  ;;  %v10472_v25 = vpack.i.bf16 %v17176_v50, %v19842_v31 }
 0x8f7   :  { %v6555_v4 = vrot.slane %v6388_v14, 2 }
 0x8f8   :  { %v6237_v10 = vadd.f32 %v6236_v2, %v6148_v57 }
 0x8f9   :  { %v6556_v40 = vsel %vm445_vm6, %v6551_v52, %v6555_v4 }
 0x8fa   :  { %v17321_v44 = vmax.f32 %v6386_v48, %v6556_v40  ;;  %v6322_v21 = vpop.f32.mrf.mxu3  ;;  %v9422_v48 = vld [vmem:[%s17967_s5 + $0x20] sm:$0xff]  ;;  %v6238_v51 = vpop.f32.mrf.mxu2 }
 0x8fb   :  { %v6323_v39 = vadd.f32 %v6322_v21, %v6234_v35  ;;  %7346 = vmatpush.bf16.msra.mxu2 %v9422_v48  ;;  %v19845_v48 = vld [vmem:[#allocation17_spill] sm:$0xff] }
 0x8fd   :  { %v6390_v30 = vmax.f32 %v6323_v39, 0.0  ;;  %v6149_v9 = vpop.f32.mrf.mxu1  ;;  %v6063_v11 = vpop.f32.mrf.mxu0 }
 0x8fe   :  { %10443 = vrot.lane.b32.xlu2 %v10442_v0, %s10580_s12  ;;  %v6150_v17 = vadd.f32 %v6149_v9, %v6061_v33  ;;  %v6064_v21 = vadd.f32 %v6063_v11, %v17113_v34  ;;  %v10487_v0 = vpack.i.bf16 %v17231_v7, %v17147_v28 }
 0x8ff   :  { %v6559_v12 = vrot.slane %v6390_v30, 2 }
 0x900   :  { %v6239_v40 = vadd.f32 %v6238_v51, %v6150_v17  ;;  %v19846_v51 = vld [vmem:[#allocation66_spill] sm:$0xff] }
 0x901   :  { %v6560_v52 = vsel %vm445_vm6, %v6555_v4, %v6559_v12 }
 0x902   :  { %v6325_v59 = vpop.f32.mrf.mxu3  ;;  %v17335_v54 = vmax.f32 %v6388_v14, %v6560_v52  ;;  %v6241_v2 = vpop.f32.mrf.mxu2 }
 0x903   :  { %v6326_v3 = vadd.f32 %v6325_v59, %v6237_v10  ;;  %v9442_v10 = vld [vmem:[%s17967_s5 + $0xc0] sm:$0xff] }
 0x904   :  { %19844 = vst [vmem:[#allocation7_spill] sm:$0xff] %v17335_v54  ;;  %7535 = vmatpush.bf16.msra.mxu0 %v9442_v10  ;;  %v19849_v10 = vld [vmem:[#allocation194_spill] sm:$0xff] }
 0x905   :  { %v6152_v4 = vpop.f32.mrf.mxu1  ;;  %v6392_v61 = vmax.f32 %v6326_v3, 0.0  ;;  %v6065_v19 = vpop.f32.mrf.mxu0 }
 0x906   :  { %10473 = vrot.lane.b32.xlu2 %v10472_v25, %s10581_s3  ;;  %v6153_v45 = vadd.f32 %v6152_v4, %v6064_v21  ;;  %v6066_v36 = vadd.f32 %v6065_v19, %v19845_v48  ;;  %v9436_v25 = vld [vmem:[%s17967_s5 + $0x90] sm:$0xff]  ;;  %v9421_v48 = vld [vmem:[%s17967_s5 + $0x18] sm:$0xff] }
 0x907   :  { %v6564_v30 = vrot.slane %v6392_v61, 2  ;;  %7243 = vmatpush.bf16.msra.mxu1 %v9436_v25  ;;  %7347 = vmatpush.bf16.msra.mxu2 %v9421_v48  ;;  %v19850_v25 = vld [vmem:[#allocation22_spill] sm:$0xff] }
 0x908   :  { %v6242_v57 = vadd.f32 %v6241_v2, %v6153_v45  ;;  %v10452_v2 = vpack.i.bf16 %v17251_v42, %v17293_v56 }
 0x90a   :  { %v6327_v35 = vpop.f32.mrf.mxu3 }
 0x90b   :  { %v6328_v14 = vadd.f32 %v6327_v35, %v6239_v40  ;;  %v6243_v40 = vpop.f32.mrf.mxu2 }
 0x90d   :  { %v6394_v39 = vmax.f32 %v6328_v14, 0.0  ;;  %v6154_v59 = vpop.f32.mrf.mxu1 }
 0x90e   :  { %10488 = vrot.lane.b32.xlu2 %v10487_v0, %s10581_s3  ;;  %v6155_v11 = vadd.f32 %v6154_v59, %v6066_v36  ;;  %v9430_v36 = vld [vmem:[%s17967_s5 + $0x60] sm:$0xff] }
 0x90f   :  { %v6565_v9 = vrot.slane %v6394_v39, 2  ;;  %7228 = vmatpush.bf16.msra.mxu3 %v9430_v36 }
 0x910   :  { %v6244_v21 = vadd.f32 %v6243_v40, %v6155_v11  ;;  %v10547_v11 = vpack.i.bf16 %v19850_v25, %v19849_v10  ;;  %v19851_v40 = vld [vmem:[#allocation190_spill] sm:$0xff] }
 0x911   :  { %v6566_v12 = vsel %vm445_vm6, %v6564_v30, %v6565_v9 }
 0x912   :  { %v17345_v52 = vmax.f32 %v6392_v61, %v6566_v12  ;;  %v6330_v34 = vpop.f32.mrf.mxu3 }
 0x913   :  { %v6331_v33 = vadd.f32 %v6330_v34, %v6242_v57 }
 0x914   :  { %v10447_v17 = vpack.i.bf16 %v17345_v52, %v19846_v51 }
 0x915   :  { %v6396_v3 = vmax.f32 %v6331_v33, 0.0  ;;  %v10522_v33 = vpack.i.bf16 %v19838_v5, %v17335_v54 }
 0x916   :  { %10448 = vrot.lane.b32.xlu0 %v10447_v17, %s10581_s3  ;;  %v10477_v17 = vpack.i.bf16 %v17202_v58, %v19843_v22 }
 0x917   :  { %v6569_v4 = vrot.slane %v6396_v3, 2 }
 0x919   :  { %v6570_v35 = vsel %vm445_vm6, %v6565_v9, %v6569_v4 }
 0x91a   :  { %v17358_v61 = vmax.f32 %v6394_v39, %v6570_v35  ;;  %v6332_v14 = vpop.f32.mrf.mxu3  ;;  %v19848_v39 = vld [vmem:[#allocation133_spill] sm:$0xff]  ;;  %v19852_v35 = vld [vmem:[#allocation43_spill] sm:$0xff] }
 0x91b   :  { %v6333_v45 = vadd.f32 %v6332_v14, %v6244_v21  ;;  %v10507_v57 = vpack.i.bf16 %v19848_v39, %v17261_v29  ;;  %v10462_v59 = vpack.i.bf16 %v17098_v20, %v19848_v39  ;;  %v10512_v21 = vpack.i.bf16 %v19852_v35, %v19851_v40 }
 0x91c   :  { %v10502_v0 = vpack.i.bf16 %v17358_v61, %v17321_v44 }
 0x91d   :  { %v6398_v30 = vmax.f32 %v6333_v45, 0.0  ;;  %v17407_v45 = vpop.permute.xlu2 %10383 }
 0x91e   :  { %10503 = vrot.lane.b32.xlu2 %v10502_v0, %s10581_s3  ;;  %10453 = vrot.lane.b32.xlu0 %v10452_v2, %s10581_s3  ;;  %v10374_v0 = vpop.permute.xlu0 %10373 }
 0x91f   :  { %v6573_v19 = vrot.slane %v6398_v30, 2  ;;  %v10375_v40 = vunpack.i.l.bf16 %v10374_v0 }
 0x921   :  { %v6574_v12 = vsel %vm445_vm6, %v6569_v4, %v6573_v19  ;;  %v17400_v4 = vpop.permute.xlu1 %10378  ;;  %vm7135_vm6 = vcmask 1045509  }
 0x922   :  { %v17367_v9 = vmax.f32 %v6396_v3, %v6574_v12  ;;  %v9441_v3 = vld [vmem:[%s17967_s5 + $0xb8] sm:$0xff]  ;;  %v10380_v10 = vunpack.i.l.bf16 %v17400_v4  ;;  %v10381_v54 = vunpack.i.h.bf16 %v17400_v4 }
 0x923   :  { %7536 = vmatpush.bf16.msra.mxu0 %v9441_v3 }
 0x924   :  { %19847 = vst [vmem:[#allocation121_spill] sm:$0xff] %v17367_v9  ;;  %v10532_v34 = vpack.i.bf16 %v16914_v43, %v17367_v9 }
 0x925   :  { %v10399_v30 = vpop.permute.xlu2 %10398 }
 0x926   :  { %10508 = vrot.lane.b32.xlu2 %v10507_v57, %s10581_s3  ;;  %10463 = vrot.lane.b32.xlu0 %v10462_v59, %s10580_s12  ;;  %v17417_v19 = vpop.permute.xlu0 %10388  ;;  %v9440_v57 = vld [vmem:[%s17967_s5 + $0xb0] sm:$0xff] }
 0x927   :  { %10533 = vrot.lane.b32.xlu1 %v10532_v34, %s10581_s3  ;;  %7537 = vmatpush.bf16.msra.mxu0 %v9440_v57  ;;  %v10385_v57 = vunpack.i.l.bf16 %v17407_v45 }
 0x929   :  { %v17405_v14 = vpop.permute.xlu1 %10393 }
 0x92d   :  { %v17424_v59 = vpop.permute.xlu2 %10408 }
 0x92e   :  { %10523 = vrot.lane.b32.xlu2 %v10522_v33, %s10581_s3  ;;  %10478 = vrot.lane.b32.xlu0 %v10477_v17, %s10581_s3  ;;  %v18563_v34 = vunpack.i.h.bf16 %v17424_v59  ;;  %v10404_v48 = vpop.permute.xlu0 %10403  ;;  %v10376_v33 = vunpack.i.h.bf16 %v10374_v0  ;;  %v10401_v17 = vunpack.i.h.bf16 %v10399_v30  ;;  %v9419_v0 = vld [vmem:[%s17967_s5 + $0x8] sm:$0xff] }
 0x92f   :  { %10548 = vrot.lane.b32.xlu1 %v10547_v11, %s10581_s3 }
 0x930   :  { %v6965_v3 = vsel %vm6960_vm1, %v18563_v34, %v10376_v33 }
 0x931   :  { %v10414_v2 = vpop.permute.xlu1 %10413  ;;  %v6994_v26 = vmax.f32 %v17166_v60, %v6965_v3 }
 0x933   :  { %v7372_v3 = vpack.c.bf16 %v6994_v26, %v6994_v26 }
 0x935   :  { %v10419_v35 = vpop.permute.xlu2 %10418 }
 0x936   :  { %10538 = vrot.lane.b32.xlu2 %v17282_v13, %s10581_s3  ;;  %10493 = vrot.lane.b32.xlu0 %v17255_v55, %s10581_s3  ;;  %v9420_v13 = vld [vmem:[%s17967_s5 + $0x10] sm:$0xff]  ;;  %v9429_v55 = vld [vmem:[%s17967_s5 + $0x58] sm:$0xff]  ;;  %v10420_v26 = vunpack.i.l.bf16 %v10419_v35 }
 0x937   :  { %7348 = vmatpush.bf16.msra.mxu2 %v9420_v13  ;;  %7229 = vmatpush.bf16.msra.mxu3 %v9429_v55  ;;  %v10406_v13 = vunpack.i.h.bf16 %v10404_v48  ;;  %v10405_v55 = vunpack.i.l.bf16 %v10404_v48 }
 0x939   :  { %v17419_v12 = vpop.permute.xlu1 %10423  ;;  %v6819_v34 = vsel %vm6815_vm0, %v10405_v55, %v10406_v13  ;;  %v6964_v9 = vsel %vm6960_vm1, %v10406_v13, %v10380_v10  ;;  %v10416_v55 = vunpack.i.h.bf16 %v10414_v2 }
 0x93b   :  { %7349 = vmatpush.bf16.msra.mxu2 %v9419_v0 }
 0x93e   :  { %10513 = vrot.lane.b32.xlu0 %v10512_v21, %s10580_s12 }
 0x941   :  { %v17427_v36 = vpop.permute.xlu1 %10428 }
 0x946   :  { %10528 = vrot.lane.b32.xlu0 %v10547_v11, %s10580_s12  ;;  %v10400_v11 = vunpack.i.l.bf16 %v10399_v30  ;;  %v6961_v30 = vsel %vm6960_vm1, %v10401_v17, %v10385_v57 }
 0x948   :  { %v6816_v25 = vsel %vm6815_vm0, %v10400_v11, %v10401_v17  ;;  %v9428_v17 = vld [vmem:[%s17967_s5 + $0x50] sm:$0xff]  ;;  %v19853_v11 = vld [vmem:[#allocation46_spill] sm:$0xff] }
 0x949   :  { %v6985_v48 = vmax.f32 %v16710_v32, %v6816_v25  ;;  %v6986_v60 = vmax.f32 %v19853_v11, %v6961_v30  ;;  %7230 = vmatpush.bf16.msra.mxu3 %v9428_v17  ;;  %v19854_v32 = vld [vmem:[#allocation32_spill] sm:$0xff]  ;;  %v10415_v25 = vunpack.i.l.bf16 %v10414_v2  ;;  %v10421_v30 = vunpack.i.h.bf16 %v10419_v35 }
 0x94a   :  { %v6992_v10 = vmax.f32 %v19854_v32, %v6964_v9  ;;  %v7425_v11 = vunpack.c.l.b16 %v7372_v3  ;;  %v10390_v2 = vunpack.i.l.bf16 %v17417_v19 }
 0x94b   :  { %v7033_v15 = vpack.c.bf16 %v6985_v48, %v6985_v48  ;;  %v7034_v43 = vpack.c.bf16 %v6986_v60, %v6986_v60  ;;  %v6822_v17 = vsel %vm6815_vm0, %v10415_v25, %v10416_v55  ;;  %v6825_v35 = vsel %vm6815_vm0, %v10420_v26, %v10421_v30 }
 0x94c   :  { %v7036_v0 = vpack.c.bf16 %v6992_v10, %v6992_v10  ;;  %v7452_v3 = vrot.slane %v7425_v11, 7  ;;  %v10430_v25 = vunpack.i.l.bf16 %v17427_v36 }
 0x94d   :  { %v7106_v32 = vunpack.c.l.b16 %v7033_v15  ;;  %v7107_v4 = vunpack.c.l.b16 %v7034_v43  ;;  %v7003_v15 = vmax.f32 %v16938_v41, %v6825_v35  ;;  %v10434_v41 = vpop.permute.xlu0 %10433 }
 0x94e   :  { %10543 = vrot.lane.b32.xlu0 %v10512_v21, %s10581_s3  ;;  %v18565_v21 = vunpack.i.l.bf16 %v17424_v59  ;;  %v7109_v10 = vunpack.c.l.b16 %v7036_v0  ;;  %v10436_v37 = vunpack.i.h.bf16 %v10434_v41  ;;  %v10435_v24 = vunpack.i.l.bf16 %v10434_v41 }
 0x94f   :  { %v7122_v26 = vrot.slane %v7106_v32, 4  ;;  %v7039_v9 = vpack.c.bf16 %v7003_v15, %v7003_v15 }
 0x950   :  { %v6962_v33 = vsel %vm6960_vm1, %v18565_v21, %v10375_v40  ;;  %v6991_v40 = vmax.f32 %v16785_v18, %v6819_v34  ;;  %v17453_v21 = vpop.permute.xlu1 %10458  ;;  %v17456_v13 = vpop.permute.xlu2 %10438  ;;  %v6967_v18 = vsel %vm6960_vm1, %v10416_v55, %v10381_v54  ;;  %v10386_v34 = vunpack.i.h.bf16 %v17407_v45 }
 0x951   :  { %v6988_v57 = vmax.f32 %v17140_v6, %v6962_v33  ;;  %v6998_v48 = vmax.f32 %v17186_v8, %v6967_v18  ;;  %v6997_v45 = vmax.f32 %v19831_v53, %v6822_v17  ;;  %v10431_v8 = vunpack.i.h.bf16 %v17427_v36 }
 0x952   :  { %v7035_v33 = vpack.c.bf16 %v6991_v40, %v6991_v40  ;;  %v6970_v60 = vsel %vm6960_vm1, %v10421_v30, %v10386_v34  ;;  %v7144_v35 = vrot.slane %v7109_v10, 3 }
 0x953   :  { %v7370_v6 = vpack.c.bf16 %v6988_v57, %v6988_v57  ;;  %v7004_v43 = vmax.f32 %v17214_v46, %v6970_v60  ;;  %v7038_v18 = vpack.c.bf16 %v6998_v48, %v6998_v48  ;;  %v7037_v40 = vpack.c.bf16 %v6997_v45, %v6997_v45 }
 0x954   :  { %v7108_v54 = vunpack.c.l.b16 %v7035_v33  ;;  %v7595_v33 = vrot.slane %v7425_v11, 3  ;;  %v6973_v16 = vsel %vm6960_vm1, %v10431_v8, %v10390_v2  ;;  %v6828_v11 = vsel %vm6815_vm0, %v10430_v25, %v10431_v8 }
 0x955   :  { %v7423_v57 = vunpack.c.l.b16 %v7370_v6  ;;  %v7143_v6 = vrot.slane %v7107_v4, 4  ;;  %v7040_v36 = vpack.c.bf16 %v7004_v43, %v7004_v43  ;;  %v7263_v48 = vrot.slane %v7109_v10, 7 }
 0x956   :  { %v7123_v0 = vrot.slane %v7108_v54, 3  ;;  %v7249_v46 = vrot.slane %v7108_v54, 7  ;;  %v7111_v29 = vunpack.c.l.b16 %v7038_v18  ;;  %v7110_v45 = vunpack.c.l.b16 %v7037_v40  ;;  %v19857_v18 = vld [vmem:[#allocation202_spill] sm:$0xff] }
 0x957   :  { %v17477_v34 = vsel %vm7124_vm2, %v7452_v3, %v7423_v57  ;;  %v7594_v17 = vrot.slane %v7423_v57, 4  ;;  %v7010_v54 = vmax.f32 %v17242_v47, %v6973_v16  ;;  %v7009_v15 = vmax.f32 %v16977_v49, %v6828_v11  ;;  %v9439_v47 = vld [vmem:[%s17967_s5 + $0xa8] sm:$0xff] }
 0x958   :  { %v10469_v30 = vpop.permute.xlu1 %10468  ;;  %v17474_v53 = vpop.permute.xlu2 %10443  ;;  %v7125_v57 = vsel %vm7124_vm2, %v7123_v0, %v7122_v26  ;;  %v19855_v43 = vunpack.i.h.bf16 %v17424_v59  ;;  %v19856_v10 = vunpack.i.l.bf16 %v17424_v59  ;;  %v7145_v25 = vsel %vm7124_vm2, %v7144_v35, %v7143_v6  ;;  %7538 = vmatpush.bf16.msra.mxu0 %v9439_v47 }
 0x959   :  { %v10471_v60 = vunpack.i.h.bf16 %v10469_v30  ;;  %v10470_v55 = vunpack.i.l.bf16 %v10469_v30  ;;  %v17482_v3 = vsel %vm7124_vm2, %v7595_v33, %v7594_v17  ;;  %v7250_v30 = vsel %vm7124_vm2, %v7249_v46, %v7106_v32  ;;  %v19858_v17 = vld [vmem:[#allocation201_spill] sm:$0xff] }
 0x95a   :  { %v7112_v33 = vunpack.c.l.b16 %v7039_v9  ;;  %v7113_v26 = vunpack.c.l.b16 %v7040_v36  ;;  %v7264_v49 = vsel %vm7124_vm2, %v7263_v48, %v7107_v4  ;;  %v7146_v16 = vrot.slane %v7111_v29, 2 }
 0x95b   :  { %v6820_v2 = vsel %vm6815_vm0, %v10471_v60, %v19855_v43  ;;  %v6817_v8 = vsel %vm6815_vm0, %v10470_v55, %v19856_v10  ;;  %v6831_v40 = vsel %vm6815_vm0, %v10435_v24, %v10436_v37  ;;  %v19859_v32 = vunpack.i.h.bf16 %v17417_v19 }
 0x95c   :  { %v6993_v59 = vmax.f32 %v19857_v18, %v6820_v2  ;;  %v6987_v55 = vmax.f32 %v19858_v17, %v6817_v8  ;;  %v10441_v6 = vunpack.i.h.bf16 %v17456_v13  ;;  %v7265_v41 = vrot.slane %v7111_v29, 6 }
 0x95d   :  { %v6976_v9 = vsel %vm6960_vm1, %v10436_v37, %v19859_v32  ;;  %v7126_v35 = vrot.slane %v7110_v45, 2  ;;  %v7042_v4 = vpack.c.bf16 %v7010_v54, %v7010_v54  ;;  %v7041_v46 = vpack.c.bf16 %v7009_v15, %v7009_v15 }
 0x95e   :  { %v7251_v24 = vrot.slane %v7110_v45, 6  ;;  %v7129_v36 = vrot.slane %v7112_v33, 1  ;;  %v7148_v11 = vrot.slane %v7113_v26, 1  ;;  %v7015_v48 = vmax.f32 %v19840_v38, %v6831_v40 }
 0x95f   :  { %v7147_v43 = vsel %vm7127_vm3, %v7146_v16, %v7145_v25  ;;  %v7253_v2 = vrot.slane %v7112_v33, 5  ;;  %v7016_v19 = vmax.f32 %v17278_v63, %v6976_v9  ;;  %v10440_v37 = vunpack.i.l.bf16 %v17456_v13 }
 0x960   :  { %v17502_v0 = vpop.permute.xlu1 %10483  ;;  %v17508_v60 = vpop.permute.xlu2 %10473  ;;  %v7267_v10 = vrot.slane %v7113_v26, 5  ;;  %v7371_v8 = vpack.c.bf16 %v6993_v59, %v6993_v59  ;;  %v7369_v29 = vpack.c.bf16 %v6987_v55, %v6987_v55  ;;  %v19860_v54 = vunpack.i.l.bf16 %v17405_v14  ;;  %v9418_v26 = vld [vmem:[%s17967_s5] sm:$0xff] }
 0x961   :  { %v7266_v45 = vsel %vm7127_vm3, %v7265_v41, %v7264_v49  ;;  %v7128_v47 = vsel %vm7127_vm3, %v7126_v35, %v7125_v57  ;;  %v7115_v18 = vunpack.c.l.b16 %v7042_v4  ;;  %v7114_v38 = vunpack.c.l.b16 %v7041_v46  ;;  %7350 = vmatpush.bf16.msra.mxu2 %v9418_v26 }
 0x962   :  { %v6979_v15 = vsel %vm6960_vm1, %v10441_v6, %v19860_v54  ;;  %v7252_v25 = vsel %vm7127_vm3, %v7251_v24, %v7250_v30  ;;  %v7131_v33 = vsel %vm7130_vm4, %v7129_v36, %v7128_v47  ;;  %v7149_v63 = vsel %vm7130_vm4, %v7148_v11, %v7147_v43 }
 0x963   :  { %v7043_v13 = vpack.c.bf16 %v7015_v48, %v7015_v48  ;;  %v7254_v16 = vsel %vm7130_vm4, %v7253_v2, %v7252_v25  ;;  %v7044_v40 = vpack.c.bf16 %v7016_v19, %v7016_v19  ;;  %v6834_v49 = vsel %vm6815_vm0, %v10440_v37, %v10441_v6 }
 0x964   :  { %v7022_v57 = vmax.f32 %v17314_v1, %v6979_v15  ;;  %v7268_v59 = vsel %vm7130_vm4, %v7267_v10, %v7266_v45  ;;  %v7424_v30 = vunpack.c.l.b16 %v7371_v8  ;;  %v7422_v17 = vunpack.c.l.b16 %v7369_v29 }
 0x965   :  { %v10426_v55 = vunpack.i.h.bf16 %v17419_v12  ;;  %v10425_v32 = vunpack.i.l.bf16 %v17419_v12  ;;  %v7269_v9 = vrot.slane %v7115_v18, 4  ;;  %v7255_v41 = vrot.slane %v7114_v38, 4 }
 0x966   :  { %v7116_v35 = vunpack.c.l.b16 %v7043_v13  ;;  %v7021_v6 = vmax.f32 %v17050_v27, %v6834_v49  ;;  %v10445_v1 = vunpack.i.l.bf16 %v17474_v53  ;;  %v10461_v46 = vunpack.i.h.bf16 %v17453_v21 }
 0x967   :  { %v10460_v24 = vunpack.i.l.bf16 %v17453_v21  ;;  %v7117_v36 = vunpack.c.l.b16 %v7044_v40  ;;  %v7046_v11 = vpack.c.bf16 %v7022_v57, %v7022_v57  ;;  %v7133_v43 = vsel %vm7132_vm5, %v7114_v38, %v7131_v33 }
 0x968   :  { %v17531_v4 = vpop.permute.xlu1 %10498  ;;  %v17537_v48 = vpop.permute.xlu2 %10488  ;;  %v7438_v2 = vrot.slane %v7424_v30, 7  ;;  %v7581_v19 = vrot.slane %v7424_v30, 3  ;;  %v7580_v37 = vrot.slane %v7422_v17, 4  ;;  %v7150_v10 = vsel %vm7132_vm5, %v7115_v18, %v7149_v63  ;;  %v9455_v18 = vld [vmem:[%s17967_s5 + $0x128] sm:$0xff] }
 0x969   :  { %v7256_v8 = vsel %vm7132_vm5, %v7255_v41, %v7254_v16  ;;  %v7270_v27 = vsel %vm7132_vm5, %v7269_v9, %v7268_v59  ;;  %v10446_v29 = vunpack.i.h.bf16 %v17474_v53  ;;  %v7134_v54 = vrot.slane %v7116_v35, 7  ;;  %v9427_v53 = vld [vmem:[%s17967_s5 + $0x48] sm:$0xff]  ;;  %7674 = vmatpush.bf16.msrb.mxu2 %v9455_v18 }
 0x96a   :  { %v7045_v15 = vpack.c.bf16 %v7021_v6, %v7021_v6  ;;  %v6968_v45 = vsel %vm6960_vm1, %v10425_v32, %v10445_v1  ;;  %v10486_v47 = vunpack.i.h.bf16 %v17502_v0  ;;  %v10485_v38 = vunpack.i.l.bf16 %v17502_v0  ;;  %7362 = vmatpush.bf16.msrb.mxu3 %v9427_v53 }
 0x96b   :  { %v7151_v25 = vrot.slane %v7117_v36, 7  ;;  %v7119_v33 = vunpack.c.l.b16 %v7046_v11  ;;  %v17556_v63 = vsel %vm7124_vm2, %v7438_v2, %v7422_v17  ;;  %v17559_v13 = vsel %vm7124_vm2, %v7581_v19, %v7580_v37  ;;  %v9454_v17 = vld [vmem:[%s17967_s5 + $0x120] sm:$0xff] }
 0x96c   :  { %v7257_v26 = vrot.slane %v7116_v35, 3  ;;  %v7271_v16 = vrot.slane %v7117_v36, 3  ;;  %v6971_v49 = vsel %vm6960_vm1, %v10426_v55, %v10446_v29  ;;  %v7000_v57 = vmax.f32 %v17195_v23, %v6968_v45 }
 0x96d   :  { %v7136_v9 = vsel %vm7135_vm6, %v7134_v54, %v7133_v43  ;;  %v10501_v41 = vunpack.i.h.bf16 %v17531_v4  ;;  %v10500_v35 = vunpack.i.l.bf16 %v17531_v4  ;;  %v7118_v6 = vunpack.c.l.b16 %v7045_v15  ;;  %7675 = vmatpush.bf16.msrb.mxu2 %v9454_v17 }
 0x96e   :  { %v7152_v36 = vsel %vm7135_vm6, %v7151_v25, %v7150_v10  ;;  %v7153_v23 = vrot.slane %v7119_v33, 6  ;;  %v19861_v19 = vunpack.i.h.bf16 %v17405_v14  ;;  %v7273_v29 = vrot.slane %v7119_v33, 2 }
 0x96f   :  { %v7006_v43 = vmax.f32 %v17220_v62, %v6971_v49  ;;  %v7258_v45 = vsel %vm7135_vm6, %v7257_v26, %v7256_v8  ;;  %v7272_v10 = vsel %vm7135_vm6, %v7271_v16, %v7270_v27  ;;  %v7374_v25 = vpack.c.bf16 %v7000_v57, %v7000_v57  ;;  %v9447_v62 = vld [vmem:[%s17967_s5 + $0xe8] sm:$0xff] }
 0x970   :  { %v17571_v1 = vpop.permute.xlu1 %10518  ;;  %v7137_v53 = vrot.slane %v7118_v6, 6  ;;  %v7154_v8 = vsel %vm7138_vm7, %v7153_v23, %v7152_v36  ;;  %v10476_v33 = vunpack.i.h.bf16 %v17508_v60  ;;  %v10475_v26 = vunpack.i.l.bf16 %v17508_v60  ;;  %7551 = vmatpush.bf16.msrb.mxu1 %v9447_v62 }
 0x971   :  { %v10521_v18 = vunpack.i.h.bf16 %v17571_v1  ;;  %v10520_v27 = vunpack.i.l.bf16 %v17571_v1  ;;  %v17600_v16 = vsel %vm7138_vm7, %v7273_v29, %v7272_v10  ;;  %v7376_v49 = vpack.c.bf16 %v7006_v43, %v7006_v43 }
 0x972   :  { %v17609_v36 = vunpack.c.l.b16 %v7374_v25  ;;  %v7139_v43 = vsel %vm7138_vm7, %v7137_v53, %v7136_v9  ;;  %v6966_v10 = vsel %vm6960_vm1, %v10476_v33, %v10485_v38  ;;  %v10491_v21 = vunpack.i.h.bf16 %v17537_v48 }
 0x973   :  { %v17632_v9 = vunpack.c.l.b16 %v7376_v49 }
 0x974   :  { %v7454_v38 = vrot.slane %v17609_v36, 6 }
 0x978   :  { %v17574_v11 = vpop.permute.xlu2 %10503 }
 0x988   :  { %v10449_v40 = vpop.permute.xlu0 %10448 }
 0x989   :  { %v10451_v59 = vunpack.i.h.bf16 %v10449_v40  ;;  %v10450_v30 = vunpack.i.l.bf16 %v10449_v40  ;;  %v7259_v40 = vrot.slane %v7118_v6, 2  ;;  %v9446_v6 = vld [vmem:[%s17967_s5 + $0xe0] sm:$0xff] }
 0x98a   :  { %7552 = vmatpush.bf16.msrb.mxu1 %v9446_v6 }
 0x98b   :  { %v6837_v2 = vsel %vm6815_vm0, %v10450_v30, %v10451_v59  ;;  %v6982_v37 = vsel %vm6960_vm1, %v10451_v59, %v19861_v19  ;;  %v9452_v19 = vld [vmem:[%s17967_s5 + $0x110] sm:$0xff] }
 0x98c   :  { %v7027_v54 = vmax.f32 %v19846_v51, %v6837_v2  ;;  %v7028_v15 = vmax.f32 %v17345_v52, %v6982_v37  ;;  %v9453_v52 = vld [vmem:[%s17967_s5 + $0x118] sm:$0xff]  ;;  %v9426_v51 = vld [vmem:[%s17967_s5 + $0x40] sm:$0xff] }
 0x98d   :  { %7363 = vmatpush.bf16.msrb.mxu3 %v9426_v51  ;;  %7676 = vmatpush.bf16.msrb.mxu2 %v9453_v52  ;;  %v6996_v52 = vmax.f32 %v17176_v50, %v6966_v10  ;;  %v10506_v50 = vunpack.i.h.bf16 %v17574_v11 }
 0x98e   :  { %v7047_v14 = vpack.c.bf16 %v7027_v54, %v7027_v54  ;;  %v7048_v30 = vpack.c.bf16 %v7028_v15, %v7028_v15  ;;  %v7260_v54 = vsel %vm7138_vm7, %v7259_v40, %v7258_v45  ;;  %v6823_v15 = vsel %vm6815_vm0, %v10475_v26, %v10425_v32  ;;  %v17642_v40 = vpop.permute.xlu2 %10508  ;;  %v9457_v26 = vld [vmem:[%s17967_s5 + $0x138] sm:$0xff] }
 0x98f   :  { %v10490_v45 = vunpack.i.l.bf16 %v17537_v48  ;;  %v6999_v51 = vmax.f32 %v19842_v31, %v6823_v15 }
 0x990   :  { %v7120_v57 = vunpack.c.l.b16 %v7047_v14  ;;  %v17602_v59 = vunpack.c.l.b16 %v7048_v30  ;;  %v17604_v17 = vpop.permute.xlu0 %10453 }
 0x991   :  { %v10456_v23 = vunpack.i.h.bf16 %v17604_v17  ;;  %v10455_v2 = vunpack.i.l.bf16 %v17604_v17  ;;  %7677 = vmatpush.bf16.msrb.mxu2 %v9452_v19  ;;  %v6963_v6 = vsel %vm6960_vm1, %v10490_v45, %v10500_v35  ;;  %v7599_v35 = vrot.slane %v17632_v9, 1 }
 0x992   :  { %v7140_v37 = vrot.slane %v7120_v57, 5  ;;  %v7155_v29 = vrot.slane %v17602_v59, 5  ;;  %v7261_v25 = vrot.slane %v7120_v57, 1  ;;  %v7456_v57 = vrot.slane %v17632_v9, 5 }
 0x993   :  { %v6974_v14 = vsel %vm6960_vm1, %v10456_v23, %v10461_v46  ;;  %v6977_v32 = vsel %vm6960_vm1, %v10455_v2, %v10460_v24  ;;  %v9451_v24 = vld [vmem:[%s17967_s5 + $0x108] sm:$0xff]  ;;  %v6990_v9 = vmax.f32 %v17147_v28, %v6963_v6 }
 0x994   :  { %v7156_v53 = vsel %vm7141_vm10, %v7155_v29, %v7154_v8  ;;  %v7012_v46 = vmax.f32 %v17251_v42, %v6974_v14  ;;  %v7018_v62 = vmax.f32 %v17293_v56, %v6977_v32  ;;  %v7142_v8 = vsel %vm7141_vm10, %v7140_v37, %v7139_v43  ;;  %v9438_v42 = vld [vmem:[%s17967_s5 + $0xa0] sm:$0xff] }
 0x995   :  { %v7158_v30 = vpack.c.b16 %v7156_v53, %v7156_v53  ;;  %v7157_v31 = vpack.c.b16 %v7142_v8, %v7142_v8  ;;  %v7262_v49 = vsel %vm7141_vm10, %v7261_v25, %v7260_v54  ;;  %7539 = vmatpush.bf16.msra.mxu0 %v9438_v42  ;;  %v10511_v43 = vunpack.i.h.bf16 %v17642_v40  ;;  %7678 = vmatpush.bf16.msrb.mxu2 %v9451_v24  ;;  %v9450_v54 = vld [vmem:[%s17967_s5 + $0x100] sm:$0xff]  ;;  %v9465_v42 = vld [vmem:[%s17967_s5 + $0x178] sm:$0xff] }
 0x996   :  { %v7378_v56 = vpack.c.bf16 %v7012_v46, %v7012_v46  ;;  %v7380_v19 = vpack.c.bf16 %v7018_v62, %v7018_v62  ;;  %v7277_v37 = vpack.c.b16 %v7262_v49, %v7262_v49  ;;  %v7597_v25 = vrot.slane %v17609_v36, 2 }
 0x997   :  { %8944 = vmatmul.msk.bf16.vlgmr.msra.gmra.mxu1 %vm4061_vm14, %v7158_v30  ;;  %7231 = vmatmul.bf16.vlgmr.msra.gmra.mxu3 %v7157_v31  ;;  %v7373_v53 = vpack.c.bf16 %v6999_v51, %v6999_v51  ;;  %v10505_v32 = vunpack.i.l.bf16 %v17574_v11  ;;  %v7455_v30 = vsel %vm7127_vm3, %v7454_v38, %v17477_v34  ;;  %v7704_v46 = vpack.c.bf16 %v6996_v52, %v6996_v52 }
 0x998   :  { %v10464_v29 = vpop.permute.xlu0 %10463  ;;  %v17669_v15 = vunpack.c.l.b16 %v7378_v56  ;;  %7351 = vmatmul.bf16.vlgmr.msra.gmra.mxu2 %v7277_v37  ;;  %7693 = vmatpush.bf16.msra.mxu3 %v9457_v26  ;;  %v6972_v62 = vsel %vm6960_vm1, %v10491_v21, %v10501_v41  ;;  %v6838_v36 = vsel %vm6815_vm0, %v10521_v18, %v10506_v50  ;;  %v17688_v51 = vunpack.c.l.b16 %v7380_v19  ;;  %v9449_v26 = vld [vmem:[%s17967_s5 + $0xf8] sm:$0xff]  ;;  %v17710_v56 = vpop.permute.xlu2 %10523  ;;  %v9464_v37 = vld [vmem:[%s17967_s5 + $0x170] sm:$0xff] }
 0x999   :  { %v10466_v10 = vunpack.i.h.bf16 %v10464_v29  ;;  %v10465_v14 = vunpack.i.l.bf16 %v10464_v29  ;;  %v6835_v34 = vsel %vm6815_vm0, %v10511_v43, %v10505_v32  ;;  %7679 = vmatpush.bf16.msrb.mxu2 %v9450_v54  ;;  %v7457_v52 = vsel %vm7130_vm4, %v7456_v57, %v7455_v30  ;;  %7864 = vmatpush.bf16.msra.mxu1 %v9465_v42 }
 0x99a   :  { %v7458_v4 = vrot.slane %v17669_v15, 4  ;;  %v7598_v28 = vsel %vm7127_vm3, %v7597_v25, %v17482_v3  ;;  %v7426_v18 = vunpack.c.l.b16 %v7373_v53  ;;  %v7029_v24 = vmax.f32 %v17098_v20, %v6838_v36 }
 0x99b   :  { %v6983_v11 = vsel %vm6960_vm1, %v10506_v50, %v10466_v10  ;;  %v6980_v8 = vsel %vm6960_vm1, %v10505_v32, %v10465_v14  ;;  %v7008_v50 = vmax.f32 %v17231_v7, %v6972_v62  ;;  %v7702_v20 = vpack.c.bf16 %v6990_v9, %v6990_v9 }
 0x99c   :  { %v7030_v38 = vmax.f32 %v17358_v61, %v6983_v11  ;;  %v7024_v41 = vmax.f32 %v17321_v44, %v6980_v8  ;;  %v9456_v44 = vld [vmem:[%s17967_s5 + $0x130] sm:$0xff]  ;;  %v7757_v61 = vunpack.c.l.b16 %v7704_v46  ;;  %v7023_v49 = vmax.f32 %v19848_v39, %v6835_v34 }
 0x99d   :  { %v7275_v57 = vrot.slane %v17602_v59, 1  ;;  %v7460_v6 = vrot.slane %v17688_v51, 3  ;;  %7694 = vmatpush.bf16.msra.mxu3 %v9456_v44  ;;  %v7459_v7 = vsel %vm7132_vm5, %v7458_v4, %v7457_v52  ;;  %7680 = vmatpush.bf16.msrb.mxu2 %v9449_v26  ;;  %v9448_v59 = vld [vmem:[%s17967_s5 + $0xf0] sm:$0xff]  ;;  %v7600_v10 = vsel %vm7130_vm4, %v7599_v35, %v7598_v28  ;;  %v17740_v4 = vpop.permute.xlu1 %10533  ;;  %v9463_v52 = vld [vmem:[%s17967_s5 + $0x168] sm:$0xff] }
 0x99e   :  { %v7384_v3 = vpack.c.bf16 %v7030_v38, %v7030_v38  ;;  %v7382_v31 = vpack.c.bf16 %v7024_v41, %v7024_v41  ;;  %v7440_v14 = vrot.slane %v7426_v18, 6  ;;  %v7583_v54 = vrot.slane %v7426_v18, 2  ;;  %7865 = vmatpush.bf16.msra.mxu1 %v9464_v37  ;;  %v9467_v28 = vld [vmem:[%s17967_s5 + $0x188] sm:$0xff] }
 0x99f   :  { %v7383_v25 = vpack.c.bf16 %v7029_v24, %v7029_v24  ;;  %v7708_v53 = vpack.c.bf16 %v7008_v50, %v7008_v50  ;;  %v10526_v32 = vunpack.i.h.bf16 %v17710_v56  ;;  %v7755_v62 = vunpack.c.l.b16 %v7702_v20 }
 0x9a0   :  { %v17715_v19 = vpop.permute.xlu0 %10478  ;;  %v17721_v29 = vunpack.c.l.b16 %v7384_v3  ;;  %v17723_v43 = vunpack.c.l.b16 %v7382_v31  ;;  %v7276_v36 = vsel %vm7141_vm10, %v7275_v57, %v17600_v16  ;;  %v7461_v9 = vsel %vm7135_vm6, %v7460_v6, %v7459_v7  ;;  %v17773_v60 = vpop.permute.xlu2 %10538 }
 0x9a1   :  { %v10480_v39 = vunpack.i.l.bf16 %v17715_v19  ;;  %v7784_v11 = vrot.slane %v7757_v61, 7  ;;  %v7381_v8 = vpack.c.bf16 %v7023_v49, %v7023_v49  ;;  %v10481_v38 = vunpack.i.h.bf16 %v17715_v19  ;;  %7681 = vmatpush.bf16.msrb.mxu2 %v9448_v59 }
 0x9a2   :  { %v7464_v30 = vrot.slane %v17721_v29, 1  ;;  %v7462_v46 = vrot.slane %v17723_v43, 2  ;;  %v17745_v41 = vsel %vm7127_vm3, %v7440_v14, %v17556_v63  ;;  %v17747_v16 = vunpack.c.l.b16 %v7383_v25  ;;  %7866 = vmatpush.bf16.msra.mxu1 %v9463_v52 }
 0x9a3   :  { %v6826_v35 = vsel %vm6815_vm0, %v10480_v39, %v10426_v55  ;;  %v7584_v18 = vsel %vm7127_vm3, %v7583_v54, %v17559_v13  ;;  %v6821_v63 = vsel %vm6815_vm0, %v10526_v32, %v10476_v33  ;;  %v7278_v24 = vpack.c.b16 %v7276_v36, %v7276_v36  ;;  %v9462_v13 = vld [vmem:[%s17967_s5 + $0x160] sm:$0xff] }
 0x9a4   :  { %v7463_v34 = vsel %vm7138_vm7, %v7462_v46, %v7461_v9  ;;  %v7005_v55 = vmax.f32 %v19843_v22, %v6826_v35  ;;  %v17762_v42 = vunpack.c.l.b16 %v7708_v53  ;;  %v17765_v22 = vsel %vm7124_vm2, %v7784_v11, %v7755_v62 }
 0x9a5   :  { %v7465_v12 = vsel %vm7141_vm10, %v7464_v30, %v7463_v34  ;;  %v10510_v44 = vunpack.i.l.bf16 %v17642_v40  ;;  %v17771_v3 = vunpack.c.l.b16 %v7381_v8  ;;  %v6969_v33 = vsel %vm6960_vm1, %v10481_v38, %v10486_v47  ;;  %v9466_v30 = vld [vmem:[%s17967_s5 + $0x180] sm:$0xff]  ;;  %v17816_v36 = vpop.permute.xlu1 %10548 }
 0x9a6   :  { %v7467_v26 = vpack.c.b16 %v7465_v12, %v7465_v12  ;;  %v7375_v61 = vpack.c.bf16 %v7005_v55, %v7005_v55  ;;  %v7450_v49 = vrot.slane %v17747_v16, 1  ;;  %v17784_v57 = vmax.f32 %v19838_v5, %v6821_v63  ;;  %7867 = vmatpush.bf16.msra.mxu1 %v9462_v13  ;;  %v9460_v55 = vld [vmem:[%s17967_s5 + $0x150] sm:$0xff] }
 0x9a7   :  { %8985 = vmatmul.msk.bf16.vlgmr.msrb.gmra.mxu3 %vm4061_vm14, %v7278_v24  ;;  %v7602_v6 = vrot.slane %v17688_v51, 7  ;;  %v7601_v0 = vsel %vm7132_vm5, %v17669_v15, %v7600_v10  ;;  %v7604_v47 = vrot.slane %v17723_v43, 6  ;;  %v7592_v5 = vrot.slane %v17747_v16, 5  ;;  %v19862_v10 = vld [vmem:[#allocation50_spill] sm:$0xff] }
 0x9a8   :  { %v10494_v50 = vpop.permute.xlu0 %10493  ;;  %9046 = vmatmul.msk.bf16.vlgmr.msrb.gmra.mxu1 %vm4061_vm14, %v7467_v26  ;;  %v7428_v37 = vunpack.c.l.b16 %v7375_v61  ;;  %7883 = vmatpush.bf16.msrb.mxu3 %v9467_v28  ;;  %v10525_v59 = vunpack.i.l.bf16 %v17710_v56  ;;  %v10540_v51 = vunpack.i.l.bf16 %v17773_v60  ;;  %v7002_v14 = vmax.f32 %v17202_v58, %v6969_v33  ;;  %v9461_v58 = vld [vmem:[%s17967_s5 + $0x158] sm:$0xff] }
 0x9a9   :  { %v10496_v31 = vunpack.i.h.bf16 %v10494_v50  ;;  %v10495_v20 = vunpack.i.l.bf16 %v10494_v50  ;;  %v7448_v15 = vrot.slane %v17771_v3, 2  ;;  %v7590_v43 = vrot.slane %v17771_v3, 6 }
 0x9aa   :  { %v7703_v17 = vpack.c.bf16 %v17784_v57, %v17784_v57  ;;  %v7606_v53 = vrot.slane %v17721_v29, 5  ;;  %v7585_v32 = vrot.slane %v7428_v37, 1  ;;  %v10541_v46 = vunpack.i.h.bf16 %v17773_v60  ;;  %7868 = vmatpush.bf16.msra.mxu1 %v9461_v58 }
 0x9ab   :  { %v6829_v7 = vsel %vm6815_vm0, %v10496_v31, %v10456_v23  ;;  %v6832_v39 = vsel %vm6815_vm0, %v10495_v20, %v10455_v2  ;;  %v19863_v23 = vld [vmem:[#allocation189_spill] sm:$0xff]  ;;  %v7603_v2 = vsel %vm7135_vm6, %v7602_v6, %v7601_v0  ;;  %v6818_v29 = vsel %vm6815_vm0, %v10540_v51, %v10490_v45  ;;  %v19864_v0 = vld [vmem:[#allocation206_spill] sm:$0xff]  ;;  %v19866_v51 = vld [vmem:[#allocation187_spill] sm:$0xff] }
 0x9ac   :  { %v7011_v54 = vmax.f32 %v19862_v10, %v6829_v7  ;;  %v7017_v25 = vmax.f32 %v19863_v23, %v6832_v39  ;;  %v7605_v62 = vsel %vm7138_vm7, %v7604_v47, %v7603_v2  ;;  %v10536_v11 = vunpack.i.h.bf16 %v17740_v4  ;;  %7884 = vmatpush.bf16.msrb.mxu3 %v9466_v30  ;;  %v19865_v47 = vld [vmem:[#allocation195_spill] sm:$0xff] }
 0x9ad   :  { %v7442_v8 = vrot.slane %v7428_v37, 5  ;;  %v7706_v34 = vpack.c.bf16 %v7002_v14, %v7002_v14  ;;  %v7607_v26 = vsel %vm7141_vm10, %v7606_v53, %v7605_v62  ;;  %v7586_v61 = vsel %vm7130_vm4, %v7585_v32, %v7584_v18 }
 0x9ae   :  { %v7377_v9 = vpack.c.bf16 %v7011_v54, %v7011_v54  ;;  %v7379_v35 = vpack.c.bf16 %v7017_v25, %v7017_v25  ;;  %v6824_v45 = vsel %vm6815_vm0, %v10536_v11, %v10481_v38  ;;  %v10550_v50 = vunpack.i.l.bf16 %v17816_v36  ;;  %7869 = vmatpush.bf16.msra.mxu1 %v9460_v55  ;;  %v9459_v38 = vld [vmem:[%s17967_s5 + $0x148] sm:$0xff] }
 0x9af   :  { %v7443_v31 = vsel %vm7130_vm4, %v7442_v8, %v17745_v41  ;;  %v7759_v20 = vunpack.c.l.b16 %v7706_v34  ;;  %v7609_v39 = vpack.c.b16 %v7607_v26, %v7607_v26  ;;  %v7001_v14 = vmax.f32 %v19866_v51, %v6824_v45  ;;  %v19870_v26 = vld [vmem:[#allocation135_spill] sm:$0xff] }
 0x9b0   :  { %v10514_v12 = vpop.permute.xlu0 %10513  ;;  %v7430_v52 = vunpack.c.l.b16 %v7377_v9  ;;  %v7432_v28 = vunpack.c.l.b16 %v7379_v35  ;;  %v6827_v32 = vsel %vm6815_vm0, %v10541_v46, %v10491_v21  ;;  %v19867_v21 = vld [vmem:[#allocation183_spill] sm:$0xff]  ;;  %v10551_v11 = vunpack.i.h.bf16 %v17816_v36 }
 0x9b1   :  { %v10516_v63 = vunpack.i.h.bf16 %v10514_v12  ;;  %v10515_v24 = vunpack.i.l.bf16 %v10514_v12  ;;  %v7786_v58 = vrot.slane %v7759_v20, 6  ;;  %v6989_v46 = vmax.f32 %v19867_v21, %v6818_v29 }
 0x9b2   :  { %v7444_v13 = vrot.slane %v7430_v52, 4  ;;  %v7446_v3 = vrot.slane %v7432_v28, 3  ;;  %v7587_v60 = vsel %vm7132_vm5, %v7430_v52, %v7586_v61  ;;  %v7588_v33 = vrot.slane %v7432_v28, 7  ;;  %7870 = vmatpush.bf16.msra.mxu1 %v9459_v38  ;;  %v19868_v52 = vld [vmem:[#allocation7_spill] sm:$0xff]  ;;  %v19869_v28 = vld [vmem:[#allocation121_spill] sm:$0xff] }
 0x9b3   :  { %v6975_v6 = vsel %vm6960_vm1, %v10510_v44, %v10515_v24  ;;  %v6978_v19 = vsel %vm6960_vm1, %v10520_v27, %v10516_v63  ;;  %v6836_v16 = vsel %vm6815_vm0, %v10550_v50, %v10525_v59  ;;  %v7705_v8 = vpack.c.bf16 %v7001_v14, %v7001_v14 }
 0x9b4   :  { %v7445_v18 = vsel %vm7132_vm5, %v7444_v13, %v7443_v31  ;;  %v7589_v37 = vsel %vm7135_vm6, %v7588_v33, %v7587_v60  ;;  %v7014_v41 = vmax.f32 %v19864_v0, %v6975_v6  ;;  %v7020_v7 = vmax.f32 %v19865_v47, %v6978_v19  ;;  %v19871_v13 = vld [vmem:[#allocation194_spill] sm:$0xff] }
 0x9b5   :  { %v7447_v10 = vsel %vm7135_vm6, %v7446_v3, %v7445_v18  ;;  %v7591_v54 = vsel %vm7138_vm7, %v7590_v43, %v7589_v37  ;;  %v9458_v43 = vld [vmem:[%s17967_s5 + $0x140] sm:$0xff]  ;;  %v7787_v55 = vsel %vm7127_vm3, %v7786_v58, %v17765_v22  ;;  %v7788_v24 = vrot.slane %v17762_v42, 5 }
 0x9b6   :  { %v7710_v23 = vpack.c.bf16 %v7014_v41, %v7014_v41  ;;  %v7712_v25 = vpack.c.bf16 %v7020_v7, %v7020_v7  ;;  %v7593_v2 = vsel %vm7141_vm10, %v7592_v5, %v7591_v54  ;;  %v7449_v53 = vsel %vm7138_vm7, %v7448_v15, %v7447_v10  ;;  %7871 = vmatpush.bf16.msra.mxu1 %v9458_v43  ;;  %v19872_v18 = vld [vmem:[#allocation22_spill] sm:$0xff] }
 0x9b7   :  { %v7608_v62 = vpack.c.b16 %v7593_v2, %v7593_v2  ;;  %v7451_v9 = vsel %vm7141_vm10, %v7450_v49, %v7449_v53  ;;  %v10535_v5 = vunpack.i.l.bf16 %v17740_v4  ;;  %9107 = vmatmul.msk.bf16.vlgmr.msra.gmra.mxu3 %vm4061_vm14, %v7609_v39  ;;  %v7007_v45 = vmax.f32 %v19870_v26, %v6827_v32  ;;  %v19874_v2 = vld [vmem:[#allocation43_spill] sm:$0xff] }
 0x9b8   :  { %v10529_v30 = vpop.permute.xlu0 %10528  ;;  %v7763_v35 = vunpack.c.l.b16 %v7710_v23  ;;  %v7466_v49 = vpack.c.b16 %v7451_v9, %v7451_v9  ;;  %v7765_v34 = vunpack.c.l.b16 %v7712_v25  ;;  %v7701_v61 = vpack.c.bf16 %v6989_v46, %v6989_v46  ;;  %v19873_v23 = vld [vmem:[#allocation190_spill] sm:$0xff] }
 0x9b9   :  { %v10531_v48 = vunpack.i.h.bf16 %v10529_v30  ;;  %v10530_v15 = vunpack.i.l.bf16 %v10529_v30  ;;  %7682 = vmatmul.bf16.vlgmr.msrb.gmra.mxu2 %v7608_v62  ;;  %v6839_v56 = vsel %vm6815_vm0, %v10551_v11, %v10535_v5  ;;  %v7756_v22 = vunpack.c.l.b16 %v7703_v17 }
 0x9ba   :  { %v7790_v29 = vrot.slane %v7763_v35, 4  ;;  %7540 = vmatmul.bf16.vlgmr.msra.gmra.mxu0 %v7466_v49  ;;  %v7025_v3 = vmax.f32 %v19871_v13, %v6836_v16  ;;  %v7789_v60 = vsel %vm7130_vm4, %v7788_v24, %v7787_v55  ;;  %v7792_v33 = vrot.slane %v7765_v34, 3  ;;  %v9472_v13 = vld [vmem:[%s17970_s7 + $0x20] sm:$0xff] }
 0x9bb   :  { %v6981_v4 = vsel %vm6960_vm1, %v10525_v59, %v10530_v15  ;;  %v6984_v12 = vsel %vm6960_vm1, %v10535_v5, %v10531_v48  ;;  %v7758_v31 = vunpack.c.l.b16 %v7705_v8  ;;  %v7707_v38 = vpack.c.bf16 %v7007_v45, %v7007_v45 }
 0x9bc   :  { %v7026_v36 = vmax.f32 %v19868_v52, %v6981_v4  ;;  %v7032_v63 = vmax.f32 %v19869_v28, %v6984_v12  ;;  %v7791_v20 = vsel %vm7132_vm5, %v7790_v29, %v7789_v60  ;;  %v7031_v37 = vmax.f32 %v19872_v18, %v6839_v56  ;;  %v7912_v28 = vld [vmem:[%s17970_s7 + $0x38] sm:$0xf] }
 0x9bd   :  { %v7754_v47 = vunpack.c.l.b16 %v7701_v61  ;;  %v7713_v17 = vpack.c.bf16 %v7025_v3, %v7025_v3  ;;  %v7793_v39 = vsel %vm7135_vm6, %v7792_v33, %v7791_v20  ;;  %v7772_v10 = vrot.slane %v7758_v31, 6  ;;  %v9474_v61 = vld [vmem:[%s17970_s7 + $0x30] sm:$0xff]  ;;  %v9471_v33 = vld [vmem:[%s17970_s7 + $0x18] sm:$0xff] }
 0x9be   :  { %v7714_v59 = vpack.c.bf16 %v7026_v36, %v7026_v36  ;;  %v7716_v50 = vpack.c.bf16 %v7032_v63, %v7032_v63  ;;  %v7770_v32 = vrot.slane %v7756_v22, 7  ;;  %v7760_v58 = vunpack.c.l.b16 %v7707_v38  ;;  %v9473_v22 = vld [vmem:[%s17970_s7 + $0x28] sm:$0xff]  ;;  %v9470_v20 = vld [vmem:[%s17970_s7 + $0x10] sm:$0xff] }
 0x9bf   :  { %v7715_v30 = vpack.c.bf16 %v7031_v37, %v7031_v37  ;;  %v7946_v24 = vunpack.c.l.b16 %v7912_v28 }
 0x9c0   :  { %v7767_v42 = vunpack.c.l.b16 %v7714_v59  ;;  %v7769_v6 = vunpack.c.l.b16 %v7716_v50  ;;  %v10544_v19 = vpop.permute.xlu0 %10543  ;;  %v7774_v48 = vrot.slane %v7760_v58, 5 }
 0x9c1   :  { %v10546_v0 = vunpack.i.h.bf16 %v10544_v19  ;;  %v10545_v41 = vunpack.i.l.bf16 %v10544_v19  ;;  %v7768_v15 = vunpack.c.l.b16 %v7715_v30  ;;  %v7954_v26 = vpack.c.b16 %v7946_v24, %v7946_v24  ;;  %v7993_v19 = vld [vmem:[%s17971_s9 + $0x28] sm:$0x3] }
 0x9c2   :  { %v7794_v7 = vrot.slane %v7767_v42, 2  ;;  %v7796_v57 = vrot.slane %v7769_v6, 1  ;;  %v9469_v6 = vld [vmem:[%s17970_s7 + $0x8] sm:$0xff]  ;;  %v8019_v38 = vunpack.c.l.b16 %v7993_v19 }
 0x9c3   :  { %v6830_v51 = vsel %vm6815_vm0, %v10545_v41, %v10510_v44  ;;  %v6833_v14 = vsel %vm6815_vm0, %v10546_v0, %v10520_v27  ;;  %v7771_v44 = vsel %vm7124_vm2, %v7770_v32, %v7754_v47  ;;  %v7766_v27 = vunpack.c.l.b16 %v7713_v17  ;;  %v9468_v41 = vld [vmem:[%s17970_s7] sm:$0xff] }
 0x9c4   :  { %v7795_v54 = vsel %vm7138_vm7, %v7794_v7, %v7793_v39  ;;  %v7013_v25 = vmax.f32 %v19873_v23, %v6830_v51  ;;  %v7019_v53 = vmax.f32 %v19874_v2, %v6833_v14  ;;  %v7773_v1 = vsel %vm7127_vm3, %v7772_v10, %v7771_v44  ;;  %v9479_v7 = vld [vmem:[%s17971_s9 + $0x20] sm:$0xff]  ;;  %v9478_v39 = vld [vmem:[%s17971_s9 + $0x18] sm:$0xff]  ;;  %v9477_v10 = vld [vmem:[%s17971_s9 + $0x10] sm:$0xff] }
 0x9c5   :  { %v7797_v62 = vsel %vm7141_vm10, %v7796_v57, %v7795_v54  ;;  %v7775_v11 = vsel %vm7130_vm4, %v7774_v48, %v7773_v1  ;;  %v7780_v16 = vrot.slane %v7766_v27, 2  ;;  %v7782_v8 = vrot.slane %v7768_v15, 1  ;;  %v9475_v48 = vld [vmem:[%s17971_s9] sm:$0xff] }
 0x9c6   :  { %v7799_v9 = vpack.c.b16 %v7797_v62, %v7797_v62  ;;  %v7709_v40 = vpack.c.bf16 %v7013_v25, %v7013_v25  ;;  %v7711_v43 = vpack.c.bf16 %v7019_v53, %v7019_v53  ;;  %v7966_v45 = vsel %vm2954_vm9, %v7954_v26, 0  ;;  %v10553_v15 = vld [vmem:[%s17969_s8] ss:$0 sm:$0xff] }
 0x9c7   :  { %7968 = vmatpush.bf16.msrb.mxu0 %v7966_v45  ;;  %v8025_v0 = vpack.c.b16 %v8019_v38, %v8019_v38 }
 0x9c8   :  { %v7762_v5 = vunpack.c.l.b16 %v7709_v40  ;;  %v7764_v35 = vunpack.c.l.b16 %v7711_v43  ;;  %9168 = vmatmul.msk.bf16.vlgmr.msrb.gmra.mxu3 %vm4061_vm14, %v7799_v9  ;;  %v10552_v9 = vld [vmem:[%s17968_s6] ss:$0 sm:$0xff] }
 0x9c9   :  { %v8036_v47 = vsel %vm3087_vm8, %v8025_v0, 0  ;;  %vm8031_vm8 = vcmask 687104  }
 0x9ca   :  { %v7776_v21 = vrot.slane %v7762_v5, 4  ;;  %v7778_v46 = vrot.slane %v7764_v35, 3  ;;  %8040 = vmatpush.bf16.msra.mxu2 %v8036_v47  ;;  %v9476_v35 = vld [vmem:[%s17971_s9 + $0x8] sm:$0xff] }
 0x9cb   :  { %7969 = vmatpush.bf16.msrb.mxu0 %v9474_v61 }
 0x9cc   :  { %v7777_v49 = vsel %vm7132_vm5, %v7776_v21, %v7775_v11 }
 0x9cd   :  { %v7779_v34 = vsel %vm7135_vm6, %v7778_v46, %v7777_v49 }
 0x9ce   :  { %v7781_v4 = vsel %vm7138_vm7, %v7780_v16, %v7779_v34  ;;  %8041 = vmatpush.bf16.msra.mxu2 %v9479_v7 }
 0x9cf   :  { %v7783_v12 = vsel %vm7141_vm10, %v7782_v8, %v7781_v4  ;;  %7970 = vmatpush.bf16.msrb.mxu0 %v9473_v22  ;;  %v10554_v8 = vld [vmem:[%s17972_s10] ss:$0 sm:$0xff] }
 0x9d0   :  { %v7798_v55 = vpack.c.b16 %v7783_v12, %v7783_v12 }
 0x9d2   :  { %7872 = vmatmul.bf16.vlgmr.msra.gmra.mxu1 %v7798_v55  ;;  %8042 = vmatpush.bf16.msra.mxu2 %v9478_v39 }
 0x9d3   :  { %7971 = vmatpush.bf16.msrb.mxu0 %v9472_v13 }
 0x9d6   :  { %8043 = vmatpush.bf16.msra.mxu2 %v9477_v10 }
 0x9d7   :  { %7972 = vmatpush.bf16.msrb.mxu0 %v9471_v33 }
 0x9da   :  { %8044 = vmatpush.bf16.msra.mxu2 %v9476_v35 }
 0x9db   :  { %7973 = vmatpush.bf16.msrb.mxu0 %v9470_v20 }
 0x9de   :  { %8045 = vmatpush.bf16.msra.mxu2 %v9475_v48 }
 0x9df   :  { %7974 = vmatpush.bf16.msrb.mxu0 %v9469_v6 }
 0x9e3   :  { %7975 = vmatpush.bf16.msrb.mxu0 %v9468_v41 }
 0xa14   :  { %v7245_v29 = vpop.f32.mrf.mxu1 }
 0xa1a   :  { %v7232_v52 = vpop.f32.mrf.mxu3 }
 0xa1b   :  { %v7352_v63 = vpop.f32.mrf.mxu2  ;;  %v7246_v14 = vadd.f32 %v7245_v29, %v7232_v52 }
 0xa1c   :  { %v7247_v36 = vpop.f32.mrf.mxu1 }
 0xa1d   :  { %v7353_v54 = vadd.f32 %v7352_v63, %v7246_v14 }
 0xa22   :  { %v7234_v56 = vpop.f32.mrf.mxu3 }
 0xa23   :  { %v7354_v59 = vpop.f32.mrf.mxu2 }
 0xa25   :  { %v7554_v50 = vpop.f32.mrf.mxu1 }
 0xa2a   :  { %v7365_v3 = vpop.f32.mrf.mxu3 }
 0xa2b   :  { %v7366_v25 = vadd.f32 %v7365_v3, %v7353_v54 }
 0xa2d   :  { %v7556_v60 = vpop.f32.mrf.mxu1 }
 0xa32   :  { %v7367_v31 = vpop.f32.mrf.mxu3 }
 0xa37   :  { %v7541_v42 = vpop.f32.mrf.mxu0 }
 0xa38   :  { %v7555_v23 = vadd.f32 %v7554_v50, %v7541_v42 }
 0xa3a   :  { %v7696_v18 = vpop.f32.mrf.mxu3  ;;  %v7558_v32 = vadd.f32 %v7555_v23, %v7366_v25 }
 0xa3c   :  { %v7683_v37 = vpop.f32.mrf.mxu2 }
 0xa3d   :  { %v7697_v2 = vadd.f32 %v7696_v18, %v7683_v37 }
 0xa3f   :  { %v7543_v57 = vpop.f32.mrf.mxu0  ;;  %v7700_v30 = vadd.f32 %v7697_v2, %v7558_v32 }
 0xa42   :  { %v7698_v17 = vpop.f32.mrf.mxu3 }
 0xa44   :  { %v7685_v51 = vpop.f32.mrf.mxu2 }
 0xa4b   :  { %v7886_v53 = vpop.f32.mrf.mxu3 }
 0xa4f   :  { %v7873_v58 = vpop.f32.mrf.mxu1 }
 0xa50   :  { %v7887_v62 = vadd.f32 %v7886_v53, %v7873_v58 }
 0xa52   :  { %v7890_v40 = vadd.f32 %v7887_v62, %v7700_v30 }
 0xa53   :  { %v7888_v44 = vpop.f32.mrf.mxu3 }
 0xa54   :  { %v7895_v43 = vadd.f32 %v10552_v9, %v7890_v40 }
 0xa56   :  { %v7896_v1 = vmax.f32 %v7895_v43, 0.0 }
 0xa57   :  { %v7875_v27 = vpop.f32.mrf.mxu1 }
 0xa58   :  { %v7897_v5 = vpack.c.bf16 %v7896_v1, %v7896_v1 }
 0xa5a   :  { %9197 = vmatmul.msk.bf16.vlgmr.msrb.gmra.mxu0 %vm3804_vm12, %v7897_v5 }
 0xad7   :  { %v7977_v21 = vpop.f32.mrf.mxu0 }
 0xad8   :  { %v7978_v46 = vadd.f32 %v10553_v15, %v7977_v21 }
 0xada   :  { %v7981_v11 = vmax.f32 %v7978_v46, 0.0 }
 0xadc   :  { %v7982_v16 = vpack.c.bf16 %v7981_v11, %v7981_v11 }
 0xade   :  { %9218 = vmatmul.msk.bf16.vlgmr.msra.gmra.mxu2 %vm8031_vm8, %v7982_v16 }
 0xadf   :  { %v7979_v49 = vpop.f32.mrf.mxu0 }
 0xb61   :  { %v8047_v34 = vpop.f32.mrf.mxu2 }
 0xb62   :  { %v8048_v4 = vadd.f32 %v10554_v8, %v8047_v34 }
 0xb64   :  { %8051 = vst [vmem:[%s17973_s11] sm:$0xff] %v8048_v4 }
 0xb69   :  { %v8049_v12 = vpop.f32.mrf.mxu2 }

</bundles_post_ra>
